<compile_context>
chip_gen: v7x
topology: tpu7x:2x2x1
jax: 0.10.0
libtpu: 0.0.40
codegen_flags: <defaults>
</compile_context>

<pallas_src>
import functools

import jax
import jax.numpy as jnp
from jax.experimental import pallas as pl
from jax.experimental.pallas import tpu as pltpu
import numpy as np


# ----------------------------------------------------------------------------
# Static geometry of the conv/pool pipeline
# ----------------------------------------------------------------------------
def conv3d_size_out(size, kernel_size=3, stride=2):
    return (size - (kernel_size - 1) - 1) // stride + 1


def _geometry(h, w, d):
    # depth: kernel 1 / stride 2 three times -> pure subsampling
    d1 = conv3d_size_out(d, 1, 2)
    d2 = conv3d_size_out(d1, 1, 2)
    d3 = conv3d_size_out(d2, 1, 2)
    h1, w1 = conv3d_size_out(h), conv3d_size_out(w)       # conv1
    hp1, wp1 = h1 - 1, w1 - 1                              # maxpool (1,2,2) s1
    h2, w2 = conv3d_size_out(hp1), conv3d_size_out(wp1)    # conv2
    hp2, wp2 = h2 - 1, w2 - 1                              # maxpool (1,2,2) s1
    h3, w3 = conv3d_size_out(hp2), conv3d_size_out(wp2)    # conv3
    return dict(d3=d3, h1=h1, w1=w1, hp1=hp1, wp1=wp1,
                h2=h2, w2=w2, hp2=hp2, wp2=wp2, h3=h3, w3=w3)


# ----------------------------------------------------------------------------
# One-time parameter preprocessing (outside the jit hot path)
# ----------------------------------------------------------------------------
def _band_matrices(wt, w_in, ow):
    """wt: PyTorch Conv3d weight (Cout, Cin, 1, 3, 3).
    Returns band (3, w_in*Cin, ow*Cout) so that in the lane-folded layout the
    stride-2 3x3 conv is:  out = sum_kh rows(kh, kh+2, ...) @ band[kh]."""
    cout, cin = wt.shape[0], wt.shape[1]
    wk = jnp.transpose(wt[:, :, 0], (2, 3, 1, 0))               # (kh, kw, Cin, Cout)
    diff = jnp.arange(w_in)[:, None] - 2 * jnp.arange(ow)[None, :]
    sel = (diff[None, :, :] == jnp.arange(3)[:, None, None]).astype(wt.dtype)
    m = jnp.einsum('kwo,hkcd->hwcod', sel, wk)                  # (kh, w_in, Cin, ow, Cout)
    return m.reshape(3, w_in * cin, ow * cout)


def _row_select(h_in, oh):
    """One-hot (3, oh, h_in): S[kh] picks input rows kh, kh+2, ..., kh+2*(oh-1)."""
    r = jnp.arange(oh)[:, None]
    cols = jnp.arange(h_in)[None, :]
    return jnp.stack([(cols == (2 * r + kh)).astype(jnp.float32) for kh in range(3)])


def prepare_params(params, h, w, d=1):
    """Builds band matrices, row-selection matrices, lane-tiled biases and the
    permuted head weight.  Call once, outside jit."""
    g = _geometry(h, w, d)
    band1 = _band_matrices(params["conv1_w"], w, g["w1"])
    band2 = _band_matrices(params["conv2_w"], g["wp1"], g["w2"])
    band3 = _band_matrices(params["conv3_w"], g["wp2"], g["w3"])
    sel1 = _row_select(h, g["h1"])
    sel2 = _row_select(g["hp1"], g["h2"])
    sel3 = _row_select(g["hp2"], g["h3"])
    bias1 = jnp.tile(params["conv1_b"], g["w1"])[None, :]
    bias2 = jnp.tile(params["conv2_b"], g["w2"])[None, :]
    bias3 = jnp.tile(params["conv3_b"], g["w3"])[None, :]

    # head: PyTorch flattens (C, D, H, W); the kernel produces (d, h, w*C + c).
    c3o = params["conv3_w"].shape[0]
    o, f = params["head_w"].shape
    f_need = c3o * g["d3"] * g["h3"] * g["w3"]
    assert f == f_need, (f, f_need)
    hw = params["head_w"].reshape(o, c3o, g["d3"], g["h3"], g["w3"])
    hw = jnp.transpose(hw, (2, 3, 4, 1, 0)).reshape(f, o)       # rows in (d,h,w,c) order

    return {"sel1": sel1, "band1": band1, "bias1": bias1,
            "sel2": sel2, "band2": band2, "bias2": bias2,
            "sel3": sel3, "band3": band3, "bias3": bias3,
            "head_w": hw, "head_b": params["head_b"][None, :]}


# ----------------------------------------------------------------------------
# The fused kernel: conv1+relu -> pool -> conv2+relu -> pool -> conv3+relu
#                   -> head -> softmax, all in VMEM.
# ----------------------------------------------------------------------------
def _fused_kernel(x_ref, s1_ref, m1_ref, b1_ref, s2_ref, m2_ref, b2_ref,
                  s3_ref, m3_ref, b3_ref, wh_ref, bh_ref, out_ref,
                  *, batch, d3, g, c1, c2, c3):

    def conv_relu(a, s_ref, m_ref, bias_ref):
        # a: (H_in, W_in*Cin).  out = relu(bias + sum_kh (S[kh] @ a) @ band[kh])
        acc = bias_ref[...]
        for kh in range(3):
            rows = jnp.dot(s_ref[kh], a, preferred_element_type=jnp.float32)
            acc = acc + jnp.dot(rows, m_ref[kh], preferred_element_type=jnp.float32)
        return jnp.maximum(acc, 0.0)

    def pool_2x2_s1(y, c):
        # y: (H, W*c).  2x2/stride-1 max pool: H window via sublane shift,
        # W window via a c-lane shift.
        ph, l = y.shape[0] - 1, y.shape[1]
        t = jnp.maximum(y[:ph, :], y[1:ph + 1, :])
        return jnp.maximum(t[:, :l - c], t[:, c:])

    blk = g["w3"] * c3
    logits = [None] * batch
    for n in range(batch * d3):
        b, d = divmod(n, d3)
        a0 = x_ref[n]                                           # (H, W*Cin)
        y = conv_relu(a0, s1_ref, m1_ref, b1_ref)               # (h1, w1*c1)
        y = pool_2x2_s1(y, c1)                                  # (hp1, wp1*c1)
        y = conv_relu(y, s2_ref, m2_ref, b2_ref)                # (h2, w2*c2)
        y = pool_2x2_s1(y, c2)                                  # (hp2, wp2*c2)
        y = conv_relu(y, s3_ref, m3_ref, b3_ref)                # (h3, w3*c3)
        # head contribution of this (batch, depth) slice, one h-row at a time
        for hh in range(g["h3"]):
            w_rows = wh_ref[pl.ds((d * g["h3"] + hh) * blk, blk), :]   # (blk, O)
            part = jnp.dot(y[hh:hh + 1, :], w_rows,
                           preferred_element_type=jnp.float32)         # (1, O)
            logits[b] = part if logits[b] is None else logits[b] + part

    for b in range(batch):
        lg = logits[b] + bh_ref[...]
        lg = lg - jnp.max(lg, axis=-1, keepdims=True)
        e = jnp.exp(lg)
        denom = jnp.sum(e, axis=-1, keepdims=True)
        out_ref[pl.ds(b, 1), :] = e * pl.reciprocal(denom, approx=True)


def _full_spec(a):
    nd = a.ndim
    return pl.BlockSpec(a.shape, lambda i, _nd=nd: (0,) * _nd)


def dqn_net_forward(x, prepped):
    """x: (B, 3, D, H, W) float32, PyTorch NCDHW semantics."""
    B, C, D, H, W = x.shape
    g = _geometry(H, W, D)
    d3 = g["d3"]
    c1 = prepped["bias1"].shape[1] // g["w1"]
    c2 = prepped["bias2"].shape[1] // g["w2"]
    c3 = prepped["bias3"].shape[1] // g["w3"]
    o = prepped["head_b"].shape[1]
    n_img = B * d3

    # Depth axis: conv kernel depth 1 / stride 2, three times -> every 8th slice.
    x = x[:, :, 0:8 * (d3 - 1) + 1:8]                           # (B, C, d3, H, W)
    # Single layout transform: channels-last, W and C folded into the lane dim.
    x = jnp.transpose(x, (0, 2, 3, 4, 1)).reshape(n_img, H, W * C)

    kernel = functools.partial(_fused_kernel, batch=B, d3=d3, g=g,
                               c1=c1, c2=c2, c3=c3)
    args = (x,
            prepped["sel1"], prepped["band1"], prepped["bias1"],
            prepped["sel2"], prepped["band2"], prepped["bias2"],
            prepped["sel3"], prepped["band3"], prepped["bias3"],
            prepped["head_w"], prepped["head_b"])

    return pl.pallas_call(
        kernel,
        out_shape=jax.ShapeDtypeStruct((B, o), jnp.float32),
        grid=(1,),
        in_specs=[_full_spec(a) for a in args],
        out_specs=pl.BlockSpec((B, o), lambda i: (0, 0)),
        compiler_params=pltpu.CompilerParams(dimension_semantics=("arbitrary",)),
    )(*args)


# ----------------------------------------------------------------------------
# Pure-JAX reference (correctness check)
# ----------------------------------------------------------------------------
def dqn_net_reference(x, params):
    def conv3d(x, w, b):
        y = jax.lax.conv_general_dilated(
            x, w, window_strides=(2, 2, 2), padding="VALID",
            dimension_numbers=("NCDHW", "OIDHW", "NCDHW"))
        return jax.nn.relu(y + b.reshape(1, -1, 1, 1, 1))

    def maxpool(x):
        return jax.lax.reduce_window(
            x, -jnp.inf, jax.lax.max,
            window_dimensions=(1, 1, 1, 2, 2),
            window_strides=(1, 1, 1, 1, 1), padding="VALID")

    x = maxpool(conv3d(x, params["conv1_w"], params["conv1_b"]))
    x = maxpool(conv3d(x, params["conv2_w"], params["conv2_b"]))
    x = conv3d(x, params["conv3_w"], params["conv3_b"])
    flat = x.reshape(x.shape[0], -1)
    logits = flat @ params["head_w"].T + params["head_b"]
    return jax.nn.softmax(logits, axis=1)


# ----------------------------------------------------------------------------
def init_params(key, h, w, outputs):
    convw = conv3d_size_out(conv3d_size_out(conv3d_size_out(conv3d_size_out(w))),
                            kernel_size=2, stride=1)
    convh = conv3d_size_out(conv3d_size_out(conv3d_size_out(conv3d_size_out(h))),
                            kernel_size=2, stride=1)
    linear_input_size = convw * convh * 32
    ks = jax.random.split(key, 8)

    def u(k, shape, fan_in):
        bound = 1.0 / np.sqrt(fan_in)
        return jax.random.uniform(k, shape, jnp.float32, -bound, bound)

    params = {
        "conv1_w": u(ks[0], (32, 3, 1, 3, 3), 3 * 9),
        "conv1_b": u(ks[1], (32,), 3 * 9),
        "conv2_w": u(ks[2], (64, 32, 1, 3, 3), 32 * 9),
        "conv2_b": u(ks[3], (64,), 32 * 9),
        "conv3_w": u(ks[4], (32, 64, 1, 3, 3), 64 * 9),
        "conv3_b": u(ks[5], (32,), 64 * 9),
        "head_w": u(ks[6], (outputs, linear_input_size), linear_input_size),
        "head_b": u(ks[7], (outputs,), linear_input_size),
    }
    return params, linear_input_size


if __name__ == "__main__":
    B, C, D, H, W = 2, 3, 1, 32, 32
    OUTPUTS = 4

    key = jax.random.PRNGKey(0)
    k_x, k_p = jax.random.split(key)
    x = jax.random.normal(k_x, (B, C, D, H, W), jnp.float32)
    params, _ = init_params(k_p, H, W, OUTPUTS)

    prepped = prepare_params(params, H, W, D)   # one-time weight preprocessing
    fwd = jax.jit(dqn_net_forward)
    out = jax.block_until_ready(fwd(x, prepped))

    ref = jax.block_until_ready(dqn_net_reference(x, params))
    assert out.shape == (B, OUTPUTS), out.shape
    # tolerance covers the approximate (EUP) reciprocal in the softmax epilogue
    np.testing.assert_allclose(np.asarray(out), np.asarray(ref), rtol=5e-3, atol=5e-3)
    np.testing.assert_allclose(np.asarray(out).sum(axis=1), 1.0, atol=5e-3)

    print("KERNEL_OK")
</pallas_src>

<mosaic_0001>
module attributes {stable_mosaic.version = 11 : i64} {
  func.func @_fused_kernel(%arg0: i32, %arg1: memref<2x32x96xf32, #tpu.memory_space<vmem>>, %arg2: memref<3x15x32xf32, #tpu.memory_space<vmem>>, %arg3: memref<3x96x480xf32, #tpu.memory_space<vmem>>, %arg4: memref<1x480xf32, #tpu.memory_space<vmem>>, %arg5: memref<3x6x14xf32, #tpu.memory_space<vmem>>, %arg6: memref<3x448x384xf32, #tpu.memory_space<vmem>>, %arg7: memref<1x384xf32, #tpu.memory_space<vmem>>, %arg8: memref<3x2x5xf32, #tpu.memory_space<vmem>>, %arg9: memref<3x320x64xf32, #tpu.memory_space<vmem>>, %arg10: memref<1x64xf32, #tpu.memory_space<vmem>>, %arg11: memref<128x4xf32, #tpu.memory_space<vmem>>, %arg12: memref<1x4xf32, #tpu.memory_space<vmem>>, %arg13: memref<2x4xf32, #tpu.memory_space<vmem>>) attributes {dimension_semantics = [#tpu.dimension_semantics<arbitrary>], iteration_bounds = array<i64: 1>, scalar_prefetch = 0 : i64, scratch_operands = 0 : i64, tpu.core_type = #tpu.core_type<tc>, window_params = [{pipeline_mode = #tpu.pipeline_mode<synchronous>, transform_indices = @transform_0, window_bounds = array<i64: 2, 32, 96>}, {pipeline_mode = #tpu.pipeline_mode<synchronous>, transform_indices = @transform_1, window_bounds = array<i64: 3, 15, 32>}, {pipeline_mode = #tpu.pipeline_mode<synchronous>, transform_indices = @transform_2, window_bounds = array<i64: 3, 96, 480>}, {pipeline_mode = #tpu.pipeline_mode<synchronous>, transform_indices = @transform_3, window_bounds = array<i64: 1, 480>}, {pipeline_mode = #tpu.pipeline_mode<synchronous>, transform_indices = @transform_4, window_bounds = array<i64: 3, 6, 14>}, {pipeline_mode = #tpu.pipeline_mode<synchronous>, transform_indices = @transform_5, window_bounds = array<i64: 3, 448, 384>}, {pipeline_mode = #tpu.pipeline_mode<synchronous>, transform_indices = @transform_6, window_bounds = array<i64: 1, 384>}, {pipeline_mode = #tpu.pipeline_mode<synchronous>, transform_indices = @transform_7, window_bounds = array<i64: 3, 2, 5>}, {pipeline_mode = #tpu.pipeline_mode<synchronous>, transform_indices = @transform_8, window_bounds = array<i64: 3, 320, 64>}, {pipeline_mode = #tpu.pipeline_mode<synchronous>, transform_indices = @transform_9, window_bounds = array<i64: 1, 64>}, {pipeline_mode = #tpu.pipeline_mode<synchronous>, transform_indices = @transform_10, window_bounds = array<i64: 128, 4>}, {pipeline_mode = #tpu.pipeline_mode<synchronous>, transform_indices = @transform_11, window_bounds = array<i64: 1, 4>}, {pipeline_mode = #tpu.pipeline_mode<synchronous>, transform_indices = @transform_12, window_bounds = array<i64: 2, 4>}]} {
    %c0 = arith.constant 0 : index
    %c0_0 = arith.constant 0 : index
    %c0_1 = arith.constant 0 : index
    %0 = vector.load %arg1[%c0, %c0_0, %c0_1] : memref<2x32x96xf32, #tpu.memory_space<vmem>>, vector<1x32x96xf32>
    %1 = vector.shape_cast %0 : vector<1x32x96xf32> to vector<32x96xf32>
    %c0_2 = arith.constant 0 : index
    %c0_3 = arith.constant 0 : index
    %2 = vector.load %arg4[%c0_2, %c0_3] : memref<1x480xf32, #tpu.memory_space<vmem>>, vector<1x480xf32>
    %c0_4 = arith.constant 0 : index
    %c0_5 = arith.constant 0 : index
    %c0_6 = arith.constant 0 : index
    %3 = vector.load %arg2[%c0_4, %c0_5, %c0_6] : memref<3x15x32xf32, #tpu.memory_space<vmem>>, vector<1x15x32xf32>
    %4 = vector.shape_cast %3 : vector<1x15x32xf32> to vector<15x32xf32>
    %cst = arith.constant dense<0.000000e+00> : vector<15x96xf32>
    %5 = tpu.matmul %4, %1, %cst {dimension_numbers = #tpu.dot_dimension_numbers<[1], [0], [0], [1], [0, 0, 1, 1], [], []>} : vector<15x32xf32>, vector<32x96xf32>, vector<15x96xf32> -> vector<15x96xf32>
    %c0_7 = arith.constant 0 : index
    %c0_8 = arith.constant 0 : index
    %c0_9 = arith.constant 0 : index
    %6 = vector.load %arg3[%c0_7, %c0_8, %c0_9] : memref<3x96x480xf32, #tpu.memory_space<vmem>>, vector<1x96x480xf32>
    %7 = vector.shape_cast %6 : vector<1x96x480xf32> to vector<96x480xf32>
    %cst_10 = arith.constant dense<0.000000e+00> : vector<15x480xf32>
    %8 = tpu.matmul %5, %7, %cst_10 {dimension_numbers = #tpu.dot_dimension_numbers<[1], [0], [0], [1], [0, 0, 1, 1], [], []>} : vector<15x96xf32>, vector<96x480xf32>, vector<15x480xf32> -> vector<15x480xf32>
    %9 = vector.broadcast %2 : vector<1x480xf32> to vector<15x480xf32>
    %10 = arith.addf %9, %8 : vector<15x480xf32>
    %c1 = arith.constant 1 : index
    %c0_11 = arith.constant 0 : index
    %c0_12 = arith.constant 0 : index
    %11 = vector.load %arg2[%c1, %c0_11, %c0_12] : memref<3x15x32xf32, #tpu.memory_space<vmem>>, vector<1x15x32xf32>
    %12 = vector.shape_cast %11 : vector<1x15x32xf32> to vector<15x32xf32>
    %cst_13 = arith.constant dense<0.000000e+00> : vector<15x96xf32>
    %13 = tpu.matmul %12, %1, %cst_13 {dimension_numbers = #tpu.dot_dimension_numbers<[1], [0], [0], [1], [0, 0, 1, 1], [], []>} : vector<15x32xf32>, vector<32x96xf32>, vector<15x96xf32> -> vector<15x96xf32>
    %c1_14 = arith.constant 1 : index
    %c0_15 = arith.constant 0 : index
    %c0_16 = arith.constant 0 : index
    %14 = vector.load %arg3[%c1_14, %c0_15, %c0_16] : memref<3x96x480xf32, #tpu.memory_space<vmem>>, vector<1x96x480xf32>
    %15 = vector.shape_cast %14 : vector<1x96x480xf32> to vector<96x480xf32>
    %cst_17 = arith.constant dense<0.000000e+00> : vector<15x480xf32>
    %16 = tpu.matmul %13, %15, %cst_17 {dimension_numbers = #tpu.dot_dimension_numbers<[1], [0], [0], [1], [0, 0, 1, 1], [], []>} : vector<15x96xf32>, vector<96x480xf32>, vector<15x480xf32> -> vector<15x480xf32>
    %17 = arith.addf %10, %16 : vector<15x480xf32>
    %c2 = arith.constant 2 : index
    %c0_18 = arith.constant 0 : index
    %c0_19 = arith.constant 0 : index
    %18 = vector.load %arg2[%c2, %c0_18, %c0_19] : memref<3x15x32xf32, #tpu.memory_space<vmem>>, vector<1x15x32xf32>
    %19 = vector.shape_cast %18 : vector<1x15x32xf32> to vector<15x32xf32>
    %cst_20 = arith.constant dense<0.000000e+00> : vector<15x96xf32>
    %20 = tpu.matmul %19, %1, %cst_20 {dimension_numbers = #tpu.dot_dimension_numbers<[1], [0], [0], [1], [0, 0, 1, 1], [], []>} : vector<15x32xf32>, vector<32x96xf32>, vector<15x96xf32> -> vector<15x96xf32>
    %c2_21 = arith.constant 2 : index
    %c0_22 = arith.constant 0 : index
    %c0_23 = arith.constant 0 : index
    %21 = vector.load %arg3[%c2_21, %c0_22, %c0_23] : memref<3x96x480xf32, #tpu.memory_space<vmem>>, vector<1x96x480xf32>
    %22 = vector.shape_cast %21 : vector<1x96x480xf32> to vector<96x480xf32>
    %cst_24 = arith.constant dense<0.000000e+00> : vector<15x480xf32>
    %23 = tpu.matmul %20, %22, %cst_24 {dimension_numbers = #tpu.dot_dimension_numbers<[1], [0], [0], [1], [0, 0, 1, 1], [], []>} : vector<15x96xf32>, vector<96x480xf32>, vector<15x480xf32> -> vector<15x480xf32>
    %24 = arith.addf %17, %23 : vector<15x480xf32>
    %cst_25 = arith.constant 0.000000e+00 : f32
    %25 = vector.broadcast %cst_25 : f32 to vector<15x480xf32>
    %26 = arith.maximumf %24, %25 : vector<15x480xf32>
    %27 = vector.extract_strided_slice %26 {offsets = [0, 0], sizes = [14, 480], strides = [1, 1]} : vector<15x480xf32> to vector<14x480xf32>
    %28 = vector.extract_strided_slice %26 {offsets = [1, 0], sizes = [14, 480], strides = [1, 1]} : vector<15x480xf32> to vector<14x480xf32>
    %29 = arith.maximumf %27, %28 : vector<14x480xf32>
    %30 = vector.extract_strided_slice %29 {offsets = [0, 0], sizes = [14, 448], strides = [1, 1]} : vector<14x480xf32> to vector<14x448xf32>
    %31 = vector.extract_strided_slice %29 {offsets = [0, 32], sizes = [14, 448], strides = [1, 1]} : vector<14x480xf32> to vector<14x448xf32>
    %32 = arith.maximumf %30, %31 : vector<14x448xf32>
    %c0_26 = arith.constant 0 : index
    %c0_27 = arith.constant 0 : index
    %33 = vector.load %arg7[%c0_26, %c0_27] : memref<1x384xf32, #tpu.memory_space<vmem>>, vector<1x384xf32>
    %c0_28 = arith.constant 0 : index
    %c0_29 = arith.constant 0 : index
    %c0_30 = arith.constant 0 : index
    %34 = vector.load %arg5[%c0_28, %c0_29, %c0_30] : memref<3x6x14xf32, #tpu.memory_space<vmem>>, vector<1x6x14xf32>
    %35 = vector.shape_cast %34 : vector<1x6x14xf32> to vector<6x14xf32>
    %cst_31 = arith.constant dense<0.000000e+00> : vector<6x448xf32>
    %36 = tpu.matmul %35, %32, %cst_31 {dimension_numbers = #tpu.dot_dimension_numbers<[1], [0], [0], [1], [0, 0, 1, 1], [], []>} : vector<6x14xf32>, vector<14x448xf32>, vector<6x448xf32> -> vector<6x448xf32>
    %c0_32 = arith.constant 0 : index
    %c0_33 = arith.constant 0 : index
    %c0_34 = arith.constant 0 : index
    %37 = vector.load %arg6[%c0_32, %c0_33, %c0_34] : memref<3x448x384xf32, #tpu.memory_space<vmem>>, vector<1x448x384xf32>
    %38 = vector.shape_cast %37 : vector<1x448x384xf32> to vector<448x384xf32>
    %cst_35 = arith.constant dense<0.000000e+00> : vector<6x384xf32>
    %39 = tpu.matmul %36, %38, %cst_35 {dimension_numbers = #tpu.dot_dimension_numbers<[1], [0], [0], [1], [0, 0, 1, 1], [], []>} : vector<6x448xf32>, vector<448x384xf32>, vector<6x384xf32> -> vector<6x384xf32>
    %40 = vector.broadcast %33 : vector<1x384xf32> to vector<6x384xf32>
    %41 = arith.addf %40, %39 : vector<6x384xf32>
    %c1_36 = arith.constant 1 : index
    %c0_37 = arith.constant 0 : index
    %c0_38 = arith.constant 0 : index
    %42 = vector.load %arg5[%c1_36, %c0_37, %c0_38] : memref<3x6x14xf32, #tpu.memory_space<vmem>>, vector<1x6x14xf32>
    %43 = vector.shape_cast %42 : vector<1x6x14xf32> to vector<6x14xf32>
    %cst_39 = arith.constant dense<0.000000e+00> : vector<6x448xf32>
    %44 = tpu.matmul %43, %32, %cst_39 {dimension_numbers = #tpu.dot_dimension_numbers<[1], [0], [0], [1], [0, 0, 1, 1], [], []>} : vector<6x14xf32>, vector<14x448xf32>, vector<6x448xf32> -> vector<6x448xf32>
    %c1_40 = arith.constant 1 : index
    %c0_41 = arith.constant 0 : index
    %c0_42 = arith.constant 0 : index
    %45 = vector.load %arg6[%c1_40, %c0_41, %c0_42] : memref<3x448x384xf32, #tpu.memory_space<vmem>>, vector<1x448x384xf32>
    %46 = vector.shape_cast %45 : vector<1x448x384xf32> to vector<448x384xf32>
    %cst_43 = arith.constant dense<0.000000e+00> : vector<6x384xf32>
    %47 = tpu.matmul %44, %46, %cst_43 {dimension_numbers = #tpu.dot_dimension_numbers<[1], [0], [0], [1], [0, 0, 1, 1], [], []>} : vector<6x448xf32>, vector<448x384xf32>, vector<6x384xf32> -> vector<6x384xf32>
    %48 = arith.addf %41, %47 : vector<6x384xf32>
    %c2_44 = arith.constant 2 : index
    %c0_45 = arith.constant 0 : index
    %c0_46 = arith.constant 0 : index
    %49 = vector.load %arg5[%c2_44, %c0_45, %c0_46] : memref<3x6x14xf32, #tpu.memory_space<vmem>>, vector<1x6x14xf32>
    %50 = vector.shape_cast %49 : vector<1x6x14xf32> to vector<6x14xf32>
    %cst_47 = arith.constant dense<0.000000e+00> : vector<6x448xf32>
    %51 = tpu.matmul %50, %32, %cst_47 {dimension_numbers = #tpu.dot_dimension_numbers<[1], [0], [0], [1], [0, 0, 1, 1], [], []>} : vector<6x14xf32>, vector<14x448xf32>, vector<6x448xf32> -> vector<6x448xf32>
    %c2_48 = arith.constant 2 : index
    %c0_49 = arith.constant 0 : index
    %c0_50 = arith.constant 0 : index
    %52 = vector.load %arg6[%c2_48, %c0_49, %c0_50] : memref<3x448x384xf32, #tpu.memory_space<vmem>>, vector<1x448x384xf32>
    %53 = vector.shape_cast %52 : vector<1x448x384xf32> to vector<448x384xf32>
    %cst_51 = arith.constant dense<0.000000e+00> : vector<6x384xf32>
    %54 = tpu.matmul %51, %53, %cst_51 {dimension_numbers = #tpu.dot_dimension_numbers<[1], [0], [0], [1], [0, 0, 1, 1], [], []>} : vector<6x448xf32>, vector<448x384xf32>, vector<6x384xf32> -> vector<6x384xf32>
    %55 = arith.addf %48, %54 : vector<6x384xf32>
    %cst_52 = arith.constant 0.000000e+00 : f32
    %56 = vector.broadcast %cst_52 : f32 to vector<6x384xf32>
    %57 = arith.maximumf %55, %56 : vector<6x384xf32>
    %58 = vector.extract_strided_slice %57 {offsets = [0, 0], sizes = [5, 384], strides = [1, 1]} : vector<6x384xf32> to vector<5x384xf32>
    %59 = vector.extract_strided_slice %57 {offsets = [1, 0], sizes = [5, 384], strides = [1, 1]} : vector<6x384xf32> to vector<5x384xf32>
    %60 = arith.maximumf %58, %59 : vector<5x384xf32>
    %61 = vector.extract_strided_slice %60 {offsets = [0, 0], sizes = [5, 320], strides = [1, 1]} : vector<5x384xf32> to vector<5x320xf32>
    %62 = vector.extract_strided_slice %60 {offsets = [0, 64], sizes = [5, 320], strides = [1, 1]} : vector<5x384xf32> to vector<5x320xf32>
    %63 = arith.maximumf %61, %62 : vector<5x320xf32>
    %c0_53 = arith.constant 0 : index
    %c0_54 = arith.constant 0 : index
    %64 = vector.load %arg10[%c0_53, %c0_54] : memref<1x64xf32, #tpu.memory_space<vmem>>, vector<1x64xf32>
    %c0_55 = arith.constant 0 : index
    %c0_56 = arith.constant 0 : index
    %c0_57 = arith.constant 0 : index
    %65 = vector.load %arg8[%c0_55, %c0_56, %c0_57] : memref<3x2x5xf32, #tpu.memory_space<vmem>>, vector<1x2x5xf32>
    %66 = vector.shape_cast %65 : vector<1x2x5xf32> to vector<2x5xf32>
    %cst_58 = arith.constant dense<0.000000e+00> : vector<2x320xf32>
    %67 = tpu.matmul %66, %63, %cst_58 {dimension_numbers = #tpu.dot_dimension_numbers<[1], [0], [0], [1], [0, 0, 1, 1], [], []>} : vector<2x5xf32>, vector<5x320xf32>, vector<2x320xf32> -> vector<2x320xf32>
    %c0_59 = arith.constant 0 : index
    %c0_60 = arith.constant 0 : index
    %c0_61 = arith.constant 0 : index
    %68 = vector.load %arg9[%c0_59, %c0_60, %c0_61] : memref<3x320x64xf32, #tpu.memory_space<vmem>>, vector<1x320x64xf32>
    %69 = vector.shape_cast %68 : vector<1x320x64xf32> to vector<320x64xf32>
    %cst_62 = arith.constant dense<0.000000e+00> : vector<2x64xf32>
    %70 = tpu.matmul %67, %69, %cst_62 {dimension_numbers = #tpu.dot_dimension_numbers<[1], [0], [0], [1], [0, 0, 1, 1], [], []>} : vector<2x320xf32>, vector<320x64xf32>, vector<2x64xf32> -> vector<2x64xf32>
    %71 = vector.broadcast %64 : vector<1x64xf32> to vector<2x64xf32>
    %72 = arith.addf %71, %70 : vector<2x64xf32>
    %c1_63 = arith.constant 1 : index
    %c0_64 = arith.constant 0 : index
    %c0_65 = arith.constant 0 : index
    %73 = vector.load %arg8[%c1_63, %c0_64, %c0_65] : memref<3x2x5xf32, #tpu.memory_space<vmem>>, vector<1x2x5xf32>
    %74 = vector.shape_cast %73 : vector<1x2x5xf32> to vector<2x5xf32>
    %cst_66 = arith.constant dense<0.000000e+00> : vector<2x320xf32>
    %75 = tpu.matmul %74, %63, %cst_66 {dimension_numbers = #tpu.dot_dimension_numbers<[1], [0], [0], [1], [0, 0, 1, 1], [], []>} : vector<2x5xf32>, vector<5x320xf32>, vector<2x320xf32> -> vector<2x320xf32>
    %c1_67 = arith.constant 1 : index
    %c0_68 = arith.constant 0 : index
    %c0_69 = arith.constant 0 : index
    %76 = vector.load %arg9[%c1_67, %c0_68, %c0_69] : memref<3x320x64xf32, #tpu.memory_space<vmem>>, vector<1x320x64xf32>
    %77 = vector.shape_cast %76 : vector<1x320x64xf32> to vector<320x64xf32>
    %cst_70 = arith.constant dense<0.000000e+00> : vector<2x64xf32>
    %78 = tpu.matmul %75, %77, %cst_70 {dimension_numbers = #tpu.dot_dimension_numbers<[1], [0], [0], [1], [0, 0, 1, 1], [], []>} : vector<2x320xf32>, vector<320x64xf32>, vector<2x64xf32> -> vector<2x64xf32>
    %79 = arith.addf %72, %78 : vector<2x64xf32>
    %c2_71 = arith.constant 2 : index
    %c0_72 = arith.constant 0 : index
    %c0_73 = arith.constant 0 : index
    %80 = vector.load %arg8[%c2_71, %c0_72, %c0_73] : memref<3x2x5xf32, #tpu.memory_space<vmem>>, vector<1x2x5xf32>
    %81 = vector.shape_cast %80 : vector<1x2x5xf32> to vector<2x5xf32>
    %cst_74 = arith.constant dense<0.000000e+00> : vector<2x320xf32>
    %82 = tpu.matmul %81, %63, %cst_74 {dimension_numbers = #tpu.dot_dimension_numbers<[1], [0], [0], [1], [0, 0, 1, 1], [], []>} : vector<2x5xf32>, vector<5x320xf32>, vector<2x320xf32> -> vector<2x320xf32>
    %c2_75 = arith.constant 2 : index
    %c0_76 = arith.constant 0 : index
    %c0_77 = arith.constant 0 : index
    %83 = vector.load %arg9[%c2_75, %c0_76, %c0_77] : memref<3x320x64xf32, #tpu.memory_space<vmem>>, vector<1x320x64xf32>
    %84 = vector.shape_cast %83 : vector<1x320x64xf32> to vector<320x64xf32>
    %cst_78 = arith.constant dense<0.000000e+00> : vector<2x64xf32>
    %85 = tpu.matmul %82, %84, %cst_78 {dimension_numbers = #tpu.dot_dimension_numbers<[1], [0], [0], [1], [0, 0, 1, 1], [], []>} : vector<2x320xf32>, vector<320x64xf32>, vector<2x64xf32> -> vector<2x64xf32>
    %86 = arith.addf %79, %85 : vector<2x64xf32>
    %cst_79 = arith.constant 0.000000e+00 : f32
    %87 = vector.broadcast %cst_79 : f32 to vector<2x64xf32>
    %88 = arith.maximumf %86, %87 : vector<2x64xf32>
    %c0_80 = arith.constant 0 : index
    %c0_81 = arith.constant 0 : index
    %89 = vector.load %arg11[%c0_80, %c0_81] : memref<128x4xf32, #tpu.memory_space<vmem>>, vector<64x4xf32>
    %90 = vector.extract_strided_slice %88 {offsets = [0, 0], sizes = [1, 64], strides = [1, 1]} : vector<2x64xf32> to vector<1x64xf32>
    %cst_82 = arith.constant dense<0.000000e+00> : vector<1x4xf32>
    %91 = tpu.matmul %90, %89, %cst_82 {dimension_numbers = #tpu.dot_dimension_numbers<[1], [0], [0], [1], [0, 0, 1, 1], [], []>} : vector<1x64xf32>, vector<64x4xf32>, vector<1x4xf32> -> vector<1x4xf32>
    %c64 = arith.constant 64 : index
    %c0_83 = arith.constant 0 : index
    %92 = vector.load %arg11[%c64, %c0_83] : memref<128x4xf32, #tpu.memory_space<vmem>>, vector<64x4xf32>
    %93 = vector.extract_strided_slice %88 {offsets = [1, 0], sizes = [1, 64], strides = [1, 1]} : vector<2x64xf32> to vector<1x64xf32>
    %cst_84 = arith.constant dense<0.000000e+00> : vector<1x4xf32>
    %94 = tpu.matmul %93, %92, %cst_84 {dimension_numbers = #tpu.dot_dimension_numbers<[1], [0], [0], [1], [0, 0, 1, 1], [], []>} : vector<1x64xf32>, vector<64x4xf32>, vector<1x4xf32> -> vector<1x4xf32>
    %95 = arith.addf %91, %94 : vector<1x4xf32>
    %c1_85 = arith.constant 1 : index
    %c0_86 = arith.constant 0 : index
    %c0_87 = arith.constant 0 : index
    %96 = vector.load %arg1[%c1_85, %c0_86, %c0_87] : memref<2x32x96xf32, #tpu.memory_space<vmem>>, vector<1x32x96xf32>
    %97 = vector.shape_cast %96 : vector<1x32x96xf32> to vector<32x96xf32>
    %c0_88 = arith.constant 0 : index
    %c0_89 = arith.constant 0 : index
    %98 = vector.load %arg4[%c0_88, %c0_89] : memref<1x480xf32, #tpu.memory_space<vmem>>, vector<1x480xf32>
    %c0_90 = arith.constant 0 : index
    %c0_91 = arith.constant 0 : index
    %c0_92 = arith.constant 0 : index
    %99 = vector.load %arg2[%c0_90, %c0_91, %c0_92] : memref<3x15x32xf32, #tpu.memory_space<vmem>>, vector<1x15x32xf32>
    %100 = vector.shape_cast %99 : vector<1x15x32xf32> to vector<15x32xf32>
    %cst_93 = arith.constant dense<0.000000e+00> : vector<15x96xf32>
    %101 = tpu.matmul %100, %97, %cst_93 {dimension_numbers = #tpu.dot_dimension_numbers<[1], [0], [0], [1], [0, 0, 1, 1], [], []>} : vector<15x32xf32>, vector<32x96xf32>, vector<15x96xf32> -> vector<15x96xf32>
    %c0_94 = arith.constant 0 : index
    %c0_95 = arith.constant 0 : index
    %c0_96 = arith.constant 0 : index
    %102 = vector.load %arg3[%c0_94, %c0_95, %c0_96] : memref<3x96x480xf32, #tpu.memory_space<vmem>>, vector<1x96x480xf32>
    %103 = vector.shape_cast %102 : vector<1x96x480xf32> to vector<96x480xf32>
    %cst_97 = arith.constant dense<0.000000e+00> : vector<15x480xf32>
    %104 = tpu.matmul %101, %103, %cst_97 {dimension_numbers = #tpu.dot_dimension_numbers<[1], [0], [0], [1], [0, 0, 1, 1], [], []>} : vector<15x96xf32>, vector<96x480xf32>, vector<15x480xf32> -> vector<15x480xf32>
    %105 = vector.broadcast %98 : vector<1x480xf32> to vector<15x480xf32>
    %106 = arith.addf %105, %104 : vector<15x480xf32>
    %c1_98 = arith.constant 1 : index
    %c0_99 = arith.constant 0 : index
    %c0_100 = arith.constant 0 : index
    %107 = vector.load %arg2[%c1_98, %c0_99, %c0_100] : memref<3x15x32xf32, #tpu.memory_space<vmem>>, vector<1x15x32xf32>
    %108 = vector.shape_cast %107 : vector<1x15x32xf32> to vector<15x32xf32>
    %cst_101 = arith.constant dense<0.000000e+00> : vector<15x96xf32>
    %109 = tpu.matmul %108, %97, %cst_101 {dimension_numbers = #tpu.dot_dimension_numbers<[1], [0], [0], [1], [0, 0, 1, 1], [], []>} : vector<15x32xf32>, vector<32x96xf32>, vector<15x96xf32> -> vector<15x96xf32>
    %c1_102 = arith.constant 1 : index
    %c0_103 = arith.constant 0 : index
    %c0_104 = arith.constant 0 : index
    %110 = vector.load %arg3[%c1_102, %c0_103, %c0_104] : memref<3x96x480xf32, #tpu.memory_space<vmem>>, vector<1x96x480xf32>
    %111 = vector.shape_cast %110 : vector<1x96x480xf32> to vector<96x480xf32>
    %cst_105 = arith.constant dense<0.000000e+00> : vector<15x480xf32>
    %112 = tpu.matmul %109, %111, %cst_105 {dimension_numbers = #tpu.dot_dimension_numbers<[1], [0], [0], [1], [0, 0, 1, 1], [], []>} : vector<15x96xf32>, vector<96x480xf32>, vector<15x480xf32> -> vector<15x480xf32>
    %113 = arith.addf %106, %112 : vector<15x480xf32>
    %c2_106 = arith.constant 2 : index
    %c0_107 = arith.constant 0 : index
    %c0_108 = arith.constant 0 : index
    %114 = vector.load %arg2[%c2_106, %c0_107, %c0_108] : memref<3x15x32xf32, #tpu.memory_space<vmem>>, vector<1x15x32xf32>
    %115 = vector.shape_cast %114 : vector<1x15x32xf32> to vector<15x32xf32>
    %cst_109 = arith.constant dense<0.000000e+00> : vector<15x96xf32>
    %116 = tpu.matmul %115, %97, %cst_109 {dimension_numbers = #tpu.dot_dimension_numbers<[1], [0], [0], [1], [0, 0, 1, 1], [], []>} : vector<15x32xf32>, vector<32x96xf32>, vector<15x96xf32> -> vector<15x96xf32>
    %c2_110 = arith.constant 2 : index
    %c0_111 = arith.constant 0 : index
    %c0_112 = arith.constant 0 : index
    %117 = vector.load %arg3[%c2_110, %c0_111, %c0_112] : memref<3x96x480xf32, #tpu.memory_space<vmem>>, vector<1x96x480xf32>
    %118 = vector.shape_cast %117 : vector<1x96x480xf32> to vector<96x480xf32>
    %cst_113 = arith.constant dense<0.000000e+00> : vector<15x480xf32>
    %119 = tpu.matmul %116, %118, %cst_113 {dimension_numbers = #tpu.dot_dimension_numbers<[1], [0], [0], [1], [0, 0, 1, 1], [], []>} : vector<15x96xf32>, vector<96x480xf32>, vector<15x480xf32> -> vector<15x480xf32>
    %120 = arith.addf %113, %119 : vector<15x480xf32>
    %cst_114 = arith.constant 0.000000e+00 : f32
    %121 = vector.broadcast %cst_114 : f32 to vector<15x480xf32>
    %122 = arith.maximumf %120, %121 : vector<15x480xf32>
    %123 = vector.extract_strided_slice %122 {offsets = [0, 0], sizes = [14, 480], strides = [1, 1]} : vector<15x480xf32> to vector<14x480xf32>
    %124 = vector.extract_strided_slice %122 {offsets = [1, 0], sizes = [14, 480], strides = [1, 1]} : vector<15x480xf32> to vector<14x480xf32>
    %125 = arith.maximumf %123, %124 : vector<14x480xf32>
    %126 = vector.extract_strided_slice %125 {offsets = [0, 0], sizes = [14, 448], strides = [1, 1]} : vector<14x480xf32> to vector<14x448xf32>
    %127 = vector.extract_strided_slice %125 {offsets = [0, 32], sizes = [14, 448], strides = [1, 1]} : vector<14x480xf32> to vector<14x448xf32>
    %128 = arith.maximumf %126, %127 : vector<14x448xf32>
    %c0_115 = arith.constant 0 : index
    %c0_116 = arith.constant 0 : index
    %129 = vector.load %arg7[%c0_115, %c0_116] : memref<1x384xf32, #tpu.memory_space<vmem>>, vector<1x384xf32>
    %c0_117 = arith.constant 0 : index
    %c0_118 = arith.constant 0 : index
    %c0_119 = arith.constant 0 : index
    %130 = vector.load %arg5[%c0_117, %c0_118, %c0_119] : memref<3x6x14xf32, #tpu.memory_space<vmem>>, vector<1x6x14xf32>
    %131 = vector.shape_cast %130 : vector<1x6x14xf32> to vector<6x14xf32>
    %cst_120 = arith.constant dense<0.000000e+00> : vector<6x448xf32>
    %132 = tpu.matmul %131, %128, %cst_120 {dimension_numbers = #tpu.dot_dimension_numbers<[1], [0], [0], [1], [0, 0, 1, 1], [], []>} : vector<6x14xf32>, vector<14x448xf32>, vector<6x448xf32> -> vector<6x448xf32>
    %c0_121 = arith.constant 0 : index
    %c0_122 = arith.constant 0 : index
    %c0_123 = arith.constant 0 : index
    %133 = vector.load %arg6[%c0_121, %c0_122, %c0_123] : memref<3x448x384xf32, #tpu.memory_space<vmem>>, vector<1x448x384xf32>
    %134 = vector.shape_cast %133 : vector<1x448x384xf32> to vector<448x384xf32>
    %cst_124 = arith.constant dense<0.000000e+00> : vector<6x384xf32>
    %135 = tpu.matmul %132, %134, %cst_124 {dimension_numbers = #tpu.dot_dimension_numbers<[1], [0], [0], [1], [0, 0, 1, 1], [], []>} : vector<6x448xf32>, vector<448x384xf32>, vector<6x384xf32> -> vector<6x384xf32>
    %136 = vector.broadcast %129 : vector<1x384xf32> to vector<6x384xf32>
    %137 = arith.addf %136, %135 : vector<6x384xf32>
    %c1_125 = arith.constant 1 : index
    %c0_126 = arith.constant 0 : index
    %c0_127 = arith.constant 0 : index
    %138 = vector.load %arg5[%c1_125, %c0_126, %c0_127] : memref<3x6x14xf32, #tpu.memory_space<vmem>>, vector<1x6x14xf32>
    %139 = vector.shape_cast %138 : vector<1x6x14xf32> to vector<6x14xf32>
    %cst_128 = arith.constant dense<0.000000e+00> : vector<6x448xf32>
    %140 = tpu.matmul %139, %128, %cst_128 {dimension_numbers = #tpu.dot_dimension_numbers<[1], [0], [0], [1], [0, 0, 1, 1], [], []>} : vector<6x14xf32>, vector<14x448xf32>, vector<6x448xf32> -> vector<6x448xf32>
    %c1_129 = arith.constant 1 : index
    %c0_130 = arith.constant 0 : index
    %c0_131 = arith.constant 0 : index
    %141 = vector.load %arg6[%c1_129, %c0_130, %c0_131] : memref<3x448x384xf32, #tpu.memory_space<vmem>>, vector<1x448x384xf32>
    %142 = vector.shape_cast %141 : vector<1x448x384xf32> to vector<448x384xf32>
    %cst_132 = arith.constant dense<0.000000e+00> : vector<6x384xf32>
    %143 = tpu.matmul %140, %142, %cst_132 {dimension_numbers = #tpu.dot_dimension_numbers<[1], [0], [0], [1], [0, 0, 1, 1], [], []>} : vector<6x448xf32>, vector<448x384xf32>, vector<6x384xf32> -> vector<6x384xf32>
    %144 = arith.addf %137, %143 : vector<6x384xf32>
    %c2_133 = arith.constant 2 : index
    %c0_134 = arith.constant 0 : index
    %c0_135 = arith.constant 0 : index
    %145 = vector.load %arg5[%c2_133, %c0_134, %c0_135] : memref<3x6x14xf32, #tpu.memory_space<vmem>>, vector<1x6x14xf32>
    %146 = vector.shape_cast %145 : vector<1x6x14xf32> to vector<6x14xf32>
    %cst_136 = arith.constant dense<0.000000e+00> : vector<6x448xf32>
    %147 = tpu.matmul %146, %128, %cst_136 {dimension_numbers = #tpu.dot_dimension_numbers<[1], [0], [0], [1], [0, 0, 1, 1], [], []>} : vector<6x14xf32>, vector<14x448xf32>, vector<6x448xf32> -> vector<6x448xf32>
    %c2_137 = arith.constant 2 : index
    %c0_138 = arith.constant 0 : index
    %c0_139 = arith.constant 0 : index
    %148 = vector.load %arg6[%c2_137, %c0_138, %c0_139] : memref<3x448x384xf32, #tpu.memory_space<vmem>>, vector<1x448x384xf32>
    %149 = vector.shape_cast %148 : vector<1x448x384xf32> to vector<448x384xf32>
    %cst_140 = arith.constant dense<0.000000e+00> : vector<6x384xf32>
    %150 = tpu.matmul %147, %149, %cst_140 {dimension_numbers = #tpu.dot_dimension_numbers<[1], [0], [0], [1], [0, 0, 1, 1], [], []>} : vector<6x448xf32>, vector<448x384xf32>, vector<6x384xf32> -> vector<6x384xf32>
    %151 = arith.addf %144, %150 : vector<6x384xf32>
    %cst_141 = arith.constant 0.000000e+00 : f32
    %152 = vector.broadcast %cst_141 : f32 to vector<6x384xf32>
    %153 = arith.maximumf %151, %152 : vector<6x384xf32>
    %154 = vector.extract_strided_slice %153 {offsets = [0, 0], sizes = [5, 384], strides = [1, 1]} : vector<6x384xf32> to vector<5x384xf32>
    %155 = vector.extract_strided_slice %153 {offsets = [1, 0], sizes = [5, 384], strides = [1, 1]} : vector<6x384xf32> to vector<5x384xf32>
    %156 = arith.maximumf %154, %155 : vector<5x384xf32>
    %157 = vector.extract_strided_slice %156 {offsets = [0, 0], sizes = [5, 320], strides = [1, 1]} : vector<5x384xf32> to vector<5x320xf32>
    %158 = vector.extract_strided_slice %156 {offsets = [0, 64], sizes = [5, 320], strides = [1, 1]} : vector<5x384xf32> to vector<5x320xf32>
    %159 = arith.maximumf %157, %158 : vector<5x320xf32>
    %c0_142 = arith.constant 0 : index
    %c0_143 = arith.constant 0 : index
    %160 = vector.load %arg10[%c0_142, %c0_143] : memref<1x64xf32, #tpu.memory_space<vmem>>, vector<1x64xf32>
    %c0_144 = arith.constant 0 : index
    %c0_145 = arith.constant 0 : index
    %c0_146 = arith.constant 0 : index
    %161 = vector.load %arg8[%c0_144, %c0_145, %c0_146] : memref<3x2x5xf32, #tpu.memory_space<vmem>>, vector<1x2x5xf32>
    %162 = vector.shape_cast %161 : vector<1x2x5xf32> to vector<2x5xf32>
    %cst_147 = arith.constant dense<0.000000e+00> : vector<2x320xf32>
    %163 = tpu.matmul %162, %159, %cst_147 {dimension_numbers = #tpu.dot_dimension_numbers<[1], [0], [0], [1], [0, 0, 1, 1], [], []>} : vector<2x5xf32>, vector<5x320xf32>, vector<2x320xf32> -> vector<2x320xf32>
    %c0_148 = arith.constant 0 : index
    %c0_149 = arith.constant 0 : index
    %c0_150 = arith.constant 0 : index
    %164 = vector.load %arg9[%c0_148, %c0_149, %c0_150] : memref<3x320x64xf32, #tpu.memory_space<vmem>>, vector<1x320x64xf32>
    %165 = vector.shape_cast %164 : vector<1x320x64xf32> to vector<320x64xf32>
    %cst_151 = arith.constant dense<0.000000e+00> : vector<2x64xf32>
    %166 = tpu.matmul %163, %165, %cst_151 {dimension_numbers = #tpu.dot_dimension_numbers<[1], [0], [0], [1], [0, 0, 1, 1], [], []>} : vector<2x320xf32>, vector<320x64xf32>, vector<2x64xf32> -> vector<2x64xf32>
    %167 = vector.broadcast %160 : vector<1x64xf32> to vector<2x64xf32>
    %168 = arith.addf %167, %166 : vector<2x64xf32>
    %c1_152 = arith.constant 1 : index
    %c0_153 = arith.constant 0 : index
    %c0_154 = arith.constant 0 : index
    %169 = vector.load %arg8[%c1_152, %c0_153, %c0_154] : memref<3x2x5xf32, #tpu.memory_space<vmem>>, vector<1x2x5xf32>
    %170 = vector.shape_cast %169 : vector<1x2x5xf32> to vector<2x5xf32>
    %cst_155 = arith.constant dense<0.000000e+00> : vector<2x320xf32>
    %171 = tpu.matmul %170, %159, %cst_155 {dimension_numbers = #tpu.dot_dimension_numbers<[1], [0], [0], [1], [0, 0, 1, 1], [], []>} : vector<2x5xf32>, vector<5x320xf32>, vector<2x320xf32> -> vector<2x320xf32>
    %c1_156 = arith.constant 1 : index
    %c0_157 = arith.constant 0 : index
    %c0_158 = arith.constant 0 : index
    %172 = vector.load %arg9[%c1_156, %c0_157, %c0_158] : memref<3x320x64xf32, #tpu.memory_space<vmem>>, vector<1x320x64xf32>
    %173 = vector.shape_cast %172 : vector<1x320x64xf32> to vector<320x64xf32>
    %cst_159 = arith.constant dense<0.000000e+00> : vector<2x64xf32>
    %174 = tpu.matmul %171, %173, %cst_159 {dimension_numbers = #tpu.dot_dimension_numbers<[1], [0], [0], [1], [0, 0, 1, 1], [], []>} : vector<2x320xf32>, vector<320x64xf32>, vector<2x64xf32> -> vector<2x64xf32>
    %175 = arith.addf %168, %174 : vector<2x64xf32>
    %c2_160 = arith.constant 2 : index
    %c0_161 = arith.constant 0 : index
    %c0_162 = arith.constant 0 : index
    %176 = vector.load %arg8[%c2_160, %c0_161, %c0_162] : memref<3x2x5xf32, #tpu.memory_space<vmem>>, vector<1x2x5xf32>
    %177 = vector.shape_cast %176 : vector<1x2x5xf32> to vector<2x5xf32>
    %cst_163 = arith.constant dense<0.000000e+00> : vector<2x320xf32>
    %178 = tpu.matmul %177, %159, %cst_163 {dimension_numbers = #tpu.dot_dimension_numbers<[1], [0], [0], [1], [0, 0, 1, 1], [], []>} : vector<2x5xf32>, vector<5x320xf32>, vector<2x320xf32> -> vector<2x320xf32>
    %c2_164 = arith.constant 2 : index
    %c0_165 = arith.constant 0 : index
    %c0_166 = arith.constant 0 : index
    %179 = vector.load %arg9[%c2_164, %c0_165, %c0_166] : memref<3x320x64xf32, #tpu.memory_space<vmem>>, vector<1x320x64xf32>
    %180 = vector.shape_cast %179 : vector<1x320x64xf32> to vector<320x64xf32>
    %cst_167 = arith.constant dense<0.000000e+00> : vector<2x64xf32>
    %181 = tpu.matmul %178, %180, %cst_167 {dimension_numbers = #tpu.dot_dimension_numbers<[1], [0], [0], [1], [0, 0, 1, 1], [], []>} : vector<2x320xf32>, vector<320x64xf32>, vector<2x64xf32> -> vector<2x64xf32>
    %182 = arith.addf %175, %181 : vector<2x64xf32>
    %cst_168 = arith.constant 0.000000e+00 : f32
    %183 = vector.broadcast %cst_168 : f32 to vector<2x64xf32>
    %184 = arith.maximumf %182, %183 : vector<2x64xf32>
    %c0_169 = arith.constant 0 : index
    %c0_170 = arith.constant 0 : index
    %185 = vector.load %arg11[%c0_169, %c0_170] : memref<128x4xf32, #tpu.memory_space<vmem>>, vector<64x4xf32>
    %186 = vector.extract_strided_slice %184 {offsets = [0, 0], sizes = [1, 64], strides = [1, 1]} : vector<2x64xf32> to vector<1x64xf32>
    %cst_171 = arith.constant dense<0.000000e+00> : vector<1x4xf32>
    %187 = tpu.matmul %186, %185, %cst_171 {dimension_numbers = #tpu.dot_dimension_numbers<[1], [0], [0], [1], [0, 0, 1, 1], [], []>} : vector<1x64xf32>, vector<64x4xf32>, vector<1x4xf32> -> vector<1x4xf32>
    %c64_172 = arith.constant 64 : index
    %c0_173 = arith.constant 0 : index
    %188 = vector.load %arg11[%c64_172, %c0_173] : memref<128x4xf32, #tpu.memory_space<vmem>>, vector<64x4xf32>
    %189 = vector.extract_strided_slice %184 {offsets = [1, 0], sizes = [1, 64], strides = [1, 1]} : vector<2x64xf32> to vector<1x64xf32>
    %cst_174 = arith.constant dense<0.000000e+00> : vector<1x4xf32>
    %190 = tpu.matmul %189, %188, %cst_174 {dimension_numbers = #tpu.dot_dimension_numbers<[1], [0], [0], [1], [0, 0, 1, 1], [], []>} : vector<1x64xf32>, vector<64x4xf32>, vector<1x4xf32> -> vector<1x4xf32>
    %191 = arith.addf %187, %190 : vector<1x4xf32>
    %c0_175 = arith.constant 0 : index
    %c0_176 = arith.constant 0 : index
    %192 = vector.load %arg12[%c0_175, %c0_176] : memref<1x4xf32, #tpu.memory_space<vmem>>, vector<1x4xf32>
    %193 = arith.addf %95, %192 : vector<1x4xf32>
    %cst_177 = arith.constant dense<0xFF800000> : vector<1xf32>
    %194 = vector.multi_reduction <maximumf>, %193, %cst_177 [1] : vector<1x4xf32> to vector<1xf32>
    %195 = vector.shape_cast %194 : vector<1xf32> to vector<1x1xf32>
    %196 = vector.broadcast %195 : vector<1x1xf32> to vector<1x4xf32>
    %197 = arith.subf %193, %196 : vector<1x4xf32>
    %198 = math.exp %197 : vector<1x4xf32>
    %cst_178 = arith.constant dense<0.000000e+00> : vector<1xf32>
    %199 = vector.multi_reduction <add>, %198, %cst_178 [1] : vector<1x4xf32> to vector<1xf32>
    %200 = vector.shape_cast %199 : vector<1xf32> to vector<1x1xf32>
    %201 = tpu.reciprocal %200 {approx = true} : vector<1x1xf32> -> vector<1x1xf32>
    %202 = vector.broadcast %201 : vector<1x1xf32> to vector<1x4xf32>
    %203 = arith.mulf %198, %202 : vector<1x4xf32>
    %c0_179 = arith.constant 0 : index
    %c0_180 = arith.constant 0 : index
    %204 = vector.load %arg13[%c0_179, %c0_180] : memref<2x4xf32, #tpu.memory_space<vmem>>, vector<1x4xf32>
    tpu.vector_store %arg13[%c0_179, %c0_180], %203 {strides = array<i32>} : memref<2x4xf32, #tpu.memory_space<vmem>>, vector<1x4xf32>,
    %c0_181 = arith.constant 0 : index
    %c0_182 = arith.constant 0 : index
    %205 = vector.load %arg12[%c0_181, %c0_182] : memref<1x4xf32, #tpu.memory_space<vmem>>, vector<1x4xf32>
    %206 = arith.addf %191, %205 : vector<1x4xf32>
    %cst_183 = arith.constant dense<0xFF800000> : vector<1xf32>
    %207 = vector.multi_reduction <maximumf>, %206, %cst_183 [1] : vector<1x4xf32> to vector<1xf32>
    %208 = vector.shape_cast %207 : vector<1xf32> to vector<1x1xf32>
    %209 = vector.broadcast %208 : vector<1x1xf32> to vector<1x4xf32>
    %210 = arith.subf %206, %209 : vector<1x4xf32>
    %211 = math.exp %210 : vector<1x4xf32>
    %cst_184 = arith.constant dense<0.000000e+00> : vector<1xf32>
    %212 = vector.multi_reduction <add>, %211, %cst_184 [1] : vector<1x4xf32> to vector<1xf32>
    %213 = vector.shape_cast %212 : vector<1xf32> to vector<1x1xf32>
    %214 = tpu.reciprocal %213 {approx = true} : vector<1x1xf32> -> vector<1x1xf32>
    %215 = vector.broadcast %214 : vector<1x1xf32> to vector<1x4xf32>
    %216 = arith.mulf %211, %215 : vector<1x4xf32>
    %c1_185 = arith.constant 1 : index
    %c0_186 = arith.constant 0 : index
    %217 = vector.load %arg13[%c1_185, %c0_186] : memref<2x4xf32, #tpu.memory_space<vmem>>, vector<1x4xf32>
    tpu.vector_store %arg13[%c1_185, %c0_186], %216 {strides = array<i32>} : memref<2x4xf32, #tpu.memory_space<vmem>>, vector<1x4xf32>,
    return
  }
  func.func @transform_0(%arg0: i32) -> (i32, i32, i32) {
    %c0_i32 = arith.constant 0 : i32
    %c0_i32_0 = arith.constant 0 : i32
    %c0_i32_1 = arith.constant 0 : i32
    %c0_i32_2 = arith.constant 0 : i32
    return %c0_i32, %c0_i32_0, %c0_i32_1 : i32, i32, i32
  }
  func.func @transform_1(%arg0: i32) -> (i32, i32, i32) {
    %c0_i32 = arith.constant 0 : i32
    %c0_i32_0 = arith.constant 0 : i32
    %c0_i32_1 = arith.constant 0 : i32
    %c0_i32_2 = arith.constant 0 : i32
    return %c0_i32, %c0_i32_0, %c0_i32_1 : i32, i32, i32
  }
  func.func @transform_2(%arg0: i32) -> (i32, i32, i32) {
    %c0_i32 = arith.constant 0 : i32
    %c0_i32_0 = arith.constant 0 : i32
    %c0_i32_1 = arith.constant 0 : i32
    %c0_i32_2 = arith.constant 0 : i32
    return %c0_i32, %c0_i32_0, %c0_i32_1 : i32, i32, i32
  }
  func.func @transform_3(%arg0: i32) -> (i32, i32) {
    %c0_i32 = arith.constant 0 : i32
    %c0_i32_0 = arith.constant 0 : i32
    %c0_i32_1 = arith.constant 0 : i32
    return %c0_i32, %c0_i32_0 : i32, i32
  }
  func.func @transform_4(%arg0: i32) -> (i32, i32, i32) {
    %c0_i32 = arith.constant 0 : i32
    %c0_i32_0 = arith.constant 0 : i32
    %c0_i32_1 = arith.constant 0 : i32
    %c0_i32_2 = arith.constant 0 : i32
    return %c0_i32, %c0_i32_0, %c0_i32_1 : i32, i32, i32
  }
  func.func @transform_5(%arg0: i32) -> (i32, i32, i32) {
    %c0_i32 = arith.constant 0 : i32
    %c0_i32_0 = arith.constant 0 : i32
    %c0_i32_1 = arith.constant 0 : i32
    %c0_i32_2 = arith.constant 0 : i32
    return %c0_i32, %c0_i32_0, %c0_i32_1 : i32, i32, i32
  }
  func.func @transform_6(%arg0: i32) -> (i32, i32) {
    %c0_i32 = arith.constant 0 : i32
    %c0_i32_0 = arith.constant 0 : i32
    %c0_i32_1 = arith.constant 0 : i32
    return %c0_i32, %c0_i32_0 : i32, i32
  }
  func.func @transform_7(%arg0: i32) -> (i32, i32, i32) {
    %c0_i32 = arith.constant 0 : i32
    %c0_i32_0 = arith.constant 0 : i32
    %c0_i32_1 = arith.constant 0 : i32
    %c0_i32_2 = arith.constant 0 : i32
    return %c0_i32, %c0_i32_0, %c0_i32_1 : i32, i32, i32
  }
  func.func @transform_8(%arg0: i32) -> (i32, i32, i32) {
    %c0_i32 = arith.constant 0 : i32
    %c0_i32_0 = arith.constant 0 : i32
    %c0_i32_1 = arith.constant 0 : i32
    %c0_i32_2 = arith.constant 0 : i32
    return %c0_i32, %c0_i32_0, %c0_i32_1 : i32, i32, i32
  }
  func.func @transform_9(%arg0: i32) -> (i32, i32) {
    %c0_i32 = arith.constant 0 : i32
    %c0_i32_0 = arith.constant 0 : i32
    %c0_i32_1 = arith.constant 0 : i32
    return %c0_i32, %c0_i32_0 : i32, i32
  }
  func.func @transform_10(%arg0: i32) -> (i32, i32) {
    %c0_i32 = arith.constant 0 : i32
    %c0_i32_0 = arith.constant 0 : i32
    %c0_i32_1 = arith.constant 0 : i32
    return %c0_i32, %c0_i32_0 : i32, i32
  }
  func.func @transform_11(%arg0: i32) -> (i32, i32) {
    %c0_i32 = arith.constant 0 : i32
    %c0_i32_0 = arith.constant 0 : i32
    %c0_i32_1 = arith.constant 0 : i32
    return %c0_i32, %c0_i32_0 : i32, i32
  }
  func.func @transform_12(%arg0: i32) -> (i32, i32) {
    %c0_i32 = arith.constant 0 : i32
    %c0_i32_0 = arith.constant 0 : i32
    %c0_i32_1 = arith.constant 0 : i32
    return %c0_i32, %c0_i32_0 : i32, i32
  }
}

</mosaic_0001>

<bundles_post_ra>
// kernel: dqn_net_forward.1
= control target key start
LH: loop header
LB: loop body
LE: loop exit
PB: predicated region body
PF: predicated region fallthrough
CT: control target
= control target key end

     0   :  { %17 = vsyncpa [#allocation3], 0  ;;  %s13544_s0 = inlined_call_operand.vmem [shape: f32[2,32,96], index: 0, kind: input, shape index: {}]   ;;  %s13545_s1 = inlined_call_operand.hbm [shape: f32[3,15,32], index: 1, kind: input, shape index: {}]   ;;  %s13546_s2 = inlined_call_operand.hbm [shape: f32[3,96,480], index: 2, kind: input, shape index: {}]   ;;  %s13547_s3 = inlined_call_operand.hbm [shape: f32[1,480], index: 3, kind: input, shape index: {}]   ;;  %s13548_s4 = inlined_call_operand.hbm [shape: f32[3,6,14], index: 4, kind: input, shape index: {}]   ;;  %s13549_s5 = inlined_call_operand.hbm [shape: f32[3,448,384], index: 5, kind: input, shape index: {}]   ;;  %s13550_s6 = inlined_call_operand.hbm [shape: f32[1,384], index: 6, kind: input, shape index: {}]   ;;  %s13551_s7 = inlined_call_operand.hbm [shape: f32[3,2,5], index: 7, kind: input, shape index: {}]   ;;  %s13552_s8 = inlined_call_operand.vmem [shape: f32[3,320,64], index: 8, kind: input, shape index: {}]   ;;  %s13553_s9 = inlined_call_operand.hbm [shape: f32[1,64], index: 9, kind: input, shape index: {}]   ;;  %s13554_s10 = inlined_call_operand.vmem [shape: f32[128,4], index: 10, kind: input, shape index: {}]   ;;  %s13555_s11 = inlined_call_operand.hbm [shape: f32[1,4], index: 11, kind: input, shape index: {}]   ;;  %s13556_s12 = inlined_call_operand.hbm [shape: f32[2,4], index: 12, kind: output, shape index: {}]  }
   0x1   :  { %18 = vsyncpa [#allocation6], 0 }
   0x2   :  { %19 = vsyncpa [#allocation9], 0 }
   0x3   :  { %20 = vsyncpa [#allocation12], 0 }
   0x4   :  { %21 = vsyncpa [#allocation15], 0 }
   0x5   :  { %22 = vsyncpa [#allocation4], 0  ;;  %s10712_s21 = smov [#allocation5]   ;;  %s10480_s25 = scalar_lea.hbm %s13546_s2, 18432 }
   0x6   :  { %s42_s22 = sshll.u32 %s10712_s21, 4  ;;  %p10481_p0 = scmp.ne.s32.totalorder %s13546_s2, %s10480_s25  ;;  %s43_s22 = int_to_ptr.vmem [resolvable:$true] %s42_s22 }
   0x7   :  { %p10484_p1 = scmp.lt.u32.totalorder %s10480_s25, %s13546_s2 }
   0x9   :  { %p10486_p2 = pnand %p10484_p1, %p10481_p0 }
   0xb   :  { %10489 = shalt.err (!%p10486_p2)
}
   0xc   :  { %s10490_s30 = scalar_lea.vmem %s43_s22, 18432  ;;  %p10495_p4 = scmp.lt.s32.totalorder %s43_s22, %s43_s22 }
   0xd   :  { %p10491_p3 = scmp.ne.s32.totalorder %s43_s22, %s10490_s30  ;;  %p10496_p5 = scmp.lt.s32.totalorder %s10490_s30, %s10490_s30 }
   0xf   :  { %p10497_p6 = por %p10496_p5, %p10495_p4 }
  0x11   :  { %p10498_p7 = pnand %p10497_p6, %p10491_p3 }
  0x13   :  { %10501 = shalt.err (!%p10498_p7)
}
  0x14   :  { %s10713_s13 = smov 512   ;;  %s10714_s14 = smov 32  }
  0x15   :  { %48 = dma.hbm_to_vmem [thread:$0]  %s13546_s2, 18432, %s43_s22, [#allocation6], %s10713_s13, %s10713_s13, %s10714_s14  }
  0x16   :  { %s10715_s17 = smov [#allocation8]   ;;  %s10716_s19 = smov [#allocation11]  }
  0x17   :  { %s64_s18 = sshll.u32 %s10715_s17, 4  ;;  %s89_s20 = sshll.u32 %s10716_s19, 4  ;;  %s65_s18 = int_to_ptr.vmem [resolvable:$true] %s64_s18  ;;  %s90_s20 = int_to_ptr.vmem [resolvable:$true] %s89_s20 }
  0x18   :  { %s10502_s24 = scalar_lea.hbm %s13548_s4, 384 }
  0x19   :  { %p10503_p8 = scmp.ne.s32.totalorder %s13548_s4, %s10502_s24  ;;  %p10506_p9 = scmp.lt.u32.totalorder %s10502_s24, %s13548_s4 }
  0x1b   :  { %p10508_p10 = pnand %p10506_p9, %p10503_p8 }
  0x1d   :  { %10511 = shalt.err (!%p10508_p10)
}
  0x1e   :  { %s10512_s2 = scalar_lea.vmem %s65_s18, 384  ;;  %p10517_p12 = scmp.lt.s32.totalorder %s65_s18, %s65_s18 }
  0x1f   :  { %p10513_p11 = scmp.ne.s32.totalorder %s65_s18, %s10512_s2  ;;  %p10518_p13 = scmp.lt.s32.totalorder %s10512_s2, %s10512_s2 }
  0x21   :  { %p10519_p0 = por %p10518_p13, %p10517_p12 }
  0x23   :  { %p10520_p1 = pnand %p10519_p0, %p10513_p11 }
  0x25   :  { %10523 = shalt.err (!%p10520_p1)
}
  0x26   :  { %s10717_s22 = smov 128   ;;  %s10718_s29 = smov 8  }
  0x27   :  { %70 = dma.hbm_to_vmem [thread:$0]  %s13548_s4, 384, %s65_s18, [#allocation9], %s10717_s22, %s10717_s22, %s10718_s29  }
  0x28   :  { %s10524_s17 = scalar_lea.hbm %s13550_s6, 48 }
  0x29   :  { %p10525_p2 = scmp.ne.s32.totalorder %s13550_s6, %s10524_s17  ;;  %p10528_p3 = scmp.lt.u32.totalorder %s10524_s17, %s13550_s6 }
  0x2b   :  { %p10530_p4 = pnand %p10528_p3, %p10525_p2 }
  0x2d   :  { %10533 = shalt.err (!%p10530_p4)
}
  0x2e   :  { %s10534_s25 = scalar_lea.vmem %s90_s20, 48  ;;  %s10538_s26 = scalar_lea.vmem %s90_s20, 64 }
  0x2f   :  { %p10535_p5 = scmp.ne.s32.totalorder %s90_s20, %s10534_s25  ;;  %p10539_p6 = scmp.lt.s32.totalorder %s90_s20, %s90_s20 }
  0x30   :  { %p10540_p7 = scmp.lt.s32.totalorder %s10538_s26, %s10534_s25 }
  0x32   :  { %p10541_p8 = por %p10540_p7, %p10539_p6 }
  0x34   :  { %p10542_p9 = pnand %p10541_p8, %p10535_p5 }
  0x36   :  { %10545 = shalt.err (!%p10542_p9)
}
  0x37   :  { %92 = dma.hbm_to_vmem [thread:$0]  %s13550_s6, 48, %s90_s20, [#allocation12]  }
  0x38   :  { %s10719_s27 = smov [#allocation14]   ;;  %s10720_s2 = smov [#allocation2]  }
  0x39   :  { %s113_s28 = sshll.u32 %s10719_s27, 4  ;;  %s30_s30 = sshll.u32 %s10720_s2, 4  ;;  %s114_s28 = int_to_ptr.vmem [resolvable:$true] %s113_s28  ;;  %s31_s30 = int_to_ptr.vmem [resolvable:$true] %s30_s30 }
  0x3a   :  { %s10546_s16 = scalar_lea.hbm %s13553_s9, 16 }
  0x3b   :  { %p10547_p10 = scmp.ne.s32.totalorder %s13553_s9, %s10546_s16  ;;  %p10550_p11 = scmp.lt.u32.totalorder %s10546_s16, %s13553_s9 }
  0x3d   :  { %p10552_p12 = pnand %p10550_p11, %p10547_p10 }
  0x3f   :  { %10555 = shalt.err (!%p10552_p12)
}
  0x40   :  { %s10556_s6 = scalar_lea.vmem %s114_s28, 16  ;;  %s10560_s20 = scalar_lea.vmem %s114_s28, 32 }
  0x41   :  { %p10557_p13 = scmp.ne.s32.totalorder %s114_s28, %s10556_s6  ;;  %p10561_p0 = scmp.lt.s32.totalorder %s114_s28, %s114_s28 }
  0x42   :  { %p10562_p1 = scmp.lt.s32.totalorder %s10560_s20, %s10556_s6 }
  0x44   :  { %p10563_p2 = por %p10562_p1, %p10561_p0 }
  0x46   :  { %p10564_p3 = pnand %p10563_p2, %p10557_p13 }
  0x48   :  { %10567 = shalt.err (!%p10564_p3)
}
  0x49   :  { %116 = dma.hbm_to_vmem [thread:$0]  %s13553_s9, 16, %s114_s28, [#allocation15]  }
  0x4a   :  { %s10568_s18 = scalar_lea.hbm %s13545_s1, 768 }
  0x4b   :  { %p10569_p4 = scmp.ne.s32.totalorder %s13545_s1, %s10568_s18  ;;  %p10572_p5 = scmp.lt.u32.totalorder %s10568_s18, %s13545_s1 }
  0x4d   :  { %p10574_p6 = pnand %p10572_p5, %p10569_p4 }
  0x4f   :  { %10577 = shalt.err (!%p10574_p6)
}
  0x50   :  { %s10578_s16 = scalar_lea.vmem %s31_s30, 768  ;;  %p10583_p8 = scmp.lt.s32.totalorder %s31_s30, %s31_s30 }
  0x51   :  { %p10579_p7 = scmp.ne.s32.totalorder %s31_s30, %s10578_s16  ;;  %p10584_p9 = scmp.lt.s32.totalorder %s10578_s16, %s10578_s16 }
  0x53   :  { %p10585_p10 = por %p10584_p9, %p10583_p8 }
  0x55   :  { %p10586_p11 = pnand %p10585_p10, %p10579_p7 }
  0x57   :  { %10589 = shalt.err (!%p10586_p11)
}
  0x58   :  { %36 = dma.hbm_to_vmem [thread:$0]  %s13545_s1, 768, %s31_s30, [#allocation3], %s10717_s22, %s10717_s22, %s10718_s29  }
  0x59   :  { %s10721_s17 = smov [#allocation7]   ;;  %s10722_s21 = smov [#allocation10]  }
  0x5a   :  { %s55_s19 = sshll.u32 %s10721_s17, 4  ;;  %s76_s23 = sshll.u32 %s10722_s21, 4  ;;  %s56_s19 = int_to_ptr.vmem [resolvable:$true] %s55_s19  ;;  %s77_s23 = int_to_ptr.vmem [resolvable:$true] %s76_s23 }
  0x5b   :  { %s10590_s24 = scalar_lea.hbm %s13547_s3, 64 }
  0x5c   :  { %p10591_p12 = scmp.ne.s32.totalorder %s13547_s3, %s10590_s24  ;;  %p10594_p13 = scmp.lt.u32.totalorder %s10590_s24, %s13547_s3 }
  0x5e   :  { %p10596_p0 = pnand %p10594_p13, %p10591_p12 }
  0x60   :  { %10599 = shalt.err (!%p10596_p0)
}
  0x61   :  { %s10600_s1 = scalar_lea.vmem %s56_s19, 64  ;;  %p10605_p2 = scmp.lt.s32.totalorder %s56_s19, %s56_s19 }
  0x62   :  { %p10601_p1 = scmp.ne.s32.totalorder %s56_s19, %s10600_s1  ;;  %p10606_p3 = scmp.lt.s32.totalorder %s10600_s1, %s10600_s1 }
  0x64   :  { %p10607_p4 = por %p10606_p3, %p10605_p2 }
  0x66   :  { %p10608_p5 = pnand %p10607_p4, %p10601_p1 }
  0x68   :  { %10611 = shalt.err (!%p10608_p5)
}
  0x69   :  { %58 = dma.hbm_to_vmem [thread:$0]  %s13547_s3, 64, %s56_s19, [#allocation6]  }
  0x6a   :  { %s10612_s2 = scalar_lea.hbm %s13549_s5, 64512 }
  0x6b   :  { %p10613_p6 = scmp.ne.s32.totalorder %s13549_s5, %s10612_s2  ;;  %p10616_p7 = scmp.lt.u32.totalorder %s10612_s2, %s13549_s5 }
  0x6d   :  { %p10618_p8 = pnand %p10616_p7, %p10613_p6 }
  0x6f   :  { %10621 = shalt.err (!%p10618_p8)
}
  0x70   :  { %s10622_s28 = scalar_lea.vmem %s77_s23, 64512  ;;  %p10627_p10 = scmp.lt.s32.totalorder %s77_s23, %s77_s23 }
  0x71   :  { %p10623_p9 = scmp.ne.s32.totalorder %s77_s23, %s10622_s28  ;;  %p10628_p11 = scmp.lt.s32.totalorder %s10622_s28, %s10622_s28 }
  0x73   :  { %p10629_p12 = por %p10628_p11, %p10627_p10 }
  0x75   :  { %p10630_p13 = pnand %p10629_p12, %p10623_p9 }
  0x77   :  { %10633 = shalt.err (!%p10630_p13)
}
  0x78   :  { %s10723_s3 = smov 384   ;;  %s10724_s17 = smov 24  }
  0x79   :  { %82 = dma.hbm_to_vmem [thread:$0]  %s13549_s5, 64512, %s77_s23, [#allocation9], %s10723_s3, %s10723_s3, %s10724_s17  }
  0x7a   :  { %s10725_s6 = smov [#allocation13]   ;;  %s10634_s26 = scalar_lea.hbm %s13551_s7, 96 }
  0x7b   :  { %s98_s20 = sshll.u32 %s10725_s6, 4  ;;  %p10635_p0 = scmp.ne.s32.totalorder %s13551_s7, %s10634_s26  ;;  %s99_s20 = int_to_ptr.vmem [resolvable:$true] %s98_s20 }
  0x7c   :  { %p10638_p1 = scmp.lt.u32.totalorder %s10634_s26, %s13551_s7 }
  0x7e   :  { %p10640_p2 = pnand %p10638_p1, %p10635_p0 }
  0x80   :  { %10643 = shalt.err (!%p10640_p2)
}
  0x81   :  { %s10644_s29 = scalar_lea.vmem %s99_s20, 96  ;;  %p10649_p4 = scmp.lt.s32.totalorder %s99_s20, %s99_s20 }
  0x82   :  { %p10645_p3 = scmp.ne.s32.totalorder %s99_s20, %s10644_s29  ;;  %p10650_p5 = scmp.lt.s32.totalorder %s10644_s29, %s10644_s29 }
  0x84   :  { %p10651_p6 = por %p10650_p5, %p10649_p4 }
  0x86   :  { %p10652_p7 = pnand %p10651_p6, %p10645_p3 }
  0x88   :  { %10655 = shalt.err (!%p10652_p7)
}
  0x89   :  { %s10726_s5 = smov 2   ;;  %s10727_s27 = smov [#allocation16]  }
  0x8a   :  { %104 = dma.hbm_to_vmem [thread:$0]  %s13551_s7, 96, %s99_s20, [#allocation12], %s10714_s14, %s10714_s14, %s10726_s5  }
  0x8b   :  { %s125_s2 = sshll.u32 %s10727_s27, 4  ;;  %s10656_s16 = scalar_lea.hbm %s13555_s11, 16  ;;  %s126_s2 = int_to_ptr.vmem [resolvable:$true] %s125_s2 }
  0x8c   :  { %p10657_p8 = scmp.ne.s32.totalorder %s13555_s11, %s10656_s16  ;;  %p10660_p9 = scmp.lt.u32.totalorder %s10656_s16, %s13555_s11 }
  0x8e   :  { %p10662_p10 = pnand %p10660_p9, %p10657_p8 }
  0x90   :  { %10665 = shalt.err (!%p10662_p10)
}
  0x91   :  { %s10666_s19 = scalar_lea.vmem %s126_s2, 16  ;;  %s10670_s7 = scalar_lea.vmem %s126_s2, 32 }
  0x92   :  { %p10667_p11 = scmp.ne.s32.totalorder %s126_s2, %s10666_s19  ;;  %p10671_p12 = scmp.lt.s32.totalorder %s126_s2, %s126_s2 }
  0x93   :  { %p10672_p13 = scmp.lt.s32.totalorder %s10670_s7, %s10666_s19 }
  0x95   :  { %p10673_p0 = por %p10672_p13, %p10671_p12 }
  0x97   :  { %p10674_p1 = pnand %p10673_p0, %p10667_p11 }
  0x99   :  { %10677 = shalt.err (!%p10674_p1)
}
  0x9a   :  { %128 = dma.hbm_to_vmem [thread:$0]  %s13555_s11, 16, %s126_s2, [#allocation15]  }
  0x9b   :  { %10700 = dma.done.wait [#allocation3], 768  }
  0x9c   :  { %10701 = vsyncadd [#allocation3], 4294966528 }
  0x9d   :  { %10702 = dma.done.wait [#allocation6], 18496  }
  0x9e   :  { %10703 = vsyncadd [#allocation6], 4294948800 }
  0x9f   :  { %10704 = dma.done.wait [#allocation9], 64896  }
  0xa0   :  { %10705 = vsyncadd [#allocation9], 4294902400 }
  0xa1   :  { %10706 = dma.done.wait [#allocation12], 144  }
  0xa2   :  { %10707 = vsyncadd [#allocation12], 4294967152 }
  0xa3   :  { %10708 = dma.done.wait [#allocation15], 32  }
  0xa4   :  { %10709 = vsyncadd [#allocation15], 4294967264  ;;  %vm163_vm0 = vcmask 261120   ;;  %v156_v0 = vld [vmem:[%s13544_s0] sm:$0xff]  ;;  %v157_v1 = vld [vmem:[%s13544_s0 + $0x8] sm:$0xff]  ;;  %vm293_vm1 = vcmask 785408  }
  0xa5   :  { %v158_v2 = vld [vmem:[%s13544_s0 + $0x10] sm:$0xff]  ;;  %v10926_v3 = vpack.c.bf16 %v157_v1, %v156_v0  ;;  %v159_v4 = vld [vmem:[%s13544_s0 + $0x18] sm:$0xff]  ;;  %v161_v5 = vld [vmem:[#allocation2] sm:$0xff]  ;;  %vm1101_vm2 = vcmask 1046528   ;;  %s10729_s1 = smov 96   ;;  %vm1182_vm3 = vcmask 1045504  }
  0xa6   :  { %v10931_v6 = vpack.c.bf16 %v159_v4, %v158_v2  ;;  %8214 = vmatprep.mubr.msk.f32.mxu1 %vm163_vm0, %v161_v5  ;;  %v246_v7 = vld [vmem:[#allocation5 + $0x8] sm:$0xff]  ;;  %v248_v9 = vld [vmem:[#allocation5 + $0x18] sm:$0xff]  ;;  %v245_v12 = vld [vmem:[#allocation5] sm:$0xff]  ;;  %vm10730_vm4 = vmmov 1   ;;  %vm1178_vm6 = vcmask 113664   ;;  %vm1505_vm7 = vcmask 523264  }
  0xa7   :  { %v250_v8 = vld [vmem:[#allocation5 + $0x28] sm:$0xff]  ;;  %8493 = vmatprep.subr.bf16.mxu1 %v10926_v3  ;;  %v252_v10 = vld [vmem:[#allocation5 + $0x38] sm:$0xff]  ;;  %v247_v13 = vld [vmem:[#allocation5 + $0x10] sm:$0xff]  ;;  %s10732_s22 = smov 64   ;;  %vm3056_vm8 = vcmask 1044480   ;;  %vm3052_vm9 = vcmask 39936  }
  0xa8   :  { %8495 = vmatpush3.bf16.msra.mxu1 %v10926_v3  ;;  %v10936_v11 = vpack.c.bf16 %v252_v10, %v248_v9  ;;  %v251_v14 = vld [vmem:[#allocation5 + $0x30] sm:$0xff]  ;;  %v10939_v15 = vpack.c.bf16 %v250_v8, %v246_v7  ;;  %v249_v16 = vld [vmem:[#allocation5 + $0x20] sm:$0xff]  ;;  %v256_v18 = vld [vmem:[#allocation5 + $0x58] sm:$0xff]  ;;  %vm10733_vm10 = vmmov 0   ;;  %vm7393_vm11 = vcmask 24576  }
  0xa9   :  { %8497 = vmatprep.subr.bf16.mxu1 %v10931_v6  ;;  %v10941_v17 = vpack.c.bf16 %v251_v14, %v247_v13  ;;  %v260_v19 = vld [vmem:[#allocation5 + $0x78] sm:$0xff]  ;;  %v254_v20 = vld [vmem:[#allocation5 + $0x48] sm:$0xff]  ;;  %v255_v23 = vld [vmem:[#allocation5 + $0x50] sm:$0xff]  ;;  %v10948_v26 = vpack.c.bf16 %v249_v16, %v245_v12 }
  0xaa   :  { %8525 = vmatprep.subr.bf16.mxu0 %v10936_v11  ;;  %v258_v21 = vld [vmem:[#allocation5 + $0x68] sm:$0xff]  ;;  %v10944_v22 = vpack.c.bf16 %v260_v19, %v256_v18  ;;  %v162_v24 = vld [vmem:[#allocation2 + $0x8] sm:$0x7f]  ;;  %v259_v25 = vld [vmem:[#allocation5 + $0x70] sm:$0xff] }
  0xab   :  { %8527 = vmatpush1.bf16.msra.mxu0 %v10941_v17  ;;  %v253_v27 = vld [vmem:[#allocation5 + $0x40] sm:$0xff]  ;;  %v10951_v28 = vpack.c.bf16 %v259_v25, %v255_v23  ;;  %v264_v29 = vld [vmem:[#allocation5 + $0x98] sm:$0xff]  ;;  %v10954_v31 = vpack.c.bf16 %v258_v21, %v254_v20  ;;  %v263_v34 = vld [vmem:[#allocation5 + $0x90] sm:$0xff]  ;;  %v13557_v21 = vmov 0.0  }
  0xac   :  { %8499 = vmatpush3.bf16.msra.mxu1 %v10931_v6  ;;  %8529 = vmatprep.subr.bf16.mxu0 %v10944_v22  ;;  %v268_v30 = vld [vmem:[#allocation5 + $0xb8] sm:$0xff]  ;;  %v257_v32 = vld [vmem:[#allocation5 + $0x60] sm:$0xff]  ;;  %v267_v35 = vld [vmem:[#allocation5 + $0xb0] sm:$0xff] }
  0xad   :  { %8501 = vmatprep.subr.bf16.mxu1 %v10939_v15  ;;  %v10956_v33 = vpack.c.bf16 %v268_v30, %v264_v29  ;;  %v262_v36 = vld [vmem:[#allocation5 + $0x88] sm:$0xff]  ;;  %v272_v38 = vld [vmem:[#allocation5 + $0xd8] sm:$0xff]  ;;  %v10960_v39 = vpack.c.bf16 %v267_v35, %v263_v34  ;;  %v10963_v41 = vpack.c.bf16 %v257_v32, %v253_v27  ;;  %v261_v42 = vld [vmem:[#allocation5 + $0x80] sm:$0xff]  ;;  %441 = vmatprep.mubr.f32.mxu0 %v13557_v21 }
  0xae   :  { %v266_v37 = vld [vmem:[#allocation5 + $0xa8] sm:$0xff]  ;;  %v276_v40 = vld [vmem:[#allocation5 + $0xf8] sm:$0xff]  ;;  %v271_v44 = vld [vmem:[#allocation5 + $0xd0] sm:$0xff] }
  0xaf   :  { %8215 = vmatmul.mubr.msk.f32.vlgmr.msra.gmra.mrb[0].mxu1 %vm163_vm0, %v162_v24  ;;  %8531 = vmatpush1.bf16.msra.mxu0 %v10951_v28  ;;  %v10966_v43 = vpack.c.bf16 %v276_v40, %v272_v38  ;;  %v275_v45 = vld [vmem:[#allocation5 + $0xf0] sm:$0xff]  ;;  %v10969_v46 = vpack.c.bf16 %v266_v37, %v262_v36  ;;  %v265_v47 = vld [vmem:[#allocation5 + $0xa0] sm:$0xff]  ;;  %v280_v48 = vld [vmem:[#allocation5 + $0x118] sm:$0xff] }
  0xb0   :  { %8503 = vmatpush1.bf16.msra.mxu1 %v10948_v26  ;;  %8533 = vmatprep.subr.bf16.mxu0 %v10956_v33  ;;  %v284_v49 = vld [vmem:[#allocation5 + $0x138] sm:$0xff]  ;;  %v270_v50 = vld [vmem:[#allocation5 + $0xc8] sm:$0xff]  ;;  %v10972_v52 = vpack.c.bf16 %v275_v45, %v271_v44  ;;  %v10975_v53 = vpack.c.bf16 %v265_v47, %v261_v42  ;;  %v269_v54 = vld [vmem:[#allocation5 + $0xc0] sm:$0xff] }
  0xb1   :  { %8505 = vmatprep.subr.bf16.mxu1 %v10954_v31  ;;  %v274_v51 = vld [vmem:[#allocation5 + $0xe8] sm:$0xff]  ;;  %v10978_v55 = vpack.c.bf16 %v284_v49, %v280_v48  ;;  %v279_v56 = vld [vmem:[#allocation5 + $0x110] sm:$0xff]  ;;  %v273_v59 = vld [vmem:[#allocation5 + $0xe0] sm:$0xff]  ;;  %364 = vmatprep.mubr.f32.mxu1 %v13557_v21 }
  0xb2   :  { %v283_v57 = vld [vmem:[#allocation5 + $0x130] sm:$0xff]  ;;  %v10981_v58 = vpack.c.bf16 %v274_v51, %v270_v50  ;;  %v288_v60 = vld [vmem:[#allocation5 + $0x158] sm:$0xff]  ;;  %v278_v62 = vld [vmem:[#allocation5 + $0x108] sm:$0xff]  ;;  %v10987_v1 = vpack.c.bf16 %v273_v59, %v269_v54 }
  0xb3   :  { %8535 = vmatpush1.bf16.msra.mxu0 %v10960_v39  ;;  %v292_v61 = vld [vmem:[#allocation5 + $0x178] sm:$0xff]  ;;  %v282_v63 = vld [vmem:[#allocation5 + $0x128] sm:$0xff]  ;;  %v10984_v0 = vpack.c.bf16 %v283_v57, %v279_v56  ;;  %v287_v4 = vld [vmem:[#allocation5 + $0x150] sm:$0xff] }
  0xb4   :  { %8507 = vmatpush1.bf16.msra.mxu1 %v10963_v41  ;;  %8537 = vmatprep.subr.bf16.mxu0 %v10966_v43  ;;  %v10990_v2 = vpack.c.bf16 %v292_v61, %v288_v60  ;;  %v291_v5 = vld [vmem:[#allocation5 + $0x170] sm:$0xff]  ;;  %v10993_v7 = vpack.c.bf16 %v282_v63, %v278_v62  ;;  %v277_v8 = vld [vmem:[#allocation5 + $0x100] sm:$0xff]  ;;  %v286_v10 = vld [vmem:[#allocation5 + $0x148] sm:$0xff] }
  0xb5   :  { %8509 = vmatprep.subr.bf16.mxu1 %v10969_v46  ;;  %v281_v9 = vld [vmem:[#allocation5 + $0x120] sm:$0xff]  ;;  %v290_v12 = vld [vmem:[#allocation5 + $0x168] sm:$0xff]  ;;  %v10996_v13 = vpack.c.bf16 %v291_v5, %v287_v4  ;;  %v571_v23 = vld [vmem:[#allocation5 + $0x198] sm:$0xff] }
  0xb6   :  { %v10999_v14 = vpack.c.bf16 %v281_v9, %v277_v8  ;;  %v11003_v16 = vpack.c.bf16 %v290_v12, %v286_v10  ;;  %v285_v18 = vld [vmem:[#allocation5 + $0x140] sm:$0xff]  ;;  %v575_v24 = vld [vmem:[#allocation5 + $0x1b8] sm:$0xff]  ;;  %v570_v27 = vld [vmem:[#allocation5 + $0x190] sm:$0xff] }
  0xb7   :  { %8539 = vmatpush1.bf16.msra.mxu0 %v10972_v52  ;;  %v289_v19 = vld [vmem:[#allocation5 + $0x160] sm:$0xff]  ;;  %v11014_v25 = vpack.c.bf16 %v575_v24, %v571_v23  ;;  %v574_v29 = vld [vmem:[#allocation5 + $0x1b0] sm:$0xff]  ;;  %v569_v32 = vld [vmem:[#allocation5 + $0x188] sm:$0xff] }
  0xb8   :  { %8511 = vmatpush1.bf16.msra.mxu1 %v10975_v53  ;;  %8541 = vmatprep.subr.bf16.mxu0 %v10978_v55  ;;  %v11007_v20 = vpack.c.bf16 %v289_v19, %v285_v18  ;;  %v573_v35 = vld [vmem:[#allocation5 + $0x1a8] sm:$0xff]  ;;  %v11017_v36 = vpack.c.bf16 %v574_v29, %v570_v27  ;;  %v579_v37 = vld [vmem:[#allocation5 + $0x1d8] sm:$0xff]  ;;  %v578_v40 = vld [vmem:[#allocation5 + $0x1d0] sm:$0xff] }
  0xb9   :  { %8513 = vmatprep.subr.bf16.mxu1 %v10981_v58  ;;  %v583_v38 = vld [vmem:[#allocation5 + $0x1f8] sm:$0xff]  ;;  %v582_v42 = vld [vmem:[#allocation5 + $0x1f0] sm:$0xff]  ;;  %v484_v47 = vld [vmem:[#allocation2 + $0x10] sm:$0xff]  ;;  %v11025_v48 = vpack.c.bf16 %v573_v35, %v569_v32 }
  0xba   :  { %v587_v44 = vld [vmem:[#allocation5 + $0x218] sm:$0xff]  ;;  %v568_v49 = vld [vmem:[#allocation5 + $0x180] sm:$0xff]  ;;  %v11027_v51 = vpack.c.bf16 %v583_v38, %v579_v37  ;;  %v577_v54 = vld [vmem:[#allocation5 + $0x1c8] sm:$0xff]  ;;  %v11030_v57 = vpack.c.bf16 %v582_v42, %v578_v40 }
  0xbb   :  { %8543 = vmatpush1.bf16.msra.mxu0 %v10984_v0  ;;  %v591_v45 = vld [vmem:[#allocation5 + $0x238] sm:$0xff]  ;;  %v572_v50 = vld [vmem:[#allocation5 + $0x1a0] sm:$0xff]  ;;  %v581_v56 = vld [vmem:[#allocation5 + $0x1e8] sm:$0xff] }
  0xbc   :  { %8515 = vmatpush1.bf16.msra.mxu1 %v10987_v1  ;;  %8545 = vmatprep.subr.bf16.mxu0 %v10990_v2  ;;  %v11034_v59 = vpack.c.bf16 %v591_v45, %v587_v44  ;;  %v586_v60 = vld [vmem:[#allocation5 + $0x210] sm:$0xff]  ;;  %v485_v62 = vld [vmem:[#allocation2 + $0x18] sm:$0x7f]  ;;  %v11038_v63 = vpack.c.bf16 %v572_v50, %v568_v49  ;;  %v595_v4 = vld [vmem:[#allocation5 + $0x258] sm:$0xff]  ;;  %v11041_v8 = vpack.c.bf16 %v581_v56, %v577_v54 }
  0xbd   :  { %8517 = vmatprep.subr.bf16.mxu1 %v10993_v7  ;;  %v590_v61 = vld [vmem:[#allocation5 + $0x230] sm:$0xff]  ;;  %v599_v5 = vld [vmem:[#allocation5 + $0x278] sm:$0xff]  ;;  %v576_v9 = vld [vmem:[#allocation5 + $0x1c0] sm:$0xff] }
  0xbe   :  { %v580_v10 = vld [vmem:[#allocation5 + $0x1e0] sm:$0xff]  ;;  %v585_v12 = vld [vmem:[#allocation5 + $0x208] sm:$0xff]  ;;  %v11045_v19 = vpack.c.bf16 %v590_v61, %v586_v60  ;;  %v11050_v23 = vpack.c.bf16 %v599_v5, %v595_v4  ;;  %v594_v24 = vld [vmem:[#allocation5 + $0x250] sm:$0xff] }
  0xbf   :  { %8547 = vmatpush1.bf16.msra.mxu0 %v10996_v13  ;;  %v589_v18 = vld [vmem:[#allocation5 + $0x228] sm:$0xff]  ;;  %v598_v27 = vld [vmem:[#allocation5 + $0x270] sm:$0xff]  ;;  %v11053_v29 = vpack.c.bf16 %v580_v10, %v576_v9  ;;  %v607_v32 = vld [vmem:[#allocation5 + $0x2b8] sm:$0xff] }
  0xc0   :  { %8519 = vmatpush1.bf16.msra.mxu1 %v10999_v14  ;;  %8581 = vmatprep.subr.bf16.mxu0 %v11014_v25  ;;  %v584_v35 = vld [vmem:[#allocation5 + $0x200] sm:$0xff]  ;;  %v593_v38 = vld [vmem:[#allocation5 + $0x248] sm:$0xff]  ;;  %v11060_v42 = vpack.c.bf16 %v598_v27, %v594_v24  ;;  %v602_v45 = vld [vmem:[#allocation5 + $0x290] sm:$0xff] }
  0xc1   :  { %8521 = vmatprep.subr.bf16.mxu1 %v11003_v16  ;;  %v588_v37 = vld [vmem:[#allocation5 + $0x220] sm:$0xff]  ;;  %v597_v40 = vld [vmem:[#allocation5 + $0x268] sm:$0xff]  ;;  %v611_v50 = vld [vmem:[#allocation5 + $0x2d8] sm:$0xff] }
  0xc2   :  { %13924 = vst [vmem:[#allocation25_spill] sm:$0xff] %v11060_v42  ;;  %v11066_v49 = vpack.c.bf16 %v588_v37, %v584_v35  ;;  %v615_v54 = vld [vmem:[#allocation5 + $0x2f8] sm:$0xff]  ;;  %v11069_v56 = vpack.c.bf16 %v597_v40, %v593_v38  ;;  %v592_v60 = vld [vmem:[#allocation5 + $0x240] sm:$0xff]  ;;  %v605_v4 = vld [vmem:[#allocation5 + $0x2a8] sm:$0xff] }
  0xc3   :  { %v596_v61 = vld [vmem:[#allocation5 + $0x260] sm:$0xff]  ;;  %v11075_v9 = vpack.c.bf16 %v615_v54, %v611_v50  ;;  %v610_v10 = vld [vmem:[#allocation5 + $0x2d0] sm:$0xff]  ;;  %v613_v35 = vld [vmem:[#allocation5 + $0x2e8] sm:$0xff] }
  0xc4   :  { %8523 = vmatpush1.bf16.msra.mxu1 %v11007_v20  ;;  %13926 = vst [vmem:[#allocation27_spill] sm:$0xff] %v11066_v49  ;;  %13927 = vst [vmem:[#allocation28_spill] sm:$0xff] %v11069_v56  ;;  %v600_v27 = vld [vmem:[#allocation5 + $0x280] sm:$0xff]  ;;  %v870_v54 = vld [vmem:[#allocation5 + $0x308] sm:$0xff] }
  0xc5   :  { %8549 = vmatprep.subr.bf16.mxu1 %v10926_v3  ;;  %13929 = vst [vmem:[#allocation30_spill] sm:$0xff] %v11075_v9  ;;  %vm11360_vm5 = vmpackc.low %vm1182_vm3, %vm10730_vm4 }
 0x182   :  { %v8216_v30 = vpop.f32.mrb[0].mxu1 }
 0x183   :  { %v236_v34 = vpop.f32.mrb[1].mxu1 }
 0x184   :  { %7441 = vmatmul.mubr.msk.f32.vlgmr.msra.gmra.mrb[2].mxu1 %vm293_vm1, %v236_v34  ;;  %7443 = vmatmul.mubr.msk.f32.vlgmr.msra.gmra.mrb[0].mxu0 %vm293_vm1, %v236_v34  ;;  %v11057_v34 = vpack.c.bf16 %v589_v18, %v585_v12  ;;  %v614_v12 = vld [vmem:[#allocation5 + $0x2f0] sm:$0xff]  ;;  %v11078_v18 = vpack.c.bf16 %v596_v61, %v592_v60  ;;  %v874_v60 = vld [vmem:[#allocation5 + $0x328] sm:$0xff] }
 0x185   :  { %8551 = vmatpush3.bf16.msra.mxu1 %v10926_v3  ;;  %370 = vmatprep.mubr.f32.mxu1 %v13557_v21  ;;  %v11084_v37 = vpack.c.bf16 %v614_v12, %v610_v10  ;;  %v11100_v61 = vpack.c.bf16 %v874_v60, %v870_v54  ;;  %v872_v12 = vld [vmem:[#allocation5 + $0x318] sm:$0xff]  ;;  %v13938_v54 = vmov 0.0   ;;  %v886_v60 = vld [vmem:[#allocation5 + $0x388] sm:$0xff] }
 0x186   :  { %447 = vmatprep.mubr.f32.mxu0 %v13557_v21  ;;  %8553 = vmatprep.subr.bf16.mxu1 %v10931_v6  ;;  %13923 = vst [vmem:[#allocation24_spill] sm:$0xff] %v11057_v34  ;;  %13930 = vst [vmem:[#allocation31_spill] sm:$0xff] %v11078_v18 }
 0x187   :  { %8583 = vmatpush1.bf16.msra.mxu0 %v11017_v36  ;;  %13932 = vst [vmem:[#allocation33_spill] sm:$0xff] %v11084_v37  ;;  %13936 = vst [vmem:[#allocation37_spill] sm:$0xff] %v11100_v61 }
 0x188   :  { %7442 = vmatmul.mubr.msk.f32.gmra.mrb[4].mxu1 %vm293_vm1, %v8216_v30  ;;  %7444 = vmatmul.mubr.msk.f32.gmra.mrb[2].mxu0 %vm293_vm1, %v8216_v30  ;;  %v603_v30 = vld [vmem:[#allocation5 + $0x298] sm:$0xff] }
 0x189   :  { %8555 = vmatpush3.bf16.msra.mxu1 %v10931_v6  ;;  %8225 = vmatprep.mubr.msk.f32.mxu1 %vm163_vm0, %v484_v47  ;;  %v11063_v44 = vpack.c.bf16 %v607_v32, %v603_v30  ;;  %v606_v47 = vld [vmem:[#allocation5 + $0x2b0] sm:$0xff]  ;;  %v604_v30 = vld [vmem:[#allocation5 + $0x2a0] sm:$0xff]  ;;  %v609_v32 = vld [vmem:[#allocation5 + $0x2c8] sm:$0xff] }
 0x18a   :  { %8557 = vmatprep.subr.bf16.mxu1 %v11025_v48  ;;  %8585 = vmatprep.subr.bf16.mxu0 %v11027_v51  ;;  %v11072_v5 = vpack.c.bf16 %v606_v47, %v602_v45  ;;  %v11088_v38 = vpack.c.bf16 %v604_v30, %v600_v27  ;;  %v11091_v40 = vpack.c.bf16 %v613_v35, %v609_v32  ;;  %v608_v45 = vld [vmem:[#allocation5 + $0x2c0] sm:$0xff]  ;;  %v876_v30 = vld [vmem:[#allocation5 + $0x338] sm:$0xff]  ;;  %v878_v35 = vld [vmem:[#allocation5 + $0x348] sm:$0xff] }
 0x18b   :  { %8587 = vmatpush1.bf16.msra.mxu0 %v11030_v57  ;;  %763 = vmatprep.mubr.f32.mxu0 %v13557_v21  ;;  %13925 = vst [vmem:[#allocation26_spill] sm:$0xff] %v11063_v44  ;;  %v612_v47 = vld [vmem:[#allocation5 + $0x2e0] sm:$0xff] }
 0x18c   :  { %8226 = vmatmul.mubr.msk.f32.vlgmr.msra.gmra.mrb[6].mxu1 %vm163_vm0, %v485_v62  ;;  %8589 = vmatprep.subr.bf16.mxu0 %v11034_v59  ;;  %v601_v62 = vld [vmem:[#allocation5 + $0x288] sm:$0xff]  ;;  %13928 = vst [vmem:[#allocation29_spill] sm:$0xff] %v11072_v5  ;;  %13933 = vst [vmem:[#allocation34_spill] sm:$0xff] %v11088_v38  ;;  %v11096_v50 = vpack.c.bf16 %v612_v47, %v608_v45  ;;  %v877_v47 = vld [vmem:[#allocation5 + $0x340] sm:$0xff] }
 0x18d   :  { %8559 = vmatpush1.bf16.msra.mxu1 %v11038_v63  ;;  %686 = vmatprep.mubr.f32.mxu1 %v13557_v21  ;;  %v11081_v24 = vpack.c.bf16 %v605_v4, %v601_v62  ;;  %13934 = vst [vmem:[#allocation35_spill] sm:$0xff] %v11091_v40  ;;  %v869_v62 = vld [vmem:[#allocation5 + $0x300] sm:$0xff]  ;;  %v882_v45 = vld [vmem:[#allocation5 + $0x368] sm:$0xff] }
 0x18e   :  { %8561 = vmatprep.subr.bf16.mxu1 %v11041_v8  ;;  %13935 = vst [vmem:[#allocation36_spill] sm:$0xff] %v11096_v50  ;;  %v873_v4 = vld [vmem:[#allocation5 + $0x320] sm:$0xff] }
 0x18f   :  { %8591 = vmatpush1.bf16.msra.mxu0 %v11045_v19  ;;  %13931 = vst [vmem:[#allocation32_spill] sm:$0xff] %v11081_v24  ;;  %v11103_v32 = vpack.c.bf16 %v873_v4, %v869_v62  ;;  %v881_v21 = vld [vmem:[#allocation5 + $0x360] sm:$0xff]  ;;  %v785_v62 = vld [vmem:[#allocation2 + $0x20] sm:$0xff]  ;;  %v11111_v4 = vpack.c.bf16 %v876_v30, %v872_v12  ;;  %v786_v12 = vld [vmem:[#allocation2 + $0x28] sm:$0x7f] }
 0x190   :  { %8593 = vmatprep.subr.bf16.mxu0 %v11050_v23 }
 0x191   :  { %8563 = vmatpush1.bf16.msra.mxu1 %v11053_v29  ;;  %13937 = vst [vmem:[#allocation38_spill] sm:$0xff] %v11103_v32  ;;  %13939 = vst [vmem:[#allocation39_spill] sm:$0xff] %v11111_v4 }
 0x192   :  { %8565 = vmatprep.subr.bf16.mxu1 %v11057_v34 }
 0x193   :  { %8595 = vmatpush1.bf16.msra.mxu0 %v11060_v42 }
 0x194   :  { %8597 = vmatprep.subr.bf16.mxu0 %v11063_v44 }
 0x195   :  { %8567 = vmatpush1.bf16.msra.mxu1 %v11066_v49 }
 0x196   :  { %8569 = vmatprep.subr.bf16.mxu1 %v11069_v56 }
 0x197   :  { %8599 = vmatpush1.bf16.msra.mxu0 %v11072_v5 }
 0x198   :  { %8601 = vmatprep.subr.bf16.mxu0 %v11075_v9  ;;  %v889_v9 = vld [vmem:[#allocation5 + $0x3a0] sm:$0xff] }
 0x199   :  { %8571 = vmatpush1.bf16.msra.mxu1 %v11078_v18  ;;  %v885_v18 = vld [vmem:[#allocation5 + $0x380] sm:$0xff] }
 0x19a   :  { %8573 = vmatprep.subr.bf16.mxu1 %v11081_v24 }
 0x19b   :  { %8603 = vmatpush1.bf16.msra.mxu0 %v11084_v37  ;;  %v884_v37 = vld [vmem:[#allocation5 + $0x378] sm:$0xff] }
 0x19c   :  { %8605 = vmatprep.subr.bf16.mxu0 %v10926_v3 }
 0x19d   :  { %8575 = vmatpush1.bf16.msra.mxu1 %v11088_v38  ;;  %v11113_v38 = vpack.c.bf16 %v882_v45, %v878_v35  ;;  %v894_v35 = vld [vmem:[#allocation5 + $0x3c8] sm:$0xff] }
 0x19e   :  { %8577 = vmatprep.subr.bf16.mxu1 %v11091_v40  ;;  %v875_v40 = vld [vmem:[#allocation5 + $0x330] sm:$0xff]  ;;  %v898_v45 = vld [vmem:[#allocation5 + $0x3e8] sm:$0xff] }
 0x19f   :  { %13940 = vst [vmem:[#allocation40_spill] sm:$0xff] %v11113_v38 }
 0x1a1   :  { %8579 = vmatpush1.bf16.msra.mxu1 %v11096_v50  ;;  %v871_v50 = vld [vmem:[#allocation5 + $0x310] sm:$0xff] }
 0x1a2   :  { %8613 = vmatprep.subr.bf16.mxu1 %v11100_v61  ;;  %v890_v61 = vld [vmem:[#allocation5 + $0x3a8] sm:$0xff]  ;;  %v11124_v30 = vpack.c.bf16 %v875_v40, %v871_v50  ;;  %v11136_v40 = vpack.c.bf16 %v898_v45, %v894_v35  ;;  %v893_v50 = vld [vmem:[#allocation5 + $0x3c0] sm:$0xff]  ;;  %v896_v35 = vld [vmem:[#allocation5 + $0x3d8] sm:$0xff] }
 0x1a3   :  { %v11120_v24 = vpack.c.bf16 %v890_v61, %v886_v60  ;;  %v883_v61 = vld [vmem:[#allocation5 + $0x370] sm:$0xff]  ;;  %v892_v60 = vld [vmem:[#allocation5 + $0x3b8] sm:$0xff] }
 0x1a4   :  { %13943 = vst [vmem:[#allocation43_spill] sm:$0xff] %v11124_v30  ;;  %13946 = vst [vmem:[#allocation46_spill] sm:$0xff] %v11136_v40  ;;  %v900_v45 = vld [vmem:[#allocation5 + $0x3f8] sm:$0xff] }
 0x1a5   :  { %13942 = vst [vmem:[#allocation42_spill] sm:$0xff] %v11120_v24 }
 0x25f   :  { %v8227_v10 = vpop.f32.mrb[6].mxu1 }
 0x260   :  { %v558_v27 = vpop.f32.mrb[7].mxu1 }
 0x261   :  { %7447 = vmatmul.mubr.msk.f32.vlgmr.msra.gmra.mrb[2].mxu1 %vm293_vm1, %v558_v27  ;;  %7449 = vmatmul.mubr.msk.f32.vlgmr.msra.gmra.mrb[0].mxu0 %vm293_vm1, %v558_v27  ;;  %v880_v27 = vld [vmem:[#allocation5 + $0x358] sm:$0xff] }
 0x262   :  { %8607 = vmatpush3.bf16.msra.mxu0 %v10926_v3  ;;  %692 = vmatprep.mubr.f32.mxu1 %v13938_v54  ;;  %v11116_v3 = vpack.c.bf16 %v881_v21, %v877_v47  ;;  %v11128_v21 = vpack.c.bf16 %v884_v37, %v880_v27  ;;  %v888_v47 = vld [vmem:[#allocation5 + $0x398] sm:$0xff]  ;;  %v902_v27 = vld [vmem:[#allocation5 + $0x408] sm:$0xff] }
 0x263   :  { %769 = vmatprep.mubr.f32.mxu0 %v13938_v54  ;;  %8609 = vmatprep.subr.bf16.mxu0 %v10931_v6 }
 0x264   :  { %8615 = vmatpush1.bf16.msra.mxu1 %v11103_v32  ;;  %13941 = vst [vmem:[#allocation41_spill] sm:$0xff] %v11116_v3  ;;  %13944 = vst [vmem:[#allocation44_spill] sm:$0xff] %v11128_v21 }
 0x265   :  { %7448 = vmatmul.mubr.msk.f32.gmra.mrb[4].mxu1 %vm293_vm1, %v8227_v10  ;;  %7450 = vmatmul.mubr.msk.f32.gmra.mrb[2].mxu0 %vm293_vm1, %v8227_v10  ;;  %v879_v10 = vld [vmem:[#allocation5 + $0x350] sm:$0xff] }
 0x266   :  { %8611 = vmatpush3.bf16.msra.mxu0 %v10931_v6  ;;  %8236 = vmatprep.mubr.msk.f32.mxu0 %vm163_vm0, %v785_v62  ;;  %v11131_v6 = vpack.c.bf16 %v889_v9, %v885_v18  ;;  %v897_v62 = vld [vmem:[#allocation5 + $0x3e0] sm:$0xff]  ;;  %v11139_v37 = vpack.c.bf16 %v883_v61, %v879_v10  ;;  %v11143_v9 = vpack.c.bf16 %v892_v60, %v888_v47  ;;  %v887_v18 = vld [vmem:[#allocation5 + $0x390] sm:$0xff]  ;;  %v910_v47 = vld [vmem:[#allocation5 + $0x448] sm:$0xff] }
 0x267   :  { %8637 = vmatprep.subr.bf16.mxu0 %v11111_v4  ;;  %8617 = vmatprep.subr.bf16.mxu1 %v11113_v38  ;;  %v901_v61 = vld [vmem:[#allocation5 + $0x400] sm:$0xff]  ;;  %v914_v60 = vld [vmem:[#allocation5 + $0x468] sm:$0xff]  ;;  %v899_v4 = vld [vmem:[#allocation5 + $0x3f0] sm:$0xff] }
 0x268   :  { %8619 = vmatpush1.bf16.msra.mxu1 %v11116_v3  ;;  %13945 = vst [vmem:[#allocation45_spill] sm:$0xff] %v11131_v6  ;;  %987 = vmatprep.mubr.f32.mxu1 %v13938_v54  ;;  %13947 = vst [vmem:[#allocation47_spill] sm:$0xff] %v11139_v37  ;;  %v906_v3 = vld [vmem:[#allocation5 + $0x428] sm:$0xff] }
 0x269   :  { %8237 = vmatmul.mubr.msk.f32.vlgmr.msra.gmra.mrb[4].mxu0 %vm163_vm0, %v786_v12  ;;  %8621 = vmatprep.subr.bf16.mxu1 %v11120_v24  ;;  %13948 = vst [vmem:[#allocation48_spill] sm:$0xff] %v11143_v9  ;;  %v891_v12 = vld [vmem:[#allocation5 + $0x3b0] sm:$0xff]  ;;  %v11146_v24 = vpack.c.bf16 %v897_v62, %v893_v50  ;;  %v11149_v10 = vpack.c.bf16 %v906_v3, %v902_v27  ;;  %v904_v50 = vld [vmem:[#allocation5 + $0x418] sm:$0xff] }
 0x26a   :  { %8639 = vmatpush1.bf16.msra.mxu0 %v11124_v30  ;;  %1064 = vmatprep.mubr.f32.mxu0 %v13938_v54  ;;  %v905_v30 = vld [vmem:[#allocation5 + $0x420] sm:$0xff]  ;;  %v11152_v38 = vpack.c.bf16 %v891_v12, %v887_v18  ;;  %v908_v62 = vld [vmem:[#allocation5 + $0x438] sm:$0xff]  ;;  %v11161_v27 = vpack.c.bf16 %v914_v60, %v910_v47  ;;  %v915_v60 = vld [vmem:[#allocation5 + $0x470] sm:$0xff] }
 0x26b   :  { %8641 = vmatprep.subr.bf16.mxu0 %v11128_v21  ;;  %13949 = vst [vmem:[#allocation49_spill] sm:$0xff] %v11146_v24  ;;  %13950 = vst [vmem:[#allocation50_spill] sm:$0xff] %v11149_v10  ;;  %v11155_v21 = vpack.c.bf16 %v900_v45, %v896_v35  ;;  %v11158_v3 = vpack.c.bf16 %v905_v30, %v901_v61  ;;  %v909_v18 = vld [vmem:[#allocation5 + $0x440] sm:$0xff]  ;;  %v11167_v35 = vpack.c.bf16 %v908_v62, %v904_v50  ;;  %v903_v45 = vld [vmem:[#allocation5 + $0x410] sm:$0xff] }
 0x26c   :  { %8623 = vmatpush1.bf16.msra.mxu1 %v11131_v6  ;;  %13951 = vst [vmem:[#allocation51_spill] sm:$0xff] %v11152_v38  ;;  %v895_v6 = vld [vmem:[#allocation5 + $0x3d0] sm:$0xff]  ;;  %13954 = vst [vmem:[#allocation54_spill] sm:$0xff] %v11161_v27  ;;  %v913_v12 = vld [vmem:[#allocation5 + $0x460] sm:$0xff] }
 0x26d   :  { %8625 = vmatprep.subr.bf16.mxu1 %v11136_v40  ;;  %13952 = vst [vmem:[#allocation52_spill] sm:$0xff] %v11155_v21  ;;  %13953 = vst [vmem:[#allocation53_spill] sm:$0xff] %v11158_v3  ;;  %v912_v30 = vld [vmem:[#allocation5 + $0x458] sm:$0xff] }
 0x26e   :  { %8643 = vmatpush1.bf16.msra.mxu0 %v11139_v37  ;;  %v11164_v37 = vpack.c.bf16 %v899_v4, %v895_v6  ;;  %13956 = vst [vmem:[#allocation56_spill] sm:$0xff] %v11167_v35  ;;  %v916_v61 = vld [vmem:[#allocation5 + $0x478] sm:$0xff]  ;;  %v911_v6 = vld [vmem:[#allocation5 + $0x450] sm:$0xff] }
 0x26f   :  { %8645 = vmatprep.subr.bf16.mxu0 %v11143_v9  ;;  %v11170_v9 = vpack.c.bf16 %v913_v12, %v909_v18  ;;  %v11177_v4 = vpack.c.bf16 %v916_v61, %v912_v30  ;;  %v11181_v50 = vpack.c.bf16 %v915_v60, %v911_v6  ;;  %v160_v61 = vld [vmem:[#allocation7] sm:$0xf] }
 0x270   :  { %8627 = vmatpush1.bf16.msra.mxu1 %v11146_v24  ;;  %13955 = vst [vmem:[#allocation55_spill] sm:$0xff] %v11164_v37  ;;  %v907_v24 = vld [vmem:[#allocation5 + $0x430] sm:$0xff] }
 0x271   :  { %8629 = vmatprep.subr.bf16.mxu1 %v11149_v10  ;;  %13957 = vst [vmem:[#allocation57_spill] sm:$0xff] %v11170_v9  ;;  %v11174_v47 = vpack.c.bf16 %v907_v24, %v903_v45  ;;  %13959 = vst [vmem:[#allocation59_spill] sm:$0xff] %v11177_v4  ;;  %v455_v24 = vlaneseq }
 0x272   :  { %8647 = vmatpush1.bf16.msra.mxu0 %v11152_v38  ;;  %13960 = vst [vmem:[#allocation60_spill] sm:$0xff] %v11181_v50 }
 0x273   :  { %8649 = vmatprep.subr.bf16.mxu0 %v11155_v21  ;;  %13958 = vst [vmem:[#allocation58_spill] sm:$0xff] %v11174_v47  ;;  %v11192_v12 = vshrl.u32 %v455_v24, 7 }
 0x274   :  { %8631 = vmatpush1.bf16.msra.mxu1 %v11158_v3 }
 0x275   :  { %8633 = vmatprep.subr.bf16.mxu1 %v11161_v27  ;;  %v13584_v45 = vsub.s32 0, %v11192_v12  ;;  %v13586_v30 = vsub.s32 2, %v11192_v12  ;;  %v13590_v6 = vsub.s32 1, %v11192_v12  ;;  %v469_v60 = vsub.s32 3, %v11192_v12 }
 0x276   :  { %8651 = vmatpush1.bf16.msra.mxu0 %v11164_v37 }
 0x277   :  { %8653 = vmatprep.subr.bf16.mxu0 %v11167_v35  ;;  %v11208_v24 = vrot.slane %v160_v61, %v13590_v6 }
 0x278   :  { %8635 = vmatpush1.bf16.msra.mxu1 %v11170_v9 }
 0x279   :  { %13963 = vst [vmem:[#allocation63_spill] sm:$0xff] %v11208_v24 }
 0x27a   :  { %8655 = vmatpush1.bf16.msra.mxu0 %v11174_v47 }
 0x27b   :  { %8657 = vmatprep.subr.bf16.mxu0 %v11177_v4 }
 0x27e   :  { %8659 = vmatpush1.bf16.msra.mxu0 %v11181_v50  ;;  %v11210_v50 = vrot.slane %v160_v61, %v469_v60 }
 0x280   :  { %13964 = vst [vmem:[#allocation64_spill] sm:$0xff] %v11210_v50 }
 0x33c   :  { %v8238_v62 = vpop.f32.mrb[4].mxu0 }
 0x33d   :  { %v859_v18 = vpop.f32.mrb[5].mxu0 }
 0x33e   :  { %7453 = vmatmul.mubr.msk.f32.vlgmr.msra.gmra.mrb[2].mxu1 %vm293_vm1, %v859_v18  ;;  %7455 = vmatmul.mubr.msk.f32.vlgmr.msra.gmra.mrb[0].mxu0 %vm293_vm1, %v859_v18  ;;  %v11200_v18 = vrot.slane %v160_v61, %v13584_v45 }
 0x33f   :  { %993 = vmatprep.mubr.f32.mxu1 %v13938_v54  ;;  %1070 = vmatprep.mubr.f32.mxu0 %v13938_v54 }
 0x340   :  { %13961 = vst [vmem:[#allocation61_spill] sm:$0xff] %v11200_v18 }
 0x342   :  { %7454 = vmatmul.mubr.msk.f32.gmra.mrb[4].mxu1 %vm293_vm1, %v8238_v62  ;;  %7456 = vmatmul.mubr.msk.f32.gmra.mrb[2].mxu0 %vm293_vm1, %v8238_v62  ;;  %v11204_v62 = vrot.slane %v160_v61, %v13586_v30 }
 0x343   :  { %1259 = vmatprep.mubr.f32.mxu1 %v13938_v54 }
 0x344   :  { %13962 = vst [vmem:[#allocation62_spill] sm:$0xff] %v11204_v62 }
 0x411   :  { %v989_v4 = vpop.f32.mrb[2].mxu1  ;;  %v1066_v47 = vpop.f32.mrb[0].mxu0 }
 0x412   :  { %v10292_v9 = vadd.f32 %v989_v4, %v11200_v18  ;;  %v10296_v35 = vadd.f32 %v1066_v47, %v11204_v62  ;;  %v991_v37 = vpop.f32.mrb[3].mxu1  ;;  %v1068_v27 = vpop.f32.mrb[1].mxu0 }
 0x413   :  { %v10293_v45 = vadd.f32 %v991_v37, %v11208_v24  ;;  %v10297_v3 = vadd.f32 %v1068_v27, %v11210_v50 }
 0x414   :  { %v1085_v38 = vmax.f32 %v10292_v9, 0.0  ;;  %v1087_v10 = vmax.f32 %v10296_v35, 0.0 }
 0x415   :  { %v995_v30 = vpop.f32.mrb[4].mxu1  ;;  %v1072_v21 = vpop.f32.mrb[2].mxu0  ;;  %v1086_v32 = vmax.f32 %v10293_v45, 0.0  ;;  %v1088_v5 = vmax.f32 %v10297_v3, 0.0 }
 0x416   :  { %v10294_v6 = vadd.f32 %v995_v30, %v11200_v18  ;;  %v10298_v61 = vadd.f32 %v1072_v21, %v11204_v62  ;;  %v997_v60 = vpop.f32.mrb[5].mxu1  ;;  %v1074_v40 = vpop.f32.mrb[3].mxu0  ;;  %v1102_v44 = vrot.slane %v1085_v38, 1  ;;  %v1108_v9 = vrot.slane %v1087_v10, 1 }
 0x417   :  { %v10295_v4 = vadd.f32 %v997_v60, %v11208_v24  ;;  %v10299_v47 = vadd.f32 %v1074_v40, %v11210_v50  ;;  %v1105_v30 = vrot.slane %v1086_v32, 1  ;;  %v1111_v62 = vrot.slane %v1088_v5, 1  ;;  %v1364_v24 = vld [vmem:[#allocation10 + $0xd8] sm:$0xff] }
 0x418   :  { %v1089_v56 = vmax.f32 %v10294_v6, 0.0  ;;  %v1091_v37 = vmax.f32 %v10298_v61, 0.0 }
 0x419   :  { %v1090_v49 = vmax.f32 %v10295_v4, 0.0  ;;  %v1092_v27 = vmax.f32 %v10299_v47, 0.0 }
 0x41a   :  { %v1103_v35 = vrot.slane %v1089_v56, 1  ;;  %v1109_v42 = vrot.slane %v1091_v37, 1 }
 0x41b   :  { %v1106_v18 = vrot.slane %v1090_v49, 1  ;;  %v1112_v21 = vrot.slane %v1092_v27, 1 }
 0x41c   :  { %v11220_v34 = vmax.f32 %v1089_v56, %v1103_v35  ;;  %v1104_v45 = vsel %vm1101_vm2, %v1102_v44, %v1103_v35  ;;  %v1110_v40 = vsel %vm1101_vm2, %v1108_v9, %v1109_v42  ;;  %v11238_v44 = vmax.f32 %v1091_v37, %v1109_v42  ;;  %v1338_v42 = vld [vmem:[#allocation10 + $0x8] sm:$0xff]  ;;  %v1344_v37 = vld [vmem:[#allocation10 + $0x38] sm:$0xff] }
 0x41d   :  { %v11224_v3 = vmax.f32 %v1085_v38, %v1104_v45  ;;  %v1107_v6 = vsel %vm1101_vm2, %v1105_v30, %v1106_v18  ;;  %v11229_v60 = vmax.f32 %v1087_v10, %v1110_v40  ;;  %v1113_v4 = vsel %vm1101_vm2, %v1111_v62, %v1112_v21  ;;  %v1340_v62 = vld [vmem:[#allocation10 + $0x18] sm:$0xff]  ;;  %v1346_v45 = vld [vmem:[#allocation10 + $0x48] sm:$0xff] }
 0x41e   :  { %v11227_v61 = vmax.f32 %v1086_v32, %v1107_v6  ;;  %v11232_v47 = vmax.f32 %v1092_v27, %v1112_v21  ;;  %v11236_v50 = vmax.f32 %v1088_v5, %v1113_v4  ;;  %v11240_v9 = vmax.f32 %v1090_v49, %v1106_v18  ;;  %v1341_v49 = vld [vmem:[#allocation10 + $0x20] sm:$0xff]  ;;  %v1347_v27 = vld [vmem:[#allocation10 + $0x50] sm:$0xff]  ;;  %v1350_v40 = vld [vmem:[#allocation10 + $0x68] sm:$0xff] }
 0x41f   :  { %v10429_v56 = vpack.i.bf16 %v11220_v34, %v11224_v3  ;;  %v1337_v5 = vld [vmem:[#allocation10] sm:$0xff]  ;;  %v11252_v18 = vpack.c.bf16 %v1341_v49, %v1338_v42  ;;  %v11256_v30 = vpack.c.bf16 %v1347_v27, %v1344_v37  ;;  %v1343_v21 = vld [vmem:[#allocation10 + $0x30] sm:$0xff]  ;;  %v1358_v37 = vld [vmem:[#allocation10 + $0xa8] sm:$0xff] }
 0x420   :  { %v10419_v38 = vpack.i.bf16 %v11229_v60, %v11227_v61  ;;  %v10434_v32 = vpack.i.bf16 %v11232_v47, %v11236_v50  ;;  %v10424_v10 = vpack.i.bf16 %v11238_v44, %v11240_v9  ;;  %v11254_v35 = vpack.c.bf16 %v1340_v62, %v1337_v5  ;;  %v1353_v6 = vld [vmem:[#allocation10 + $0x80] sm:$0xff]  ;;  %v1359_v42 = vld [vmem:[#allocation10 + $0xb0] sm:$0xff]  ;;  %v1362_v27 = vld [vmem:[#allocation10 + $0xc8] sm:$0xff] }
 0x421   :  { %10430 = vrot.lane.b32.xlu1 %v10429_v56, %s10729_s1  ;;  %13965 = vst [vmem:[#allocation65_spill] sm:$0xff] %v11252_v18  ;;  %13967 = vst [vmem:[#allocation67_spill] sm:$0xff] %v11256_v30  ;;  %8673 = vmatprep.subr.bf16.mxu0 %v11252_v18  ;;  %v11260_v4 = vpack.c.bf16 %v1346_v45, %v1343_v21  ;;  %v11263_v56 = vpack.c.bf16 %v1353_v6, %v1350_v40  ;;  %v1355_v62 = vld [vmem:[#allocation10 + $0x90] sm:$0xff]  ;;  %v1365_v21 = vld [vmem:[#allocation10 + $0xe0] sm:$0xff] }
 0x422   :  { %10420 = vrot.lane.b32.xlu0 %v10419_v38, %s10729_s1  ;;  %13966 = vst [vmem:[#allocation66_spill] sm:$0xff] %v11254_v35  ;;  %8675 = vmatpush1.bf16.msra.mxu0 %v11254_v35  ;;  %v1349_v38 = vld [vmem:[#allocation10 + $0x60] sm:$0xff]  ;;  %v11272_v45 = vpack.c.bf16 %v1358_v37, %v1355_v62  ;;  %v11275_v40 = vpack.c.bf16 %v1365_v21, %v1362_v27  ;;  %v1374_v62 = vld [vmem:[#allocation10 + $0x128] sm:$0xff]  ;;  %v2029_v18 = vld [vmem:[#allocation10 + $0x778] sm:$0xff] }
 0x423   :  { %13968 = vst [vmem:[#allocation68_spill] sm:$0xff] %v11260_v4  ;;  %8677 = vmatprep.subr.bf16.mxu0 %v11256_v30  ;;  %13969 = vst [vmem:[#allocation69_spill] sm:$0xff] %v11263_v56  ;;  %v1361_v6 = vld [vmem:[#allocation10 + $0xc0] sm:$0xff] }
 0x424   :  { %13972 = vst [vmem:[#allocation72_spill] sm:$0xff] %v11272_v45  ;;  %13973 = vst [vmem:[#allocation73_spill] sm:$0xff] %v11275_v40  ;;  %v1377_v37 = vld [vmem:[#allocation10 + $0x140] sm:$0xff] }
 0x425   :  { %10435 = vrot.lane.b32.xlu1 %v10434_v32, %s10729_s1  ;;  %v1352_v32 = vld [vmem:[#allocation10 + $0x78] sm:$0xff]  ;;  %v11287_v21 = vpack.c.bf16 %v1377_v37, %v1374_v62 }
 0x426   :  { %10425 = vrot.lane.b32.xlu0 %v10424_v10, %s10729_s1  ;;  %v1356_v10 = vld [vmem:[#allocation10 + $0x98] sm:$0xff]  ;;  %8679 = vmatpush1.bf16.msra.mxu0 %v11260_v4  ;;  %v11266_v49 = vpack.c.bf16 %v1352_v32, %v1349_v38  ;;  %v1371_v32 = vld [vmem:[#allocation10 + $0x110] sm:$0xff] }
 0x427   :  { %8681 = vmatprep.subr.bf16.mxu0 %v11263_v56  ;;  %v11269_v5 = vpack.c.bf16 %v1359_v42, %v1356_v10  ;;  %v1368_v38 = vld [vmem:[#allocation10 + $0xf8] sm:$0xff]  ;;  %v11278_v10 = vpack.c.bf16 %v1364_v24, %v1361_v6  ;;  %v1367_v56 = vld [vmem:[#allocation10 + $0xf0] sm:$0xff]  ;;  %13977 = vst [vmem:[#allocation77_spill] sm:$0xff] %v11287_v21 }
 0x428   :  { %13970 = vst [vmem:[#allocation70_spill] sm:$0xff] %v11266_v49  ;;  %v11281_v42 = vpack.c.bf16 %v1371_v32, %v1368_v38  ;;  %v1380_v24 = vld [vmem:[#allocation10 + $0x158] sm:$0xff]  ;;  %v1383_v6 = vld [vmem:[#allocation10 + $0x170] sm:$0xff] }
 0x429   :  { %13971 = vst [vmem:[#allocation71_spill] sm:$0xff] %v11269_v5  ;;  %13974 = vst [vmem:[#allocation74_spill] sm:$0xff] %v11278_v10  ;;  %v11293_v32 = vpack.c.bf16 %v1383_v6, %v1380_v24 }
 0x42a   :  { %8683 = vmatpush1.bf16.msra.mxu0 %v11266_v49  ;;  %13975 = vst [vmem:[#allocation75_spill] sm:$0xff] %v11281_v42  ;;  %v1370_v49 = vld [vmem:[#allocation10 + $0x108] sm:$0xff] }
 0x42b   :  { %8685 = vmatprep.subr.bf16.mxu0 %v11269_v5  ;;  %v11284_v27 = vpack.c.bf16 %v1370_v49, %v1367_v56  ;;  %v1373_v5 = vld [vmem:[#allocation10 + $0x120] sm:$0xff]  ;;  %13979 = vst [vmem:[#allocation79_spill] sm:$0xff] %v11293_v32  ;;  %v1386_v56 = vld [vmem:[#allocation10 + $0x188] sm:$0xff] }
 0x42c   :  { %v1389_v49 = vld [vmem:[#allocation10 + $0x1a0] sm:$0xff] }
 0x42d   :  { %13976 = vst [vmem:[#allocation76_spill] sm:$0xff] %v11284_v27  ;;  %v11299_v37 = vpack.c.bf16 %v1389_v49, %v1386_v56 }
 0x42e   :  { %8687 = vmatpush1.bf16.msra.mxu0 %v11272_v45  ;;  %v1376_v45 = vld [vmem:[#allocation10 + $0x138] sm:$0xff] }
 0x42f   :  { %8689 = vmatprep.subr.bf16.mxu0 %v11275_v40  ;;  %v11290_v38 = vpack.c.bf16 %v1376_v45, %v1373_v5  ;;  %v1379_v40 = vld [vmem:[#allocation10 + $0x150] sm:$0xff]  ;;  %13981 = vst [vmem:[#allocation81_spill] sm:$0xff] %v11299_v37  ;;  %v1392_v5 = vld [vmem:[#allocation10 + $0x1b8] sm:$0xff] }
 0x430   :  { %v1395_v45 = vld [vmem:[#allocation10 + $0x1d0] sm:$0xff] }
 0x431   :  { %13978 = vst [vmem:[#allocation78_spill] sm:$0xff] %v11290_v38  ;;  %v11305_v6 = vpack.c.bf16 %v1395_v45, %v1392_v5 }
 0x432   :  { %8691 = vmatpush1.bf16.msra.mxu0 %v11278_v10  ;;  %v1382_v10 = vld [vmem:[#allocation10 + $0x168] sm:$0xff] }
 0x433   :  { %8693 = vmatprep.subr.bf16.mxu0 %v11281_v42  ;;  %v11296_v62 = vpack.c.bf16 %v1382_v10, %v1379_v40  ;;  %v1385_v42 = vld [vmem:[#allocation10 + $0x180] sm:$0xff]  ;;  %13983 = vst [vmem:[#allocation83_spill] sm:$0xff] %v11305_v6  ;;  %v1398_v40 = vld [vmem:[#allocation10 + $0x1e8] sm:$0xff] }
 0x434   :  { %v1401_v10 = vld [vmem:[#allocation10 + $0x200] sm:$0xff] }
 0x435   :  { %13980 = vst [vmem:[#allocation80_spill] sm:$0xff] %v11296_v62  ;;  %v11311_v49 = vpack.c.bf16 %v1401_v10, %v1398_v40 }
 0x436   :  { %8695 = vmatpush1.bf16.msra.mxu0 %v11284_v27  ;;  %v1388_v27 = vld [vmem:[#allocation10 + $0x198] sm:$0xff] }
 0x437   :  { %8697 = vmatprep.subr.bf16.mxu0 %v11287_v21  ;;  %v11302_v24 = vpack.c.bf16 %v1388_v27, %v1385_v42  ;;  %v1391_v21 = vld [vmem:[#allocation10 + $0x1b0] sm:$0xff]  ;;  %13985 = vst [vmem:[#allocation85_spill] sm:$0xff] %v11311_v49  ;;  %v1404_v42 = vld [vmem:[#allocation10 + $0x218] sm:$0xff] }
 0x438   :  { %v1407_v27 = vld [vmem:[#allocation10 + $0x230] sm:$0xff] }
 0x439   :  { %13982 = vst [vmem:[#allocation82_spill] sm:$0xff] %v11302_v24  ;;  %v11317_v45 = vpack.c.bf16 %v1407_v27, %v1404_v42 }
 0x43a   :  { %8699 = vmatpush1.bf16.msra.mxu0 %v11290_v38  ;;  %v1394_v38 = vld [vmem:[#allocation10 + $0x1c8] sm:$0xff] }
 0x43b   :  { %8701 = vmatprep.subr.bf16.mxu0 %v11293_v32  ;;  %v11308_v56 = vpack.c.bf16 %v1394_v38, %v1391_v21  ;;  %v1397_v32 = vld [vmem:[#allocation10 + $0x1e0] sm:$0xff]  ;;  %13987 = vst [vmem:[#allocation87_spill] sm:$0xff] %v11317_v45  ;;  %v1410_v21 = vld [vmem:[#allocation10 + $0x248] sm:$0xff] }
 0x43c   :  { %v1413_v38 = vld [vmem:[#allocation10 + $0x260] sm:$0xff] }
 0x43d   :  { %13984 = vst [vmem:[#allocation84_spill] sm:$0xff] %v11308_v56  ;;  %v11323_v10 = vpack.c.bf16 %v1413_v38, %v1410_v21 }
 0x43e   :  { %8703 = vmatpush1.bf16.msra.mxu0 %v11296_v62  ;;  %v1400_v62 = vld [vmem:[#allocation10 + $0x1f8] sm:$0xff] }
 0x43f   :  { %8705 = vmatprep.subr.bf16.mxu0 %v11299_v37  ;;  %v11314_v5 = vpack.c.bf16 %v1400_v62, %v1397_v32  ;;  %v1403_v37 = vld [vmem:[#allocation10 + $0x210] sm:$0xff]  ;;  %13989 = vst [vmem:[#allocation89_spill] sm:$0xff] %v11323_v10  ;;  %v1416_v32 = vld [vmem:[#allocation10 + $0x278] sm:$0xff] }
 0x440   :  { %v1419_v62 = vld [vmem:[#allocation10 + $0x290] sm:$0xff] }
 0x441   :  { %13986 = vst [vmem:[#allocation86_spill] sm:$0xff] %v11314_v5  ;;  %v11329_v27 = vpack.c.bf16 %v1419_v62, %v1416_v32 }
 0x442   :  { %8707 = vmatpush1.bf16.msra.mxu0 %v11302_v24  ;;  %v1406_v24 = vld [vmem:[#allocation10 + $0x228] sm:$0xff] }
 0x443   :  { %8709 = vmatprep.subr.bf16.mxu0 %v11305_v6  ;;  %v11320_v40 = vpack.c.bf16 %v1406_v24, %v1403_v37  ;;  %v1409_v6 = vld [vmem:[#allocation10 + $0x240] sm:$0xff]  ;;  %13991 = vst [vmem:[#allocation91_spill] sm:$0xff] %v11329_v27  ;;  %v1422_v37 = vld [vmem:[#allocation10 + $0x2a8] sm:$0xff] }
 0x444   :  { %v1425_v24 = vld [vmem:[#allocation10 + $0x2c0] sm:$0xff] }
 0x445   :  { %13988 = vst [vmem:[#allocation88_spill] sm:$0xff] %v11320_v40  ;;  %v11335_v38 = vpack.c.bf16 %v1425_v24, %v1422_v37 }
 0x446   :  { %8711 = vmatpush1.bf16.msra.mxu0 %v11308_v56  ;;  %v1412_v56 = vld [vmem:[#allocation10 + $0x258] sm:$0xff] }
 0x447   :  { %8713 = vmatprep.subr.bf16.mxu0 %v11311_v49  ;;  %v11326_v42 = vpack.c.bf16 %v1412_v56, %v1409_v6  ;;  %v1415_v49 = vld [vmem:[#allocation10 + $0x270] sm:$0xff]  ;;  %13993 = vst [vmem:[#allocation93_spill] sm:$0xff] %v11335_v38  ;;  %v1428_v6 = vld [vmem:[#allocation10 + $0x2d8] sm:$0xff] }
 0x448   :  { %v1431_v56 = vld [vmem:[#allocation10 + $0x2f0] sm:$0xff] }
 0x449   :  { %13990 = vst [vmem:[#allocation90_spill] sm:$0xff] %v11326_v42  ;;  %v11341_v62 = vpack.c.bf16 %v1431_v56, %v1428_v6 }
 0x44a   :  { %8715 = vmatpush1.bf16.msra.mxu0 %v11314_v5  ;;  %v1418_v5 = vld [vmem:[#allocation10 + $0x288] sm:$0xff] }
 0x44b   :  { %8717 = vmatprep.subr.bf16.mxu0 %v11317_v45  ;;  %v11332_v21 = vpack.c.bf16 %v1418_v5, %v1415_v49  ;;  %v1421_v45 = vld [vmem:[#allocation10 + $0x2a0] sm:$0xff]  ;;  %13995 = vst [vmem:[#allocation95_spill] sm:$0xff] %v11341_v62 }
 0x44d   :  { %13992 = vst [vmem:[#allocation92_spill] sm:$0xff] %v11332_v21 }
 0x44e   :  { %8719 = vmatpush1.bf16.msra.mxu0 %v11320_v40  ;;  %v1424_v40 = vld [vmem:[#allocation10 + $0x2b8] sm:$0xff] }
 0x44f   :  { %8721 = vmatprep.subr.bf16.mxu0 %v11323_v10  ;;  %v11338_v32 = vpack.c.bf16 %v1424_v40, %v1421_v45  ;;  %v1427_v10 = vld [vmem:[#allocation10 + $0x2d0] sm:$0xff] }
 0x451   :  { %13994 = vst [vmem:[#allocation94_spill] sm:$0xff] %v11338_v32 }
 0x452   :  { %8723 = vmatpush1.bf16.msra.mxu0 %v11326_v42  ;;  %v1430_v42 = vld [vmem:[#allocation10 + $0x2e8] sm:$0xff] }
 0x453   :  { %8725 = vmatprep.subr.bf16.mxu0 %v11329_v27  ;;  %v11344_v49 = vpack.c.bf16 %v1430_v42, %v1427_v10 }
 0x455   :  { %13996 = vst [vmem:[#allocation96_spill] sm:$0xff] %v11344_v49 }
 0x456   :  { %8727 = vmatpush1.bf16.msra.mxu0 %v11332_v21 }
 0x457   :  { %8729 = vmatprep.subr.bf16.mxu0 %v11335_v38 }
 0x45a   :  { %8731 = vmatpush1.bf16.msra.mxu0 %v11338_v32 }
 0x45b   :  { %8733 = vmatprep.subr.bf16.mxu0 %v11341_v62 }
 0x45e   :  { %8735 = vmatpush1.bf16.msra.mxu0 %v11344_v49 }
 0x493   :  { %v10431_v5 = vpop.permute.xlu1 %10430 }
 0x494   :  { %v10432_v37 = vunpack.i.l.bf16 %v10431_v5  ;;  %v10421_v24 = vpop.permute.xlu0 %10420  ;;  %v10433_v32 = vunpack.i.h.bf16 %v10431_v5 }
 0x495   :  { %v10423_v21 = vunpack.i.h.bf16 %v10421_v24  ;;  %v10422_v45 = vunpack.i.l.bf16 %v10421_v24 }
 0x497   :  { %v1154_v40 = vsel %vm293_vm1, %v10432_v37, %v10422_v45  ;;  %v1155_v6 = vsel %vm293_vm1, %v10422_v45, %v10423_v21  ;;  %v10436_v56 = vpop.permute.xlu1 %10435 }
 0x498   :  { %v10438_v38 = vunpack.i.h.bf16 %v10436_v56  ;;  %v10437_v27 = vunpack.i.l.bf16 %v10436_v56  ;;  %v10426_v4 = vpop.permute.xlu0 %10425  ;;  %v1168_v62 = vmax.f32 %v11224_v3, %v1154_v40  ;;  %v1169_v49 = vmax.f32 %v11227_v61, %v1155_v6  ;;  %v1345_v6 = vld [vmem:[#allocation10 + $0x40] sm:$0xff] }
 0x499   :  { %v10428_v10 = vunpack.i.h.bf16 %v10426_v4  ;;  %v10427_v42 = vunpack.i.l.bf16 %v10426_v4 }
 0x49a   :  { %v1175_v30 = vmax.f32 %v11232_v47, %v10438_v38  ;;  %v1156_v24 = vsel %vm293_vm1, %v10423_v21, %v10437_v27  ;;  %v1171_v35 = vmax.f32 %v11236_v50, %v10437_v27  ;;  %v1387_v50 = vld [vmem:[#allocation10 + $0x190] sm:$0xff]  ;;  %v1390_v27 = vld [vmem:[#allocation10 + $0x1a8] sm:$0xff] }
 0x49b   :  { %v1157_v37 = vsel %vm293_vm1, %v10433_v32, %v10427_v42  ;;  %v1158_v45 = vsel %vm293_vm1, %v10427_v42, %v10428_v10  ;;  %v1159_v56 = vsel %vm293_vm1, %v10428_v10, %v10438_v38  ;;  %v1170_v21 = vmax.f32 %v11229_v60, %v1156_v24  ;;  %v1348_v10 = vld [vmem:[#allocation10 + $0x58] sm:$0xff]  ;;  %v1399_v42 = vld [vmem:[#allocation10 + $0x1f0] sm:$0xff]  ;;  %v1402_v24 = vld [vmem:[#allocation10 + $0x208] sm:$0xff] }
 0x49c   :  { %v1172_v5 = vmax.f32 %v11220_v34, %v1157_v37  ;;  %v1173_v4 = vmax.f32 %v11240_v9, %v1158_v45  ;;  %v1174_v32 = vmax.f32 %v11238_v44, %v1159_v56  ;;  %v11370_v38 = vpack.c.bf16 %v1175_v30, %v1171_v35  ;;  %v1177_v34 = vld [vmem:[#allocation8] sm:$0x3f]  ;;  %v1339_v44 = vld [vmem:[#allocation10 + $0x10] sm:$0xff]  ;;  %v1393_v30 = vld [vmem:[#allocation10 + $0x1c0] sm:$0xff] }
 0x49d   :  { %v11381_v60 = vpack.c.bf16 %v1390_v27, %v1387_v50  ;;  %v1342_v9 = vld [vmem:[#allocation10 + $0x28] sm:$0xff]  ;;  %v11397_v37 = vpack.c.bf16 %v1348_v10, %v1345_v6  ;;  %v11400_v45 = vpack.c.bf16 %v1402_v24, %v1399_v42  ;;  %v1351_v56 = vld [vmem:[#allocation10 + $0x70] sm:$0xff]  ;;  %v1357_v27 = vld [vmem:[#allocation10 + $0xa0] sm:$0xff] }
 0x49e   :  { %v11364_v61 = vpack.c.bf16 %v1172_v5, %v1168_v62  ;;  %v11366_v47 = vpack.c.bf16 %v1173_v4, %v1169_v49  ;;  %v11383_v35 = vpack.c.bf16 %v1174_v32, %v1170_v21  ;;  %v1396_v62 = vld [vmem:[#allocation10 + $0x1d8] sm:$0xff]  ;;  %v11390_v49 = vpack.c.bf16 %v1342_v9, %v1339_v44  ;;  %v1354_v5 = vld [vmem:[#allocation10 + $0x88] sm:$0xff]  ;;  %v1405_v4 = vld [vmem:[#allocation10 + $0x220] sm:$0xff] }
 0x49f   :  { %13999 = vst [vmem:[#allocation97_spill] sm:$0xff] %v11381_v60  ;;  %v11393_v40 = vpack.c.bf16 %v1396_v62, %v1393_v30  ;;  %14002 = vst [vmem:[#allocation100_spill] sm:$0xff] %v11397_v37  ;;  %v1408_v21 = vld [vmem:[#allocation10 + $0x238] sm:$0xff]  ;;  %v11403_v32 = vpack.c.bf16 %v1354_v5, %v1351_v56  ;;  %v1411_v44 = vld [vmem:[#allocation10 + $0x250] sm:$0xff] }
 0x4a0   :  { %8662 = vmatprep.subr.msk.bf16.mxu1 %vm11360_vm5, %v11366_v47  ;;  %14000 = vst [vmem:[#allocation98_spill] sm:$0xff] %v11390_v49  ;;  %14003 = vst [vmem:[#allocation101_spill] sm:$0xff] %v11400_v45  ;;  %v11406_v50 = vpack.c.bf16 %v1408_v21, %v1405_v4  ;;  %v1414_v9 = vld [vmem:[#allocation10 + $0x268] sm:$0xff]  ;;  %v1363_v6 = vld [vmem:[#allocation10 + $0xd0] sm:$0xff] }
 0x4a1   :  { %8665 = vmatpush1.bf16.msk.msra.mxu1 %vm11360_vm5, %v11364_v61  ;;  %14001 = vst [vmem:[#allocation99_spill] sm:$0xff] %v11393_v40  ;;  %14004 = vst [vmem:[#allocation102_spill] sm:$0xff] %v11403_v32  ;;  %v11412_v62 = vpack.c.bf16 %v1414_v9, %v1411_v44  ;;  %v1366_v10 = vld [vmem:[#allocation10 + $0xe8] sm:$0xff]  ;;  %v1417_v42 = vld [vmem:[#allocation10 + $0x280] sm:$0xff] }
 0x4a2   :  { %8668 = vmatprep.subr.msk.bf16.mxu1 %vm11360_vm5, %v11370_v38  ;;  %14005 = vst [vmem:[#allocation103_spill] sm:$0xff] %v11406_v50  ;;  %v1420_v24 = vld [vmem:[#allocation10 + $0x298] sm:$0xff]  ;;  %v11415_v56 = vpack.c.bf16 %v1366_v10, %v1363_v6  ;;  %v1369_v4 = vld [vmem:[#allocation10 + $0x100] sm:$0xff] }
 0x4a3   :  { %14007 = vst [vmem:[#allocation105_spill] sm:$0xff] %v11412_v62  ;;  %v11418_v5 = vpack.c.bf16 %v1420_v24, %v1417_v42  ;;  %v1372_v21 = vld [vmem:[#allocation10 + $0x118] sm:$0xff]  ;;  %v1429_v6 = vld [vmem:[#allocation10 + $0x2e0] sm:$0xff] }
 0x4a4   :  { %7459 = vmatmul.mubr.msk.f32.vlgmr.msra.gmra.mrb[8].mxu1 %vm1178_vm6, %v1177_v34  ;;  %14008 = vst [vmem:[#allocation106_spill] sm:$0xff] %v11415_v56  ;;  %v11421_v44 = vpack.c.bf16 %v1372_v21, %v1369_v4  ;;  %v1432_v10 = vld [vmem:[#allocation10 + $0x2f8] sm:$0xff]  ;;  %v1434_v21 = vld [vmem:[#allocation10 + $0x308] sm:$0xff] }
 0x4a5   :  { %8671 = vmatpush1.bf16.msk.msra.mxu1 %vm11360_vm5, %v11383_v35  ;;  %1330 = vmatprep.mubr.f32.mxu1 %v13938_v54  ;;  %14009 = vst [vmem:[#allocation107_spill] sm:$0xff] %v11418_v5  ;;  %v11430_v24 = vpack.c.bf16 %v1432_v10, %v1429_v6  ;;  %v1436_v6 = vld [vmem:[#allocation10 + $0x318] sm:$0xff]  ;;  %v1435_v10 = vld [vmem:[#allocation10 + $0x310] sm:$0xff] }
 0x4a6   :  { %8785 = vmatprep.subr.bf16.mxu1 %v11381_v60  ;;  %14010 = vst [vmem:[#allocation108_spill] sm:$0xff] %v11421_v44  ;;  %v1455_v60 = vld [vmem:[#allocation10 + $0x3b0] sm:$0xff] }
 0x4a7   :  { %14013 = vst [vmem:[#allocation111_spill] sm:$0xff] %v11430_v24 }
 0x4a8   :  { %7462 = vmatmul.mubr.msk.f32.vlgmr.msra.gmra.mrb[10].mxu1 %vm1178_vm6, %v1177_v34  ;;  %v1360_v34 = vld [vmem:[#allocation10 + $0xb8] sm:$0xff] }
 0x4a9   :  { %8787 = vmatpush3.bf16.msra.mxu1 %v11390_v49  ;;  %v11409_v30 = vpack.c.bf16 %v1360_v34, %v1357_v27  ;;  %v1423_v27 = vld [vmem:[#allocation10 + $0x2b0] sm:$0xff]  ;;  %v1426_v34 = vld [vmem:[#allocation10 + $0x2c8] sm:$0xff] }
 0x4aa   :  { %8789 = vmatprep.subr.bf16.mxu1 %v11393_v40  ;;  %v11424_v9 = vpack.c.bf16 %v1426_v34, %v1423_v27  ;;  %v1437_v27 = vld [vmem:[#allocation10 + $0x320] sm:$0xff]  ;;  %v1450_v40 = vld [vmem:[#allocation10 + $0x388] sm:$0xff] }
 0x4ab   :  { %14006 = vst [vmem:[#allocation104_spill] sm:$0xff] %v11409_v30  ;;  %v11437_v34 = vpack.c.bf16 %v1437_v27, %v1434_v21  ;;  %v1442_v27 = vld [vmem:[#allocation10 + $0x348] sm:$0xff] }
 0x4ac   :  { %14011 = vst [vmem:[#allocation109_spill] sm:$0xff] %v11424_v9 }
 0x4ad   :  { %8791 = vmatpush3.bf16.msra.mxu1 %v11397_v37  ;;  %14015 = vst [vmem:[#allocation113_spill] sm:$0xff] %v11437_v34  ;;  %8737 = vmatprep.subr.bf16.mxu0 %v11437_v34  ;;  %v1449_v37 = vld [vmem:[#allocation10 + $0x380] sm:$0xff]  ;;  %v2020_v34 = vld [vmem:[#allocation10 + $0x730] sm:$0xff] }
 0x4ae   :  { %8793 = vmatprep.subr.bf16.mxu1 %v11400_v45  ;;  %v1444_v45 = vld [vmem:[#allocation10 + $0x358] sm:$0xff] }
 0x4b1   :  { %8795 = vmatpush3.bf16.msra.mxu1 %v11403_v32  ;;  %v1441_v32 = vld [vmem:[#allocation10 + $0x340] sm:$0xff] }
 0x4b2   :  { %8797 = vmatprep.subr.bf16.mxu1 %v11406_v50  ;;  %v1375_v50 = vld [vmem:[#allocation10 + $0x130] sm:$0xff] }
 0x4b5   :  { %8799 = vmatpush3.bf16.msra.mxu1 %v11409_v30  ;;  %v1378_v30 = vld [vmem:[#allocation10 + $0x148] sm:$0xff] }
 0x4b6   :  { %8801 = vmatprep.subr.bf16.mxu1 %v11412_v62  ;;  %v11427_v42 = vpack.c.bf16 %v1378_v30, %v1375_v50  ;;  %v1381_v62 = vld [vmem:[#allocation10 + $0x160] sm:$0xff]  ;;  %v13650_v50 = vmov 0.0|0.0  }
 0x4b7   :  { %v1433_v30 = vld [vmem:[#allocation10 + $0x300] sm:$0xff] }
 0x4b8   :  { %14012 = vst [vmem:[#allocation110_spill] sm:$0xff] %v11427_v42 }
 0x4b9   :  { %8803 = vmatpush3.bf16.msra.mxu1 %v11415_v56  ;;  %v1384_v56 = vld [vmem:[#allocation10 + $0x178] sm:$0xff] }
 0x4ba   :  { %8805 = vmatprep.subr.bf16.mxu1 %v11418_v5  ;;  %v11433_v4 = vpack.c.bf16 %v1384_v56, %v1381_v62  ;;  %v1443_v62 = vld [vmem:[#allocation10 + $0x350] sm:$0xff] }
 0x4bc   :  { %14014 = vst [vmem:[#allocation112_spill] sm:$0xff] %v11433_v4 }
 0x4bd   :  { %8807 = vmatpush3.bf16.msra.mxu1 %v11421_v44  ;;  %v11441_v44 = vpack.c.bf16 %v1436_v6, %v1433_v30  ;;  %v11451_v30 = vpack.c.bf16 %v1444_v45, %v1441_v32 }
 0x4be   :  { %8809 = vmatprep.subr.bf16.mxu1 %v11424_v9  ;;  %v1438_v9 = vld [vmem:[#allocation10 + $0x328] sm:$0xff] }
 0x4bf   :  { %14016 = vst [vmem:[#allocation114_spill] sm:$0xff] %v11441_v44  ;;  %14020 = vst [vmem:[#allocation118_spill] sm:$0xff] %v11451_v30 }
 0x4c1   :  { %8811 = vmatpush3.bf16.msra.mxu1 %v11427_v42  ;;  %v1440_v42 = vld [vmem:[#allocation10 + $0x338] sm:$0xff] }
 0x4c2   :  { %8813 = vmatprep.subr.bf16.mxu1 %v11430_v24  ;;  %v11443_v24 = vpack.c.bf16 %v1438_v9, %v1435_v10  ;;  %v11445_v21 = vpack.c.bf16 %v1443_v62, %v1440_v42  ;;  %v1445_v42 = vld [vmem:[#allocation10 + $0x360] sm:$0xff]  ;;  %v14021_v10 = vmov 0.0|0.0   ;;  %v1448_v62 = vld [vmem:[#allocation10 + $0x378] sm:$0xff] }
 0x4c3   :  { %v11463_v45 = vpack.c.bf16 %v1448_v62, %v1445_v42  ;;  %v1457_v62 = vld [vmem:[#allocation10 + $0x3c0] sm:$0xff] }
 0x4c4   :  { %14017 = vst [vmem:[#allocation115_spill] sm:$0xff] %v11443_v24  ;;  %14018 = vst [vmem:[#allocation116_spill] sm:$0xff] %v11445_v21 }
 0x4c5   :  { %8815 = vmatpush3.bf16.msra.mxu1 %v11433_v4  ;;  %v1439_v4 = vld [vmem:[#allocation10 + $0x330] sm:$0xff]  ;;  %14023 = vst [vmem:[#allocation120_spill] sm:$0xff] %v11463_v45 }
 0x4c6   :  { %8816 = vmatprep.subr.bf16.mxu1 %v13650_v50  ;;  %v1446_v50 = vld [vmem:[#allocation10 + $0x368] sm:$0xff]  ;;  %v11449_v9 = vpack.c.bf16 %v1442_v27, %v1439_v4  ;;  %v1453_v27 = vld [vmem:[#allocation10 + $0x3a0] sm:$0xff] }
 0x4c8   :  { %14019 = vst [vmem:[#allocation117_spill] sm:$0xff] %v11449_v9 }
 0x577   :  { %v1261_v56 = vpop.f32.mrb[8].mxu1 }
 0x578   :  { %v1263_v5 = vpop.f32.mrb[9].mxu1 }
 0x579   :  { %1573 = vmatprep.mubr.f32.mxu0 %v1263_v5  ;;  %1715 = vmatprep.mubr.f32.mxu1 %v1263_v5  ;;  %v11457_v5 = vpack.c.bf16 %v1449_v37, %v1446_v50  ;;  %v1451_v37 = vld [vmem:[#allocation10 + $0x390] sm:$0xff]  ;;  %v1454_v50 = vld [vmem:[#allocation10 + $0x3a8] sm:$0xff] }
 0x57a   :  { %1574 = vmatmul.mubr.f32.vlgmr.msra.gmra.mrb[6].mxu0 %v1261_v56  ;;  %1716 = vmatmul.mubr.f32.vlgmr.msra.gmra.mrb[12].mxu1 %v1261_v56  ;;  %v1447_v56 = vld [vmem:[#allocation10 + $0x370] sm:$0xff]  ;;  %v11473_v42 = vpack.c.bf16 %v1454_v50, %v1451_v37 }
 0x57b   :  { %8739 = vmatpush1.bf16.msra.mxu0 %v11441_v44  ;;  %8818 = vmatpush1.bf16.msra.mxu1 %v11443_v24  ;;  %v11453_v6 = vpop.f32.mrb[10].mxu1  ;;  %14022 = vst [vmem:[#allocation119_spill] sm:$0xff] %v11457_v5  ;;  %v1452_v44 = vld [vmem:[#allocation10 + $0x398] sm:$0xff]  ;;  %v11465_v32 = vpack.c.bf16 %v1450_v40, %v1447_v56  ;;  %v1458_v24 = vld [vmem:[#allocation10 + $0x3c8] sm:$0xff]  ;;  %v1459_v56 = vld [vmem:[#allocation10 + $0x3d0] sm:$0xff] }
 0x57c   :  { %8741 = vmatprep.subr.bf16.mxu0 %v11445_v21  ;;  %8819 = vmatprep.subr.bf16.mxu1 %v14021_v10  ;;  %v1334_v49 = vpop.f32.mrb[11].mxu1  ;;  %v11469_v4 = vpack.c.bf16 %v1455_v60, %v1452_v44  ;;  %v1456_v21 = vld [vmem:[#allocation10 + $0x3b8] sm:$0xff]  ;;  %14026 = vst [vmem:[#allocation123_spill] sm:$0xff] %v11473_v42  ;;  %v1463_v50 = vld [vmem:[#allocation10 + $0x3f0] sm:$0xff] }
 0x57d   :  { %7463 = vmatprep.mubr.msk.f32.mxu0 %vm1505_vm7, %v1334_v49  ;;  %7464 = vmatprep.mubr.msk.f32.mxu1 %vm1505_vm7, %v1334_v49  ;;  %14024 = vst [vmem:[#allocation121_spill] sm:$0xff] %v11465_v32  ;;  %v1461_v49 = vld [vmem:[#allocation10 + $0x3e0] sm:$0xff]  ;;  %v11475_v40 = vpack.c.bf16 %v1456_v21, %v1453_v27  ;;  %v1460_v44 = vld [vmem:[#allocation10 + $0x3d8] sm:$0xff]  ;;  %v1466_v27 = vld [vmem:[#allocation10 + $0x408] sm:$0xff] }
 0x57e   :  { %14025 = vst [vmem:[#allocation122_spill] sm:$0xff] %v11469_v4  ;;  %v11479_v60 = vpack.c.bf16 %v1461_v49, %v1458_v24  ;;  %v11483_v37 = vpack.c.bf16 %v1460_v44, %v1457_v62  ;;  %v1465_v49 = vld [vmem:[#allocation10 + $0x400] sm:$0xff]  ;;  %v11493_v62 = vpack.c.bf16 %v1466_v27, %v1463_v50  ;;  %v1475_v27 = vld [vmem:[#allocation10 + $0x450] sm:$0xff] }
 0x57f   :  { %8743 = vmatpush1.bf16.msra.mxu0 %v11449_v9  ;;  %8821 = vmatpush1.bf16.msra.mxu1 %v11451_v30  ;;  %14027 = vst [vmem:[#allocation124_spill] sm:$0xff] %v11475_v40  ;;  %v1464_v30 = vld [vmem:[#allocation10 + $0x3f8] sm:$0xff]  ;;  %v1467_v9 = vld [vmem:[#allocation10 + $0x410] sm:$0xff]  ;;  %v1469_v44 = vld [vmem:[#allocation10 + $0x420] sm:$0xff] }
 0x580   :  { %8745 = vmatprep.subr.bf16.mxu0 %v11457_v5  ;;  %8822 = vmatprep.subr.bf16.mxu1 %v14021_v10  ;;  %14028 = vst [vmem:[#allocation125_spill] sm:$0xff] %v11479_v60  ;;  %v1462_v5 = vld [vmem:[#allocation10 + $0x3e8] sm:$0xff]  ;;  %14029 = vst [vmem:[#allocation126_spill] sm:$0xff] %v11483_v37  ;;  %v11489_v24 = vpack.c.bf16 %v1467_v9, %v1464_v30  ;;  %v1472_v30 = vld [vmem:[#allocation10 + $0x438] sm:$0xff] }
 0x581   :  { %v11485_v21 = vpack.c.bf16 %v1462_v5, %v1459_v56  ;;  %14032 = vst [vmem:[#allocation129_spill] sm:$0xff] %v11493_v62  ;;  %v1471_v56 = vld [vmem:[#allocation10 + $0x430] sm:$0xff]  ;;  %v11503_v50 = vpack.c.bf16 %v1472_v30, %v1469_v44  ;;  %v1481_v30 = vld [vmem:[#allocation10 + $0x480] sm:$0xff] }
 0x582   :  { %14031 = vst [vmem:[#allocation128_spill] sm:$0xff] %v11489_v24 }
 0x583   :  { %8747 = vmatpush1.bf16.msra.mxu0 %v11463_v45  ;;  %8824 = vmatpush1.bf16.msra.mxu1 %v11465_v32  ;;  %14030 = vst [vmem:[#allocation127_spill] sm:$0xff] %v11485_v21  ;;  %v1470_v32 = vld [vmem:[#allocation10 + $0x428] sm:$0xff]  ;;  %v1473_v45 = vld [vmem:[#allocation10 + $0x440] sm:$0xff]  ;;  %14035 = vst [vmem:[#allocation132_spill] sm:$0xff] %v11503_v50 }
 0x584   :  { %8749 = vmatprep.subr.bf16.mxu0 %v11469_v4  ;;  %8825 = vmatprep.subr.bf16.mxu1 %v14021_v10  ;;  %v1468_v4 = vld [vmem:[#allocation10 + $0x418] sm:$0xff]  ;;  %v11499_v9 = vpack.c.bf16 %v1473_v45, %v1470_v32  ;;  %v1478_v32 = vld [vmem:[#allocation10 + $0x468] sm:$0xff] }
 0x585   :  { %v11495_v5 = vpack.c.bf16 %v1468_v4, %v1465_v49  ;;  %v1477_v49 = vld [vmem:[#allocation10 + $0x460] sm:$0xff]  ;;  %v11513_v44 = vpack.c.bf16 %v1478_v32, %v1475_v27  ;;  %v1487_v32 = vld [vmem:[#allocation10 + $0x4b0] sm:$0xff] }
 0x586   :  { %14034 = vst [vmem:[#allocation131_spill] sm:$0xff] %v11499_v9 }
 0x587   :  { %8751 = vmatpush1.bf16.msra.mxu0 %v11473_v42  ;;  %8827 = vmatpush1.bf16.msra.mxu1 %v11475_v40  ;;  %14033 = vst [vmem:[#allocation130_spill] sm:$0xff] %v11495_v5  ;;  %v1476_v40 = vld [vmem:[#allocation10 + $0x458] sm:$0xff]  ;;  %v1479_v42 = vld [vmem:[#allocation10 + $0x470] sm:$0xff]  ;;  %14038 = vst [vmem:[#allocation135_spill] sm:$0xff] %v11513_v44 }
 0x588   :  { %8753 = vmatprep.subr.bf16.mxu0 %v11479_v60  ;;  %8828 = vmatprep.subr.bf16.mxu1 %v14021_v10  ;;  %v1474_v60 = vld [vmem:[#allocation10 + $0x448] sm:$0xff]  ;;  %v11509_v45 = vpack.c.bf16 %v1479_v42, %v1476_v40  ;;  %v1484_v40 = vld [vmem:[#allocation10 + $0x498] sm:$0xff] }
 0x589   :  { %v11505_v4 = vpack.c.bf16 %v1474_v60, %v1471_v56  ;;  %v1483_v56 = vld [vmem:[#allocation10 + $0x490] sm:$0xff]  ;;  %v11523_v27 = vpack.c.bf16 %v1484_v40, %v1481_v30  ;;  %v1493_v40 = vld [vmem:[#allocation10 + $0x4e0] sm:$0xff] }
 0x58a   :  { %14037 = vst [vmem:[#allocation134_spill] sm:$0xff] %v11509_v45 }
 0x58b   :  { %8755 = vmatpush1.bf16.msra.mxu0 %v11483_v37  ;;  %8830 = vmatpush1.bf16.msra.mxu1 %v11485_v21  ;;  %14036 = vst [vmem:[#allocation133_spill] sm:$0xff] %v11505_v4  ;;  %v1482_v21 = vld [vmem:[#allocation10 + $0x488] sm:$0xff]  ;;  %v1485_v37 = vld [vmem:[#allocation10 + $0x4a0] sm:$0xff]  ;;  %14041 = vst [vmem:[#allocation138_spill] sm:$0xff] %v11523_v27 }
 0x58c   :  { %8757 = vmatprep.subr.bf16.mxu0 %v11489_v24  ;;  %8831 = vmatprep.subr.bf16.mxu1 %v14021_v10  ;;  %v1480_v24 = vld [vmem:[#allocation10 + $0x478] sm:$0xff]  ;;  %v11519_v42 = vpack.c.bf16 %v1485_v37, %v1482_v21  ;;  %v1490_v21 = vld [vmem:[#allocation10 + $0x4c8] sm:$0xff] }
 0x58d   :  { %v11515_v60 = vpack.c.bf16 %v1480_v24, %v1477_v49  ;;  %v1489_v49 = vld [vmem:[#allocation10 + $0x4c0] sm:$0xff]  ;;  %v11533_v30 = vpack.c.bf16 %v1490_v21, %v1487_v32  ;;  %v1499_v21 = vld [vmem:[#allocation10 + $0x510] sm:$0xff] }
 0x58e   :  { %14040 = vst [vmem:[#allocation137_spill] sm:$0xff] %v11519_v42 }
 0x58f   :  { %8759 = vmatpush1.bf16.msra.mxu0 %v11493_v62  ;;  %8833 = vmatpush1.bf16.msra.mxu1 %v11495_v5  ;;  %14039 = vst [vmem:[#allocation136_spill] sm:$0xff] %v11515_v60  ;;  %v1488_v5 = vld [vmem:[#allocation10 + $0x4b8] sm:$0xff]  ;;  %v1491_v62 = vld [vmem:[#allocation10 + $0x4d0] sm:$0xff]  ;;  %14044 = vst [vmem:[#allocation141_spill] sm:$0xff] %v11533_v30 }
 0x590   :  { %8761 = vmatprep.subr.bf16.mxu0 %v11499_v9  ;;  %8834 = vmatprep.subr.bf16.mxu1 %v14021_v10  ;;  %v1486_v9 = vld [vmem:[#allocation10 + $0x4a8] sm:$0xff]  ;;  %v11529_v37 = vpack.c.bf16 %v1491_v62, %v1488_v5  ;;  %v1496_v5 = vld [vmem:[#allocation10 + $0x4f8] sm:$0xff] }
 0x591   :  { %v11525_v24 = vpack.c.bf16 %v1486_v9, %v1483_v56  ;;  %v1495_v56 = vld [vmem:[#allocation10 + $0x4f0] sm:$0xff]  ;;  %v11543_v32 = vpack.c.bf16 %v1496_v5, %v1493_v40 }
 0x592   :  { %14043 = vst [vmem:[#allocation140_spill] sm:$0xff] %v11529_v37 }
 0x593   :  { %8763 = vmatpush1.bf16.msra.mxu0 %v11503_v50  ;;  %8836 = vmatpush1.bf16.msra.mxu1 %v11505_v4  ;;  %14042 = vst [vmem:[#allocation139_spill] sm:$0xff] %v11525_v24  ;;  %v1494_v4 = vld [vmem:[#allocation10 + $0x4e8] sm:$0xff]  ;;  %v1497_v50 = vld [vmem:[#allocation10 + $0x500] sm:$0xff]  ;;  %14047 = vst [vmem:[#allocation144_spill] sm:$0xff] %v11543_v32 }
 0x594   :  { %8765 = vmatprep.subr.bf16.mxu0 %v11509_v45  ;;  %8837 = vmatprep.subr.bf16.mxu1 %v14021_v10  ;;  %v1492_v45 = vld [vmem:[#allocation10 + $0x4d8] sm:$0xff]  ;;  %v11539_v62 = vpack.c.bf16 %v1497_v50, %v1494_v4  ;;  %v1502_v4 = vld [vmem:[#allocation10 + $0x528] sm:$0xff] }
 0x595   :  { %v11535_v9 = vpack.c.bf16 %v1492_v45, %v1489_v49  ;;  %v1501_v49 = vld [vmem:[#allocation10 + $0x520] sm:$0xff]  ;;  %v11553_v40 = vpack.c.bf16 %v1502_v4, %v1499_v21  ;;  %v1971_v4 = vld [vmem:[#allocation10 + $0x5a8] sm:$0xff] }
 0x596   :  { %14046 = vst [vmem:[#allocation143_spill] sm:$0xff] %v11539_v62 }
 0x597   :  { %8767 = vmatpush1.bf16.msra.mxu0 %v11513_v44  ;;  %8839 = vmatpush1.bf16.msra.mxu1 %v11515_v60  ;;  %14045 = vst [vmem:[#allocation142_spill] sm:$0xff] %v11535_v9  ;;  %v1500_v60 = vld [vmem:[#allocation10 + $0x518] sm:$0xff]  ;;  %v1503_v44 = vld [vmem:[#allocation10 + $0x530] sm:$0xff]  ;;  %14050 = vst [vmem:[#allocation147_spill] sm:$0xff] %v11553_v40 }
 0x598   :  { %8769 = vmatprep.subr.bf16.mxu0 %v11519_v42  ;;  %8840 = vmatprep.subr.bf16.mxu1 %v14021_v10  ;;  %v1498_v42 = vld [vmem:[#allocation10 + $0x508] sm:$0xff]  ;;  %v11549_v50 = vpack.c.bf16 %v1503_v44, %v1500_v60  ;;  %v1958_v44 = vld [vmem:[#allocation10 + $0x540] sm:$0xff]  ;;  %v1961_v60 = vld [vmem:[#allocation10 + $0x558] sm:$0xff] }
 0x599   :  { %v11545_v45 = vpack.c.bf16 %v1498_v42, %v1495_v56  ;;  %v1965_v56 = vld [vmem:[#allocation10 + $0x578] sm:$0xff] }
 0x59a   :  { %14049 = vst [vmem:[#allocation146_spill] sm:$0xff] %v11549_v50 }
 0x59b   :  { %8771 = vmatpush1.bf16.msra.mxu0 %v11523_v27  ;;  %8842 = vmatpush1.bf16.msra.mxu1 %v11525_v24  ;;  %14048 = vst [vmem:[#allocation145_spill] sm:$0xff] %v11545_v45  ;;  %v1959_v24 = vld [vmem:[#allocation10 + $0x548] sm:$0xff]  ;;  %v1962_v27 = vld [vmem:[#allocation10 + $0x560] sm:$0xff] }
 0x59c   :  { %8773 = vmatprep.subr.bf16.mxu0 %v11529_v37  ;;  %8843 = vmatprep.subr.bf16.mxu1 %v14021_v10  ;;  %v1504_v37 = vld [vmem:[#allocation10 + $0x538] sm:$0xff]  ;;  %v11559_v5 = vpack.c.bf16 %v1962_v27, %v1959_v24  ;;  %v1964_v27 = vld [vmem:[#allocation10 + $0x570] sm:$0xff]  ;;  %v1967_v24 = vld [vmem:[#allocation10 + $0x588] sm:$0xff] }
 0x59d   :  { %v11555_v42 = vpack.c.bf16 %v1504_v37, %v1501_v49  ;;  %v11567_v37 = vpack.c.bf16 %v1961_v60, %v1958_v44  ;;  %v1974_v49 = vld [vmem:[#allocation10 + $0x5c0] sm:$0xff]  ;;  %v1973_v60 = vld [vmem:[#allocation10 + $0x5b8] sm:$0xff] }
 0x59e   :  { %14052 = vst [vmem:[#allocation149_spill] sm:$0xff] %v11559_v5  ;;  %v1970_v44 = vld [vmem:[#allocation10 + $0x5a0] sm:$0xff] }
 0x59f   :  { %8775 = vmatpush1.bf16.msra.mxu0 %v11533_v30  ;;  %8845 = vmatpush1.bf16.msra.mxu1 %v11535_v9  ;;  %14051 = vst [vmem:[#allocation148_spill] sm:$0xff] %v11555_v42  ;;  %14053 = vst [vmem:[#allocation150_spill] sm:$0xff] %v11567_v37 }
 0x5a0   :  { %8777 = vmatprep.subr.bf16.mxu0 %v11539_v62  ;;  %8846 = vmatprep.subr.bf16.mxu1 %v14021_v10  ;;  %v1968_v62 = vld [vmem:[#allocation10 + $0x590] sm:$0xff] }
 0x5a1   :  { %v11569_v21 = vpack.c.bf16 %v1968_v62, %v1965_v56  ;;  %v11581_v62 = vpack.c.bf16 %v1967_v24, %v1964_v27  ;;  %v11592_v56 = vpack.c.bf16 %v1973_v60, %v1970_v44  ;;  %v1977_v27 = vld [vmem:[#allocation10 + $0x5d8] sm:$0xff]  ;;  %v1980_v24 = vld [vmem:[#allocation10 + $0x5f0] sm:$0xff]  ;;  %v1983_v44 = vld [vmem:[#allocation10 + $0x608] sm:$0xff] }
 0x5a2   :  { %v1986_v60 = vld [vmem:[#allocation10 + $0x620] sm:$0xff] }
 0x5a3   :  { %8779 = vmatpush1.bf16.msra.mxu0 %v11543_v32  ;;  %8848 = vmatpush1.bf16.msra.mxu1 %v11545_v45  ;;  %14054 = vst [vmem:[#allocation151_spill] sm:$0xff] %v11569_v21  ;;  %14055 = vst [vmem:[#allocation152_spill] sm:$0xff] %v11581_v62  ;;  %v2008_v45 = vld [vmem:[#allocation10 + $0x6d0] sm:$0xff]  ;;  %v2011_v32 = vld [vmem:[#allocation10 + $0x6e8] sm:$0xff] }
 0x5a4   :  { %8781 = vmatprep.subr.bf16.mxu0 %v11549_v50  ;;  %8849 = vmatprep.subr.bf16.mxu1 %v14021_v10  ;;  %14057 = vst [vmem:[#allocation154_spill] sm:$0xff] %v11592_v56  ;;  %v2004_v50 = vld [vmem:[#allocation10 + $0x6b0] sm:$0xff]  ;;  %v11616_v9 = vpack.c.bf16 %v2011_v32, %v2008_v45  ;;  %v2017_v32 = vld [vmem:[#allocation10 + $0x718] sm:$0xff]  ;;  %v2010_v45 = vld [vmem:[#allocation10 + $0x6e0] sm:$0xff] }
 0x5a6   :  { %14065 = vst [vmem:[#allocation162_spill] sm:$0xff] %v11616_v9 }
 0x5a7   :  { %8783 = vmatpush1.bf16.msra.mxu0 %v11553_v40  ;;  %8851 = vmatpush1.bf16.msra.mxu1 %v11555_v42  ;;  %v1811_v42 = vld [vmem:[#allocation8 + $0x8] sm:$0x3f] }
 0x5a8   :  { %8854 = vmatprep.subr.msk.bf16.mxu1 %vm11360_vm5, %v11366_v47  ;;  %8865 = vmatprep.subr.bf16.mxu0 %v11559_v5  ;;  %v1989_v5 = vld [vmem:[#allocation10 + $0x638] sm:$0xff]  ;;  %v1992_v40 = vld [vmem:[#allocation10 + $0x650] sm:$0xff] }
 0x5aa   :  { %1645 = vmatmul.mubr.f32.vlgmr.msra.gmra.mrb[6].mxu0 %v11453_v6  ;;  %1786 = vmatmul.mubr.f32.vlgmr.msra.gmra.mrb[14].mxu1 %v11453_v6  ;;  %v11584_v6 = vpack.c.bf16 %v1974_v49, %v1971_v4  ;;  %v11597_v4 = vpack.c.bf16 %v1980_v24, %v1977_v27  ;;  %v1976_v49 = vld [vmem:[#allocation10 + $0x5d0] sm:$0xff]  ;;  %v1991_v24 = vld [vmem:[#allocation10 + $0x648] sm:$0xff] }
 0x5ab   :  { %8857 = vmatpush1.bf16.msk.msra.mxu1 %vm11360_vm5, %v11364_v61  ;;  %1879 = vmatprep.mubr.f32.mxu1 %v13938_v54  ;;  %v1988_v27 = vld [vmem:[#allocation10 + $0x630] sm:$0xff] }
 0x5ac   :  { %8860 = vmatprep.subr.msk.bf16.mxu1 %vm11360_vm5, %v11370_v38  ;;  %8867 = vmatpush1.bf16.msra.mxu0 %v11567_v37  ;;  %14056 = vst [vmem:[#allocation153_spill] sm:$0xff] %v11584_v6  ;;  %14058 = vst [vmem:[#allocation155_spill] sm:$0xff] %v11597_v4 }
 0x5ad   :  { %8869 = vmatprep.subr.bf16.mxu0 %v11569_v21  ;;  %v1979_v21 = vld [vmem:[#allocation10 + $0x5e8] sm:$0xff] }
 0x5ae   :  { %7467 = vmatmul.mubr.msk.f32.vlgmr.msra.gmra.mrb[16].mxu1 %vm1178_vm6, %v1811_v42  ;;  %v11599_v37 = vpack.c.bf16 %v1979_v21, %v1976_v49  ;;  %v11608_v21 = vpack.c.bf16 %v1992_v40, %v1989_v5  ;;  %v1995_v49 = vld [vmem:[#allocation10 + $0x668] sm:$0xff]  ;;  %v1960_v40 = vld [vmem:[#allocation10 + $0x550] sm:$0xff] }
 0x5af   :  { %8863 = vmatpush1.bf16.msk.msra.mxu1 %vm11360_vm5, %v11383_v35  ;;  %1950 = vmatprep.mubr.f32.mxu1 %v13938_v54 }
 0x5b0   :  { %8871 = vmatpush1.bf16.msra.mxu0 %v11581_v62  ;;  %14059 = vst [vmem:[#allocation156_spill] sm:$0xff] %v11599_v37  ;;  %v11603_v62 = vpack.c.bf16 %v1986_v60, %v1983_v44  ;;  %14062 = vst [vmem:[#allocation159_spill] sm:$0xff] %v11608_v21  ;;  %v1994_v60 = vld [vmem:[#allocation10 + $0x660] sm:$0xff]  ;;  %8977 = vmatprep.subr.bf16.mxu1 %v11616_v9 }
 0x5b1   :  { %8873 = vmatprep.subr.bf16.mxu0 %v11584_v6  ;;  %v1982_v6 = vld [vmem:[#allocation10 + $0x600] sm:$0xff] }
 0x5b2   :  { %7470 = vmatmul.mubr.msk.f32.vlgmr.msra.gmra.mrb[18].mxu1 %vm1178_vm6, %v1811_v42  ;;  %14060 = vst [vmem:[#allocation157_spill] sm:$0xff] %v11603_v62  ;;  %v1985_v42 = vld [vmem:[#allocation10 + $0x618] sm:$0xff]  ;;  %v2026_v9 = vld [vmem:[#allocation10 + $0x760] sm:$0xff] }
 0x5b4   :  { %8875 = vmatpush1.bf16.msra.mxu0 %v11592_v56  ;;  %v11605_v56 = vpack.c.bf16 %v1985_v42, %v1982_v6  ;;  %v1997_v6 = vld [vmem:[#allocation10 + $0x678] sm:$0xff] }
 0x5b5   :  { %8877 = vmatprep.subr.bf16.mxu0 %v11597_v4  ;;  %v1998_v4 = vld [vmem:[#allocation10 + $0x680] sm:$0xff]  ;;  %v2001_v42 = vld [vmem:[#allocation10 + $0x698] sm:$0xff]  ;;  %v11619_v5 = vpack.c.bf16 %v1997_v6, %v1994_v60 }
 0x5b6   :  { %14061 = vst [vmem:[#allocation158_spill] sm:$0xff] %v11605_v56  ;;  %v11614_v44 = vpack.c.bf16 %v1998_v4, %v1995_v49  ;;  %v11622_v4 = vpack.c.bf16 %v2004_v50, %v2001_v42  ;;  %v2007_v49 = vld [vmem:[#allocation10 + $0x6c8] sm:$0xff]  ;;  %v1969_v60 = vld [vmem:[#allocation10 + $0x598] sm:$0xff]  ;;  %v2006_v42 = vld [vmem:[#allocation10 + $0x6c0] sm:$0xff] }
 0x5b7   :  { %14066 = vst [vmem:[#allocation163_spill] sm:$0xff] %v11619_v5 }
 0x5b8   :  { %8879 = vmatpush1.bf16.msra.mxu0 %v11599_v37  ;;  %v11611_v37 = vpack.c.bf16 %v1991_v24, %v1988_v27  ;;  %14064 = vst [vmem:[#allocation161_spill] sm:$0xff] %v11614_v44  ;;  %v2003_v27 = vld [vmem:[#allocation10 + $0x6a8] sm:$0xff]  ;;  %14067 = vst [vmem:[#allocation164_spill] sm:$0xff] %v11622_v4 }
 0x5b9   :  { %8881 = vmatprep.subr.bf16.mxu0 %v11603_v62  ;;  %v1963_v24 = vld [vmem:[#allocation10 + $0x568] sm:$0xff]  ;;  %v2014_v62 = vld [vmem:[#allocation10 + $0x700] sm:$0xff] }
 0x5ba   :  { %14063 = vst [vmem:[#allocation160_spill] sm:$0xff] %v11611_v37  ;;  %v11627_v30 = vpack.c.bf16 %v2017_v32, %v2014_v62  ;;  %v11637_v62 = vpack.c.bf16 %v2010_v45, %v2007_v49  ;;  %v11648_v49 = vpack.c.bf16 %v2029_v18, %v2026_v9  ;;  %v1981_v45 = vld [vmem:[#allocation10 + $0x5f8] sm:$0xff]  ;;  %v2018_v18 = vld [vmem:[#allocation10 + $0x720] sm:$0xff] }
 0x5bc   :  { %8883 = vmatpush1.bf16.msra.mxu0 %v11605_v56  ;;  %v2000_v56 = vld [vmem:[#allocation10 + $0x690] sm:$0xff]  ;;  %14069 = vst [vmem:[#allocation166_spill] sm:$0xff] %v11627_v30  ;;  %14072 = vst [vmem:[#allocation169_spill] sm:$0xff] %v11637_v62 }
 0x5bd   :  { %8885 = vmatprep.subr.bf16.mxu0 %v11608_v21  ;;  %v11625_v21 = vpack.c.bf16 %v1963_v24, %v1960_v40  ;;  %v11633_v50 = vpack.c.bf16 %v2003_v27, %v2000_v56  ;;  %v2023_v40 = vld [vmem:[#allocation10 + $0x748] sm:$0xff]  ;;  %v2013_v24 = vld [vmem:[#allocation10 + $0x6f8] sm:$0xff]  ;;  %14076 = vst [vmem:[#allocation173_spill] sm:$0xff] %v11648_v49 }
 0x5be   :  { %v11639_v32 = vpack.c.bf16 %v2023_v40, %v2020_v34  ;;  %v1978_v34 = vld [vmem:[#allocation10 + $0x5e0] sm:$0xff] }
 0x5bf   :  { %14068 = vst [vmem:[#allocation165_spill] sm:$0xff] %v11625_v21  ;;  %8979 = vmatpush3.bf16.msra.mxu1 %v11625_v21  ;;  %14071 = vst [vmem:[#allocation168_spill] sm:$0xff] %v11633_v50  ;;  %v1972_v21 = vld [vmem:[#allocation10 + $0x5b0] sm:$0xff] }
 0x5c0   :  { %8887 = vmatpush1.bf16.msra.mxu0 %v11611_v37  ;;  %v1966_v37 = vld [vmem:[#allocation10 + $0x580] sm:$0xff]  ;;  %8981 = vmatprep.subr.bf16.mxu1 %v11627_v30  ;;  %14073 = vst [vmem:[#allocation170_spill] sm:$0xff] %v11639_v32  ;;  %v2032_v30 = vld [vmem:[#allocation10 + $0x790] sm:$0xff] }
 0x5c1   :  { %8889 = vmatprep.subr.bf16.mxu0 %v11614_v44  ;;  %v11630_v6 = vpack.c.bf16 %v1969_v60, %v1966_v37  ;;  %v2009_v44 = vld [vmem:[#allocation10 + $0x6d8] sm:$0xff]  ;;  %v1975_v37 = vld [vmem:[#allocation10 + $0x5c8] sm:$0xff]  ;;  %v2016_v60 = vld [vmem:[#allocation10 + $0x710] sm:$0xff] }
 0x5c2   :  { %v11642_v56 = vpack.c.bf16 %v1975_v37, %v1972_v21  ;;  %v11645_v27 = vpack.c.bf16 %v2009_v44, %v2006_v42  ;;  %v11651_v40 = vpack.c.bf16 %v2016_v60, %v2013_v24  ;;  %v2019_v21 = vld [vmem:[#allocation10 + $0x728] sm:$0xff]  ;;  %v2022_v37 = vld [vmem:[#allocation10 + $0x740] sm:$0xff]  ;;  %v11654_v44 = vpack.c.bf16 %v1981_v45, %v1978_v34  ;;  %v1984_v24 = vld [vmem:[#allocation10 + $0x610] sm:$0xff] }
 0x5c3   :  { %14070 = vst [vmem:[#allocation167_spill] sm:$0xff] %v11630_v6  ;;  %8983 = vmatpush3.bf16.msra.mxu1 %v11630_v6  ;;  %v2035_v6 = vld [vmem:[#allocation10 + $0x7a8] sm:$0xff]  ;;  %v2025_v34 = vld [vmem:[#allocation10 + $0x758] sm:$0xff]  ;;  %v2028_v45 = vld [vmem:[#allocation10 + $0x770] sm:$0xff] }
 0x5c4   :  { %8891 = vmatpush1.bf16.msra.mxu0 %v11619_v5  ;;  %14074 = vst [vmem:[#allocation171_spill] sm:$0xff] %v11642_v56  ;;  %14075 = vst [vmem:[#allocation172_spill] sm:$0xff] %v11645_v27  ;;  %v2012_v5 = vld [vmem:[#allocation10 + $0x6f0] sm:$0xff]  ;;  %8985 = vmatprep.subr.bf16.mxu1 %v11639_v32  ;;  %v11660_v9 = vpack.c.bf16 %v2035_v6, %v2032_v30  ;;  %v1987_v60 = vld [vmem:[#allocation10 + $0x628] sm:$0xff] }
 0x5c5   :  { %8893 = vmatprep.subr.bf16.mxu0 %v11622_v4  ;;  %14077 = vst [vmem:[#allocation174_spill] sm:$0xff] %v11651_v40  ;;  %v2015_v4 = vld [vmem:[#allocation10 + $0x708] sm:$0xff]  ;;  %14078 = vst [vmem:[#allocation175_spill] sm:$0xff] %v11654_v44  ;;  %v2038_v32 = vld [vmem:[#allocation10 + $0x7c0] sm:$0xff] }
 0x5c6   :  { %v11657_v42 = vpack.c.bf16 %v2015_v4, %v2012_v5  ;;  %14080 = vst [vmem:[#allocation177_spill] sm:$0xff] %v11660_v9  ;;  %v11666_v5 = vpack.c.bf16 %v1987_v60, %v1984_v24  ;;  %v2024_v30 = vld [vmem:[#allocation10 + $0x750] sm:$0xff]  ;;  %v2031_v24 = vld [vmem:[#allocation10 + $0x788] sm:$0xff]  ;;  %v2034_v60 = vld [vmem:[#allocation10 + $0x7a0] sm:$0xff] }
 0x5c7   :  { %8987 = vmatpush3.bf16.msra.mxu1 %v11642_v56  ;;  %v2041_v56 = vld [vmem:[#allocation10 + $0x7d8] sm:$0xff] }
 0x5c8   :  { %8895 = vmatpush1.bf16.msra.mxu0 %v11633_v50  ;;  %14079 = vst [vmem:[#allocation176_spill] sm:$0xff] %v11657_v42  ;;  %8989 = vmatprep.subr.bf16.mxu1 %v11648_v49  ;;  %v2021_v50 = vld [vmem:[#allocation10 + $0x738] sm:$0xff]  ;;  %14082 = vst [vmem:[#allocation179_spill] sm:$0xff] %v11666_v5  ;;  %v11672_v6 = vpack.c.bf16 %v2041_v56, %v2038_v32  ;;  %v2044_v49 = vld [vmem:[#allocation10 + $0x7f0] sm:$0xff] }
 0x5c9   :  { %8897 = vmatprep.subr.bf16.mxu0 %v11637_v62  ;;  %v11663_v62 = vpack.c.bf16 %v2022_v37, %v2019_v21  ;;  %v11669_v4 = vpack.c.bf16 %v2021_v50, %v2018_v18  ;;  %v1990_v21 = vld [vmem:[#allocation10 + $0x640] sm:$0xff]  ;;  %v1993_v37 = vld [vmem:[#allocation10 + $0x658] sm:$0xff] }
 0x5ca   :  { %14084 = vst [vmem:[#allocation181_spill] sm:$0xff] %v11672_v6  ;;  %v11678_v50 = vpack.c.bf16 %v1993_v37, %v1990_v21  ;;  %v2030_v32 = vld [vmem:[#allocation10 + $0x780] sm:$0xff]  ;;  %v2037_v21 = vld [vmem:[#allocation10 + $0x7b8] sm:$0xff]  ;;  %v2040_v37 = vld [vmem:[#allocation10 + $0x7d0] sm:$0xff] }
 0x5cb   :  { %14081 = vst [vmem:[#allocation178_spill] sm:$0xff] %v11663_v62  ;;  %8991 = vmatpush3.bf16.msra.mxu1 %v11654_v44  ;;  %14083 = vst [vmem:[#allocation180_spill] sm:$0xff] %v11669_v4  ;;  %v2047_v44 = vld [vmem:[#allocation10 + $0x808] sm:$0xff] }
 0x5cc   :  { %8899 = vmatpush1.bf16.msra.mxu0 %v11645_v27  ;;  %8993 = vmatprep.subr.bf16.mxu1 %v11660_v9  ;;  %v2027_v27 = vld [vmem:[#allocation10 + $0x768] sm:$0xff]  ;;  %14086 = vst [vmem:[#allocation183_spill] sm:$0xff] %v11678_v50  ;;  %v11684_v56 = vpack.c.bf16 %v2047_v44, %v2044_v49  ;;  %v2050_v9 = vld [vmem:[#allocation10 + $0x820] sm:$0xff] }
 0x5cd   :  { %8901 = vmatprep.subr.bf16.mxu0 %v11651_v40  ;;  %v11675_v40 = vpack.c.bf16 %v2028_v45, %v2025_v34  ;;  %v11681_v18 = vpack.c.bf16 %v2027_v27, %v2024_v30  ;;  %v1996_v34 = vld [vmem:[#allocation10 + $0x670] sm:$0xff]  ;;  %v1999_v45 = vld [vmem:[#allocation10 + $0x688] sm:$0xff]  ;;  %v2002_v44 = vld [vmem:[#allocation10 + $0x6a0] sm:$0xff] }
 0x5ce   :  { %v11690_v27 = vpack.c.bf16 %v1999_v45, %v1996_v34  ;;  %v2049_v45 = vld [vmem:[#allocation10 + $0x818] sm:$0xff] }
 0x5cf   :  { %14085 = vst [vmem:[#allocation182_spill] sm:$0xff] %v11675_v40  ;;  %8995 = vmatpush3.bf16.msra.mxu1 %v11666_v5  ;;  %14087 = vst [vmem:[#allocation184_spill] sm:$0xff] %v11681_v18  ;;  %v2053_v5 = vld [vmem:[#allocation10 + $0x838] sm:$0xff] }
 0x5d0   :  { %8903 = vmatpush1.bf16.msra.mxu0 %v11657_v42  ;;  %8997 = vmatprep.subr.bf16.mxu1 %v11672_v6  ;;  %v2033_v42 = vld [vmem:[#allocation10 + $0x798] sm:$0xff]  ;;  %14089 = vst [vmem:[#allocation186_spill] sm:$0xff] %v11690_v27  ;;  %v11696_v49 = vpack.c.bf16 %v2053_v5, %v2050_v9  ;;  %v2043_v6 = vld [vmem:[#allocation10 + $0x7e8] sm:$0xff]  ;;  %v2042_v5 = vld [vmem:[#allocation10 + $0x7e0] sm:$0xff] }
 0x5d1   :  { %8905 = vmatprep.subr.bf16.mxu0 %v11663_v62  ;;  %v11687_v62 = vpack.c.bf16 %v2034_v60, %v2031_v24  ;;  %v11693_v30 = vpack.c.bf16 %v2033_v42, %v2030_v32  ;;  %v2005_v24 = vld [vmem:[#allocation10 + $0x6b8] sm:$0xff]  ;;  %v11699_v60 = vpack.c.bf16 %v2040_v37, %v2037_v21  ;;  %v2052_v21 = vld [vmem:[#allocation10 + $0x830] sm:$0xff] }
 0x5d2   :  { %14091 = vst [vmem:[#allocation188_spill] sm:$0xff] %v11696_v49  ;;  %v11702_v34 = vpack.c.bf16 %v2005_v24, %v2002_v44  ;;  %v2045_v32 = vld [vmem:[#allocation10 + $0x7f8] sm:$0xff]  ;;  %v2051_v44 = vld [vmem:[#allocation10 + $0x828] sm:$0xff]  ;;  %v2058_v24 = vld [vmem:[#allocation10 + $0x860] sm:$0xff] }
 0x5d3   :  { %14088 = vst [vmem:[#allocation185_spill] sm:$0xff] %v11687_v62  ;;  %8999 = vmatpush3.bf16.msra.mxu1 %v11678_v50  ;;  %14090 = vst [vmem:[#allocation187_spill] sm:$0xff] %v11693_v30  ;;  %v2046_v50 = vld [vmem:[#allocation10 + $0x800] sm:$0xff]  ;;  %v11713_v37 = vpack.c.bf16 %v2045_v32, %v2042_v5 }
 0x5d4   :  { %8907 = vmatpush1.bf16.msra.mxu0 %v11669_v4  ;;  %9001 = vmatprep.subr.bf16.mxu1 %v11684_v56  ;;  %14092 = vst [vmem:[#allocation189_spill] sm:$0xff] %v11699_v60  ;;  %v2039_v4 = vld [vmem:[#allocation10 + $0x7c8] sm:$0xff]  ;;  %14093 = vst [vmem:[#allocation190_spill] sm:$0xff] %v11702_v34  ;;  %v11709_v9 = vpack.c.bf16 %v2046_v50, %v2043_v6 }
 0x5d5   :  { %8909 = vmatprep.subr.bf16.mxu0 %v11675_v40  ;;  %v2036_v40 = vld [vmem:[#allocation10 + $0x7b0] sm:$0xff]  ;;  %14096 = vst [vmem:[#allocation193_spill] sm:$0xff] %v11713_v37  ;;  %v2055_v50 = vld [vmem:[#allocation10 + $0x848] sm:$0xff] }
 0x5d6   :  { %v11705_v42 = vpack.c.bf16 %v2039_v4, %v2036_v40  ;;  %14095 = vst [vmem:[#allocation192_spill] sm:$0xff] %v11709_v9  ;;  %v11717_v40 = vpack.c.bf16 %v2052_v21, %v2049_v45  ;;  %v2048_v4 = vld [vmem:[#allocation10 + $0x810] sm:$0xff]  ;;  %v11724_v5 = vpack.c.bf16 %v2058_v24, %v2055_v50  ;;  %v2054_v21 = vld [vmem:[#allocation10 + $0x840] sm:$0xff] }
 0x5d7   :  { %9003 = vmatpush3.bf16.msra.mxu1 %v11690_v27  ;;  %v11720_v6 = vpack.c.bf16 %v2051_v44, %v2048_v4  ;;  %v2061_v4 = vld [vmem:[#allocation10 + $0x878] sm:$0xff]  ;;  %v2064_v44 = vld [vmem:[#allocation10 + $0x890] sm:$0xff] }
 0x5d8   :  { %8911 = vmatpush1.bf16.msra.mxu0 %v11681_v18  ;;  %14094 = vst [vmem:[#allocation191_spill] sm:$0xff] %v11705_v42  ;;  %9005 = vmatprep.subr.bf16.mxu1 %v11696_v49  ;;  %14097 = vst [vmem:[#allocation194_spill] sm:$0xff] %v11717_v40  ;;  %v11733_v24 = vpack.c.bf16 %v2064_v44, %v2061_v4  ;;  %v2062_v18 = vld [vmem:[#allocation10 + $0x880] sm:$0xff]  ;;  %v2069_v44 = vld [vmem:[#allocation10 + $0x8b8] sm:$0xff] }
 0x5d9   :  { %8913 = vmatprep.subr.bf16.mxu0 %v11687_v62  ;;  %14098 = vst [vmem:[#allocation195_spill] sm:$0xff] %v11720_v6  ;;  %14099 = vst [vmem:[#allocation196_spill] sm:$0xff] %v11724_v5  ;;  %v2060_v62 = vld [vmem:[#allocation10 + $0x870] sm:$0xff] }
 0x5da   :  { %14102 = vst [vmem:[#allocation199_spill] sm:$0xff] %v11733_v24  ;;  %v2076_v27 = vld [vmem:[#allocation10 + $0x8f0] sm:$0xff] }
 0x5db   :  { %9007 = vmatpush3.bf16.msra.mxu1 %v11702_v34  ;;  %v2065_v34 = vld [vmem:[#allocation10 + $0x898] sm:$0xff] }
 0x5dc   :  { %8915 = vmatpush1.bf16.msra.mxu0 %v11693_v30  ;;  %9008 = vmatprep.subr.bf16.mxu1 %v14021_v10 }
 0x5dd   :  { %8917 = vmatprep.subr.bf16.mxu0 %v11699_v60  ;;  %v2056_v60 = vld [vmem:[#allocation10 + $0x850] sm:$0xff] }
 0x5e0   :  { %8919 = vmatpush1.bf16.msra.mxu0 %v11705_v42  ;;  %v2057_v42 = vld [vmem:[#allocation10 + $0x858] sm:$0xff] }
 0x5e1   :  { %8921 = vmatprep.subr.bf16.mxu0 %v11709_v9 }
 0x5e4   :  { %8923 = vmatpush1.bf16.msra.mxu0 %v11713_v37  ;;  %v2059_v37 = vld [vmem:[#allocation10 + $0x868] sm:$0xff] }
 0x5e5   :  { %8925 = vmatprep.subr.bf16.mxu0 %v11717_v40  ;;  %v11729_v40 = vpack.c.bf16 %v2057_v42, %v2054_v21 }
 0x5e7   :  { %14100 = vst [vmem:[#allocation197_spill] sm:$0xff] %v11729_v40 }
 0x5e8   :  { %8927 = vmatpush1.bf16.msra.mxu0 %v11720_v6  ;;  %v11731_v6 = vpack.c.bf16 %v2059_v37, %v2056_v60  ;;  %v11739_v60 = vpack.c.bf16 %v2065_v34, %v2062_v18  ;;  %v2066_v37 = vld [vmem:[#allocation10 + $0x8a0] sm:$0xff]  ;;  %v2072_v34 = vld [vmem:[#allocation10 + $0x8d0] sm:$0xff] }
 0x5e9   :  { %8929 = vmatprep.subr.bf16.mxu0 %v11724_v5  ;;  %v2063_v5 = vld [vmem:[#allocation10 + $0x888] sm:$0xff] }
 0x5ea   :  { %14101 = vst [vmem:[#allocation198_spill] sm:$0xff] %v11731_v6  ;;  %v11737_v42 = vpack.c.bf16 %v2063_v5, %v2060_v62  ;;  %14104 = vst [vmem:[#allocation201_spill] sm:$0xff] %v11739_v60  ;;  %v11751_v62 = vpack.c.bf16 %v2069_v44, %v2066_v37 }
 0x5ec   :  { %14103 = vst [vmem:[#allocation200_spill] sm:$0xff] %v11737_v42  ;;  %14106 = vst [vmem:[#allocation203_spill] sm:$0xff] %v11751_v62 }
 0x64d   :  { %v7698_v32 = vpop.f32.mrb[12].mxu1 }
 0x64e   :  { %v7699_v9 = vpop.f32.mrb[13].mxu1 }
 0x64f   :  { %v11727_v45 = vadd.f32 %v7699_v9, %v7698_v32  ;;  %v2067_v9 = vld [vmem:[#allocation10 + $0x8a8] sm:$0xff]  ;;  %v2070_v32 = vld [vmem:[#allocation10 + $0x8c0] sm:$0xff] }
 0x650   :  { %v11745_v4 = vpack.c.bf16 %v2070_v32, %v2067_v9  ;;  %v2075_v9 = vld [vmem:[#allocation10 + $0x8e8] sm:$0xff]  ;;  %v2074_v32 = vld [vmem:[#allocation10 + $0x8e0] sm:$0xff] }
 0x651   :  { %v11761_v37 = vpack.c.bf16 %v2075_v9, %v2072_v34  ;;  %v2084_v9 = vld [vmem:[#allocation10 + $0x930] sm:$0xff] }
 0x652   :  { %14105 = vst [vmem:[#allocation202_spill] sm:$0xff] %v11745_v4 }
 0x653   :  { %14109 = vst [vmem:[#allocation206_spill] sm:$0xff] %v11761_v37 }
 0x681   :  { %v1881_v30 = vpop.f32.mrb[16].mxu1 }
 0x682   :  { %v1883_v50 = vpop.f32.mrb[17].mxu1 }
 0x683   :  { %2193 = vmatprep.mubr.f32.mxu0 %v1883_v50  ;;  %2335 = vmatprep.mubr.f32.mxu1 %v1883_v50  ;;  %v2068_v50 = vld [vmem:[#allocation10 + $0x8b0] sm:$0xff] }
 0x684   :  { %2194 = vmatmul.mubr.f32.vlgmr.msra.gmra.mrb[6].mxu0 %v1881_v30  ;;  %2336 = vmatmul.mubr.f32.vlgmr.msra.gmra.mrb[20].mxu1 %v1881_v30  ;;  %v2071_v30 = vld [vmem:[#allocation10 + $0x8c8] sm:$0xff] }
 0x685   :  { %8931 = vmatpush1.bf16.msra.mxu0 %v11729_v40  ;;  %9010 = vmatpush1.bf16.msra.mxu1 %v11731_v6  ;;  %v11741_v21 = vpop.f32.mrb[18].mxu1  ;;  %v2073_v40 = vld [vmem:[#allocation10 + $0x8d8] sm:$0xff]  ;;  %v11753_v18 = vpack.c.bf16 %v2071_v30, %v2068_v50  ;;  %v2079_v6 = vld [vmem:[#allocation10 + $0x908] sm:$0xff]  ;;  %v2078_v50 = vld [vmem:[#allocation10 + $0x900] sm:$0xff] }
 0x686   :  { %8933 = vmatprep.subr.bf16.mxu0 %v11733_v24  ;;  %9011 = vmatprep.subr.bf16.mxu1 %v14021_v10  ;;  %v1954_v49 = vpop.f32.mrb[19].mxu1  ;;  %v11757_v5 = vpack.c.bf16 %v2076_v27, %v2073_v40  ;;  %v2077_v24 = vld [vmem:[#allocation10 + $0x8f8] sm:$0xff]  ;;  %v2080_v30 = vld [vmem:[#allocation10 + $0x910] sm:$0xff] }
 0x687   :  { %7471 = vmatprep.mubr.msk.f32.mxu0 %vm1505_vm7, %v1954_v49  ;;  %7472 = vmatprep.mubr.msk.f32.mxu1 %vm1505_vm7, %v1954_v49  ;;  %14107 = vst [vmem:[#allocation204_spill] sm:$0xff] %v11753_v18  ;;  %v2082_v49 = vld [vmem:[#allocation10 + $0x920] sm:$0xff]  ;;  %v11763_v44 = vpack.c.bf16 %v2077_v24, %v2074_v32  ;;  %v2081_v40 = vld [vmem:[#allocation10 + $0x918] sm:$0xff]  ;;  %v2087_v32 = vld [vmem:[#allocation10 + $0x948] sm:$0xff] }
 0x688   :  { %14108 = vst [vmem:[#allocation205_spill] sm:$0xff] %v11757_v5  ;;  %v11767_v27 = vpack.c.bf16 %v2082_v49, %v2079_v6  ;;  %v11771_v34 = vpack.c.bf16 %v2081_v40, %v2078_v50  ;;  %v2086_v49 = vld [vmem:[#allocation10 + $0x940] sm:$0xff]  ;;  %v11781_v50 = vpack.c.bf16 %v2087_v32, %v2084_v9  ;;  %v2096_v32 = vld [vmem:[#allocation10 + $0x990] sm:$0xff] }
 0x689   :  { %8935 = vmatpush1.bf16.msra.mxu0 %v11737_v42  ;;  %9013 = vmatpush1.bf16.msra.mxu1 %v11739_v60  ;;  %14110 = vst [vmem:[#allocation207_spill] sm:$0xff] %v11763_v44  ;;  %v2085_v60 = vld [vmem:[#allocation10 + $0x938] sm:$0xff]  ;;  %v2088_v42 = vld [vmem:[#allocation10 + $0x950] sm:$0xff]  ;;  %v2090_v40 = vld [vmem:[#allocation10 + $0x960] sm:$0xff] }
 0x68a   :  { %8937 = vmatprep.subr.bf16.mxu0 %v11745_v4  ;;  %9014 = vmatprep.subr.bf16.mxu1 %v14021_v10  ;;  %14111 = vst [vmem:[#allocation208_spill] sm:$0xff] %v11767_v27  ;;  %v2083_v4 = vld [vmem:[#allocation10 + $0x928] sm:$0xff]  ;;  %14112 = vst [vmem:[#allocation209_spill] sm:$0xff] %v11771_v34  ;;  %v11777_v6 = vpack.c.bf16 %v2088_v42, %v2085_v60  ;;  %v2093_v60 = vld [vmem:[#allocation10 + $0x978] sm:$0xff] }
 0x68b   :  { %v11773_v24 = vpack.c.bf16 %v2083_v4, %v2080_v30  ;;  %14115 = vst [vmem:[#allocation212_spill] sm:$0xff] %v11781_v50  ;;  %v2092_v30 = vld [vmem:[#allocation10 + $0x970] sm:$0xff]  ;;  %v11791_v9 = vpack.c.bf16 %v2093_v60, %v2090_v40  ;;  %v2102_v60 = vld [vmem:[#allocation10 + $0x9c0] sm:$0xff] }
 0x68c   :  { %14114 = vst [vmem:[#allocation211_spill] sm:$0xff] %v11777_v6 }
 0x68d   :  { %8939 = vmatpush1.bf16.msra.mxu0 %v11751_v62  ;;  %9016 = vmatpush1.bf16.msra.mxu1 %v11753_v18  ;;  %14113 = vst [vmem:[#allocation210_spill] sm:$0xff] %v11773_v24  ;;  %v2091_v18 = vld [vmem:[#allocation10 + $0x968] sm:$0xff]  ;;  %v2094_v62 = vld [vmem:[#allocation10 + $0x980] sm:$0xff]  ;;  %14118 = vst [vmem:[#allocation215_spill] sm:$0xff] %v11791_v9 }
 0x68e   :  { %8941 = vmatprep.subr.bf16.mxu0 %v11757_v5  ;;  %9017 = vmatprep.subr.bf16.mxu1 %v14021_v10  ;;  %v2089_v5 = vld [vmem:[#allocation10 + $0x958] sm:$0xff]  ;;  %v11787_v42 = vpack.c.bf16 %v2094_v62, %v2091_v18  ;;  %v2099_v18 = vld [vmem:[#allocation10 + $0x9a8] sm:$0xff] }
 0x68f   :  { %v11783_v4 = vpack.c.bf16 %v2089_v5, %v2086_v49  ;;  %v2098_v49 = vld [vmem:[#allocation10 + $0x9a0] sm:$0xff]  ;;  %v11801_v40 = vpack.c.bf16 %v2099_v18, %v2096_v32  ;;  %v2108_v18 = vld [vmem:[#allocation10 + $0x9f0] sm:$0xff] }
 0x690   :  { %14117 = vst [vmem:[#allocation214_spill] sm:$0xff] %v11787_v42 }
 0x691   :  { %8943 = vmatpush1.bf16.msra.mxu0 %v11761_v37  ;;  %9019 = vmatpush1.bf16.msra.mxu1 %v11763_v44  ;;  %14116 = vst [vmem:[#allocation213_spill] sm:$0xff] %v11783_v4  ;;  %v2097_v44 = vld [vmem:[#allocation10 + $0x998] sm:$0xff]  ;;  %v2100_v37 = vld [vmem:[#allocation10 + $0x9b0] sm:$0xff]  ;;  %14121 = vst [vmem:[#allocation218_spill] sm:$0xff] %v11801_v40 }
 0x692   :  { %8945 = vmatprep.subr.bf16.mxu0 %v11767_v27  ;;  %9020 = vmatprep.subr.bf16.mxu1 %v14021_v10  ;;  %v2095_v27 = vld [vmem:[#allocation10 + $0x988] sm:$0xff]  ;;  %v11797_v62 = vpack.c.bf16 %v2100_v37, %v2097_v44  ;;  %v2105_v44 = vld [vmem:[#allocation10 + $0x9d8] sm:$0xff] }
 0x693   :  { %v11793_v5 = vpack.c.bf16 %v2095_v27, %v2092_v30  ;;  %v2104_v30 = vld [vmem:[#allocation10 + $0x9d0] sm:$0xff]  ;;  %v11811_v32 = vpack.c.bf16 %v2105_v44, %v2102_v60  ;;  %v2114_v44 = vld [vmem:[#allocation10 + $0xa20] sm:$0xff] }
 0x694   :  { %14120 = vst [vmem:[#allocation217_spill] sm:$0xff] %v11797_v62 }
 0x695   :  { %8947 = vmatpush1.bf16.msra.mxu0 %v11771_v34  ;;  %9022 = vmatpush1.bf16.msra.mxu1 %v11773_v24  ;;  %14119 = vst [vmem:[#allocation216_spill] sm:$0xff] %v11793_v5  ;;  %v2103_v24 = vld [vmem:[#allocation10 + $0x9c8] sm:$0xff]  ;;  %v2106_v34 = vld [vmem:[#allocation10 + $0x9e0] sm:$0xff]  ;;  %14124 = vst [vmem:[#allocation221_spill] sm:$0xff] %v11811_v32 }
 0x696   :  { %8949 = vmatprep.subr.bf16.mxu0 %v11777_v6  ;;  %9023 = vmatprep.subr.bf16.mxu1 %v14021_v10  ;;  %v2101_v6 = vld [vmem:[#allocation10 + $0x9b8] sm:$0xff]  ;;  %v11807_v37 = vpack.c.bf16 %v2106_v34, %v2103_v24  ;;  %v2111_v24 = vld [vmem:[#allocation10 + $0xa08] sm:$0xff] }
 0x697   :  { %v11803_v27 = vpack.c.bf16 %v2101_v6, %v2098_v49  ;;  %v2110_v49 = vld [vmem:[#allocation10 + $0xa00] sm:$0xff]  ;;  %v11821_v60 = vpack.c.bf16 %v2111_v24, %v2108_v18  ;;  %v2120_v24 = vld [vmem:[#allocation10 + $0xa50] sm:$0xff] }
 0x698   :  { %14123 = vst [vmem:[#allocation220_spill] sm:$0xff] %v11807_v37 }
 0x699   :  { %8951 = vmatpush1.bf16.msra.mxu0 %v11781_v50  ;;  %9025 = vmatpush1.bf16.msra.mxu1 %v11783_v4  ;;  %14122 = vst [vmem:[#allocation219_spill] sm:$0xff] %v11803_v27  ;;  %v2109_v4 = vld [vmem:[#allocation10 + $0x9f8] sm:$0xff]  ;;  %v2112_v50 = vld [vmem:[#allocation10 + $0xa10] sm:$0xff] }
 0x69a   :  { %8953 = vmatprep.subr.bf16.mxu0 %v11787_v42  ;;  %9026 = vmatprep.subr.bf16.mxu1 %v14021_v10  ;;  %v2107_v42 = vld [vmem:[#allocation10 + $0x9e8] sm:$0xff]  ;;  %v11817_v34 = vpack.c.bf16 %v2112_v50, %v2109_v4  ;;  %v2117_v4 = vld [vmem:[#allocation10 + $0xa38] sm:$0xff] }
 0x69b   :  { %v11813_v6 = vpack.c.bf16 %v2107_v42, %v2104_v30  ;;  %v2116_v30 = vld [vmem:[#allocation10 + $0xa30] sm:$0xff]  ;;  %v11831_v18 = vpack.c.bf16 %v2117_v4, %v2114_v44 }
 0x69c   :  { %14126 = vst [vmem:[#allocation223_spill] sm:$0xff] %v11817_v34 }
 0x69d   :  { %8955 = vmatpush1.bf16.msra.mxu0 %v11791_v9  ;;  %9028 = vmatpush1.bf16.msra.mxu1 %v11793_v5  ;;  %14125 = vst [vmem:[#allocation222_spill] sm:$0xff] %v11813_v6  ;;  %v2115_v5 = vld [vmem:[#allocation10 + $0xa28] sm:$0xff]  ;;  %v2118_v9 = vld [vmem:[#allocation10 + $0xa40] sm:$0xff]  ;;  %14128 = vst [vmem:[#allocation225_spill] sm:$0xff] %v11831_v18 }
 0x69e   :  { %8957 = vmatprep.subr.bf16.mxu0 %v11797_v62  ;;  %9029 = vmatprep.subr.bf16.mxu1 %v14021_v10  ;;  %v2113_v62 = vld [vmem:[#allocation10 + $0xa18] sm:$0xff]  ;;  %v11827_v50 = vpack.c.bf16 %v2118_v9, %v2115_v5  ;;  %v2123_v5 = vld [vmem:[#allocation10 + $0xa68] sm:$0xff] }
 0x69f   :  { %v11823_v42 = vpack.c.bf16 %v2113_v62, %v2110_v49  ;;  %v2122_v49 = vld [vmem:[#allocation10 + $0xa60] sm:$0xff]  ;;  %v11841_v44 = vpack.c.bf16 %v2123_v5, %v2120_v24  ;;  %v2575_v5 = vld [vmem:[#allocation10 + $0xae8] sm:$0xff] }
 0x6a0   :  { %14127 = vst [vmem:[#allocation224_spill] sm:$0xff] %v11827_v50 }
 0x6a1   :  { %8959 = vmatpush1.bf16.msra.mxu0 %v11801_v40  ;;  %9031 = vmatpush1.bf16.msra.mxu1 %v11803_v27  ;;  %v2121_v27 = vld [vmem:[#allocation10 + $0xa58] sm:$0xff]  ;;  %v2124_v40 = vld [vmem:[#allocation10 + $0xa70] sm:$0xff]  ;;  %14131 = vst [vmem:[#allocation228_spill] sm:$0xff] %v11841_v44 }
 0x6a2   :  { %8961 = vmatprep.subr.bf16.mxu0 %v11807_v37  ;;  %9032 = vmatprep.subr.bf16.mxu1 %v14021_v10  ;;  %v2119_v37 = vld [vmem:[#allocation10 + $0xa48] sm:$0xff]  ;;  %v11837_v9 = vpack.c.bf16 %v2124_v40, %v2121_v27  ;;  %v2562_v40 = vld [vmem:[#allocation10 + $0xa80] sm:$0xff]  ;;  %v2565_v27 = vld [vmem:[#allocation10 + $0xa98] sm:$0xff] }
 0x6a3   :  { %v11833_v62 = vpack.c.bf16 %v2119_v37, %v2116_v30  ;;  %v2569_v30 = vld [vmem:[#allocation10 + $0xab8] sm:$0xff] }
 0x6a4   :  { %14130 = vst [vmem:[#allocation227_spill] sm:$0xff] %v11837_v9 }
 0x6a5   :  { %8963 = vmatpush1.bf16.msra.mxu0 %v11811_v32  ;;  %9034 = vmatpush1.bf16.msra.mxu1 %v11813_v6  ;;  %14129 = vst [vmem:[#allocation226_spill] sm:$0xff] %v11833_v62  ;;  %v2563_v6 = vld [vmem:[#allocation10 + $0xa88] sm:$0xff]  ;;  %v2566_v32 = vld [vmem:[#allocation10 + $0xaa0] sm:$0xff] }
 0x6a6   :  { %8965 = vmatprep.subr.bf16.mxu0 %v11817_v34  ;;  %9035 = vmatprep.subr.bf16.mxu1 %v14021_v10  ;;  %v2125_v34 = vld [vmem:[#allocation10 + $0xa78] sm:$0xff]  ;;  %v11847_v4 = vpack.c.bf16 %v2566_v32, %v2563_v6  ;;  %v2568_v32 = vld [vmem:[#allocation10 + $0xab0] sm:$0xff]  ;;  %v2571_v6 = vld [vmem:[#allocation10 + $0xac8] sm:$0xff] }
 0x6a7   :  { %v11843_v37 = vpack.c.bf16 %v2125_v34, %v2122_v49  ;;  %v11855_v34 = vpack.c.bf16 %v2565_v27, %v2562_v40  ;;  %v2578_v49 = vld [vmem:[#allocation10 + $0xb00] sm:$0xff]  ;;  %v2577_v27 = vld [vmem:[#allocation10 + $0xaf8] sm:$0xff] }
 0x6a8   :  { %14133 = vst [vmem:[#allocation230_spill] sm:$0xff] %v11847_v4  ;;  %v2574_v40 = vld [vmem:[#allocation10 + $0xae0] sm:$0xff] }
 0x6a9   :  { %8967 = vmatpush1.bf16.msra.mxu0 %v11821_v60  ;;  %9037 = vmatpush1.bf16.msra.mxu1 %v11823_v42  ;;  %14132 = vst [vmem:[#allocation229_spill] sm:$0xff] %v11843_v37  ;;  %14134 = vst [vmem:[#allocation231_spill] sm:$0xff] %v11855_v34 }
 0x6aa   :  { %8969 = vmatprep.subr.bf16.mxu0 %v11827_v50  ;;  %9038 = vmatprep.subr.bf16.mxu1 %v14021_v10  ;;  %v2572_v50 = vld [vmem:[#allocation10 + $0xad0] sm:$0xff] }
 0x6ab   :  { %v11857_v24 = vpack.c.bf16 %v2572_v50, %v2569_v30  ;;  %v11869_v50 = vpack.c.bf16 %v2571_v6, %v2568_v32  ;;  %v2584_v30 = vld [vmem:[#allocation10 + $0xb30] sm:$0xff] }
 0x6ac   :  { %v2580_v6 = vld [vmem:[#allocation10 + $0xb10] sm:$0xff] }
 0x6ad   :  { %8971 = vmatpush1.bf16.msra.mxu0 %v11831_v18  ;;  %9040 = vmatpush1.bf16.msra.mxu1 %v11833_v62  ;;  %14135 = vst [vmem:[#allocation232_spill] sm:$0xff] %v11857_v24  ;;  %14136 = vst [vmem:[#allocation233_spill] sm:$0xff] %v11869_v50  ;;  %v2624_v62 = vld [vmem:[#allocation10 + $0xc70] sm:$0xff]  ;;  %v2633_v18 = vld [vmem:[#allocation10 + $0xcb8] sm:$0xff] }
 0x6ae   :  { %8973 = vmatprep.subr.bf16.mxu0 %v11837_v9  ;;  %9041 = vmatprep.subr.bf16.mxu1 %v14021_v10 }
 0x6b1   :  { %8975 = vmatpush1.bf16.msra.mxu0 %v11841_v44  ;;  %9043 = vmatpush1.bf16.msra.mxu1 %v11843_v37  ;;  %v2615_v37 = vld [vmem:[#allocation10 + $0xc28] sm:$0xff] }
 0x6b2   :  { %9046 = vmatprep.subr.msk.bf16.mxu1 %vm11360_vm5, %v11366_v47  ;;  %9057 = vmatprep.subr.bf16.mxu0 %v11847_v4  ;;  %v2415_v47 = vld [vmem:[#allocation8 + $0x10] sm:$0x3f]  ;;  %v2612_v4 = vld [vmem:[#allocation10 + $0xc10] sm:$0xff] }
 0x6b3   :  { %v11904_v44 = vpack.c.bf16 %v2615_v37, %v2612_v4  ;;  %v2621_v37 = vld [vmem:[#allocation10 + $0xc58] sm:$0xff]  ;;  %v2614_v4 = vld [vmem:[#allocation10 + $0xc20] sm:$0xff] }
 0x6b4   :  { %2265 = vmatmul.mubr.f32.vlgmr.msra.gmra.mrb[6].mxu0 %v11741_v21  ;;  %2406 = vmatmul.mubr.f32.vlgmr.msra.gmra.mrb[14].mxu1 %v11741_v21  ;;  %v11872_v21 = vpack.c.bf16 %v2578_v49, %v2575_v5  ;;  %v2583_v5 = vld [vmem:[#allocation10 + $0xb28] sm:$0xff] }
 0x6b5   :  { %9049 = vmatpush1.bf16.msk.msra.mxu1 %vm11360_vm5, %v11364_v61  ;;  %2483 = vmatprep.mubr.f32.mxu1 %v13938_v54  ;;  %v11880_v61 = vpack.c.bf16 %v2577_v27, %v2574_v40  ;;  %v11887_v49 = vpack.c.bf16 %v2583_v5, %v2580_v6  ;;  %v2590_v40 = vld [vmem:[#allocation10 + $0xb60] sm:$0xff]  ;;  %v2599_v5 = vld [vmem:[#allocation10 + $0xba8] sm:$0xff]  ;;  %14146 = vst [vmem:[#allocation243_spill] sm:$0xff] %v11904_v44 }
 0x6b6   :  { %9052 = vmatprep.subr.msk.bf16.mxu1 %vm11360_vm5, %v11370_v38  ;;  %9059 = vmatpush1.bf16.msra.mxu0 %v11855_v34  ;;  %14137 = vst [vmem:[#allocation234_spill] sm:$0xff] %v11872_v21  ;;  %v2581_v38 = vld [vmem:[#allocation10 + $0xb18] sm:$0xff]  ;;  %v2608_v34 = vld [vmem:[#allocation10 + $0xbf0] sm:$0xff] }
 0x6b7   :  { %9061 = vmatprep.subr.bf16.mxu0 %v11857_v24  ;;  %14138 = vst [vmem:[#allocation235_spill] sm:$0xff] %v11880_v61  ;;  %v11885_v32 = vpack.c.bf16 %v2584_v30, %v2581_v38  ;;  %14140 = vst [vmem:[#allocation237_spill] sm:$0xff] %v11887_v49  ;;  %v2596_v24 = vld [vmem:[#allocation10 + $0xb90] sm:$0xff]  ;;  %v2595_v30 = vld [vmem:[#allocation10 + $0xb88] sm:$0xff] }
 0x6b8   :  { %7475 = vmatmul.mubr.msk.f32.vlgmr.msra.gmra.mrb[22].mxu1 %vm1178_vm6, %v2415_v47  ;;  %v2592_v38 = vld [vmem:[#allocation10 + $0xb70] sm:$0xff] }
 0x6b9   :  { %9055 = vmatpush1.bf16.msk.msra.mxu1 %vm11360_vm5, %v11383_v35  ;;  %2554 = vmatprep.mubr.f32.mxu1 %v13938_v54  ;;  %14139 = vst [vmem:[#allocation236_spill] sm:$0xff] %v11885_v32  ;;  %v2587_v35 = vld [vmem:[#allocation10 + $0xb48] sm:$0xff] }
 0x6ba   :  { %9063 = vmatpush1.bf16.msra.mxu0 %v11869_v50  ;;  %v11891_v27 = vpack.c.bf16 %v2590_v40, %v2587_v35  ;;  %v2593_v50 = vld [vmem:[#allocation10 + $0xb78] sm:$0xff]  ;;  %v2598_v40 = vld [vmem:[#allocation10 + $0xba0] sm:$0xff]  ;;  %9169 = vmatprep.subr.bf16.mxu1 %v11904_v44 }
 0x6bb   :  { %9065 = vmatprep.subr.bf16.mxu0 %v11872_v21  ;;  %v2586_v21 = vld [vmem:[#allocation10 + $0xb40] sm:$0xff]  ;;  %v11896_v6 = vpack.c.bf16 %v2596_v24, %v2593_v50  ;;  %v2564_v24 = vld [vmem:[#allocation10 + $0xa90] sm:$0xff] }
 0x6bc   :  { %7478 = vmatmul.mubr.msk.f32.vlgmr.msra.gmra.mrb[24].mxu1 %vm1178_vm6, %v2415_v47  ;;  %14141 = vst [vmem:[#allocation238_spill] sm:$0xff] %v11891_v27  ;;  %v2589_v47 = vld [vmem:[#allocation10 + $0xb58] sm:$0xff]  ;;  %v2630_v44 = vld [vmem:[#allocation10 + $0xca0] sm:$0xff] }
 0x6bd   :  { %14143 = vst [vmem:[#allocation240_spill] sm:$0xff] %v11896_v6 }
 0x6be   :  { %9067 = vmatpush1.bf16.msra.mxu0 %v11880_v61  ;;  %v11893_v61 = vpack.c.bf16 %v2589_v47, %v2586_v21  ;;  %v2601_v21 = vld [vmem:[#allocation10 + $0xbb8] sm:$0xff] }
 0x6bf   :  { %9069 = vmatprep.subr.bf16.mxu0 %v11885_v32  ;;  %v2602_v32 = vld [vmem:[#allocation10 + $0xbc0] sm:$0xff]  ;;  %v2605_v47 = vld [vmem:[#allocation10 + $0xbd8] sm:$0xff]  ;;  %v11907_v50 = vpack.c.bf16 %v2601_v21, %v2598_v40 }
 0x6c0   :  { %14142 = vst [vmem:[#allocation239_spill] sm:$0xff] %v11893_v61  ;;  %v11902_v35 = vpack.c.bf16 %v2602_v32, %v2599_v5  ;;  %v11910_v32 = vpack.c.bf16 %v2608_v34, %v2605_v47  ;;  %v2611_v5 = vld [vmem:[#allocation10 + $0xc08] sm:$0xff]  ;;  %v2573_v40 = vld [vmem:[#allocation10 + $0xad8] sm:$0xff]  ;;  %v2610_v47 = vld [vmem:[#allocation10 + $0xc00] sm:$0xff] }
 0x6c1   :  { %14147 = vst [vmem:[#allocation244_spill] sm:$0xff] %v11907_v50 }
 0x6c2   :  { %9071 = vmatpush1.bf16.msra.mxu0 %v11887_v49  ;;  %v11899_v49 = vpack.c.bf16 %v2595_v30, %v2592_v38  ;;  %14145 = vst [vmem:[#allocation242_spill] sm:$0xff] %v11902_v35  ;;  %v2607_v38 = vld [vmem:[#allocation10 + $0xbe8] sm:$0xff]  ;;  %14148 = vst [vmem:[#allocation245_spill] sm:$0xff] %v11910_v32 }
 0x6c3   :  { %9073 = vmatprep.subr.bf16.mxu0 %v11891_v27  ;;  %v2567_v30 = vld [vmem:[#allocation10 + $0xaa8] sm:$0xff]  ;;  %v2618_v27 = vld [vmem:[#allocation10 + $0xc40] sm:$0xff] }
 0x6c4   :  { %14144 = vst [vmem:[#allocation241_spill] sm:$0xff] %v11899_v49  ;;  %v11915_v9 = vpack.c.bf16 %v2621_v37, %v2618_v27  ;;  %v11925_v27 = vpack.c.bf16 %v2614_v4, %v2611_v5  ;;  %v11936_v5 = vpack.c.bf16 %v2633_v18, %v2630_v44  ;;  %v2585_v4 = vld [vmem:[#allocation10 + $0xb38] sm:$0xff]  ;;  %v2622_v18 = vld [vmem:[#allocation10 + $0xc60] sm:$0xff] }
 0x6c6   :  { %9075 = vmatpush1.bf16.msra.mxu0 %v11893_v61  ;;  %v2604_v61 = vld [vmem:[#allocation10 + $0xbd0] sm:$0xff]  ;;  %14150 = vst [vmem:[#allocation247_spill] sm:$0xff] %v11915_v9  ;;  %14153 = vst [vmem:[#allocation250_spill] sm:$0xff] %v11925_v27 }
 0x6c7   :  { %9077 = vmatprep.subr.bf16.mxu0 %v11896_v6  ;;  %v11913_v6 = vpack.c.bf16 %v2567_v30, %v2564_v24  ;;  %v11921_v34 = vpack.c.bf16 %v2607_v38, %v2604_v61  ;;  %v2627_v24 = vld [vmem:[#allocation10 + $0xc88] sm:$0xff]  ;;  %v2617_v30 = vld [vmem:[#allocation10 + $0xc38] sm:$0xff]  ;;  %14157 = vst [vmem:[#allocation254_spill] sm:$0xff] %v11936_v5 }
 0x6c8   :  { %v11927_v37 = vpack.c.bf16 %v2627_v24, %v2624_v62  ;;  %v2582_v62 = vld [vmem:[#allocation10 + $0xb20] sm:$0xff] }
 0x6c9   :  { %14149 = vst [vmem:[#allocation246_spill] sm:$0xff] %v11913_v6  ;;  %9171 = vmatpush3.bf16.msra.mxu1 %v11913_v6  ;;  %14152 = vst [vmem:[#allocation249_spill] sm:$0xff] %v11921_v34  ;;  %v2576_v6 = vld [vmem:[#allocation10 + $0xaf0] sm:$0xff] }
 0x6ca   :  { %9079 = vmatpush1.bf16.msra.mxu0 %v11899_v49  ;;  %v2570_v49 = vld [vmem:[#allocation10 + $0xac0] sm:$0xff]  ;;  %9173 = vmatprep.subr.bf16.mxu1 %v11915_v9  ;;  %14154 = vst [vmem:[#allocation251_spill] sm:$0xff] %v11927_v37  ;;  %v2636_v9 = vld [vmem:[#allocation10 + $0xcd0] sm:$0xff] }
 0x6cb   :  { %9081 = vmatprep.subr.bf16.mxu0 %v11902_v35  ;;  %v11918_v21 = vpack.c.bf16 %v2573_v40, %v2570_v49  ;;  %v2613_v35 = vld [vmem:[#allocation10 + $0xc18] sm:$0xff]  ;;  %v2579_v49 = vld [vmem:[#allocation10 + $0xb08] sm:$0xff]  ;;  %v2620_v40 = vld [vmem:[#allocation10 + $0xc50] sm:$0xff] }
 0x6cc   :  { %v11930_v61 = vpack.c.bf16 %v2579_v49, %v2576_v6  ;;  %v11933_v38 = vpack.c.bf16 %v2613_v35, %v2610_v47  ;;  %v11939_v24 = vpack.c.bf16 %v2620_v40, %v2617_v30  ;;  %v2623_v6 = vld [vmem:[#allocation10 + $0xc68] sm:$0xff]  ;;  %v2626_v49 = vld [vmem:[#allocation10 + $0xc80] sm:$0xff]  ;;  %v11942_v35 = vpack.c.bf16 %v2585_v4, %v2582_v62  ;;  %v2588_v30 = vld [vmem:[#allocation10 + $0xb50] sm:$0xff] }
 0x6cd   :  { %14151 = vst [vmem:[#allocation248_spill] sm:$0xff] %v11918_v21  ;;  %9175 = vmatpush3.bf16.msra.mxu1 %v11918_v21  ;;  %v2639_v21 = vld [vmem:[#allocation10 + $0xce8] sm:$0xff]  ;;  %v2629_v62 = vld [vmem:[#allocation10 + $0xc98] sm:$0xff]  ;;  %v2632_v4 = vld [vmem:[#allocation10 + $0xcb0] sm:$0xff] }
 0x6ce   :  { %9083 = vmatpush1.bf16.msra.mxu0 %v11907_v50  ;;  %14155 = vst [vmem:[#allocation252_spill] sm:$0xff] %v11930_v61  ;;  %14156 = vst [vmem:[#allocation253_spill] sm:$0xff] %v11933_v38  ;;  %v2616_v50 = vld [vmem:[#allocation10 + $0xc30] sm:$0xff]  ;;  %9177 = vmatprep.subr.bf16.mxu1 %v11927_v37  ;;  %v11948_v44 = vpack.c.bf16 %v2639_v21, %v2636_v9  ;;  %v2591_v40 = vld [vmem:[#allocation10 + $0xb68] sm:$0xff] }
 0x6cf   :  { %9085 = vmatprep.subr.bf16.mxu0 %v11910_v32  ;;  %14158 = vst [vmem:[#allocation255_spill] sm:$0xff] %v11939_v24  ;;  %v2619_v32 = vld [vmem:[#allocation10 + $0xc48] sm:$0xff]  ;;  %14159 = vst [vmem:[#allocation256_spill] sm:$0xff] %v11942_v35  ;;  %v2642_v37 = vld [vmem:[#allocation10 + $0xd00] sm:$0xff] }
 0x6d0   :  { %v11945_v47 = vpack.c.bf16 %v2619_v32, %v2616_v50  ;;  %14161 = vst [vmem:[#allocation258_spill] sm:$0xff] %v11948_v44  ;;  %v11954_v50 = vpack.c.bf16 %v2591_v40, %v2588_v30  ;;  %v2628_v9 = vld [vmem:[#allocation10 + $0xc90] sm:$0xff]  ;;  %v2635_v30 = vld [vmem:[#allocation10 + $0xcc8] sm:$0xff]  ;;  %v2638_v40 = vld [vmem:[#allocation10 + $0xce0] sm:$0xff] }
 0x6d1   :  { %9179 = vmatpush3.bf16.msra.mxu1 %v11930_v61  ;;  %v2645_v61 = vld [vmem:[#allocation10 + $0xd18] sm:$0xff] }
 0x6d2   :  { %9087 = vmatpush1.bf16.msra.mxu0 %v11921_v34  ;;  %14160 = vst [vmem:[#allocation257_spill] sm:$0xff] %v11945_v47  ;;  %9181 = vmatprep.subr.bf16.mxu1 %v11936_v5  ;;  %v2625_v34 = vld [vmem:[#allocation10 + $0xc78] sm:$0xff]  ;;  %14163 = vst [vmem:[#allocation260_spill] sm:$0xff] %v11954_v50  ;;  %v11960_v21 = vpack.c.bf16 %v2645_v61, %v2642_v37  ;;  %v2648_v5 = vld [vmem:[#allocation10 + $0xd30] sm:$0xff] }
 0x6d3   :  { %9089 = vmatprep.subr.bf16.mxu0 %v11925_v27  ;;  %v11951_v27 = vpack.c.bf16 %v2626_v49, %v2623_v6  ;;  %v11957_v32 = vpack.c.bf16 %v2625_v34, %v2622_v18  ;;  %v2594_v6 = vld [vmem:[#allocation10 + $0xb80] sm:$0xff]  ;;  %v2597_v49 = vld [vmem:[#allocation10 + $0xb98] sm:$0xff] }
 0x6d4   :  { %14165 = vst [vmem:[#allocation262_spill] sm:$0xff] %v11960_v21  ;;  %v11966_v34 = vpack.c.bf16 %v2597_v49, %v2594_v6  ;;  %v2634_v37 = vld [vmem:[#allocation10 + $0xcc0] sm:$0xff]  ;;  %v2641_v6 = vld [vmem:[#allocation10 + $0xcf8] sm:$0xff]  ;;  %v2644_v49 = vld [vmem:[#allocation10 + $0xd10] sm:$0xff] }
 0x6d5   :  { %14162 = vst [vmem:[#allocation259_spill] sm:$0xff] %v11951_v27  ;;  %9183 = vmatpush3.bf16.msra.mxu1 %v11942_v35  ;;  %14164 = vst [vmem:[#allocation261_spill] sm:$0xff] %v11957_v32  ;;  %v2651_v35 = vld [vmem:[#allocation10 + $0xd48] sm:$0xff]  ;;  %v14501_v3 = vld [vmem:[#allocation248_spill] sm:$0xff] }
 0x6d6   :  { %9091 = vmatpush1.bf16.msra.mxu0 %v11933_v38  ;;  %9185 = vmatprep.subr.bf16.mxu1 %v11948_v44  ;;  %v2631_v38 = vld [vmem:[#allocation10 + $0xca8] sm:$0xff]  ;;  %14167 = vst [vmem:[#allocation264_spill] sm:$0xff] %v11966_v34  ;;  %v11972_v61 = vpack.c.bf16 %v2651_v35, %v2648_v5  ;;  %v2654_v44 = vld [vmem:[#allocation10 + $0xd60] sm:$0xff] }
 0x6d7   :  { %9093 = vmatprep.subr.bf16.mxu0 %v11939_v24  ;;  %v11963_v24 = vpack.c.bf16 %v2632_v4, %v2629_v62  ;;  %v11969_v18 = vpack.c.bf16 %v2631_v38, %v2628_v9  ;;  %v2600_v62 = vld [vmem:[#allocation10 + $0xbb0] sm:$0xff]  ;;  %v2603_v4 = vld [vmem:[#allocation10 + $0xbc8] sm:$0xff]  ;;  %v2606_v35 = vld [vmem:[#allocation10 + $0xbe0] sm:$0xff] }
 0x6d8   :  { %v11978_v38 = vpack.c.bf16 %v2603_v4, %v2600_v62  ;;  %v2653_v4 = vld [vmem:[#allocation10 + $0xd58] sm:$0xff] }
 0x6d9   :  { %14166 = vst [vmem:[#allocation263_spill] sm:$0xff] %v11963_v24  ;;  %9187 = vmatpush3.bf16.msra.mxu1 %v11954_v50  ;;  %14168 = vst [vmem:[#allocation265_spill] sm:$0xff] %v11969_v18  ;;  %v2657_v50 = vld [vmem:[#allocation10 + $0xd78] sm:$0xff] }
 0x6da   :  { %9095 = vmatpush1.bf16.msra.mxu0 %v11945_v47  ;;  %9189 = vmatprep.subr.bf16.mxu1 %v11960_v21  ;;  %v2637_v47 = vld [vmem:[#allocation10 + $0xcd8] sm:$0xff]  ;;  %14170 = vst [vmem:[#allocation267_spill] sm:$0xff] %v11978_v38  ;;  %v11984_v5 = vpack.c.bf16 %v2657_v50, %v2654_v44  ;;  %v2647_v21 = vld [vmem:[#allocation10 + $0xd28] sm:$0xff]  ;;  %v2646_v50 = vld [vmem:[#allocation10 + $0xd20] sm:$0xff] }
 0x6db   :  { %9097 = vmatprep.subr.bf16.mxu0 %v11951_v27  ;;  %v11975_v27 = vpack.c.bf16 %v2638_v40, %v2635_v30  ;;  %v11981_v9 = vpack.c.bf16 %v2637_v47, %v2634_v37  ;;  %v2609_v30 = vld [vmem:[#allocation10 + $0xbf8] sm:$0xff]  ;;  %v11987_v40 = vpack.c.bf16 %v2644_v49, %v2641_v6  ;;  %v2656_v6 = vld [vmem:[#allocation10 + $0xd70] sm:$0xff] }
 0x6dc   :  { %14172 = vst [vmem:[#allocation269_spill] sm:$0xff] %v11984_v5  ;;  %v11990_v62 = vpack.c.bf16 %v2609_v30, %v2606_v35  ;;  %v2649_v37 = vld [vmem:[#allocation10 + $0xd38] sm:$0xff]  ;;  %v2655_v35 = vld [vmem:[#allocation10 + $0xd68] sm:$0xff]  ;;  %v2662_v30 = vld [vmem:[#allocation10 + $0xda0] sm:$0xff] }
 0x6dd   :  { %14169 = vst [vmem:[#allocation266_spill] sm:$0xff] %v11975_v27  ;;  %9191 = vmatpush3.bf16.msra.mxu1 %v11966_v34  ;;  %14171 = vst [vmem:[#allocation268_spill] sm:$0xff] %v11981_v9  ;;  %v2650_v34 = vld [vmem:[#allocation10 + $0xd40] sm:$0xff]  ;;  %v12001_v49 = vpack.c.bf16 %v2649_v37, %v2646_v50 }
 0x6de   :  { %9099 = vmatpush1.bf16.msra.mxu0 %v11957_v32  ;;  %9193 = vmatprep.subr.bf16.mxu1 %v11972_v61  ;;  %14173 = vst [vmem:[#allocation270_spill] sm:$0xff] %v11987_v40  ;;  %v2643_v32 = vld [vmem:[#allocation10 + $0xd08] sm:$0xff]  ;;  %14174 = vst [vmem:[#allocation271_spill] sm:$0xff] %v11990_v62  ;;  %v11997_v44 = vpack.c.bf16 %v2650_v34, %v2647_v21  ;;  %v12015_v37 = vld [vmem:[#allocation11] sm:$0x7] }
 0x6df   :  { %9101 = vmatprep.subr.bf16.mxu0 %v11963_v24  ;;  %v2640_v24 = vld [vmem:[#allocation10 + $0xcf0] sm:$0xff]  ;;  %14177 = vst [vmem:[#allocation274_spill] sm:$0xff] %v12001_v49  ;;  %v2659_v34 = vld [vmem:[#allocation10 + $0xd88] sm:$0xff] }
 0x6e0   :  { %v11993_v47 = vpack.c.bf16 %v2643_v32, %v2640_v24  ;;  %14176 = vst [vmem:[#allocation273_spill] sm:$0xff] %v11997_v44  ;;  %v12005_v24 = vpack.c.bf16 %v2656_v6, %v2653_v4  ;;  %v2652_v32 = vld [vmem:[#allocation10 + $0xd50] sm:$0xff]  ;;  %v12012_v50 = vpack.c.bf16 %v2662_v30, %v2659_v34  ;;  %v14181_v4 = vsub.s32 2, %v11192_v12  ;;  %v2661_v34 = vld [vmem:[#allocation10 + $0xd98] sm:$0xff] }
 0x6e1   :  { %9195 = vmatpush3.bf16.msra.mxu1 %v11978_v38  ;;  %v12008_v21 = vpack.c.bf16 %v2655_v35, %v2652_v32  ;;  %v2660_v30 = vld [vmem:[#allocation10 + $0xd90] sm:$0xff]  ;;  %v2667_v38 = vld [vmem:[#allocation10 + $0xdc8] sm:$0xff] }
 0x6e2   :  { %9103 = vmatpush1.bf16.msra.mxu0 %v11969_v18  ;;  %14175 = vst [vmem:[#allocation272_spill] sm:$0xff] %v11993_v47  ;;  %9197 = vmatprep.subr.bf16.mxu1 %v11984_v5  ;;  %14178 = vst [vmem:[#allocation275_spill] sm:$0xff] %v12005_v24  ;;  %v12020_v6 = vrot.slane %v12015_v37, %v14181_v4  ;;  %v2664_v4 = vld [vmem:[#allocation10 + $0xdb0] sm:$0xff] }
 0x6e3   :  { %9105 = vmatprep.subr.bf16.mxu0 %v11975_v27  ;;  %14179 = vst [vmem:[#allocation276_spill] sm:$0xff] %v12008_v21  ;;  %14180 = vst [vmem:[#allocation277_spill] sm:$0xff] %v12012_v50 }
 0x6e4   :  { %14182 = vst [vmem:[#allocation278_spill] sm:$0xff] %v12020_v6  ;;  %v10302_v35 = vadd.f32 %v11727_v45, %v12020_v6  ;;  %v2666_v45 = vld [vmem:[#allocation10 + $0xdc0] sm:$0xff]  ;;  %v2680_v6 = vld [vmem:[#allocation10 + $0xe30] sm:$0xff] }
 0x6e5   :  { %9199 = vmatpush3.bf16.msra.mxu1 %v11990_v62 }
 0x6e6   :  { %9107 = vmatpush1.bf16.msra.mxu0 %v11981_v9  ;;  %9200 = vmatprep.subr.bf16.mxu1 %v14021_v10 }
 0x6e7   :  { %9109 = vmatprep.subr.bf16.mxu0 %v11987_v40  ;;  %v2668_v40 = vld [vmem:[#allocation10 + $0xdd0] sm:$0xff] }
 0x6ea   :  { %9111 = vmatpush1.bf16.msra.mxu0 %v11993_v47  ;;  %v2663_v47 = vld [vmem:[#allocation10 + $0xda8] sm:$0xff] }
 0x6eb   :  { %9113 = vmatprep.subr.bf16.mxu0 %v11997_v44  ;;  %v2658_v44 = vld [vmem:[#allocation10 + $0xd80] sm:$0xff]  ;;  %v12028_v18 = vpack.c.bf16 %v2663_v47, %v2660_v30 }
 0x6ec   :  { %v12026_v27 = vpack.c.bf16 %v2661_v34, %v2658_v44  ;;  %v12034_v44 = vpack.c.bf16 %v2667_v38, %v2664_v4  ;;  %v2672_v34 = vld [vmem:[#allocation10 + $0xdf0] sm:$0xff] }
 0x6ed   :  { %14184 = vst [vmem:[#allocation280_spill] sm:$0xff] %v12028_v18 }
 0x6ee   :  { %9115 = vmatpush1.bf16.msra.mxu0 %v12001_v49  ;;  %14183 = vst [vmem:[#allocation279_spill] sm:$0xff] %v12026_v27  ;;  %14186 = vst [vmem:[#allocation282_spill] sm:$0xff] %v12034_v44 }
 0x6ef   :  { %9117 = vmatprep.subr.bf16.mxu0 %v12005_v24 }
 0x6f2   :  { %9119 = vmatpush1.bf16.msra.mxu0 %v12008_v21 }
 0x6f3   :  { %9121 = vmatprep.subr.bf16.mxu0 %v12012_v50  ;;  %v2665_v50 = vld [vmem:[#allocation10 + $0xdb8] sm:$0xff] }
 0x6f4   :  { %v12030_v5 = vpack.c.bf16 %v2668_v40, %v2665_v50  ;;  %v2673_v50 = vld [vmem:[#allocation10 + $0xdf8] sm:$0xff] }
 0x6f6   :  { %14185 = vst [vmem:[#allocation281_spill] sm:$0xff] %v12030_v5 }
 0x757   :  { %v7733_v49 = vpop.f32.mrb[20].mxu1 }
 0x758   :  { %v7734_v32 = vpop.f32.mrb[21].mxu1 }
 0x759   :  { %v7735_v24 = vadd.f32 %v7734_v32, %v7733_v49  ;;  %v2669_v49 = vld [vmem:[#allocation10 + $0xdd8] sm:$0xff]  ;;  %v2674_v32 = vld [vmem:[#allocation10 + $0xe00] sm:$0xff] }
 0x75a   :  { %v12036_v47 = vpack.c.bf16 %v2669_v49, %v2666_v45  ;;  %v2676_v45 = vld [vmem:[#allocation10 + $0xe10] sm:$0xff] }
 0x75b   :  { %v12024_v21 = vadd.f32 %v10302_v35, %v7735_v24  ;;  %v2671_v24 = vld [vmem:[#allocation10 + $0xde8] sm:$0xff]  ;;  %v2670_v35 = vld [vmem:[#allocation10 + $0xde0] sm:$0xff] }
 0x75c   :  { %14187 = vst [vmem:[#allocation283_spill] sm:$0xff] %v12036_v47  ;;  %v12048_v38 = vpack.c.bf16 %v2673_v50, %v2670_v35 }
 0x75e   :  { %14189 = vst [vmem:[#allocation285_spill] sm:$0xff] %v12048_v38 }
 0x78b   :  { %v2485_v9 = vpop.f32.mrb[22].mxu1 }
 0x78c   :  { %v2487_v62 = vpop.f32.mrb[23].mxu1 }
 0x78d   :  { %2797 = vmatprep.mubr.f32.mxu0 %v2487_v62  ;;  %2939 = vmatprep.mubr.f32.mxu1 %v2487_v62  ;;  %v12042_v62 = vpack.c.bf16 %v2674_v32, %v2671_v24  ;;  %v2679_v24 = vld [vmem:[#allocation10 + $0xe28] sm:$0xff]  ;;  %v2678_v32 = vld [vmem:[#allocation10 + $0xe20] sm:$0xff] }
 0x78e   :  { %2798 = vmatmul.mubr.f32.vlgmr.msra.gmra.mrb[6].mxu0 %v2485_v9  ;;  %2940 = vmatmul.mubr.f32.vlgmr.msra.gmra.mrb[26].mxu1 %v2485_v9  ;;  %v2675_v9 = vld [vmem:[#allocation10 + $0xe08] sm:$0xff]  ;;  %v12058_v35 = vpack.c.bf16 %v2679_v24, %v2676_v45  ;;  %v2688_v24 = vld [vmem:[#allocation10 + $0xe70] sm:$0xff] }
 0x78f   :  { %9123 = vmatpush1.bf16.msra.mxu0 %v12026_v27  ;;  %9202 = vmatpush1.bf16.msra.mxu1 %v12028_v18  ;;  %v12038_v40 = vpop.f32.mrb[24].mxu1  ;;  %14188 = vst [vmem:[#allocation284_spill] sm:$0xff] %v12042_v62  ;;  %v2677_v27 = vld [vmem:[#allocation10 + $0xe18] sm:$0xff]  ;;  %v12050_v4 = vpack.c.bf16 %v2675_v9, %v2672_v34  ;;  %v2683_v18 = vld [vmem:[#allocation10 + $0xe48] sm:$0xff]  ;;  %v2682_v34 = vld [vmem:[#allocation10 + $0xe40] sm:$0xff] }
 0x790   :  { %9125 = vmatprep.subr.bf16.mxu0 %v12030_v5  ;;  %9203 = vmatprep.subr.bf16.mxu1 %v14021_v10  ;;  %v2558_v30 = vpop.f32.mrb[25].mxu1  ;;  %v12054_v49 = vpack.c.bf16 %v2680_v6, %v2677_v27  ;;  %v2681_v5 = vld [vmem:[#allocation10 + $0xe38] sm:$0xff]  ;;  %14192 = vst [vmem:[#allocation288_spill] sm:$0xff] %v12058_v35  ;;  %v2684_v9 = vld [vmem:[#allocation10 + $0xe50] sm:$0xff] }
 0x791   :  { %7479 = vmatprep.mubr.msk.f32.mxu0 %vm1505_vm7, %v2558_v30  ;;  %7480 = vmatprep.mubr.msk.f32.mxu1 %vm1505_vm7, %v2558_v30  ;;  %14190 = vst [vmem:[#allocation286_spill] sm:$0xff] %v12050_v4  ;;  %v2686_v30 = vld [vmem:[#allocation10 + $0xe60] sm:$0xff]  ;;  %v12060_v50 = vpack.c.bf16 %v2681_v5, %v2678_v32  ;;  %v2685_v6 = vld [vmem:[#allocation10 + $0xe58] sm:$0xff]  ;;  %v2691_v32 = vld [vmem:[#allocation10 + $0xe88] sm:$0xff] }
 0x792   :  { %14191 = vst [vmem:[#allocation287_spill] sm:$0xff] %v12054_v49  ;;  %v12064_v27 = vpack.c.bf16 %v2686_v30, %v2683_v18  ;;  %v12068_v45 = vpack.c.bf16 %v2685_v6, %v2682_v34  ;;  %v2690_v30 = vld [vmem:[#allocation10 + $0xe80] sm:$0xff]  ;;  %v12078_v34 = vpack.c.bf16 %v2691_v32, %v2688_v24  ;;  %v2700_v32 = vld [vmem:[#allocation10 + $0xed0] sm:$0xff] }
 0x793   :  { %9127 = vmatpush1.bf16.msra.mxu0 %v12034_v44  ;;  %9205 = vmatpush1.bf16.msra.mxu1 %v12036_v47  ;;  %14193 = vst [vmem:[#allocation289_spill] sm:$0xff] %v12060_v50  ;;  %v2689_v47 = vld [vmem:[#allocation10 + $0xe78] sm:$0xff]  ;;  %v2692_v44 = vld [vmem:[#allocation10 + $0xe90] sm:$0xff]  ;;  %v2694_v6 = vld [vmem:[#allocation10 + $0xea0] sm:$0xff] }
 0x794   :  { %9129 = vmatprep.subr.bf16.mxu0 %v12042_v62  ;;  %9206 = vmatprep.subr.bf16.mxu1 %v14021_v10  ;;  %14194 = vst [vmem:[#allocation290_spill] sm:$0xff] %v12064_v27  ;;  %v2687_v62 = vld [vmem:[#allocation10 + $0xe68] sm:$0xff]  ;;  %14195 = vst [vmem:[#allocation291_spill] sm:$0xff] %v12068_v45  ;;  %v12074_v18 = vpack.c.bf16 %v2692_v44, %v2689_v47  ;;  %v2697_v47 = vld [vmem:[#allocation10 + $0xeb8] sm:$0xff] }
 0x795   :  { %v12070_v5 = vpack.c.bf16 %v2687_v62, %v2684_v9  ;;  %14198 = vst [vmem:[#allocation294_spill] sm:$0xff] %v12078_v34  ;;  %v2696_v9 = vld [vmem:[#allocation10 + $0xeb0] sm:$0xff]  ;;  %v12088_v24 = vpack.c.bf16 %v2697_v47, %v2694_v6  ;;  %v2706_v47 = vld [vmem:[#allocation10 + $0xf00] sm:$0xff] }
 0x796   :  { %14197 = vst [vmem:[#allocation293_spill] sm:$0xff] %v12074_v18 }
 0x797   :  { %9131 = vmatpush1.bf16.msra.mxu0 %v12048_v38  ;;  %9208 = vmatpush1.bf16.msra.mxu1 %v12050_v4  ;;  %14196 = vst [vmem:[#allocation292_spill] sm:$0xff] %v12070_v5  ;;  %v2695_v4 = vld [vmem:[#allocation10 + $0xea8] sm:$0xff]  ;;  %v2698_v38 = vld [vmem:[#allocation10 + $0xec0] sm:$0xff]  ;;  %14201 = vst [vmem:[#allocation297_spill] sm:$0xff] %v12088_v24 }
 0x798   :  { %9133 = vmatprep.subr.bf16.mxu0 %v12054_v49  ;;  %9209 = vmatprep.subr.bf16.mxu1 %v14021_v10  ;;  %v2693_v49 = vld [vmem:[#allocation10 + $0xe98] sm:$0xff]  ;;  %v12084_v44 = vpack.c.bf16 %v2698_v38, %v2695_v4  ;;  %v2703_v4 = vld [vmem:[#allocation10 + $0xee8] sm:$0xff] }
 0x799   :  { %v12080_v62 = vpack.c.bf16 %v2693_v49, %v2690_v30  ;;  %v2702_v30 = vld [vmem:[#allocation10 + $0xee0] sm:$0xff]  ;;  %v12098_v6 = vpack.c.bf16 %v2703_v4, %v2700_v32  ;;  %v2712_v4 = vld [vmem:[#allocation10 + $0xf30] sm:$0xff] }
 0x79a   :  { %14200 = vst [vmem:[#allocation296_spill] sm:$0xff] %v12084_v44 }
 0x79b   :  { %9135 = vmatpush1.bf16.msra.mxu0 %v12058_v35  ;;  %9211 = vmatpush1.bf16.msra.mxu1 %v12060_v50  ;;  %14199 = vst [vmem:[#allocation295_spill] sm:$0xff] %v12080_v62  ;;  %v2701_v50 = vld [vmem:[#allocation10 + $0xed8] sm:$0xff]  ;;  %v2704_v35 = vld [vmem:[#allocation10 + $0xef0] sm:$0xff]  ;;  %14204 = vst [vmem:[#allocation300_spill] sm:$0xff] %v12098_v6 }
 0x79c   :  { %9137 = vmatprep.subr.bf16.mxu0 %v12064_v27  ;;  %9212 = vmatprep.subr.bf16.mxu1 %v14021_v10  ;;  %v2699_v27 = vld [vmem:[#allocation10 + $0xec8] sm:$0xff]  ;;  %v12094_v38 = vpack.c.bf16 %v2704_v35, %v2701_v50  ;;  %v2709_v50 = vld [vmem:[#allocation10 + $0xf18] sm:$0xff] }
 0x79d   :  { %v12090_v49 = vpack.c.bf16 %v2699_v27, %v2696_v9  ;;  %v2708_v9 = vld [vmem:[#allocation10 + $0xf10] sm:$0xff]  ;;  %v12108_v32 = vpack.c.bf16 %v2709_v50, %v2706_v47  ;;  %v2718_v50 = vld [vmem:[#allocation10 + $0xf60] sm:$0xff] }
 0x79e   :  { %14203 = vst [vmem:[#allocation299_spill] sm:$0xff] %v12094_v38 }
 0x79f   :  { %9139 = vmatpush1.bf16.msra.mxu0 %v12068_v45  ;;  %9214 = vmatpush1.bf16.msra.mxu1 %v12070_v5  ;;  %14202 = vst [vmem:[#allocation298_spill] sm:$0xff] %v12090_v49  ;;  %v2707_v5 = vld [vmem:[#allocation10 + $0xf08] sm:$0xff]  ;;  %v2710_v45 = vld [vmem:[#allocation10 + $0xf20] sm:$0xff] }
 0x7a0   :  { %9141 = vmatprep.subr.bf16.mxu0 %v12074_v18  ;;  %9215 = vmatprep.subr.bf16.mxu1 %v14021_v10  ;;  %v2705_v18 = vld [vmem:[#allocation10 + $0xef8] sm:$0xff]  ;;  %v12104_v35 = vpack.c.bf16 %v2710_v45, %v2707_v5  ;;  %v2715_v5 = vld [vmem:[#allocation10 + $0xf48] sm:$0xff] }
 0x7a1   :  { %v12100_v27 = vpack.c.bf16 %v2705_v18, %v2702_v30  ;;  %v2714_v30 = vld [vmem:[#allocation10 + $0xf40] sm:$0xff]  ;;  %v12118_v47 = vpack.c.bf16 %v2715_v5, %v2712_v4  ;;  %v2724_v5 = vld [vmem:[#allocation10 + $0xf90] sm:$0xff] }
 0x7a2   :  { %14206 = vst [vmem:[#allocation302_spill] sm:$0xff] %v12104_v35 }
 0x7a3   :  { %9143 = vmatpush1.bf16.msra.mxu0 %v12078_v34  ;;  %9217 = vmatpush1.bf16.msra.mxu1 %v12080_v62  ;;  %14205 = vst [vmem:[#allocation301_spill] sm:$0xff] %v12100_v27  ;;  %v2713_v62 = vld [vmem:[#allocation10 + $0xf38] sm:$0xff]  ;;  %v2716_v34 = vld [vmem:[#allocation10 + $0xf50] sm:$0xff]  ;;  %14208 = vst [vmem:[#allocation304_spill] sm:$0xff] %v12118_v47 }
 0x7a4   :  { %9145 = vmatprep.subr.bf16.mxu0 %v12084_v44  ;;  %9218 = vmatprep.subr.bf16.mxu1 %v14021_v10  ;;  %v2711_v44 = vld [vmem:[#allocation10 + $0xf28] sm:$0xff]  ;;  %v12114_v45 = vpack.c.bf16 %v2716_v34, %v2713_v62  ;;  %v2721_v62 = vld [vmem:[#allocation10 + $0xf78] sm:$0xff] }
 0x7a5   :  { %v12110_v18 = vpack.c.bf16 %v2711_v44, %v2708_v9  ;;  %v2720_v9 = vld [vmem:[#allocation10 + $0xf70] sm:$0xff]  ;;  %v12128_v4 = vpack.c.bf16 %v2721_v62, %v2718_v50  ;;  %v14216_v62 = vsub.s32 0, %v11192_v12 }
 0x7a6   :  { %14207 = vst [vmem:[#allocation303_spill] sm:$0xff] %v12114_v45 }
 0x7a7   :  { %9147 = vmatpush1.bf16.msra.mxu0 %v12088_v24  ;;  %9220 = vmatpush1.bf16.msra.mxu1 %v12090_v49  ;;  %v2719_v49 = vld [vmem:[#allocation10 + $0xf68] sm:$0xff]  ;;  %v2722_v24 = vld [vmem:[#allocation10 + $0xf80] sm:$0xff]  ;;  %14211 = vst [vmem:[#allocation307_spill] sm:$0xff] %v12128_v4 }
 0x7a8   :  { %9149 = vmatprep.subr.bf16.mxu0 %v12094_v38  ;;  %9221 = vmatprep.subr.bf16.mxu1 %v14021_v10  ;;  %v2717_v38 = vld [vmem:[#allocation10 + $0xf58] sm:$0xff]  ;;  %v12124_v34 = vpack.c.bf16 %v2722_v24, %v2719_v49  ;;  %v2727_v49 = vld [vmem:[#allocation10 + $0xfa8] sm:$0xff] }
 0x7a9   :  { %v12120_v44 = vpack.c.bf16 %v2717_v38, %v2714_v30  ;;  %v2726_v30 = vld [vmem:[#allocation10 + $0xfa0] sm:$0xff] }
 0x7aa   :  { %14210 = vst [vmem:[#allocation306_spill] sm:$0xff] %v12124_v34 }
 0x7ab   :  { %9151 = vmatpush1.bf16.msra.mxu0 %v12098_v6  ;;  %9223 = vmatpush1.bf16.msra.mxu1 %v12100_v27  ;;  %14209 = vst [vmem:[#allocation305_spill] sm:$0xff] %v12120_v44  ;;  %v2725_v27 = vld [vmem:[#allocation10 + $0xf98] sm:$0xff]  ;;  %v2728_v6 = vld [vmem:[#allocation10 + $0xfb0] sm:$0xff] }
 0x7ac   :  { %9153 = vmatprep.subr.bf16.mxu0 %v12104_v35  ;;  %9224 = vmatprep.subr.bf16.mxu1 %v14021_v10  ;;  %v2723_v35 = vld [vmem:[#allocation10 + $0xf88] sm:$0xff]  ;;  %v12134_v24 = vpack.c.bf16 %v2728_v6, %v2725_v27 }
 0x7ad   :  { %v12130_v38 = vpack.c.bf16 %v2723_v35, %v2720_v9  ;;  %v12154_v9 = vrot.slane %v12015_v37, %v14216_v62 }
 0x7ae   :  { %14213 = vst [vmem:[#allocation309_spill] sm:$0xff] %v12134_v24 }
 0x7af   :  { %9155 = vmatpush1.bf16.msra.mxu0 %v12108_v32  ;;  %9226 = vmatpush1.bf16.msra.mxu1 %v12110_v18  ;;  %14212 = vst [vmem:[#allocation308_spill] sm:$0xff] %v12130_v38 }
 0x7b0   :  { %9157 = vmatprep.subr.bf16.mxu0 %v12114_v45  ;;  %9227 = vmatprep.subr.bf16.mxu1 %v14021_v10  ;;  %v2729_v45 = vld [vmem:[#allocation10 + $0xfb8] sm:$0xff] }
 0x7b1   :  { %v12140_v50 = vpack.c.bf16 %v2729_v45, %v2726_v30 }
 0x7b3   :  { %9159 = vmatpush1.bf16.msra.mxu0 %v12118_v47  ;;  %9229 = vmatpush1.bf16.msra.mxu1 %v12120_v44  ;;  %v12138_v47 = vpack.c.bf16 %v2727_v49, %v2724_v5  ;;  %14215 = vst [vmem:[#allocation311_spill] sm:$0xff] %v12140_v50  ;;  %v14217_v5 = vsub.s32 1, %v11192_v12 }
 0x7b4   :  { %9161 = vmatprep.subr.bf16.mxu0 %v12124_v34  ;;  %9230 = vmatprep.subr.bf16.mxu1 %v14021_v10 }
 0x7b5   :  { %14214 = vst [vmem:[#allocation310_spill] sm:$0xff] %v12138_v47  ;;  %v12159_v49 = vrot.slane %v12015_v37, %v14217_v5  ;;  %v3224_v5 = vld [vmem:[%s13552_s8 + $0x88] sm:$0xff] }
 0x7b7   :  { %9163 = vmatpush1.bf16.msra.mxu0 %v12128_v4  ;;  %9232 = vmatpush1.bf16.msra.mxu1 %v12130_v38 }
 0x7b8   :  { %9165 = vmatprep.subr.bf16.mxu0 %v12134_v24  ;;  %9233 = vmatprep.subr.bf16.mxu1 %v14021_v10 }
 0x7bb   :  { %9167 = vmatpush1.bf16.msra.mxu0 %v12138_v47  ;;  %9235 = vmatpush1.bf16.msra.mxu1 %v12140_v50 }
 0x7be   :  { %2869 = vmatmul.mubr.f32.vlgmr.msra.gmra.mrb[6].mxu0 %v12038_v40  ;;  %3010 = vmatmul.mubr.f32.vlgmr.msra.gmra.mrb[14].mxu1 %v12038_v40 }
 0x7bf   :  { %3130 = vmatprep.mubr.f32.mxu1 %v13938_v54  ;;  %3797 = vmatprep.mubr.f32.mxu0 %v13938_v54 }
 0x861   :  { %v7768_v6 = vpop.f32.mrb[26].mxu1 }
 0x862   :  { %v7769_v27 = vpop.f32.mrb[27].mxu1 }
 0x863   :  { %v7770_v35 = vadd.f32 %v7769_v27, %v7768_v6 }
 0x865   :  { %v10304_v45 = vadd.f32 %v12024_v21, %v7770_v35 }
 0x891   :  { %v2870_v40 = vpop.f32.mrb[6].mxu0  ;;  %v3011_v30 = vpop.f32.mrb[14].mxu1 }
 0x892   :  { %v10300_v50 = vadd.f32 %v2870_v40, %v12154_v9  ;;  %v10305_v47 = vadd.f32 %v10304_v45, %v3011_v30  ;;  %v2872_v24 = vpop.f32.mrb[7].mxu0  ;;  %v3013_v38 = vpop.f32.mrb[15].mxu1  ;;  %v3051_v30 = vld [vmem:[#allocation13] sm:$0x3] }
 0x893   :  { %v10301_v6 = vadd.f32 %v2872_v24, %v12159_v49 }
 0x894   :  { %v3020_v21 = vmax.f32 %v10305_v47, 0.0  ;;  %v3018_v27 = vmax.f32 %v10300_v50, 0.0 }
 0x895   :  { %v3019_v35 = vmax.f32 %v10301_v6, 0.0  ;;  %v3207_v6 = vld [vmem:[%s13552_s8] sm:$0xff] }
 0x896   :  { %v3026_v4 = vrot.slane %v3020_v21, 1  ;;  %v3024_v44 = vrot.slane %v3018_v27, 1 }
 0x897   :  { %v3025_v62 = vrot.slane %v3019_v35, 1 }
 0x898   :  { %v3032_v34 = vmax.f32 %v3020_v21, %v3026_v4  ;;  %v3030_v37 = vmax.f32 %v3018_v27, %v3024_v44  ;;  %v3223_v44 = vld [vmem:[%s13552_s8 + $0x80] sm:$0xff]  ;;  %v3208_v21 = vld [vmem:[%s13552_s8 + $0x8] sm:$0xff] }
 0x899   :  { %v3031_v12 = vmax.f32 %v3019_v35, %v3025_v62  ;;  %v3729_v35 = vld [vmem:[#allocation13 + $0x4] sm:$0x3]  ;;  %v12194_v62 = vpack.c.bf16 %v3224_v5, %v3223_v44 }
 0x89a   :  { %3040 = vrot.lane.b32.xlu1 %v3032_v34, %s10732_s22 }
 0x89b   :  { %3038 = vrot.lane.b32.xlu0 %v3031_v12, %s10732_s22 }
 0x89f   :  { %3036 = vrot.lane.b32.xlu0 %v3030_v37, %s10732_s22 }
 0x90c   :  { %v3041_v45 = vpop.permute.xlu1 %3040 }
 0x90d   :  { %v3039_v38 = vpop.permute.xlu0 %3038  ;;  %v12188_v27 = vmax.f32 %v3032_v34, %v3041_v45  ;;  %v12207_v34 = vpack.c.bf16 %v3208_v21, %v3207_v6  ;;  %v3211_v6 = vld [vmem:[%s13552_s8 + $0x20] sm:$0xff]  ;;  %v3212_v21 = vld [vmem:[%s13552_s8 + $0x28] sm:$0xff] }
 0x90e   :  { %v3043_v24 = vsel %vm1505_vm7, %v3039_v38, %v3041_v45 }
 0x90f   :  { %v12167_v47 = vmax.f32 %v3031_v12, %v3043_v24  ;;  %v3225_v12 = vld [vmem:[%s13552_s8 + $0x90] sm:$0xff]  ;;  %14218 = vst [vmem:[#allocation312_spill] sm:$0xff] %v12207_v34  ;;  %v3210_v24 = vld [vmem:[%s13552_s8 + $0x18] sm:$0xff] }
 0x911   :  { %7481 = vmatprep.subr.msk.mxu1 %vm3056_vm8, %v12167_v47  ;;  %7534 = vmatprep.subr.msk.mxu0 %vm3056_vm8, %v12167_v47  ;;  %v3037_v4 = vpop.permute.xlu0 %3036 }
 0x912   :  { %v3042_v50 = vsel %vm1505_vm7, %v3037_v4, %v3039_v38  ;;  %v3209_v38 = vld [vmem:[%s13552_s8 + $0x10] sm:$0xff]  ;;  %v3227_v4 = vld [vmem:[%s13552_s8 + $0xa0] sm:$0xff] }
 0x913   :  { %v12180_v40 = vmax.f32 %v3030_v37, %v3042_v50  ;;  %v3226_v37 = vld [vmem:[%s13552_s8 + $0x98] sm:$0xff]  ;;  %v3228_v50 = vld [vmem:[%s13552_s8 + $0xa8] sm:$0xff]  ;;  %v12233_v44 = vpack.c.bf16 %v3210_v24, %v3209_v38 }
 0x914   :  { %v12212_v45 = vpack.c.bf16 %v3226_v37, %v3225_v12  ;;  %v12236_v5 = vpack.c.bf16 %v3228_v50, %v3227_v4  ;;  %v3230_v12 = vld [vmem:[%s13552_s8 + $0xb8] sm:$0xff]  ;;  %v12252_v37 = vpack.c.bf16 %v3212_v21, %v3211_v6  ;;  %v3231_v4 = vld [vmem:[%s13552_s8 + $0xc0] sm:$0xff]  ;;  %v3232_v50 = vld [vmem:[%s13552_s8 + $0xc8] sm:$0xff] }
 0x915   :  { %7482 = vmatpush1.msk.msra.mxu1 %vm3056_vm8, %v12180_v40  ;;  %7535 = vmatpush1.msk.msra.mxu0 %vm3056_vm8, %v12180_v40  ;;  %14220 = vst [vmem:[#allocation314_spill] sm:$0xff] %v12233_v44  ;;  %v3214_v24 = vld [vmem:[%s13552_s8 + $0x38] sm:$0xff]  ;;  %v12273_v21 = vpack.c.bf16 %v3232_v50, %v3231_v4  ;;  %v3217_v50 = vld [vmem:[%s13552_s8 + $0x50] sm:$0xff] }
 0x916   :  { %7483 = vmatmul.mubr.msk.f32.vlgmr.msra.gmra.mrb[28].mxu1 %vm3052_vm9, %v3051_v30  ;;  %8239 = vmatprep.subr.mxu1 %v13938_v54  ;;  %14219 = vst [vmem:[#allocation313_spill] sm:$0xff] %v12212_v45  ;;  %14221 = vst [vmem:[#allocation315_spill] sm:$0xff] %v12236_v5 }
 0x917   :  { %8287 = vmatprep.subr.mxu0 %v13938_v54  ;;  %8240 = vmatpush3.msk.msra.mxu1 %vm3056_vm8, %v12188_v27  ;;  %14222 = vst [vmem:[#allocation316_spill] sm:$0xff] %v12252_v37  ;;  %14225 = vst [vmem:[#allocation319_spill] sm:$0xff] %v12273_v21 }
 0x918   :  { %7536 = vmatmul.mubr.msk.f32.vlgmr.msra.gmra.mrb[8].mxu0 %vm3052_vm9, %v3729_v35  ;;  %8241 = vmatprep.mubr.msk.f32.mxu1 %vm10733_vm10, %v13938_v54 }
 0x919   :  { %8288 = vmatpush3.msk.msra.mxu0 %vm3056_vm8, %v12188_v27  ;;  %9237 = vmatprep.subr.bf16.mxu1 %v12194_v62 }
 0x91a   :  { %8242 = vmatmul.mubr.msk.f32.vlgmr.msra.gmra.mrb[30].mxu1 %vm3052_vm9, %v3051_v30  ;;  %8289 = vmatprep.mubr.msk.f32.mxu0 %vm10733_vm10, %v13938_v54  ;;  %v3229_v30 = vld [vmem:[%s13552_s8 + $0xb0] sm:$0xff] }
 0x91b   :  { %9239 = vmatpush3.bf16.msra.mxu1 %v12207_v34  ;;  %v12255_v38 = vpack.c.bf16 %v3230_v12, %v3229_v30  ;;  %v3215_v30 = vld [vmem:[%s13552_s8 + $0x40] sm:$0xff]  ;;  %v3216_v12 = vld [vmem:[%s13552_s8 + $0x48] sm:$0xff] }
 0x91c   :  { %9241 = vmatprep.subr.bf16.mxu1 %v12212_v45  ;;  %8290 = vmatmul.mubr.msk.f32.vlgmr.msra.gmra.mrb[10].mxu0 %vm3052_vm9, %v3729_v35  ;;  %v3213_v35 = vld [vmem:[%s13552_s8 + $0x30] sm:$0xff] }
 0x91d   :  { %14223 = vst [vmem:[#allocation317_spill] sm:$0xff] %v12255_v38  ;;  %v12270_v6 = vpack.c.bf16 %v3214_v24, %v3213_v35  ;;  %v3234_v35 = vld [vmem:[%s13552_s8 + $0xd8] sm:$0xff]  ;;  %v12288_v24 = vpack.c.bf16 %v3216_v12, %v3215_v30  ;;  %v3236_v30 = vld [vmem:[%s13552_s8 + $0xe8] sm:$0xff] }
 0x91f   :  { %9243 = vmatpush3.bf16.msra.mxu1 %v12233_v44  ;;  %14224 = vst [vmem:[#allocation318_spill] sm:$0xff] %v12270_v6  ;;  %14226 = vst [vmem:[#allocation320_spill] sm:$0xff] %v12288_v24 }
 0x920   :  { %9245 = vmatprep.subr.bf16.mxu1 %v12236_v5  ;;  %v3233_v5 = vld [vmem:[%s13552_s8 + $0xd0] sm:$0xff] }
 0x921   :  { %v12291_v4 = vpack.c.bf16 %v3234_v35, %v3233_v5  ;;  %v3219_v35 = vld [vmem:[%s13552_s8 + $0x60] sm:$0xff] }
 0x923   :  { %9247 = vmatpush3.bf16.msra.mxu1 %v12252_v37  ;;  %14227 = vst [vmem:[#allocation321_spill] sm:$0xff] %v12291_v4  ;;  %v3235_v37 = vld [vmem:[%s13552_s8 + $0xe0] sm:$0xff] }
 0x924   :  { %9249 = vmatprep.subr.bf16.mxu1 %v12255_v38  ;;  %v3218_v38 = vld [vmem:[%s13552_s8 + $0x58] sm:$0xff]  ;;  %v12309_v12 = vpack.c.bf16 %v3236_v30, %v3235_v37  ;;  %v3221_v30 = vld [vmem:[%s13552_s8 + $0x70] sm:$0xff] }
 0x925   :  { %v12306_v5 = vpack.c.bf16 %v3218_v38, %v3217_v50  ;;  %v3238_v38 = vld [vmem:[%s13552_s8 + $0xf8] sm:$0xff] }
 0x926   :  { %14229 = vst [vmem:[#allocation323_spill] sm:$0xff] %v12309_v12 }
 0x927   :  { %9251 = vmatpush3.bf16.msra.mxu1 %v12270_v6  ;;  %14228 = vst [vmem:[#allocation322_spill] sm:$0xff] %v12306_v5  ;;  %v3237_v6 = vld [vmem:[%s13552_s8 + $0xf0] sm:$0xff] }
 0x928   :  { %9253 = vmatprep.subr.bf16.mxu1 %v12273_v21  ;;  %v3220_v21 = vld [vmem:[%s13552_s8 + $0x68] sm:$0xff]  ;;  %v12327_v50 = vpack.c.bf16 %v3238_v38, %v3237_v6  ;;  %v7555_v6 = vld [vmem:[%s13552_s8 + $0x300] sm:$0xff] }
 0x929   :  { %v12324_v37 = vpack.c.bf16 %v3220_v21, %v3219_v35  ;;  %v7556_v21 = vld [vmem:[%s13552_s8 + $0x308] sm:$0xff] }
 0x92a   :  { %14231 = vst [vmem:[#allocation325_spill] sm:$0xff] %v12327_v50  ;;  %v12347_v35 = vpack.c.bf16 %v7556_v21, %v7555_v6  ;;  %v7540_v38 = vld [vmem:[%s13552_s8 + $0x288] sm:$0xff]  ;;  %v7558_v6 = vld [vmem:[%s13552_s8 + $0x318] sm:$0xff] }
 0x92b   :  { %9255 = vmatpush3.bf16.msra.mxu1 %v12288_v24  ;;  %14230 = vst [vmem:[#allocation324_spill] sm:$0xff] %v12324_v37 }
 0x92c   :  { %9257 = vmatprep.subr.bf16.mxu1 %v12291_v4  ;;  %v3222_v4 = vld [vmem:[%s13552_s8 + $0x78] sm:$0xff]  ;;  %14233 = vst [vmem:[#allocation327_spill] sm:$0xff] %v12347_v35  ;;  %9325 = vmatprep.subr.bf16.mxu0 %v12347_v35  ;;  %v7584_v35 = vld [vmem:[%s13544_s0 + $0x30] sm:$0xff] }
 0x92d   :  { %v12336_v24 = vpack.c.bf16 %v3222_v4, %v3221_v30  ;;  %v7539_v4 = vld [vmem:[%s13552_s8 + $0x280] sm:$0xff] }
 0x92e   :  { %v12356_v30 = vpack.c.bf16 %v7540_v38, %v7539_v4  ;;  %v7542_v4 = vld [vmem:[%s13552_s8 + $0x298] sm:$0xff] }
 0x92f   :  { %9259 = vmatpush3.bf16.msra.mxu1 %v12306_v5  ;;  %14232 = vst [vmem:[#allocation326_spill] sm:$0xff] %v12336_v24 }
 0x930   :  { %9261 = vmatprep.subr.bf16.mxu1 %v12309_v12  ;;  %14234 = vst [vmem:[#allocation328_spill] sm:$0xff] %v12356_v30  ;;  %9327 = vmatpush3.bf16.msra.mxu0 %v12356_v30 }
 0x933   :  { %9263 = vmatpush3.bf16.msra.mxu1 %v12324_v37  ;;  %v3239_v37 = vld [vmem:[%s13552_s8 + $0x100] sm:$0xff] }
 0x934   :  { %9265 = vmatprep.subr.bf16.mxu1 %v12327_v50  ;;  %v7541_v50 = vld [vmem:[%s13552_s8 + $0x290] sm:$0xff] }
 0x935   :  { %v12373_v38 = vpack.c.bf16 %v7542_v4, %v7541_v50  ;;  %v3241_v50 = vld [vmem:[%s13552_s8 + $0x110] sm:$0xff]  ;;  %v3242_v4 = vld [vmem:[%s13552_s8 + $0x118] sm:$0xff] }
 0x937   :  { %9267 = vmatpush3.bf16.msra.mxu1 %v12336_v24  ;;  %v7557_v24 = vld [vmem:[%s13552_s8 + $0x310] sm:$0xff]  ;;  %14236 = vst [vmem:[#allocation330_spill] sm:$0xff] %v12373_v38 }
 0x938   :  { %9268 = vmatprep.subr.bf16.mxu1 %v14021_v10  ;;  %v12365_v21 = vpack.c.bf16 %v7558_v6, %v7557_v24  ;;  %v3240_v24 = vld [vmem:[%s13552_s8 + $0x108] sm:$0xff] }
 0x939   :  { %v12383_v12 = vpack.c.bf16 %v3240_v24, %v3239_v37  ;;  %v3243_v37 = vld [vmem:[%s13552_s8 + $0x120] sm:$0xff]  ;;  %v3244_v24 = vld [vmem:[%s13552_s8 + $0x128] sm:$0xff] }
 0x93a   :  { %14235 = vst [vmem:[#allocation329_spill] sm:$0xff] %v12365_v21  ;;  %9329 = vmatprep.subr.bf16.mxu0 %v12365_v21  ;;  %v7524_v21 = vld [vmem:[%s13552_s8 + $0x238] sm:$0xff] }
 0x93b   :  { %9331 = vmatpush3.bf16.msra.mxu0 %v12373_v38  ;;  %14237 = vst [vmem:[#allocation331_spill] sm:$0xff] %v12383_v12  ;;  %v12392_v38 = vpack.c.bf16 %v3242_v4, %v3241_v50  ;;  %v3245_v50 = vld [vmem:[%s13552_s8 + $0x130] sm:$0xff]  ;;  %v3246_v4 = vld [vmem:[%s13552_s8 + $0x138] sm:$0xff] }
 0x93d   :  { %14238 = vst [vmem:[#allocation332_spill] sm:$0xff] %v12392_v38 }
 0x9e9   :  { %v3132_v6 = vpop.f32.mrb[28].mxu1 }
 0x9ea   :  { %v3134_v5 = vpop.f32.mrb[29].mxu1 }
 0x9eb   :  { %3314 = vmatprep.mubr.f32.mxu1 %v3134_v5 }
 0x9ec   :  { %3315 = vmatmul.mubr.f32.vlgmr.msra.gmra.mrb[32].mxu1 %v3132_v6  ;;  %v12404_v6 = vpack.c.bf16 %v3244_v24, %v3243_v37  ;;  %v7509_v37 = vld [vmem:[%s13552_s8 + $0x1c0] sm:$0xff]  ;;  %v7510_v24 = vld [vmem:[%s13552_s8 + $0x1c8] sm:$0xff] }
 0x9ed   :  { %9270 = vmatpush3.bf16.msra.mxu1 %v12383_v12  ;;  %v3203_v44 = vpop.f32.mrb[30].mxu1  ;;  %8260 = vmatprep.mubr.msk.f32.mxu1 %vm10733_vm10, %v13938_v54  ;;  %v12414_v12 = vpack.c.bf16 %v3246_v4, %v3245_v50  ;;  %v12431_v50 = vpack.c.bf16 %v7510_v24, %v7509_v37  ;;  %v7494_v4 = vld [vmem:[%s13552_s8 + $0x148] sm:$0xff] }
 0x9ee   :  { %9271 = vmatprep.subr.bf16.mxu1 %v14021_v10  ;;  %v8243_v5 = vpop.f32.mrb[31].mxu1  ;;  %14239 = vst [vmem:[#allocation333_spill] sm:$0xff] %v12404_v6 }
 0x9ef   :  { %14240 = vst [vmem:[#allocation334_spill] sm:$0xff] %v12414_v12  ;;  %v3398_v5 = vld [vmem:[#allocation13 + $0x2] sm:$0x3]  ;;  %14241 = vst [vmem:[#allocation335_spill] sm:$0xff] %v12431_v50 }
 0x9f1   :  { %9273 = vmatpush3.bf16.msra.mxu1 %v12392_v38 }
 0x9f2   :  { %9274 = vmatprep.subr.bf16.mxu1 %v14021_v10 }
 0x9f5   :  { %9276 = vmatpush3.bf16.msra.mxu1 %v12404_v6  ;;  %v7496_v6 = vld [vmem:[%s13552_s8 + $0x158] sm:$0xff] }
 0x9f6   :  { %9277 = vmatprep.subr.bf16.mxu1 %v14021_v10 }
 0x9f9   :  { %9279 = vmatpush3.bf16.msra.mxu1 %v12414_v12  ;;  %v7495_v12 = vld [vmem:[%s13552_s8 + $0x150] sm:$0xff] }
 0x9fa   :  { %7488 = vmatprep.subr.msk.mxu1 %vm3056_vm8, %v12167_v47  ;;  %v7493_v47 = vld [vmem:[%s13552_s8 + $0x140] sm:$0xff] }
 0x9fb   :  { %v12450_v37 = vpack.c.bf16 %v7494_v4, %v7493_v47  ;;  %v7514_v47 = vld [vmem:[%s13552_s8 + $0x1e8] sm:$0xff]  ;;  %v12469_v4 = vpack.c.bf16 %v7496_v6, %v7495_v12  ;;  %v7559_v12 = vld [vmem:[%s13552_s8 + $0x320] sm:$0xff] }
 0x9fc   :  { %8261 = vmatmul.mubr.msk.f32.vlgmr.msra.gmra.mrb[34].mxu1 %vm1505_vm7, %v3203_v44  ;;  %v7511_v44 = vld [vmem:[%s13552_s8 + $0x1d0] sm:$0xff]  ;;  %v7560_v6 = vld [vmem:[%s13552_s8 + $0x328] sm:$0xff] }
 0x9fd   :  { %7489 = vmatpush1.msk.msra.mxu1 %vm3056_vm8, %v12180_v40  ;;  %3466 = vmatprep.mubr.f32.mxu1 %v13938_v54  ;;  %v7512_v40 = vld [vmem:[%s13552_s8 + $0x1d8] sm:$0xff]  ;;  %14242 = vst [vmem:[#allocation336_spill] sm:$0xff] %v12450_v37  ;;  %14244 = vst [vmem:[#allocation338_spill] sm:$0xff] %v12469_v4 }
 0x9fe   :  { %8263 = vmatprep.subr.mxu1 %v13938_v54  ;;  %v12453_v24 = vpack.c.bf16 %v7512_v40, %v7511_v44  ;;  %v7497_v40 = vld [vmem:[%s13552_s8 + $0x160] sm:$0xff] }
 0xa00   :  { %7490 = vmatmul.mubr.msk.f32.vlgmr.msra.gmra.mrb[36].mxu1 %vm3052_vm9, %v3398_v5  ;;  %14243 = vst [vmem:[#allocation337_spill] sm:$0xff] %v12453_v24 }
 0xa01   :  { %8264 = vmatpush3.msk.msra.mxu1 %vm3056_vm8, %v12188_v27  ;;  %8265 = vmatprep.mubr.msk.f32.mxu1 %vm10733_vm10, %v13938_v54  ;;  %v7513_v27 = vld [vmem:[%s13552_s8 + $0x1e0] sm:$0xff] }
 0xa02   :  { %9281 = vmatprep.subr.bf16.mxu1 %v12431_v50  ;;  %v12472_v44 = vpack.c.bf16 %v7514_v47, %v7513_v27  ;;  %v7498_v50 = vld [vmem:[%s13552_s8 + $0x168] sm:$0xff]  ;;  %v7515_v27 = vld [vmem:[%s13552_s8 + $0x1f0] sm:$0xff] }
 0xa03   :  { %v12481_v38 = vpack.c.bf16 %v7498_v50, %v7497_v40  ;;  %v7516_v50 = vld [vmem:[%s13552_s8 + $0x1f8] sm:$0xff]  ;;  %v7543_v40 = vld [vmem:[%s13552_s8 + $0x2a0] sm:$0xff] }
 0xa04   :  { %8266 = vmatmul.mubr.msk.f32.vlgmr.msra.gmra.mrb[38].mxu1 %vm3052_vm9, %v3398_v5  ;;  %14245 = vst [vmem:[#allocation339_spill] sm:$0xff] %v12472_v44  ;;  %v12491_v5 = vpack.c.bf16 %v7560_v6, %v7559_v12  ;;  %v12499_v47 = vpack.c.bf16 %v7516_v50, %v7515_v27  ;;  %v7499_v12 = vld [vmem:[%s13552_s8 + $0x170] sm:$0xff]  ;;  %v7500_v27 = vld [vmem:[%s13552_s8 + $0x178] sm:$0xff] }
 0xa05   :  { %9283 = vmatpush3.bf16.msra.mxu1 %v12450_v37  ;;  %14246 = vst [vmem:[#allocation340_spill] sm:$0xff] %v12481_v38  ;;  %v12517_v50 = vpack.c.bf16 %v7500_v27, %v7499_v12  ;;  %v7518_v12 = vld [vmem:[%s13552_s8 + $0x208] sm:$0xff]  ;;  %v7545_v27 = vld [vmem:[%s13552_s8 + $0x2b0] sm:$0xff] }
 0xa06   :  { %9285 = vmatprep.subr.bf16.mxu1 %v12453_v24  ;;  %14247 = vst [vmem:[#allocation341_spill] sm:$0xff] %v12491_v5  ;;  %14248 = vst [vmem:[#allocation342_spill] sm:$0xff] %v12499_v47  ;;  %9333 = vmatprep.subr.bf16.mxu0 %v12491_v5  ;;  %v7502_v24 = vld [vmem:[%s13552_s8 + $0x188] sm:$0xff] }
 0xa07   :  { %14250 = vst [vmem:[#allocation344_spill] sm:$0xff] %v12517_v50 }
 0xa09   :  { %9287 = vmatpush3.bf16.msra.mxu1 %v12469_v4  ;;  %v7562_v4 = vld [vmem:[%s13552_s8 + $0x338] sm:$0xff] }
 0xa0a   :  { %9289 = vmatprep.subr.bf16.mxu1 %v12472_v44  ;;  %v7561_v44 = vld [vmem:[%s13552_s8 + $0x330] sm:$0xff] }
 0xa0d   :  { %9291 = vmatpush3.bf16.msra.mxu1 %v12481_v38  ;;  %v7544_v38 = vld [vmem:[%s13552_s8 + $0x2a8] sm:$0xff] }
 0xa0e   :  { %v12511_v6 = vpack.c.bf16 %v7544_v38, %v7543_v40  ;;  %9293 = vmatprep.subr.bf16.mxu1 %v12499_v47  ;;  %v12526_v38 = vpack.c.bf16 %v7562_v4, %v7561_v44  ;;  %v7517_v40 = vld [vmem:[%s13552_s8 + $0x200] sm:$0xff]  ;;  %v7546_v4 = vld [vmem:[%s13552_s8 + $0x2b8] sm:$0xff] }
 0xa0f   :  { %v12538_v47 = vpack.c.bf16 %v7518_v12, %v7517_v40  ;;  %v7501_v44 = vld [vmem:[%s13552_s8 + $0x180] sm:$0xff]  ;;  %v12550_v37 = vpack.c.bf16 %v7546_v4, %v7545_v27  ;;  %v7564_v12 = vld [vmem:[%s13552_s8 + $0x348] sm:$0xff] }
 0xa10   :  { %14249 = vst [vmem:[#allocation343_spill] sm:$0xff] %v12511_v6  ;;  %9335 = vmatpush3.bf16.msra.mxu0 %v12511_v6  ;;  %14251 = vst [vmem:[#allocation345_spill] sm:$0xff] %v12526_v38  ;;  %v12552_v6 = vpack.c.bf16 %v7502_v24, %v7501_v44  ;;  %v7563_v40 = vld [vmem:[%s13552_s8 + $0x340] sm:$0xff]  ;;  %v7520_v24 = vld [vmem:[%s13552_s8 + $0x218] sm:$0xff] }
 0xa11   :  { %9295 = vmatpush3.bf16.msra.mxu1 %v12517_v50  ;;  %14252 = vst [vmem:[#allocation346_spill] sm:$0xff] %v12538_v47  ;;  %9337 = vmatprep.subr.bf16.mxu0 %v12526_v38  ;;  %14253 = vst [vmem:[#allocation347_spill] sm:$0xff] %v12550_v37  ;;  %v7519_v50 = vld [vmem:[%s13552_s8 + $0x210] sm:$0xff]  ;;  %v12564_v5 = vpack.c.bf16 %v7564_v12, %v7563_v40  ;;  %v7547_v27 = vld [vmem:[%s13552_s8 + $0x2c0] sm:$0xff] }
 0xa12   :  { %14254 = vst [vmem:[#allocation348_spill] sm:$0xff] %v12552_v6  ;;  %9297 = vmatprep.subr.bf16.mxu1 %v12538_v47  ;;  %v7548_v4 = vld [vmem:[%s13552_s8 + $0x2c8] sm:$0xff]  ;;  %v12576_v44 = vpack.c.bf16 %v7520_v24, %v7519_v50  ;;  %v7503_v40 = vld [vmem:[%s13552_s8 + $0x190] sm:$0xff]  ;;  %v7504_v12 = vld [vmem:[%s13552_s8 + $0x198] sm:$0xff] }
 0xa13   :  { %14255 = vst [vmem:[#allocation349_spill] sm:$0xff] %v12564_v5  ;;  %v12578_v38 = vpack.c.bf16 %v7548_v4, %v7547_v27  ;;  %v7565_v47 = vld [vmem:[%s13552_s8 + $0x350] sm:$0xff]  ;;  %v12591_v50 = vpack.c.bf16 %v7504_v12, %v7503_v40  ;;  %v7566_v24 = vld [vmem:[%s13552_s8 + $0x358] sm:$0xff]  ;;  %v7521_v27 = vld [vmem:[%s13552_s8 + $0x220] sm:$0xff] }
 0xa14   :  { %9339 = vmatpush3.bf16.msra.mxu0 %v12550_v37  ;;  %14256 = vst [vmem:[#allocation350_spill] sm:$0xff] %v12576_v44  ;;  %v7522_v4 = vld [vmem:[%s13552_s8 + $0x228] sm:$0xff]  ;;  %v12603_v37 = vpack.c.bf16 %v7566_v24, %v7565_v47  ;;  %v7549_v40 = vld [vmem:[%s13552_s8 + $0x2d0] sm:$0xff]  ;;  %v7550_v12 = vld [vmem:[%s13552_s8 + $0x2d8] sm:$0xff] }
 0xa15   :  { %14257 = vst [vmem:[#allocation351_spill] sm:$0xff] %v12578_v38  ;;  %9299 = vmatpush3.bf16.msra.mxu1 %v12552_v6  ;;  %9341 = vmatprep.subr.bf16.mxu0 %v12564_v5  ;;  %14258 = vst [vmem:[#allocation352_spill] sm:$0xff] %v12591_v50  ;;  %v12605_v6 = vpack.c.bf16 %v7522_v4, %v7521_v27  ;;  %v7505_v5 = vld [vmem:[%s13552_s8 + $0x1a0] sm:$0xff]  ;;  %v7568_v24 = vld [vmem:[%s13552_s8 + $0x368] sm:$0xff]  ;;  %v12626_v27 = vpack.c.bf16 %v7550_v12, %v7549_v40 }
 0xa16   :  { %9301 = vmatprep.subr.bf16.mxu1 %v12576_v44  ;;  %14259 = vst [vmem:[#allocation353_spill] sm:$0xff] %v12603_v37  ;;  %v7506_v44 = vld [vmem:[%s13552_s8 + $0x1a8] sm:$0xff]  ;;  %v7567_v47 = vld [vmem:[%s13552_s8 + $0x360] sm:$0xff]  ;;  %v7523_v4 = vld [vmem:[%s13552_s8 + $0x230] sm:$0xff] }
 0xa17   :  { %14260 = vst [vmem:[#allocation354_spill] sm:$0xff] %v12605_v6  ;;  %14261 = vst [vmem:[#allocation355_spill] sm:$0xff] %v12626_v27  ;;  %v12636_v30 = vpack.c.bf16 %v7506_v44, %v7505_v5  ;;  %v12638_v45 = vpack.c.bf16 %v7568_v24, %v7567_v47  ;;  %v7551_v40 = vld [vmem:[%s13552_s8 + $0x2e0] sm:$0xff]  ;;  %v7552_v12 = vld [vmem:[%s13552_s8 + $0x2e8] sm:$0xff] }
 0xa18   :  { %9343 = vmatpush3.bf16.msra.mxu0 %v12578_v38  ;;  %v12647_v38 = vpack.c.bf16 %v7524_v21, %v7523_v4  ;;  %v7508_v5 = vld [vmem:[%s13552_s8 + $0x1b8] sm:$0xff]  ;;  %v12656_v44 = vpack.c.bf16 %v7552_v12, %v7551_v40  ;;  %v7569_v21 = vld [vmem:[%s13552_s8 + $0x370] sm:$0xff] }
 0xa19   :  { %9303 = vmatpush3.bf16.msra.mxu1 %v12591_v50  ;;  %9345 = vmatprep.subr.bf16.mxu0 %v12603_v37  ;;  %14262 = vst [vmem:[#allocation356_spill] sm:$0xff] %v12636_v30  ;;  %14263 = vst [vmem:[#allocation357_spill] sm:$0xff] %v12638_v45  ;;  %v7507_v50 = vld [vmem:[%s13552_s8 + $0x1b0] sm:$0xff]  ;;  %v7570_v24 = vld [vmem:[%s13552_s8 + $0x378] sm:$0xff] }
 0xa1a   :  { %9305 = vmatprep.subr.bf16.mxu1 %v12605_v6  ;;  %14264 = vst [vmem:[#allocation358_spill] sm:$0xff] %v12647_v38  ;;  %14265 = vst [vmem:[#allocation359_spill] sm:$0xff] %v12656_v44  ;;  %v12660_v47 = vpack.c.bf16 %v7508_v5, %v7507_v50  ;;  %v12670_v4 = vpack.c.bf16 %v7570_v24, %v7569_v21  ;;  %v7553_v40 = vld [vmem:[%s13552_s8 + $0x2f0] sm:$0xff]  ;;  %v7554_v50 = vld [vmem:[%s13552_s8 + $0x2f8] sm:$0xff]  ;;  %v3799_v5 = vpop.f32.mrb[8].mxu0 }
 0xa1b   :  { %v12679_v12 = vpack.c.bf16 %v7554_v50, %v7553_v40  ;;  %v3801_v21 = vpop.f32.mrb[9].mxu0 }
 0xa1c   :  { %9347 = vmatpush3.bf16.msra.mxu0 %v12626_v27  ;;  %14266 = vst [vmem:[#allocation360_spill] sm:$0xff] %v12660_v47  ;;  %14267 = vst [vmem:[#allocation361_spill] sm:$0xff] %v12670_v4  ;;  %3982 = vmatprep.mubr.f32.mxu0 %v3801_v21  ;;  %v3870_v24 = vpop.f32.mrb[10].mxu0  ;;  %v7526_v21 = vld [vmem:[%s13552_s8 + $0x248] sm:$0xff] }
 0xa1d   :  { %9307 = vmatpush3.bf16.msra.mxu1 %v12636_v30  ;;  %9349 = vmatprep.subr.bf16.mxu0 %v12638_v45  ;;  %14268 = vst [vmem:[#allocation362_spill] sm:$0xff] %v12679_v12  ;;  %v7525_v30 = vld [vmem:[%s13552_s8 + $0x240] sm:$0xff] }
 0xa1e   :  { %9309 = vmatprep.subr.bf16.mxu1 %v12647_v38  ;;  %v8291_v38 = vpop.f32.mrb[11].mxu0 }
 0xa1f   :  { %v7527_v38 = vld [vmem:[%s13552_s8 + $0x250] sm:$0xff] }
 0xa20   :  { %9351 = vmatpush3.bf16.msra.mxu0 %v12656_v44 }
 0xa21   :  { %9311 = vmatpush3.bf16.msra.mxu1 %v12660_v47  ;;  %9353 = vmatprep.subr.bf16.mxu0 %v12670_v4 }
 0xa22   :  { %9312 = vmatprep.subr.bf16.mxu1 %v14021_v10 }
 0xa24   :  { %9355 = vmatpush3.bf16.msra.mxu0 %v12679_v12  ;;  %v12695_v12 = vpack.c.bf16 %v7526_v21, %v7525_v30  ;;  %v7529_v30 = vld [vmem:[%s13552_s8 + $0x260] sm:$0xff]  ;;  %v7530_v21 = vld [vmem:[%s13552_s8 + $0x268] sm:$0xff] }
 0xa25   :  { %9368 = vmatprep.subr.bf16.mxu0 %v14021_v10 }
 0xa26   :  { %14269 = vst [vmem:[#allocation363_spill] sm:$0xff] %v12695_v12 }
 0xa27   :  { %3983 = vmatmul.mubr.f32.vlgmr.msra.gmra.mrb[12].mxu0 %v3799_v5 }
 0xa28   :  { %8327 = vmatprep.mubr.msk.f32.mxu0 %vm10733_vm10, %v13938_v54 }
 0xabf   :  { %v7805_v47 = vpop.f32.mrb[32].mxu1 }
 0xac0   :  { %v7806_v40 = vpop.f32.mrb[33].mxu1 }
 0xac1   :  { %v12687_v50 = vadd.f32 %v7806_v40, %v7805_v47  ;;  %v7528_v47 = vld [vmem:[%s13552_s8 + $0x258] sm:$0xff] }
 0xac2   :  { %v12704_v40 = vpack.c.bf16 %v7528_v47, %v7527_v38  ;;  %v7531_v38 = vld [vmem:[%s13552_s8 + $0x270] sm:$0xff]  ;;  %v7532_v47 = vld [vmem:[%s13552_s8 + $0x278] sm:$0xff] }
 0xac4   :  { %14270 = vst [vmem:[#allocation364_spill] sm:$0xff] %v12704_v40 }
 0xad3   :  { %v3468_v6 = vpop.f32.mrb[36].mxu1 }
 0xad4   :  { %v3470_v5 = vpop.f32.mrb[37].mxu1 }
 0xad5   :  { %3651 = vmatprep.mubr.f32.mxu1 %v3470_v5 }
 0xad6   :  { %3652 = vmatmul.mubr.f32.vlgmr.msra.gmra.mrb[40].mxu1 %v3468_v6  ;;  %v12716_v6 = vpack.c.bf16 %v7530_v21, %v7529_v30  ;;  %v7571_v30 = vld [vmem:[%s13552_s8 + $0x380] sm:$0xff]  ;;  %v7572_v21 = vld [vmem:[%s13552_s8 + $0x388] sm:$0xff] }
 0xad7   :  { %9314 = vmatpush3.bf16.msra.mxu1 %v12695_v12  ;;  %v3539_v4 = vpop.f32.mrb[38].mxu1  ;;  %8284 = vmatprep.mubr.msk.f32.mxu1 %vm10733_vm10, %v13938_v54  ;;  %v12726_v12 = vpack.c.bf16 %v7532_v47, %v7531_v38  ;;  %v7573_v38 = vld [vmem:[%s13552_s8 + $0x390] sm:$0xff]  ;;  %v7574_v47 = vld [vmem:[%s13552_s8 + $0x398] sm:$0xff] }
 0xad8   :  { %9315 = vmatprep.subr.bf16.mxu1 %v14021_v10  ;;  %v8267_v5 = vpop.f32.mrb[39].mxu1  ;;  %14271 = vst [vmem:[#allocation365_spill] sm:$0xff] %v12716_v6 }
 0xad9   :  { %14272 = vst [vmem:[#allocation366_spill] sm:$0xff] %v12726_v12  ;;  %v12736_v5 = vpack.c.bf16 %v7572_v21, %v7571_v30  ;;  %v7575_v30 = vld [vmem:[%s13552_s8 + $0x3a0] sm:$0xff]  ;;  %v7576_v21 = vld [vmem:[%s13552_s8 + $0x3a8] sm:$0xff] }
 0xadb   :  { %9317 = vmatpush3.bf16.msra.mxu1 %v12704_v40  ;;  %14273 = vst [vmem:[#allocation367_spill] sm:$0xff] %v12736_v5 }
 0xadc   :  { %9318 = vmatprep.subr.bf16.mxu1 %v14021_v10 }
 0xadf   :  { %9320 = vmatpush3.bf16.msra.mxu1 %v12716_v6  ;;  %v12747_v6 = vpack.c.bf16 %v7574_v47, %v7573_v38  ;;  %v7577_v38 = vld [vmem:[%s13552_s8 + $0x3b0] sm:$0xff]  ;;  %v7578_v47 = vld [vmem:[%s13552_s8 + $0x3b8] sm:$0xff] }
 0xae0   :  { %9321 = vmatprep.subr.bf16.mxu1 %v14021_v10 }
 0xae1   :  { %14274 = vst [vmem:[#allocation368_spill] sm:$0xff] %v12747_v6 }
 0xae3   :  { %9323 = vmatpush3.bf16.msra.mxu1 %v12726_v12  ;;  %v4063_v12 = vld [vmem:[%s13554_s10 + $0x18] sm:$0xff] }
 0xae4   :  { %9356 = vmatprep.subr.bf16.mxu1 %v14021_v10 }
 0xae6   :  { %8285 = vmatmul.mubr.msk.f32.vlgmr.msra.gmra.mrb[34].mxu1 %vm1505_vm7, %v3539_v4  ;;  %v12759_v4 = vpack.c.bf16 %v7576_v21, %v7575_v30  ;;  %v4060_v21 = vld [vmem:[%s13554_s10] sm:$0xff] }
 0xae7   :  { %9358 = vmatpush3.bf16.msra.mxu1 %v12736_v5  ;;  %8308 = vmatprep.mubr.msk.f32.mxu1 %vm10733_vm10, %v13938_v54  ;;  %v12769_v5 = vpack.c.bf16 %v7578_v47, %v7577_v38  ;;  %v4061_v38 = vld [vmem:[%s13554_s10 + $0x8] sm:$0xff]  ;;  %v4068_v47 = vld [vmem:[%s13554_s10 + $0x40] sm:$0xff] }
 0xae8   :  { %9359 = vmatprep.subr.bf16.mxu1 %v14021_v10  ;;  %14275 = vst [vmem:[#allocation369_spill] sm:$0xff] %v12759_v4 }
 0xae9   :  { %14276 = vst [vmem:[#allocation370_spill] sm:$0xff] %v12769_v5 }
 0xaeb   :  { %9361 = vmatpush3.bf16.msra.mxu1 %v12747_v6  ;;  %v4062_v6 = vld [vmem:[%s13554_s10 + $0x10] sm:$0xff] }
 0xaec   :  { %9362 = vmatprep.subr.bf16.mxu1 %v14021_v10  ;;  %v12806_v45 = vpack.c.bf16 %v4063_v12, %v4062_v6  ;;  %v4072_v12 = vld [vmem:[%s13554_s10 + $0x60] sm:$0xff]  ;;  %v4073_v6 = vld [vmem:[%s13554_s10 + $0x68] sm:$0xff] }
 0xaee   :  { %14279 = vst [vmem:[#allocation373_spill] sm:$0xff] %v12806_v45 }
 0xaef   :  { %9364 = vmatpush3.bf16.msra.mxu1 %v12759_v4  ;;  %v12786_v4 = vpack.c.bf16 %v4061_v38, %v4060_v21  ;;  %v4070_v21 = vld [vmem:[%s13554_s10 + $0x50] sm:$0xff]  ;;  %v4071_v38 = vld [vmem:[%s13554_s10 + $0x58] sm:$0xff] }
 0xaf0   :  { %9365 = vmatprep.subr.bf16.mxu1 %v14021_v10  ;;  %v12810_v27 = vpack.c.bf16 %v4071_v38, %v4070_v21  ;;  %v4066_v21 = vld [vmem:[%s13554_s10 + $0x30] sm:$0xff]  ;;  %v4067_v38 = vld [vmem:[%s13554_s10 + $0x38] sm:$0xff] }
 0xaf1   :  { %14277 = vst [vmem:[#allocation371_spill] sm:$0xff] %v12786_v4 }
 0xaf2   :  { %14280 = vst [vmem:[#allocation374_spill] sm:$0xff] %v12810_v27 }
 0xaf3   :  { %9367 = vmatpush3.bf16.msra.mxu1 %v12769_v5 }
 0xaf4   :  { %9380 = vmatprep.subr.bf16.mxu1 %v14021_v10 }
 0xaf6   :  { %8309 = vmatmul.mubr.msk.f32.vlgmr.msra.gmra.mrb[34].mxu1 %vm1505_vm7, %v3870_v24  ;;  %v4069_v24 = vld [vmem:[%s13554_s10 + $0x48] sm:$0xff] }
 0xaf7   :  { %8346 = vmatprep.mubr.msk.f32.mxu1 %vm10733_vm10, %v13938_v54  ;;  %v12797_v44 = vpack.c.bf16 %v4069_v24, %v4068_v47  ;;  %9382 = vmatpush3.bf16.msra.mxu1 %v12786_v4  ;;  %v12830_v24 = vpack.c.bf16 %v4073_v6, %v4072_v12  ;;  %v4075_v12 = vld [vmem:[%s13554_s10 + $0x78] sm:$0xff] }
 0xaf8   :  { %9383 = vmatprep.subr.bf16.mxu1 %v14021_v10 }
 0xaf9   :  { %14278 = vst [vmem:[#allocation372_spill] sm:$0xff] %v12797_v44  ;;  %9370 = vmatpush3.bf16.msra.mxu0 %v12797_v44  ;;  %14282 = vst [vmem:[#allocation376_spill] sm:$0xff] %v12830_v24 }
 0xafa   :  { %v7897_v30 = vpop.f32.mrb[12].mxu0  ;;  %9371 = vmatprep.subr.bf16.mxu0 %v14021_v10 }
 0xafb   :  { %v7898_v5 = vpop.f32.mrb[13].mxu0  ;;  %9385 = vmatpush3.bf16.msra.mxu1 %v12806_v45 }
 0xafc   :  { %v7899_v40 = vadd.f32 %v7898_v5, %v7897_v30  ;;  %v4064_v5 = vld [vmem:[%s13554_s10 + $0x20] sm:$0xff]  ;;  %v4065_v30 = vld [vmem:[%s13554_s10 + $0x28] sm:$0xff]  ;;  %9386 = vmatprep.subr.bf16.mxu1 %v14021_v10 }
 0xafd   :  { %v12826_v47 = vpack.c.bf16 %v4065_v30, %v4064_v5  ;;  %9373 = vmatpush3.bf16.msra.mxu0 %v12810_v27  ;;  %v12843_v5 = vpack.c.bf16 %v4067_v38, %v4066_v21  ;;  %v4074_v30 = vld [vmem:[%s13554_s10 + $0x70] sm:$0xff]  ;;  %v7583_v21 = vld [vmem:[%s13544_s0 + $0x28] sm:$0xff] }
 0xafe   :  { %9374 = vmatprep.subr.bf16.mxu0 %v14021_v10  ;;  %v12851_v6 = vpack.c.bf16 %v4075_v12, %v4074_v30  ;;  %v7487_v30 = vld [vmem:[#allocation14] ss:$0 sm:$0xff] }
 0xaff   :  { %14281 = vst [vmem:[#allocation375_spill] sm:$0xff] %v12826_v47  ;;  %9388 = vmatpush3.bf16.msra.mxu1 %v12826_v47  ;;  %14283 = vst [vmem:[#allocation377_spill] sm:$0xff] %v12843_v5  ;;  %v7582_v47 = vld [vmem:[%s13544_s0 + $0x20] sm:$0xff] }
 0xb00   :  { %9389 = vmatprep.subr.bf16.mxu1 %v14021_v10  ;;  %14284 = vst [vmem:[#allocation378_spill] sm:$0xff] %v12851_v6  ;;  %v12862_v38 = vpack.c.bf16 %v7583_v21, %v7582_v47 }
 0xb01   :  { %9376 = vmatpush3.bf16.msra.mxu0 %v12830_v24 }
 0xb02   :  { %9377 = vmatprep.subr.bf16.mxu0 %v14021_v10 }
 0xb03   :  { %9391 = vmatpush3.bf16.msra.mxu1 %v12843_v5  ;;  %v10306_v5 = vadd.f32 %v12687_v50, %v7487_v30  ;;  %v14310_v50 = vld [vmem:[#allocation49_spill] sm:$0xff]  ;;  %v14317_v30 = vld [vmem:[#allocation56_spill] sm:$0xff] }
 0xb04   :  { %9425 = vmatprep.subr.bf16.mxu1 %v10936_v11  ;;  %v7585_v11 = vld [vmem:[%s13544_s0 + $0x38] sm:$0xff]  ;;  %s10734_s0 = smov [#allocation17]  }
 0xb05   :  { %9379 = vmatpush3.bf16.msra.mxu0 %v12851_v6  ;;  %v12873_v34 = vpack.c.bf16 %v7585_v11, %v7584_v35  ;;  %v14306_v35 = vld [vmem:[#allocation45_spill] sm:$0xff]  ;;  %v14319_v11 = vld [vmem:[#allocation58_spill] sm:$0xff] }
 0xb06   :  { %9393 = vmatprep.subr.bf16.mxu0 %v12862_v38 }
 0xba9   :  { %v7851_v12 = vpop.f32.mrb[40].mxu1 }
 0xbaa   :  { %v7852_v45 = vpop.f32.mrb[41].mxu1 }
 0xbab   :  { %v7853_v4 = vadd.f32 %v7852_v45, %v7851_v12  ;;  %v10467_v45 = vld [vmem:[#allocation2] sm:$0xff] }
 0xbac   :  { %v14318_v12 = vld [vmem:[#allocation57_spill] sm:$0xff] }
 0xbad   :  { %v10307_v6 = vadd.f32 %v10306_v5, %v7853_v4  ;;  %v14312_v4 = vld [vmem:[#allocation51_spill] sm:$0xff]  ;;  %v14314_v5 = vld [vmem:[#allocation53_spill] sm:$0xff] }
 0xbaf   :  { %v10308_v24 = vadd.f32 %v10307_v6, %v7899_v40  ;;  %v14311_v40 = vld [vmem:[#allocation50_spill] sm:$0xff] }
 0xbb0   :  { %v14315_v6 = vld [vmem:[#allocation54_spill] sm:$0xff] }
 0xbc9   :  { %v4054_v27 = vpop.f32.mrb[34].mxu1 }
 0xbca   :  { %v10309_v44 = vadd.f32 %v10308_v24, %v4054_v27  ;;  %v8310_v37 = vpop.f32.mrb[35].mxu1  ;;  %v14308_v27 = vld [vmem:[#allocation47_spill] sm:$0xff]  ;;  %v14313_v24 = vld [vmem:[#allocation52_spill] sm:$0xff] }
 0xbcb   :  { %v14307_v37 = vld [vmem:[#allocation46_spill] sm:$0xff] }
 0xbcc   :  { %v4059_v47 = vmax.f32 %v10309_v44, 0.0  ;;  %v14309_v44 = vld [vmem:[#allocation48_spill] sm:$0xff] }
 0xbce   :  { %v4077_v21 = vrot.slane %v4059_v47, 1  ;;  %8347 = vmatmul.mubr.msk.f32.vlgmr.msra.gmra.mrb[42].mxu1 %vm1505_vm7, %v4059_v47  ;;  %v14320_v47 = vld [vmem:[#allocation59_spill] sm:$0xff] }
 0xbcf   :  { %9427 = vmatpush1.bf16.msra.mxu1 %v10941_v17  ;;  %4449 = vmatprep.mubr.f32.mxu1 %v13938_v54  ;;  %v10468_v17 = vld [vmem:[#allocation2 + $0x8] sm:$0x7f] }
 0xbd0   :  { %8328 = vmatmul.mubr.msk.f32.vlgmr.msra.gmra.mrb[14].mxu0 %vm1505_vm7, %v4077_v21  ;;  %9429 = vmatprep.subr.bf16.mxu1 %v10944_v22  ;;  %v14321_v21 = vld [vmem:[#allocation60_spill] sm:$0xff] }
 0xbd1   :  { %9395 = vmatpush3.bf16.msra.mxu0 %v12862_v38  ;;  %8357 = vmatprep.mubr.msk.f32.mxu0 %vm163_vm0, %v10467_v45  ;;  %v14322_v45 = vld [vmem:[#allocation65_spill] sm:$0xff] }
 0xbd2   :  { %9397 = vmatprep.subr.bf16.mxu0 %v12873_v34 }
 0xbd3   :  { %9431 = vmatpush1.bf16.msra.mxu1 %v10951_v28 }
 0xbd4   :  { %9433 = vmatprep.subr.bf16.mxu1 %v10956_v33 }
 0xbd5   :  { %9399 = vmatpush3.bf16.msra.mxu0 %v12873_v34 }
 0xbd6   :  { %9401 = vmatprep.subr.bf16.mxu0 %v10939_v15 }
 0xbd7   :  { %9435 = vmatpush1.bf16.msra.mxu1 %v10960_v39 }
 0xbd8   :  { %8358 = vmatmul.mubr.msk.f32.vlgmr.msra.gmra.mrb[16].mxu0 %vm163_vm0, %v10468_v17  ;;  %9437 = vmatprep.subr.bf16.mxu1 %v10966_v43  ;;  %v10470_v43 = vld [vmem:[#allocation2 + $0x18] sm:$0x7f] }
 0xbd9   :  { %9403 = vmatpush1.bf16.msra.mxu0 %v10948_v26  ;;  %4372 = vmatprep.mubr.f32.mxu0 %v13938_v54 }
 0xbda   :  { %9405 = vmatprep.subr.bf16.mxu0 %v10954_v31 }
 0xbdb   :  { %9439 = vmatpush1.bf16.msra.mxu1 %v10972_v52  ;;  %v14286_v52 = vld [vmem:[#allocation25_spill] sm:$0xff] }
 0xbdc   :  { %9441 = vmatprep.subr.bf16.mxu1 %v10978_v55  ;;  %v14288_v55 = vld [vmem:[#allocation27_spill] sm:$0xff] }
 0xbdd   :  { %9407 = vmatpush1.bf16.msra.mxu0 %v10963_v41  ;;  %v10469_v41 = vld [vmem:[#allocation2 + $0x10] sm:$0xff] }
 0xbde   :  { %9409 = vmatprep.subr.bf16.mxu0 %v10969_v46  ;;  %v14285_v46 = vld [vmem:[#allocation24_spill] sm:$0xff] }
 0xbdf   :  { %9443 = vmatpush1.bf16.msra.mxu1 %v10984_v0  ;;  %v14290_v0 = vld [vmem:[#allocation29_spill] sm:$0xff] }
 0xbe0   :  { %9445 = vmatprep.subr.bf16.mxu1 %v10990_v2  ;;  %v14292_v2 = vld [vmem:[#allocation31_spill] sm:$0xff] }
 0xbe1   :  { %9411 = vmatpush1.bf16.msra.mxu0 %v10975_v53  ;;  %v14287_v53 = vld [vmem:[#allocation26_spill] sm:$0xff] }
 0xbe2   :  { %9413 = vmatprep.subr.bf16.mxu0 %v10981_v58  ;;  %v14289_v58 = vld [vmem:[#allocation28_spill] sm:$0xff] }
 0xbe3   :  { %9447 = vmatpush1.bf16.msra.mxu1 %v10996_v13  ;;  %v14294_v13 = vld [vmem:[#allocation33_spill] sm:$0xff] }
 0xbe4   :  { %9481 = vmatprep.subr.bf16.mxu1 %v11014_v25  ;;  %v14298_v25 = vld [vmem:[#allocation37_spill] sm:$0xff] }
 0xbe5   :  { %9415 = vmatpush1.bf16.msra.mxu0 %v10987_v1  ;;  %v14291_v1 = vld [vmem:[#allocation30_spill] sm:$0xff] }
 0xbe6   :  { %9417 = vmatprep.subr.bf16.mxu0 %v10993_v7  ;;  %v14293_v7 = vld [vmem:[#allocation32_spill] sm:$0xff] }
 0xbe9   :  { %9419 = vmatpush1.bf16.msra.mxu0 %v10999_v14  ;;  %v14295_v14 = vld [vmem:[#allocation34_spill] sm:$0xff] }
 0xbea   :  { %9421 = vmatprep.subr.bf16.mxu0 %v11003_v16  ;;  %v14296_v16 = vld [vmem:[#allocation35_spill] sm:$0xff] }
 0xbed   :  { %9423 = vmatpush1.bf16.msra.mxu0 %v11007_v20  ;;  %v14297_v20 = vld [vmem:[#allocation36_spill] sm:$0xff] }
 0xbee   :  { %9449 = vmatprep.subr.bf16.mxu0 %v12862_v38 }
 0xca1   :  { %v4218_v15 = vpop.f32.mrb[42].mxu1 }
 0xca2   :  { %v8348_v22 = vpop.f32.mrb[43].mxu1 }
 0xca3   :  { %v4146_v26 = vpop.f32.mrb[14].mxu0  ;;  %v14323_v22 = vld [vmem:[#allocation66_spill] sm:$0xff] }
 0xca4   :  { %v12908_v28 = vadd.f32 %v4218_v15, %v4146_v26  ;;  %v8329_v31 = vpop.f32.mrb[15].mxu0  ;;  %v14324_v26 = vld [vmem:[#allocation67_spill] sm:$0xff] }
 0xca5   :  { %v14325_v31 = vld [vmem:[#allocation68_spill] sm:$0xff] }
 0xcab   :  { %v8359_v33 = vpop.f32.mrb[16].mxu0 }
 0xcac   :  { %v4293_v39 = vpop.f32.mrb[17].mxu0 }
 0xcad   :  { %7588 = vmatmul.mubr.msk.f32.vlgmr.msra.gmra.mrb[18].mxu0 %vm293_vm1, %v4293_v39  ;;  %7590 = vmatmul.mubr.msk.f32.vlgmr.msra.gmra.mrb[44].mxu1 %vm293_vm1, %v4293_v39  ;;  %v14327_v39 = vld [vmem:[#allocation70_spill] sm:$0xff] }
 0xcae   :  { %9451 = vmatpush3.bf16.msra.mxu0 %v12862_v38  ;;  %4378 = vmatprep.mubr.f32.mxu0 %v13938_v54 }
 0xcaf   :  { %4455 = vmatprep.mubr.f32.mxu1 %v13938_v54  ;;  %9453 = vmatprep.subr.bf16.mxu0 %v12873_v34 }
 0xcb0   :  { %9483 = vmatpush1.bf16.msra.mxu1 %v11017_v36 }
 0xcb1   :  { %7589 = vmatmul.mubr.msk.f32.gmra.mrb[20].mxu0 %vm293_vm1, %v8359_v33  ;;  %7591 = vmatmul.mubr.msk.f32.gmra.mrb[46].mxu1 %vm293_vm1, %v8359_v33  ;;  %v14326_v33 = vld [vmem:[#allocation69_spill] sm:$0xff] }
 0xcb2   :  { %9455 = vmatpush3.bf16.msra.mxu0 %v12873_v34  ;;  %8368 = vmatprep.mubr.msk.f32.mxu0 %vm163_vm0, %v10469_v41  ;;  %v14328_v41 = vld [vmem:[#allocation71_spill] sm:$0xff] }
 0xcb3   :  { %9457 = vmatprep.subr.bf16.mxu0 %v11025_v48  ;;  %9485 = vmatprep.subr.bf16.mxu1 %v11027_v51  ;;  %v14299_v51 = vld [vmem:[#allocation38_spill] sm:$0xff] }
 0xcb4   :  { %9487 = vmatpush1.bf16.msra.mxu1 %v11030_v57  ;;  %4692 = vmatprep.mubr.f32.mxu1 %v13938_v54  ;;  %v10471_v57 = vld [vmem:[#allocation2 + $0x20] sm:$0xff] }
 0xcb5   :  { %8369 = vmatmul.mubr.msk.f32.vlgmr.msra.gmra.mrb[22].mxu0 %vm163_vm0, %v10470_v43  ;;  %9489 = vmatprep.subr.bf16.mxu1 %v11034_v59  ;;  %v14300_v59 = vld [vmem:[#allocation39_spill] sm:$0xff]  ;;  %v14329_v43 = vld [vmem:[#allocation72_spill] sm:$0xff] }
 0xcb6   :  { %9459 = vmatpush1.bf16.msra.mxu0 %v11038_v63  ;;  %4615 = vmatprep.mubr.f32.mxu0 %v13938_v54  ;;  %v14301_v63 = vld [vmem:[#allocation40_spill] sm:$0xff] }
 0xcb7   :  { %9461 = vmatprep.subr.bf16.mxu0 %v11041_v8  ;;  %v14302_v8 = vld [vmem:[#allocation41_spill] sm:$0xff] }
 0xcb8   :  { %9491 = vmatpush1.bf16.msra.mxu1 %v11045_v19  ;;  %v10472_v19 = vld [vmem:[#allocation2 + $0x28] sm:$0x7f] }
 0xcb9   :  { %9493 = vmatprep.subr.bf16.mxu1 %v11050_v23  ;;  %v14303_v23 = vld [vmem:[#allocation42_spill] sm:$0xff] }
 0xcba   :  { %9463 = vmatpush1.bf16.msra.mxu0 %v11053_v29  ;;  %v14304_v29 = vld [vmem:[#allocation43_spill] sm:$0xff] }
 0xcbb   :  { %9465 = vmatprep.subr.bf16.mxu0 %v14285_v46  ;;  %v14330_v46 = vld [vmem:[#allocation73_spill] sm:$0xff] }
 0xcbc   :  { %9495 = vmatpush1.bf16.msra.mxu1 %v14286_v52  ;;  %v14331_v52 = vld [vmem:[#allocation74_spill] sm:$0xff] }
 0xcbd   :  { %9497 = vmatprep.subr.bf16.mxu1 %v14287_v53  ;;  %v14332_v53 = vld [vmem:[#allocation75_spill] sm:$0xff] }
 0xcbe   :  { %9467 = vmatpush1.bf16.msra.mxu0 %v14288_v55  ;;  %v14333_v55 = vld [vmem:[#allocation76_spill] sm:$0xff] }
 0xcbf   :  { %9469 = vmatprep.subr.bf16.mxu0 %v14289_v58  ;;  %v14334_v58 = vld [vmem:[#allocation77_spill] sm:$0xff] }
 0xcc0   :  { %9499 = vmatpush1.bf16.msra.mxu1 %v14290_v0  ;;  %v14335_v0 = vld [vmem:[#allocation78_spill] sm:$0xff] }
 0xcc1   :  { %9501 = vmatprep.subr.bf16.mxu1 %v14291_v1  ;;  %v14336_v1 = vld [vmem:[#allocation79_spill] sm:$0xff] }
 0xcc2   :  { %9471 = vmatpush1.bf16.msra.mxu0 %v14292_v2  ;;  %v14337_v2 = vld [vmem:[#allocation80_spill] sm:$0xff] }
 0xcc3   :  { %9473 = vmatprep.subr.bf16.mxu0 %v14293_v7  ;;  %v14338_v7 = vld [vmem:[#allocation81_spill] sm:$0xff] }
 0xcc4   :  { %9503 = vmatpush1.bf16.msra.mxu1 %v14294_v13  ;;  %v14339_v13 = vld [vmem:[#allocation82_spill] sm:$0xff] }
 0xcc5   :  { %9505 = vmatprep.subr.bf16.mxu1 %v12862_v38 }
 0xcc6   :  { %9475 = vmatpush1.bf16.msra.mxu0 %v14295_v14  ;;  %v14340_v14 = vld [vmem:[#allocation83_spill] sm:$0xff] }
 0xcc7   :  { %9477 = vmatprep.subr.bf16.mxu0 %v14296_v16  ;;  %v14341_v16 = vld [vmem:[#allocation84_spill] sm:$0xff] }
 0xcca   :  { %9479 = vmatpush1.bf16.msra.mxu0 %v14297_v20  ;;  %v14342_v20 = vld [vmem:[#allocation85_spill] sm:$0xff] }
 0xccb   :  { %9513 = vmatprep.subr.bf16.mxu0 %v14298_v25  ;;  %v14343_v25 = vld [vmem:[#allocation86_spill] sm:$0xff] }
 0xd88   :  { %v8370_v36 = vpop.f32.mrb[22].mxu0 }
 0xd89   :  { %v4536_v48 = vpop.f32.mrb[23].mxu0 }
 0xd8a   :  { %7594 = vmatmul.mubr.msk.f32.vlgmr.msra.gmra.mrb[18].mxu0 %vm293_vm1, %v4536_v48  ;;  %7596 = vmatmul.mubr.msk.f32.vlgmr.msra.gmra.mrb[44].mxu1 %vm293_vm1, %v4536_v48  ;;  %v14345_v48 = vld [vmem:[#allocation88_spill] sm:$0xff] }
 0xd8b   :  { %9507 = vmatpush3.bf16.msra.mxu1 %v12862_v38  ;;  %4621 = vmatprep.mubr.f32.mxu0 %v13938_v54  ;;  %v14316_v38 = vld [vmem:[#allocation55_spill] sm:$0xff] }
 0xd8c   :  { %4698 = vmatprep.mubr.f32.mxu1 %v13938_v54  ;;  %9509 = vmatprep.subr.bf16.mxu1 %v12873_v34 }
 0xd8d   :  { %9515 = vmatpush1.bf16.msra.mxu0 %v14299_v51  ;;  %v14346_v51 = vld [vmem:[#allocation89_spill] sm:$0xff] }
 0xd8e   :  { %7595 = vmatmul.mubr.msk.f32.gmra.mrb[20].mxu0 %vm293_vm1, %v8370_v36  ;;  %7597 = vmatmul.mubr.msk.f32.gmra.mrb[46].mxu1 %vm293_vm1, %v8370_v36  ;;  %v14344_v36 = vld [vmem:[#allocation87_spill] sm:$0xff] }
 0xd8f   :  { %9511 = vmatpush3.bf16.msra.mxu1 %v12873_v34  ;;  %8379 = vmatprep.mubr.msk.f32.mxu1 %vm163_vm0, %v10471_v57  ;;  %v14305_v34 = vld [vmem:[#allocation44_spill] sm:$0xff]  ;;  %v14347_v57 = vld [vmem:[#allocation90_spill] sm:$0xff] }
 0xd90   :  { %9537 = vmatprep.subr.bf16.mxu1 %v14300_v59  ;;  %9517 = vmatprep.subr.bf16.mxu0 %v14301_v63  ;;  %v14348_v59 = vld [vmem:[#allocation91_spill] sm:$0xff]  ;;  %v14349_v63 = vld [vmem:[#allocation92_spill] sm:$0xff] }
 0xd91   :  { %9519 = vmatpush1.bf16.msra.mxu0 %v14302_v8  ;;  %4858 = vmatprep.mubr.f32.mxu0 %v13938_v54  ;;  %v14350_v8 = vld [vmem:[#allocation93_spill] sm:$0xff] }
 0xd92   :  { %8380 = vmatmul.mubr.msk.f32.vlgmr.msra.gmra.mrb[48].mxu1 %vm163_vm0, %v10472_v19  ;;  %9521 = vmatprep.subr.bf16.mxu0 %v14303_v23  ;;  %v14351_v19 = vld [vmem:[#allocation94_spill] sm:$0xff]  ;;  %v14352_v23 = vld [vmem:[#allocation95_spill] sm:$0xff] }
 0xd93   :  { %9539 = vmatpush1.bf16.msra.mxu1 %v14304_v29  ;;  %4935 = vmatprep.mubr.f32.mxu1 %v13938_v54  ;;  %v14353_v29 = vld [vmem:[#allocation96_spill] sm:$0xff] }
 0xd94   :  { %9541 = vmatprep.subr.bf16.mxu1 %v14305_v34  ;;  %v14354_v34 = vld [vmem:[#allocation113_spill] sm:$0xff] }
 0xd95   :  { %9523 = vmatpush1.bf16.msra.mxu0 %v14306_v35 }
 0xd96   :  { %9525 = vmatprep.subr.bf16.mxu0 %v14307_v37 }
 0xd97   :  { %9543 = vmatpush1.bf16.msra.mxu1 %v14308_v27  ;;  %v14355_v27 = vld [vmem:[#allocation61_spill] sm:$0xff] }
 0xd98   :  { %9545 = vmatprep.subr.bf16.mxu1 %v14309_v44 }
 0xd99   :  { %9527 = vmatpush1.bf16.msra.mxu0 %v14310_v50  ;;  %v14356_v50 = vld [vmem:[#allocation62_spill] sm:$0xff] }
 0xd9a   :  { %9529 = vmatprep.subr.bf16.mxu0 %v14311_v40 }
 0xd9b   :  { %9547 = vmatpush1.bf16.msra.mxu1 %v14312_v4 }
 0xd9c   :  { %9549 = vmatprep.subr.bf16.mxu1 %v14313_v24 }
 0xd9d   :  { %9531 = vmatpush1.bf16.msra.mxu0 %v14314_v5  ;;  %v14357_v5 = vld [vmem:[#allocation63_spill] sm:$0xff] }
 0xd9e   :  { %9533 = vmatprep.subr.bf16.mxu0 %v14315_v6 }
 0xd9f   :  { %9551 = vmatpush1.bf16.msra.mxu1 %v14316_v38  ;;  %v14358_v38 = vld [vmem:[#allocation64_spill] sm:$0xff] }
 0xda0   :  { %9553 = vmatprep.subr.bf16.mxu1 %v14317_v30 }
 0xda1   :  { %9535 = vmatpush1.bf16.msra.mxu0 %v14318_v12 }
 0xda3   :  { %9555 = vmatpush1.bf16.msra.mxu1 %v14319_v11 }
 0xda4   :  { %9557 = vmatprep.subr.bf16.mxu1 %v14320_v47 }
 0xda7   :  { %9559 = vmatpush1.bf16.msra.mxu1 %v14321_v21 }
 0xda8   :  { %9573 = vmatprep.subr.bf16.mxu1 %v14322_v45 }
 0xe65   :  { %v8381_v17 = vpop.f32.mrb[48].mxu1 }
 0xe66   :  { %v4779_v15 = vpop.f32.mrb[49].mxu1 }
 0xe67   :  { %7600 = vmatmul.mubr.msk.f32.vlgmr.msra.gmra.mrb[18].mxu0 %vm293_vm1, %v4779_v15  ;;  %7602 = vmatmul.mubr.msk.f32.vlgmr.msra.gmra.mrb[44].mxu1 %vm293_vm1, %v4779_v15 }
 0xe68   :  { %4864 = vmatprep.mubr.f32.mxu0 %v13938_v54  ;;  %4941 = vmatprep.mubr.f32.mxu1 %v13938_v54 }
 0xe69   :  { %9575 = vmatpush1.bf16.msra.mxu1 %v14323_v22 }
 0xe6a   :  { %9577 = vmatprep.subr.bf16.mxu1 %v14324_v26 }
 0xe6b   :  { %7601 = vmatmul.mubr.msk.f32.gmra.mrb[20].mxu0 %vm293_vm1, %v8381_v17  ;;  %7603 = vmatmul.mubr.msk.f32.gmra.mrb[46].mxu1 %vm293_vm1, %v8381_v17 }
 0xe6c   :  { %5122 = vmatprep.mubr.f32.mxu0 %v13938_v54 }
 0xe6d   :  { %9579 = vmatpush1.bf16.msra.mxu1 %v14325_v31 }
 0xe6e   :  { %9581 = vmatprep.subr.bf16.mxu1 %v14326_v33 }
 0xe71   :  { %9583 = vmatpush1.bf16.msra.mxu1 %v14327_v39 }
 0xe72   :  { %9585 = vmatprep.subr.bf16.mxu1 %v14328_v41 }
 0xe75   :  { %9587 = vmatpush1.bf16.msra.mxu1 %v14329_v43 }
 0xe76   :  { %9589 = vmatprep.subr.bf16.mxu1 %v14330_v46 }
 0xe79   :  { %9591 = vmatpush1.bf16.msra.mxu1 %v14331_v52 }
 0xe7a   :  { %9593 = vmatprep.subr.bf16.mxu1 %v14332_v53 }
 0xe7d   :  { %9595 = vmatpush1.bf16.msra.mxu1 %v14333_v55 }
 0xe7e   :  { %9597 = vmatprep.subr.bf16.mxu1 %v14334_v58 }
 0xe81   :  { %9599 = vmatpush1.bf16.msra.mxu1 %v14335_v0 }
 0xe82   :  { %9601 = vmatprep.subr.bf16.mxu1 %v14336_v1 }
 0xe85   :  { %9603 = vmatpush1.bf16.msra.mxu1 %v14337_v2 }
 0xe86   :  { %9605 = vmatprep.subr.bf16.mxu1 %v14338_v7 }
 0xe89   :  { %9607 = vmatpush1.bf16.msra.mxu1 %v14339_v13 }
 0xe8a   :  { %9609 = vmatprep.subr.bf16.mxu1 %v14340_v14 }
 0xe8d   :  { %9611 = vmatpush1.bf16.msra.mxu1 %v14341_v16 }
 0xe8e   :  { %9613 = vmatprep.subr.bf16.mxu1 %v14342_v20 }
 0xe91   :  { %9615 = vmatpush1.bf16.msra.mxu1 %v14343_v25 }
 0xe92   :  { %9617 = vmatprep.subr.bf16.mxu1 %v14344_v36 }
 0xe95   :  { %9619 = vmatpush1.bf16.msra.mxu1 %v14345_v48 }
 0xe96   :  { %9621 = vmatprep.subr.bf16.mxu1 %v14346_v51 }
 0xe99   :  { %9623 = vmatpush1.bf16.msra.mxu1 %v14347_v57 }
 0xe9a   :  { %9625 = vmatprep.subr.bf16.mxu1 %v14348_v59 }
 0xe9d   :  { %9627 = vmatpush1.bf16.msra.mxu1 %v14349_v63 }
 0xe9e   :  { %9629 = vmatprep.subr.bf16.mxu1 %v14350_v8 }
 0xea1   :  { %9631 = vmatpush1.bf16.msra.mxu1 %v14351_v19 }
 0xea2   :  { %9633 = vmatprep.subr.bf16.mxu1 %v14352_v23 }
 0xea5   :  { %9635 = vmatpush1.bf16.msra.mxu1 %v14353_v29 }
 0xea6   :  { %9637 = vmatprep.subr.bf16.mxu1 %v14354_v34 }
 0xf3a   :  { %v4860_v35 = vpop.f32.mrb[18].mxu0  ;;  %v4937_v37 = vpop.f32.mrb[44].mxu1 }
 0xf3b   :  { %v10310_v44 = vadd.f32 %v4860_v35, %v14355_v27  ;;  %v10314_v40 = vadd.f32 %v4937_v37, %v14356_v50  ;;  %v4862_v4 = vpop.f32.mrb[19].mxu0  ;;  %v4939_v24 = vpop.f32.mrb[45].mxu1 }
 0xf3c   :  { %v10311_v6 = vadd.f32 %v4862_v4, %v14357_v5  ;;  %v10315_v30 = vadd.f32 %v4939_v24, %v14358_v38 }
 0xf3d   :  { %v4956_v47 = vmax.f32 %v10310_v44, 0.0  ;;  %v4958_v21 = vmax.f32 %v10314_v40, 0.0 }
 0xf3e   :  { %v4866_v12 = vpop.f32.mrb[20].mxu0  ;;  %v4943_v11 = vpop.f32.mrb[46].mxu1  ;;  %v4957_v26 = vmax.f32 %v10311_v6, 0.0  ;;  %v4959_v39 = vmax.f32 %v10315_v30, 0.0 }
 0xf3f   :  { %v10312_v45 = vadd.f32 %v4866_v12, %v14355_v27  ;;  %v10316_v17 = vadd.f32 %v4943_v11, %v14356_v50  ;;  %v4868_v15 = vpop.f32.mrb[21].mxu0  ;;  %v4945_v22 = vpop.f32.mrb[47].mxu1  ;;  %v4972_v53 = vrot.slane %v4956_v47, 1  ;;  %v4978_v55 = vrot.slane %v4958_v21, 1 }
 0xf40   :  { %v10313_v31 = vadd.f32 %v4868_v15, %v14357_v5  ;;  %v10317_v33 = vadd.f32 %v4945_v22, %v14358_v38  ;;  %v4975_v1 = vrot.slane %v4957_v26, 1  ;;  %v4981_v13 = vrot.slane %v4959_v39, 1 }
 0xf41   :  { %v4960_v41 = vmax.f32 %v10312_v45, 0.0  ;;  %v4962_v43 = vmax.f32 %v10316_v17, 0.0 }
 0xf42   :  { %v4961_v46 = vmax.f32 %v10313_v31, 0.0  ;;  %v4963_v52 = vmax.f32 %v10317_v33, 0.0 }
 0xf43   :  { %v4973_v58 = vrot.slane %v4960_v41, 1  ;;  %v4979_v0 = vrot.slane %v4962_v43, 1 }
 0xf44   :  { %v4976_v2 = vrot.slane %v4961_v46, 1  ;;  %v4982_v7 = vrot.slane %v4963_v52, 1 }
 0xf45   :  { %v4998_v14 = vmax.f32 %v4962_v43, %v4979_v0  ;;  %v4980_v16 = vsel %vm1101_vm2, %v4978_v55, %v4979_v0  ;;  %v4974_v20 = vsel %vm1101_vm2, %v4972_v53, %v4973_v58  ;;  %v4996_v23 = vmax.f32 %v4960_v41, %v4973_v58  ;;  %v10473_v0 = vld [vmem:[#allocation8] sm:$0x3f] }
 0xf46   :  { %v4997_v25 = vmax.f32 %v4961_v46, %v4976_v2  ;;  %v4977_v36 = vsel %vm1101_vm2, %v4975_v1, %v4976_v2  ;;  %v4994_v48 = vmax.f32 %v4958_v21, %v4980_v16  ;;  %v4983_v57 = vsel %vm1101_vm2, %v4981_v13, %v4982_v7  ;;  %v14359_v1 = vld [vmem:[#allocation97_spill] sm:$0xff]  ;;  %v14360_v2 = vld [vmem:[#allocation98_spill] sm:$0xff]  ;;  %v14362_v13 = vld [vmem:[#allocation100_spill] sm:$0xff] }
 0xf47   :  { %v4993_v51 = vmax.f32 %v4957_v26, %v4977_v36  ;;  %v4992_v59 = vmax.f32 %v4956_v47, %v4974_v20  ;;  %v4999_v63 = vmax.f32 %v4963_v52, %v4982_v7  ;;  %v4995_v19 = vmax.f32 %v4959_v39, %v4983_v57  ;;  %v14361_v7 = vld [vmem:[#allocation99_spill] sm:$0xff]  ;;  %v14364_v16 = vld [vmem:[#allocation102_spill] sm:$0xff]  ;;  %v14367_v36 = vld [vmem:[#allocation105_spill] sm:$0xff] }
 0xf48   :  { %v10439_v8 = vpack.i.bf16 %v4998_v14, %v4997_v25  ;;  %v14365_v20 = vld [vmem:[#allocation103_spill] sm:$0xff]  ;;  %v14370_v57 = vld [vmem:[#allocation108_spill] sm:$0xff] }
 0xf49   :  { %v10444_v29 = vpack.i.bf16 %v4994_v48, %v4993_v51  ;;  %v10454_v34 = vpack.i.bf16 %v4999_v63, %v4995_v19  ;;  %v10449_v35 = vpack.i.bf16 %v4996_v23, %v4992_v59 }
 0xf4a   :  { %10440 = vrot.lane.b32.xlu0 %v10439_v8, %s10729_s1  ;;  %v14373_v8 = vld [vmem:[#allocation111_spill] sm:$0xff] }
 0xf4b   :  { %10445 = vrot.lane.b32.xlu1 %v10444_v29, %s10729_s1 }
 0xf4e   :  { %10455 = vrot.lane.b32.xlu0 %v10454_v34, %s10729_s1  ;;  %v14375_v34 = vld [vmem:[#allocation114_spill] sm:$0xff] }
 0xf4f   :  { %10450 = vrot.lane.b32.xlu1 %v10449_v35, %s10729_s1  ;;  %v14376_v35 = vld [vmem:[#allocation115_spill] sm:$0xff]  ;;  %s7426_s1 = sshll.u32 %s10734_s0, 4  ;;  %s7427_s1 = int_to_ptr.vmem [resolvable:$true] %s7426_s1 }
 0xf50   :  { %p10683_p3 = scmp.lt.s32.totalorder %s7427_s1, %s7427_s1 }
 0xfbc   :  { %v10441_v37 = vpop.permute.xlu0 %10440 }
 0xfbd   :  { %v10443_v27 = vunpack.i.h.bf16 %v10441_v37  ;;  %v10442_v44 = vunpack.i.l.bf16 %v10441_v37  ;;  %v10446_v50 = vpop.permute.xlu1 %10445 }
 0xfbe   :  { %v10448_v40 = vunpack.i.h.bf16 %v10446_v50  ;;  %v10447_v4 = vunpack.i.l.bf16 %v10446_v50  ;;  %v14378_v50 = vld [vmem:[#allocation117_spill] sm:$0xff] }
 0xfbf   :  { %v5028_v24 = vsel %vm293_vm1, %v10442_v44, %v10443_v27 }
 0xfc0   :  { %v5025_v5 = vsel %vm293_vm1, %v10447_v4, %v10448_v40  ;;  %v10456_v6 = vpop.permute.xlu0 %10455  ;;  %v5043_v38 = vmax.f32 %v4997_v25, %v5028_v24  ;;  %v14366_v25 = vld [vmem:[#allocation104_spill] sm:$0xff] }
 0xfc1   :  { %v5039_v30 = vmax.f32 %v4993_v51, %v5025_v5  ;;  %v10458_v12 = vunpack.i.h.bf16 %v10456_v6  ;;  %v10457_v11 = vunpack.i.l.bf16 %v10456_v6  ;;  %v10451_v47 = vpop.permute.xlu1 %10450  ;;  %v14369_v51 = vld [vmem:[#allocation107_spill] sm:$0xff]  ;;  %v14381_v24 = vld [vmem:[#allocation120_spill] sm:$0xff]  ;;  %v14382_v5 = vld [vmem:[#allocation121_spill] sm:$0xff] }
 0xfc2   :  { %v10453_v21 = vunpack.i.h.bf16 %v10451_v47  ;;  %v10452_v45 = vunpack.i.l.bf16 %v10451_v47  ;;  %v14383_v6 = vld [vmem:[#allocation122_spill] sm:$0xff]  ;;  %v14388_v47 = vld [vmem:[#allocation127_spill] sm:$0xff] }
 0xfc3   :  { %v5045_v17 = vmax.f32 %v4999_v63, %v10458_v12  ;;  %v5026_v15 = vsel %vm293_vm1, %v10448_v40, %v10457_v11  ;;  %v5029_v22 = vsel %vm293_vm1, %v10443_v27, %v10458_v12  ;;  %v5041_v26 = vmax.f32 %v4995_v19, %v10457_v11  ;;  %v14372_v63 = vld [vmem:[#allocation110_spill] sm:$0xff]  ;;  %v14374_v19 = vld [vmem:[#allocation112_spill] sm:$0xff]  ;;  %v14386_v12 = vld [vmem:[#allocation125_spill] sm:$0xff] }
 0xfc4   :  { %v5027_v31 = vsel %vm293_vm1, %v10453_v21, %v10442_v44  ;;  %v5024_v33 = vsel %vm293_vm1, %v10452_v45, %v10447_v4  ;;  %v13046_v43 = vpack.c.bf16 %v5043_v38, %v5039_v30  ;;  %v5040_v46 = vmax.f32 %v4994_v48, %v5026_v15  ;;  %v14368_v48 = vld [vmem:[#allocation106_spill] sm:$0xff]  ;;  %v14377_v27 = vld [vmem:[#allocation116_spill] sm:$0xff]  ;;  %v14380_v4 = vld [vmem:[#allocation119_spill] sm:$0xff] }
 0xfc5   :  { %v5042_v39 = vmax.f32 %v4996_v23, %v5027_v31  ;;  %v5038_v41 = vmax.f32 %v4992_v59, %v5024_v33  ;;  %v5044_v52 = vmax.f32 %v4998_v14, %v5029_v22  ;;  %v13053_v55 = vpack.c.bf16 %v5045_v17, %v5041_v26  ;;  %v14363_v14 = vld [vmem:[#allocation101_spill] sm:$0xff]  ;;  %v14379_v40 = vld [vmem:[#allocation118_spill] sm:$0xff]  ;;  %v14384_v38 = vld [vmem:[#allocation123_spill] sm:$0xff] }
 0xfc6   :  { %9562 = vmatprep.subr.msk.bf16.mxu0 %vm11360_vm5, %v13046_v43  ;;  %v14371_v59 = vld [vmem:[#allocation109_spill] sm:$0xff]  ;;  %v14385_v30 = vld [vmem:[#allocation124_spill] sm:$0xff]  ;;  %v14387_v11 = vld [vmem:[#allocation126_spill] sm:$0xff] }
 0xfc7   :  { %v13048_v53 = vpack.c.bf16 %v5042_v39, %v5038_v41  ;;  %v13061_v58 = vpack.c.bf16 %v5044_v52, %v5040_v46  ;;  %v14389_v21 = vld [vmem:[#allocation128_spill] sm:$0xff]  ;;  %v14390_v45 = vld [vmem:[#allocation129_spill] sm:$0xff]  ;;  %v14391_v17 = vld [vmem:[#allocation130_spill] sm:$0xff] }
 0xfc8   :  { %v14392_v15 = vld [vmem:[#allocation131_spill] sm:$0xff]  ;;  %v14393_v22 = vld [vmem:[#allocation132_spill] sm:$0xff]  ;;  %v14394_v26 = vld [vmem:[#allocation133_spill] sm:$0xff] }
 0xfc9   :  { %9565 = vmatpush1.bf16.msk.msra.mxu0 %vm11360_vm5, %v13048_v53  ;;  %v14395_v31 = vld [vmem:[#allocation134_spill] sm:$0xff]  ;;  %v14396_v33 = vld [vmem:[#allocation135_spill] sm:$0xff]  ;;  %v14397_v39 = vld [vmem:[#allocation136_spill] sm:$0xff] }
 0xfca   :  { %9568 = vmatprep.subr.msk.bf16.mxu0 %vm11360_vm5, %v13053_v55  ;;  %v14398_v41 = vld [vmem:[#allocation137_spill] sm:$0xff]  ;;  %v14399_v46 = vld [vmem:[#allocation138_spill] sm:$0xff]  ;;  %v14400_v52 = vld [vmem:[#allocation139_spill] sm:$0xff] }
 0xfcc   :  { %7606 = vmatmul.mubr.msk.f32.vlgmr.msra.gmra.mrb[24].mxu0 %vm1178_vm6, %v10473_v0 }
 0xfcd   :  { %9571 = vmatpush1.bf16.msk.msra.mxu0 %vm11360_vm5, %v13061_v58  ;;  %5193 = vmatprep.mubr.f32.mxu0 %v13938_v54 }
 0xfce   :  { %9685 = vmatprep.subr.bf16.mxu0 %v14359_v1  ;;  %v14402_v1 = vld [vmem:[#allocation141_spill] sm:$0xff] }
 0xfd0   :  { %7609 = vmatmul.mubr.msk.f32.vlgmr.msra.gmra.mrb[26].mxu0 %vm1178_vm6, %v10473_v0  ;;  %v14401_v0 = vld [vmem:[#allocation140_spill] sm:$0xff] }
 0xfd1   :  { %9687 = vmatpush3.bf16.msra.mxu0 %v14360_v2  ;;  %v14403_v2 = vld [vmem:[#allocation142_spill] sm:$0xff] }
 0xfd2   :  { %9689 = vmatprep.subr.bf16.mxu0 %v14361_v7  ;;  %v14404_v7 = vld [vmem:[#allocation143_spill] sm:$0xff] }
 0xfd5   :  { %9691 = vmatpush3.bf16.msra.mxu0 %v14362_v13  ;;  %v14405_v13 = vld [vmem:[#allocation144_spill] sm:$0xff] }
 0xfd6   :  { %9693 = vmatprep.subr.bf16.mxu0 %v14363_v14  ;;  %v14406_v14 = vld [vmem:[#allocation145_spill] sm:$0xff] }
 0xfd9   :  { %9695 = vmatpush3.bf16.msra.mxu0 %v14364_v16  ;;  %v14407_v16 = vld [vmem:[#allocation146_spill] sm:$0xff] }
 0xfda   :  { %9697 = vmatprep.subr.bf16.mxu0 %v14365_v20  ;;  %v14408_v20 = vld [vmem:[#allocation147_spill] sm:$0xff] }
 0xfdd   :  { %9699 = vmatpush3.bf16.msra.mxu0 %v14366_v25  ;;  %v14409_v25 = vld [vmem:[#allocation148_spill] sm:$0xff] }
 0xfde   :  { %9701 = vmatprep.subr.bf16.mxu0 %v14367_v36  ;;  %v14410_v36 = vld [vmem:[#allocation149_spill] sm:$0xff] }
 0xfe1   :  { %9703 = vmatpush3.bf16.msra.mxu0 %v14368_v48  ;;  %v14411_v48 = vld [vmem:[#allocation150_spill] sm:$0xff] }
 0xfe2   :  { %9705 = vmatprep.subr.bf16.mxu0 %v14369_v51  ;;  %v14412_v51 = vld [vmem:[#allocation151_spill] sm:$0xff] }
 0xfe5   :  { %9707 = vmatpush3.bf16.msra.mxu0 %v14370_v57  ;;  %v10474_v57 = vld [vmem:[#allocation8 + $0x8] sm:$0x3f] }
 0xfe6   :  { %9709 = vmatprep.subr.bf16.mxu0 %v14371_v59  ;;  %v14413_v59 = vld [vmem:[#allocation152_spill] sm:$0xff] }
 0xfe9   :  { %9711 = vmatpush3.bf16.msra.mxu0 %v14372_v63  ;;  %v14414_v63 = vld [vmem:[#allocation162_spill] sm:$0xff] }
 0xfea   :  { %9713 = vmatprep.subr.bf16.mxu0 %v14373_v8  ;;  %v14415_v8 = vld [vmem:[#allocation153_spill] sm:$0xff] }
 0xfed   :  { %9715 = vmatpush3.bf16.msra.mxu0 %v14374_v19  ;;  %v14416_v19 = vld [vmem:[#allocation165_spill] sm:$0xff] }
 0xfee   :  { %9716 = vmatprep.subr.bf16.mxu0 %v14021_v10 }
0x109f   :  { %v5124_v23 = vpop.f32.mrb[24].mxu0 }
0x10a0   :  { %v5126_v29 = vpop.f32.mrb[25].mxu0 }
0x10a1   :  { %5267 = vmatprep.mubr.f32.mxu1 %v5126_v29  ;;  %5409 = vmatprep.mubr.f32.mxu0 %v5126_v29  ;;  %v14418_v29 = vld [vmem:[#allocation166_spill] sm:$0xff] }
0x10a2   :  { %5268 = vmatmul.mubr.f32.vlgmr.msra.gmra.mrb[50].mxu1 %v5124_v23  ;;  %5410 = vmatmul.mubr.f32.vlgmr.msra.gmra.mrb[28].mxu0 %v5124_v23  ;;  %v14417_v23 = vld [vmem:[#allocation154_spill] sm:$0xff] }
0x10a3   :  { %9639 = vmatpush1.bf16.msra.mxu1 %v14375_v34  ;;  %9718 = vmatpush1.bf16.msra.mxu0 %v14376_v35  ;;  %v5195_v37 = vpop.f32.mrb[26].mxu0  ;;  %v14419_v34 = vld [vmem:[#allocation155_spill] sm:$0xff] }
0x10a4   :  { %9641 = vmatprep.subr.bf16.mxu1 %v14377_v27  ;;  %9719 = vmatprep.subr.bf16.mxu0 %v14021_v10  ;;  %v5197_v44 = vpop.f32.mrb[27].mxu0  ;;  %v14420_v35 = vld [vmem:[#allocation167_spill] sm:$0xff]  ;;  %v14422_v27 = vld [vmem:[#allocation170_spill] sm:$0xff] }
0x10a5   :  { %7610 = vmatprep.mubr.msk.f32.mxu1 %vm1505_vm7, %v5197_v44  ;;  %7611 = vmatprep.mubr.msk.f32.mxu0 %vm1505_vm7, %v5197_v44  ;;  %v14423_v44 = vld [vmem:[#allocation157_spill] sm:$0xff] }
0x10a7   :  { %9643 = vmatpush1.bf16.msra.mxu1 %v14378_v50  ;;  %9721 = vmatpush1.bf16.msra.mxu0 %v14379_v40  ;;  %v14424_v50 = vld [vmem:[#allocation171_spill] sm:$0xff]  ;;  %v14425_v40 = vld [vmem:[#allocation158_spill] sm:$0xff] }
0x10a8   :  { %9645 = vmatprep.subr.bf16.mxu1 %v14380_v4  ;;  %9722 = vmatprep.subr.bf16.mxu0 %v14021_v10  ;;  %v14426_v4 = vld [vmem:[#allocation173_spill] sm:$0xff] }
0x10ab   :  { %9647 = vmatpush1.bf16.msra.mxu1 %v14381_v24  ;;  %9724 = vmatpush1.bf16.msra.mxu0 %v14382_v5  ;;  %v14427_v24 = vld [vmem:[#allocation159_spill] sm:$0xff] }
0x10ac   :  { %9649 = vmatprep.subr.bf16.mxu1 %v14383_v6  ;;  %9725 = vmatprep.subr.bf16.mxu0 %v14021_v10  ;;  %v14428_v5 = vld [vmem:[#allocation175_spill] sm:$0xff]  ;;  %v14429_v6 = vld [vmem:[#allocation160_spill] sm:$0xff] }
0x10af   :  { %9651 = vmatpush1.bf16.msra.mxu1 %v14384_v38  ;;  %9727 = vmatpush1.bf16.msra.mxu0 %v14385_v30  ;;  %v14430_v38 = vld [vmem:[#allocation177_spill] sm:$0xff] }
0x10b0   :  { %9653 = vmatprep.subr.bf16.mxu1 %v14386_v12  ;;  %9728 = vmatprep.subr.bf16.mxu0 %v14021_v10  ;;  %v14431_v30 = vld [vmem:[#allocation161_spill] sm:$0xff]  ;;  %v14432_v12 = vld [vmem:[#allocation179_spill] sm:$0xff] }
0x10b3   :  { %9655 = vmatpush1.bf16.msra.mxu1 %v14387_v11  ;;  %9730 = vmatpush1.bf16.msra.mxu0 %v14388_v47  ;;  %v14433_v11 = vld [vmem:[#allocation163_spill] sm:$0xff]  ;;  %v14434_v47 = vld [vmem:[#allocation181_spill] sm:$0xff] }
0x10b4   :  { %9657 = vmatprep.subr.bf16.mxu1 %v14389_v21  ;;  %9731 = vmatprep.subr.bf16.mxu0 %v14021_v10  ;;  %v14435_v21 = vld [vmem:[#allocation164_spill] sm:$0xff] }
0x10b7   :  { %9659 = vmatpush1.bf16.msra.mxu1 %v14390_v45  ;;  %9733 = vmatpush1.bf16.msra.mxu0 %v14391_v17  ;;  %v14436_v45 = vld [vmem:[#allocation183_spill] sm:$0xff]  ;;  %v14437_v17 = vld [vmem:[#allocation168_spill] sm:$0xff] }
0x10b8   :  { %9661 = vmatprep.subr.bf16.mxu1 %v14392_v15  ;;  %9734 = vmatprep.subr.bf16.mxu0 %v14021_v10  ;;  %v14438_v15 = vld [vmem:[#allocation169_spill] sm:$0xff] }
0x10bb   :  { %9663 = vmatpush1.bf16.msra.mxu1 %v14393_v22  ;;  %9736 = vmatpush1.bf16.msra.mxu0 %v14394_v26  ;;  %v14439_v22 = vld [vmem:[#allocation186_spill] sm:$0xff]  ;;  %v14440_v26 = vld [vmem:[#allocation172_spill] sm:$0xff] }
0x10bc   :  { %9665 = vmatprep.subr.bf16.mxu1 %v14395_v31  ;;  %9737 = vmatprep.subr.bf16.mxu0 %v14021_v10  ;;  %v14441_v31 = vld [vmem:[#allocation188_spill] sm:$0xff] }
0x10bf   :  { %9667 = vmatpush1.bf16.msra.mxu1 %v14396_v33  ;;  %9739 = vmatpush1.bf16.msra.mxu0 %v14397_v39  ;;  %v14442_v33 = vld [vmem:[#allocation174_spill] sm:$0xff] }
0x10c0   :  { %9669 = vmatprep.subr.bf16.mxu1 %v14398_v41  ;;  %9740 = vmatprep.subr.bf16.mxu0 %v14021_v10  ;;  %v14443_v39 = vld [vmem:[#allocation190_spill] sm:$0xff]  ;;  %v14444_v41 = vld [vmem:[#allocation176_spill] sm:$0xff] }
0x10c3   :  { %9671 = vmatpush1.bf16.msra.mxu1 %v14399_v46  ;;  %9742 = vmatpush1.bf16.msra.mxu0 %v14400_v52  ;;  %v14445_v46 = vld [vmem:[#allocation178_spill] sm:$0xff]  ;;  %v14446_v52 = vld [vmem:[#allocation180_spill] sm:$0xff] }
0x10c4   :  { %9673 = vmatprep.subr.bf16.mxu1 %v14401_v0  ;;  %9743 = vmatprep.subr.bf16.mxu0 %v14021_v10  ;;  %v14448_v0 = vld [vmem:[#allocation184_spill] sm:$0xff] }
0x10c7   :  { %9675 = vmatpush1.bf16.msra.mxu1 %v14402_v1  ;;  %9745 = vmatpush1.bf16.msra.mxu0 %v14403_v2  ;;  %v14449_v1 = vld [vmem:[#allocation185_spill] sm:$0xff]  ;;  %v14450_v2 = vld [vmem:[#allocation187_spill] sm:$0xff] }
0x10c8   :  { %9677 = vmatprep.subr.bf16.mxu1 %v14404_v7  ;;  %9746 = vmatprep.subr.bf16.mxu0 %v14021_v10  ;;  %v14451_v7 = vld [vmem:[#allocation189_spill] sm:$0xff] }
0x10cb   :  { %9679 = vmatpush1.bf16.msra.mxu1 %v14405_v13  ;;  %9748 = vmatpush1.bf16.msra.mxu0 %v14406_v14  ;;  %v14452_v13 = vld [vmem:[#allocation191_spill] sm:$0xff]  ;;  %v14453_v14 = vld [vmem:[#allocation192_spill] sm:$0xff] }
0x10cc   :  { %9681 = vmatprep.subr.bf16.mxu1 %v14407_v16  ;;  %9749 = vmatprep.subr.bf16.mxu0 %v14021_v10  ;;  %v14454_v16 = vld [vmem:[#allocation193_spill] sm:$0xff] }
0x10cf   :  { %9683 = vmatpush1.bf16.msra.mxu1 %v14408_v20  ;;  %9751 = vmatpush1.bf16.msra.mxu0 %v14409_v25  ;;  %v14455_v20 = vld [vmem:[#allocation194_spill] sm:$0xff]  ;;  %v14456_v25 = vld [vmem:[#allocation195_spill] sm:$0xff] }
0x10d0   :  { %9754 = vmatprep.subr.msk.bf16.mxu0 %vm11360_vm5, %v13046_v43  ;;  %9765 = vmatprep.subr.bf16.mxu1 %v14410_v36  ;;  %v14457_v36 = vld [vmem:[#allocation196_spill] sm:$0xff] }
0x10d2   :  { %5339 = vmatmul.mubr.f32.vlgmr.msra.gmra.mrb[50].mxu1 %v5195_v37  ;;  %5480 = vmatmul.mubr.f32.vlgmr.msra.gmra.mrb[30].mxu0 %v5195_v37  ;;  %v14421_v37 = vld [vmem:[#allocation156_spill] sm:$0xff] }
0x10d3   :  { %9757 = vmatpush1.bf16.msk.msra.mxu0 %vm11360_vm5, %v13048_v53  ;;  %5552 = vmatprep.mubr.f32.mxu0 %v13938_v54 }
0x10d4   :  { %9760 = vmatprep.subr.msk.bf16.mxu0 %vm11360_vm5, %v13053_v55  ;;  %9767 = vmatpush1.bf16.msra.mxu1 %v14411_v48 }
0x10d5   :  { %9769 = vmatprep.subr.bf16.mxu1 %v14412_v51 }
0x10d6   :  { %7614 = vmatmul.mubr.msk.f32.vlgmr.msra.gmra.mrb[32].mxu0 %vm1178_vm6, %v10474_v57 }
0x10d7   :  { %9763 = vmatpush1.bf16.msk.msra.mxu0 %vm11360_vm5, %v13061_v58  ;;  %5623 = vmatprep.mubr.f32.mxu0 %v13938_v54 }
0x10d8   :  { %9771 = vmatpush1.bf16.msra.mxu1 %v14413_v59  ;;  %9877 = vmatprep.subr.bf16.mxu0 %v14414_v63 }
0x10d9   :  { %9773 = vmatprep.subr.bf16.mxu1 %v14415_v8  ;;  %v14458_v8 = vld [vmem:[#allocation197_spill] sm:$0xff] }
0x10da   :  { %7617 = vmatmul.mubr.msk.f32.vlgmr.msra.gmra.mrb[34].mxu0 %vm1178_vm6, %v10474_v57 }
0x10db   :  { %9879 = vmatpush3.bf16.msra.mxu0 %v14416_v19  ;;  %v14459_v19 = vld [vmem:[#allocation198_spill] sm:$0xff] }
0x10dc   :  { %9775 = vmatpush1.bf16.msra.mxu1 %v14417_v23  ;;  %9881 = vmatprep.subr.bf16.mxu0 %v14418_v29  ;;  %v14460_v29 = vld [vmem:[#allocation199_spill] sm:$0xff] }
0x10dd   :  { %9777 = vmatprep.subr.bf16.mxu1 %v14419_v34 }
0x10df   :  { %9883 = vmatpush3.bf16.msra.mxu0 %v14420_v35  ;;  %v14461_v35 = vld [vmem:[#allocation200_spill] sm:$0xff] }
0x10e0   :  { %9779 = vmatpush1.bf16.msra.mxu1 %v14421_v37  ;;  %9885 = vmatprep.subr.bf16.mxu0 %v14422_v27  ;;  %v14462_v37 = vld [vmem:[#allocation201_spill] sm:$0xff]  ;;  %v14463_v27 = vld [vmem:[#allocation202_spill] sm:$0xff] }
0x10e1   :  { %9781 = vmatprep.subr.bf16.mxu1 %v14423_v44  ;;  %v14464_v44 = vld [vmem:[#allocation203_spill] sm:$0xff] }
0x10e3   :  { %9887 = vmatpush3.bf16.msra.mxu0 %v14424_v50  ;;  %v14465_v50 = vld [vmem:[#allocation204_spill] sm:$0xff] }
0x10e4   :  { %9783 = vmatpush1.bf16.msra.mxu1 %v14425_v40  ;;  %9889 = vmatprep.subr.bf16.mxu0 %v14426_v4  ;;  %v14466_v40 = vld [vmem:[#allocation205_spill] sm:$0xff]  ;;  %v14467_v4 = vld [vmem:[#allocation206_spill] sm:$0xff] }
0x10e5   :  { %9785 = vmatprep.subr.bf16.mxu1 %v14427_v24  ;;  %v14468_v24 = vld [vmem:[#allocation207_spill] sm:$0xff] }
0x10e7   :  { %9891 = vmatpush3.bf16.msra.mxu0 %v14428_v5  ;;  %v14469_v5 = vld [vmem:[#allocation208_spill] sm:$0xff] }
0x10e8   :  { %9787 = vmatpush1.bf16.msra.mxu1 %v14429_v6  ;;  %9893 = vmatprep.subr.bf16.mxu0 %v14430_v38  ;;  %v14470_v6 = vld [vmem:[#allocation209_spill] sm:$0xff]  ;;  %v14471_v38 = vld [vmem:[#allocation210_spill] sm:$0xff] }
0x10e9   :  { %9789 = vmatprep.subr.bf16.mxu1 %v14431_v30  ;;  %v14472_v30 = vld [vmem:[#allocation211_spill] sm:$0xff] }
0x10eb   :  { %9895 = vmatpush3.bf16.msra.mxu0 %v14432_v12  ;;  %v14473_v12 = vld [vmem:[#allocation212_spill] sm:$0xff] }
0x10ec   :  { %9791 = vmatpush1.bf16.msra.mxu1 %v14433_v11  ;;  %9897 = vmatprep.subr.bf16.mxu0 %v14434_v47  ;;  %v14474_v11 = vld [vmem:[#allocation213_spill] sm:$0xff]  ;;  %v14475_v47 = vld [vmem:[#allocation214_spill] sm:$0xff] }
0x10ed   :  { %9793 = vmatprep.subr.bf16.mxu1 %v14435_v21  ;;  %v14476_v21 = vld [vmem:[#allocation215_spill] sm:$0xff] }
0x10ef   :  { %9899 = vmatpush3.bf16.msra.mxu0 %v14436_v45  ;;  %v14477_v45 = vld [vmem:[#allocation216_spill] sm:$0xff] }
0x10f0   :  { %9795 = vmatpush1.bf16.msra.mxu1 %v14437_v17  ;;  %9901 = vmatprep.subr.bf16.mxu0 %v11684_v56  ;;  %v14447_v56 = vld [vmem:[#allocation182_spill] sm:$0xff]  ;;  %v14478_v17 = vld [vmem:[#allocation217_spill] sm:$0xff] }
0x10f1   :  { %9797 = vmatprep.subr.bf16.mxu1 %v14438_v15  ;;  %v14479_v15 = vld [vmem:[#allocation218_spill] sm:$0xff] }
0x10f3   :  { %9903 = vmatpush3.bf16.msra.mxu0 %v14439_v22  ;;  %v14480_v22 = vld [vmem:[#allocation219_spill] sm:$0xff] }
0x10f4   :  { %9799 = vmatpush1.bf16.msra.mxu1 %v14440_v26  ;;  %9905 = vmatprep.subr.bf16.mxu0 %v14441_v31  ;;  %v14481_v26 = vld [vmem:[#allocation220_spill] sm:$0xff]  ;;  %v14482_v31 = vld [vmem:[#allocation221_spill] sm:$0xff] }
0x10f5   :  { %9801 = vmatprep.subr.bf16.mxu1 %v14442_v33  ;;  %v14483_v33 = vld [vmem:[#allocation222_spill] sm:$0xff] }
0x10f7   :  { %9907 = vmatpush3.bf16.msra.mxu0 %v14443_v39  ;;  %v14484_v39 = vld [vmem:[#allocation223_spill] sm:$0xff] }
0x10f8   :  { %9803 = vmatpush1.bf16.msra.mxu1 %v14444_v41  ;;  %9908 = vmatprep.subr.bf16.mxu0 %v14021_v10  ;;  %v14485_v41 = vld [vmem:[#allocation224_spill] sm:$0xff] }
0x10f9   :  { %9805 = vmatprep.subr.bf16.mxu1 %v14445_v46  ;;  %v14486_v46 = vld [vmem:[#allocation225_spill] sm:$0xff] }
0x10fc   :  { %9807 = vmatpush1.bf16.msra.mxu1 %v14446_v52  ;;  %v14487_v52 = vld [vmem:[#allocation226_spill] sm:$0xff] }
0x10fd   :  { %9809 = vmatprep.subr.bf16.mxu1 %v14447_v56  ;;  %v14488_v56 = vld [vmem:[#allocation227_spill] sm:$0xff] }
0x1100   :  { %9811 = vmatpush1.bf16.msra.mxu1 %v14448_v0  ;;  %v14489_v0 = vld [vmem:[#allocation228_spill] sm:$0xff] }
0x1101   :  { %9813 = vmatprep.subr.bf16.mxu1 %v14449_v1  ;;  %v14490_v1 = vld [vmem:[#allocation229_spill] sm:$0xff] }
0x1104   :  { %9815 = vmatpush1.bf16.msra.mxu1 %v14450_v2  ;;  %v14493_v2 = vld [vmem:[#allocation232_spill] sm:$0xff] }
0x1105   :  { %9817 = vmatprep.subr.bf16.mxu1 %v14451_v7  ;;  %v10475_v7 = vld [vmem:[#allocation8 + $0x10] sm:$0x3f] }
0x1108   :  { %9819 = vmatpush1.bf16.msra.mxu1 %v14452_v13  ;;  %v14496_v13 = vld [vmem:[#allocation234_spill] sm:$0xff] }
0x1109   :  { %9821 = vmatprep.subr.bf16.mxu1 %v14453_v14  ;;  %v14498_v14 = vld [vmem:[#allocation235_spill] sm:$0xff] }
0x110c   :  { %9823 = vmatpush1.bf16.msra.mxu1 %v14454_v16  ;;  %v14499_v16 = vld [vmem:[#allocation247_spill] sm:$0xff] }
0x110d   :  { %9825 = vmatprep.subr.bf16.mxu1 %v14455_v20  ;;  %v14500_v20 = vld [vmem:[#allocation236_spill] sm:$0xff] }
0x1110   :  { %9827 = vmatpush1.bf16.msra.mxu1 %v14456_v25  ;;  %v14503_v25 = vld [vmem:[#allocation251_spill] sm:$0xff] }
0x1111   :  { %9829 = vmatprep.subr.bf16.mxu1 %v14457_v36  ;;  %v14504_v36 = vld [vmem:[#allocation238_spill] sm:$0xff] }
0x1175   :  { %v7977_v48 = vpop.f32.mrb[28].mxu0 }
0x1176   :  { %v7978_v51 = vpop.f32.mrb[29].mxu0 }
0x1177   :  { %v13200_v57 = vadd.f32 %v7978_v51, %v7977_v48  ;;  %v14505_v48 = vld [vmem:[#allocation252_spill] sm:$0xff]  ;;  %v14506_v51 = vld [vmem:[#allocation239_spill] sm:$0xff] }
0x11a9   :  { %v5554_v59 = vpop.f32.mrb[32].mxu0 }
0x11aa   :  { %v5556_v63 = vpop.f32.mrb[33].mxu0 }
0x11ab   :  { %5697 = vmatprep.mubr.f32.mxu1 %v5556_v63  ;;  %5839 = vmatprep.mubr.f32.mxu0 %v5556_v63  ;;  %v14508_v63 = vld [vmem:[#allocation240_spill] sm:$0xff] }
0x11ac   :  { %5698 = vmatmul.mubr.f32.vlgmr.msra.gmra.mrb[50].mxu1 %v5554_v59  ;;  %5840 = vmatmul.mubr.f32.vlgmr.msra.gmra.mrb[36].mxu0 %v5554_v59  ;;  %v14507_v59 = vld [vmem:[#allocation254_spill] sm:$0xff] }
0x11ad   :  { %9831 = vmatpush1.bf16.msra.mxu1 %v14458_v8  ;;  %9910 = vmatpush1.bf16.msra.mxu0 %v14459_v19  ;;  %v5625_v23 = vpop.f32.mrb[34].mxu0  ;;  %v14509_v8 = vld [vmem:[#allocation256_spill] sm:$0xff]  ;;  %v14510_v19 = vld [vmem:[#allocation241_spill] sm:$0xff] }
0x11ae   :  { %9833 = vmatprep.subr.bf16.mxu1 %v14460_v29  ;;  %9911 = vmatprep.subr.bf16.mxu0 %v14021_v10  ;;  %v5627_v34 = vpop.f32.mrb[35].mxu0  ;;  %v14512_v29 = vld [vmem:[#allocation242_spill] sm:$0xff] }
0x11af   :  { %7618 = vmatprep.mubr.msk.f32.mxu1 %vm1505_vm7, %v5627_v34  ;;  %7619 = vmatprep.mubr.msk.f32.mxu0 %vm1505_vm7, %v5627_v34  ;;  %v14513_v34 = vld [vmem:[#allocation260_spill] sm:$0xff] }
0x11b1   :  { %9835 = vmatpush1.bf16.msra.mxu1 %v14461_v35  ;;  %9913 = vmatpush1.bf16.msra.mxu0 %v14462_v37  ;;  %v14514_v35 = vld [vmem:[#allocation244_spill] sm:$0xff]  ;;  %v14515_v37 = vld [vmem:[#allocation262_spill] sm:$0xff] }
0x11b2   :  { %9837 = vmatprep.subr.bf16.mxu1 %v14463_v27  ;;  %9914 = vmatprep.subr.bf16.mxu0 %v14021_v10  ;;  %v14516_v27 = vld [vmem:[#allocation245_spill] sm:$0xff] }
0x11b5   :  { %9839 = vmatpush1.bf16.msra.mxu1 %v14464_v44  ;;  %9916 = vmatpush1.bf16.msra.mxu0 %v14465_v50  ;;  %v14517_v44 = vld [vmem:[#allocation264_spill] sm:$0xff]  ;;  %v14518_v50 = vld [vmem:[#allocation249_spill] sm:$0xff] }
0x11b6   :  { %9841 = vmatprep.subr.bf16.mxu1 %v14466_v40  ;;  %9917 = vmatprep.subr.bf16.mxu0 %v14021_v10  ;;  %v14519_v40 = vld [vmem:[#allocation250_spill] sm:$0xff] }
0x11b9   :  { %9843 = vmatpush1.bf16.msra.mxu1 %v14467_v4  ;;  %9919 = vmatpush1.bf16.msra.mxu0 %v14468_v24  ;;  %v14520_v4 = vld [vmem:[#allocation267_spill] sm:$0xff]  ;;  %v14521_v24 = vld [vmem:[#allocation253_spill] sm:$0xff] }
0x11ba   :  { %9845 = vmatprep.subr.bf16.mxu1 %v14469_v5  ;;  %9920 = vmatprep.subr.bf16.mxu0 %v14021_v10  ;;  %v14522_v5 = vld [vmem:[#allocation269_spill] sm:$0xff] }
0x11bd   :  { %9847 = vmatpush1.bf16.msra.mxu1 %v14470_v6  ;;  %9922 = vmatpush1.bf16.msra.mxu0 %v14471_v38  ;;  %v14523_v6 = vld [vmem:[#allocation255_spill] sm:$0xff] }
0x11be   :  { %9849 = vmatprep.subr.bf16.mxu1 %v14472_v30  ;;  %9923 = vmatprep.subr.bf16.mxu0 %v14021_v10  ;;  %v14524_v38 = vld [vmem:[#allocation271_spill] sm:$0xff]  ;;  %v14525_v30 = vld [vmem:[#allocation257_spill] sm:$0xff] }
0x11c1   :  { %9851 = vmatpush1.bf16.msra.mxu1 %v14473_v12  ;;  %9925 = vmatpush1.bf16.msra.mxu0 %v14474_v11  ;;  %v14526_v12 = vld [vmem:[#allocation259_spill] sm:$0xff]  ;;  %v14527_v11 = vld [vmem:[#allocation261_spill] sm:$0xff] }
0x11c2   :  { %9853 = vmatprep.subr.bf16.mxu1 %v14475_v47  ;;  %9926 = vmatprep.subr.bf16.mxu0 %v14021_v10  ;;  %v14529_v47 = vld [vmem:[#allocation265_spill] sm:$0xff] }
0x11c5   :  { %9855 = vmatpush1.bf16.msra.mxu1 %v14476_v21  ;;  %9928 = vmatpush1.bf16.msra.mxu0 %v14477_v45  ;;  %v14530_v21 = vld [vmem:[#allocation266_spill] sm:$0xff]  ;;  %v14531_v45 = vld [vmem:[#allocation268_spill] sm:$0xff] }
0x11c6   :  { %9857 = vmatprep.subr.bf16.mxu1 %v14478_v17  ;;  %9929 = vmatprep.subr.bf16.mxu0 %v14021_v10  ;;  %v14532_v17 = vld [vmem:[#allocation270_spill] sm:$0xff] }
0x11c9   :  { %9859 = vmatpush1.bf16.msra.mxu1 %v14479_v15  ;;  %9931 = vmatpush1.bf16.msra.mxu0 %v14480_v22  ;;  %v14533_v15 = vld [vmem:[#allocation272_spill] sm:$0xff]  ;;  %v14534_v22 = vld [vmem:[#allocation273_spill] sm:$0xff] }
0x11ca   :  { %9861 = vmatprep.subr.bf16.mxu1 %v14481_v26  ;;  %9932 = vmatprep.subr.bf16.mxu0 %v14021_v10  ;;  %v14535_v26 = vld [vmem:[#allocation274_spill] sm:$0xff] }
0x11cd   :  { %9863 = vmatpush1.bf16.msra.mxu1 %v14482_v31  ;;  %9934 = vmatpush1.bf16.msra.mxu0 %v14483_v33  ;;  %v14536_v31 = vld [vmem:[#allocation275_spill] sm:$0xff]  ;;  %v14537_v33 = vld [vmem:[#allocation276_spill] sm:$0xff] }
0x11ce   :  { %9865 = vmatprep.subr.bf16.mxu1 %v14484_v39  ;;  %9935 = vmatprep.subr.bf16.mxu0 %v14021_v10  ;;  %v14538_v39 = vld [vmem:[#allocation277_spill] sm:$0xff] }
0x11d1   :  { %9867 = vmatpush1.bf16.msra.mxu1 %v11821_v60  ;;  %9937 = vmatpush1.bf16.msra.mxu0 %v11823_v42  ;;  %v14491_v60 = vld [vmem:[#allocation230_spill] sm:$0xff]  ;;  %v14492_v42 = vld [vmem:[#allocation231_spill] sm:$0xff] }
0x11d2   :  { %9869 = vmatprep.subr.bf16.mxu1 %v14485_v41  ;;  %9938 = vmatprep.subr.bf16.mxu0 %v14021_v10 }
0x11d5   :  { %9871 = vmatpush1.bf16.msra.mxu1 %v14486_v46  ;;  %9940 = vmatpush1.bf16.msra.mxu0 %v14487_v52  ;;  %v14539_v52 = vld [vmem:[#allocation278_spill] sm:$0xff] }
0x11d6   :  { %9873 = vmatprep.subr.bf16.mxu1 %v14488_v56  ;;  %9941 = vmatprep.subr.bf16.mxu0 %v14021_v10  ;;  %v10320_v56 = vadd.f32 %v13200_v57, %v14539_v52  ;;  %v14543_v57 = vld [vmem:[#allocation282_spill] sm:$0xff] }
0x11d9   :  { %9875 = vmatpush1.bf16.msra.mxu1 %v14489_v0  ;;  %9943 = vmatpush1.bf16.msra.mxu0 %v14490_v1 }
0x11da   :  { %9946 = vmatprep.subr.msk.bf16.mxu0 %vm11360_vm5, %v13046_v43  ;;  %9957 = vmatprep.subr.bf16.mxu1 %v14491_v60  ;;  %v14494_v43 = vld [vmem:[#allocation233_spill] sm:$0xff] }
0x11dc   :  { %5769 = vmatmul.mubr.f32.vlgmr.msra.gmra.mrb[50].mxu1 %v5625_v23  ;;  %5910 = vmatmul.mubr.f32.vlgmr.msra.gmra.mrb[30].mxu0 %v5625_v23  ;;  %v14511_v23 = vld [vmem:[#allocation258_spill] sm:$0xff] }
0x11dd   :  { %9949 = vmatpush1.bf16.msk.msra.mxu0 %vm11360_vm5, %v13048_v53  ;;  %5982 = vmatprep.mubr.f32.mxu0 %v13938_v54  ;;  %v14495_v53 = vld [vmem:[#allocation243_spill] sm:$0xff] }
0x11de   :  { %9952 = vmatprep.subr.msk.bf16.mxu0 %vm11360_vm5, %v13053_v55  ;;  %9959 = vmatpush1.bf16.msra.mxu1 %v14492_v42  ;;  %v14497_v55 = vld [vmem:[#allocation246_spill] sm:$0xff] }
0x11df   :  { %9961 = vmatprep.subr.bf16.mxu1 %v14493_v2  ;;  %v14540_v2 = vld [vmem:[#allocation279_spill] sm:$0xff] }
0x11e0   :  { %7622 = vmatmul.mubr.msk.f32.vlgmr.msra.gmra.mrb[38].mxu0 %vm1178_vm6, %v10475_v7 }
0x11e1   :  { %9955 = vmatpush1.bf16.msk.msra.mxu0 %vm11360_vm5, %v13061_v58  ;;  %6053 = vmatprep.mubr.f32.mxu0 %v13938_v54  ;;  %v14502_v58 = vld [vmem:[#allocation237_spill] sm:$0xff] }
0x11e2   :  { %9963 = vmatpush1.bf16.msra.mxu1 %v14494_v43  ;;  %10069 = vmatprep.subr.bf16.mxu0 %v14495_v53  ;;  %v14542_v53 = vld [vmem:[#allocation281_spill] sm:$0xff] }
0x11e3   :  { %9965 = vmatprep.subr.bf16.mxu1 %v14496_v13 }
0x11e4   :  { %7625 = vmatmul.mubr.msk.f32.vlgmr.msra.gmra.mrb[40].mxu0 %vm1178_vm6, %v10475_v7  ;;  %v14541_v7 = vld [vmem:[#allocation280_spill] sm:$0xff] }
0x11e5   :  { %10071 = vmatpush3.bf16.msra.mxu0 %v14497_v55  ;;  %v14544_v55 = vld [vmem:[#allocation283_spill] sm:$0xff] }
0x11e6   :  { %9967 = vmatpush1.bf16.msra.mxu1 %v14498_v14  ;;  %10073 = vmatprep.subr.bf16.mxu0 %v14499_v16  ;;  %v14545_v14 = vld [vmem:[#allocation284_spill] sm:$0xff]  ;;  %v14546_v16 = vld [vmem:[#allocation285_spill] sm:$0xff] }
0x11e7   :  { %9969 = vmatprep.subr.bf16.mxu1 %v14500_v20  ;;  %v14547_v20 = vld [vmem:[#allocation286_spill] sm:$0xff] }
0x11e9   :  { %10075 = vmatpush3.bf16.msra.mxu0 %v14501_v3  ;;  %v14548_v3 = vld [vmem:[#allocation287_spill] sm:$0xff] }
0x11ea   :  { %9971 = vmatpush1.bf16.msra.mxu1 %v14502_v58  ;;  %10077 = vmatprep.subr.bf16.mxu0 %v14503_v25  ;;  %v14549_v58 = vld [vmem:[#allocation288_spill] sm:$0xff]  ;;  %v14550_v25 = vld [vmem:[#allocation289_spill] sm:$0xff] }
0x11eb   :  { %9973 = vmatprep.subr.bf16.mxu1 %v14504_v36  ;;  %v14551_v36 = vld [vmem:[#allocation290_spill] sm:$0xff] }
0x11ed   :  { %10079 = vmatpush3.bf16.msra.mxu0 %v14505_v48  ;;  %v14552_v48 = vld [vmem:[#allocation291_spill] sm:$0xff] }
0x11ee   :  { %9975 = vmatpush1.bf16.msra.mxu1 %v14506_v51  ;;  %10081 = vmatprep.subr.bf16.mxu0 %v14507_v59  ;;  %v14553_v51 = vld [vmem:[#allocation292_spill] sm:$0xff]  ;;  %v14554_v59 = vld [vmem:[#allocation293_spill] sm:$0xff] }
0x11ef   :  { %9977 = vmatprep.subr.bf16.mxu1 %v14508_v63  ;;  %v14555_v63 = vld [vmem:[#allocation294_spill] sm:$0xff] }
0x11f1   :  { %10083 = vmatpush3.bf16.msra.mxu0 %v14509_v8  ;;  %v14556_v8 = vld [vmem:[#allocation295_spill] sm:$0xff] }
0x11f2   :  { %9979 = vmatpush1.bf16.msra.mxu1 %v14510_v19  ;;  %10085 = vmatprep.subr.bf16.mxu0 %v14511_v23  ;;  %v14557_v19 = vld [vmem:[#allocation296_spill] sm:$0xff]  ;;  %v14558_v23 = vld [vmem:[#allocation297_spill] sm:$0xff] }
0x11f3   :  { %9981 = vmatprep.subr.bf16.mxu1 %v14512_v29  ;;  %v14559_v29 = vld [vmem:[#allocation298_spill] sm:$0xff] }
0x11f5   :  { %10087 = vmatpush3.bf16.msra.mxu0 %v14513_v34  ;;  %v14560_v34 = vld [vmem:[#allocation299_spill] sm:$0xff] }
0x11f6   :  { %9983 = vmatpush1.bf16.msra.mxu1 %v14514_v35  ;;  %10089 = vmatprep.subr.bf16.mxu0 %v14515_v37  ;;  %v14561_v35 = vld [vmem:[#allocation300_spill] sm:$0xff]  ;;  %v14562_v37 = vld [vmem:[#allocation301_spill] sm:$0xff] }
0x11f7   :  { %9985 = vmatprep.subr.bf16.mxu1 %v14516_v27  ;;  %v14563_v27 = vld [vmem:[#allocation302_spill] sm:$0xff] }
0x11f9   :  { %10091 = vmatpush3.bf16.msra.mxu0 %v14517_v44  ;;  %v14564_v44 = vld [vmem:[#allocation303_spill] sm:$0xff] }
0x11fa   :  { %9987 = vmatpush1.bf16.msra.mxu1 %v14518_v50  ;;  %10093 = vmatprep.subr.bf16.mxu0 %v11972_v61  ;;  %v14528_v61 = vld [vmem:[#allocation263_spill] sm:$0xff]  ;;  %v14565_v50 = vld [vmem:[#allocation304_spill] sm:$0xff] }
0x11fb   :  { %9989 = vmatprep.subr.bf16.mxu1 %v14519_v40  ;;  %v14566_v40 = vld [vmem:[#allocation305_spill] sm:$0xff] }
0x11fd   :  { %10095 = vmatpush3.bf16.msra.mxu0 %v14520_v4  ;;  %v14567_v4 = vld [vmem:[#allocation306_spill] sm:$0xff] }
0x11fe   :  { %9991 = vmatpush1.bf16.msra.mxu1 %v14521_v24  ;;  %10097 = vmatprep.subr.bf16.mxu0 %v14522_v5  ;;  %v14568_v24 = vld [vmem:[#allocation307_spill] sm:$0xff]  ;;  %v14569_v5 = vld [vmem:[#allocation308_spill] sm:$0xff] }
0x11ff   :  { %9993 = vmatprep.subr.bf16.mxu1 %v14523_v6  ;;  %v14570_v6 = vld [vmem:[#allocation309_spill] sm:$0xff] }
0x1201   :  { %10099 = vmatpush3.bf16.msra.mxu0 %v14524_v38 }
0x1202   :  { %9995 = vmatpush1.bf16.msra.mxu1 %v14525_v30  ;;  %10100 = vmatprep.subr.bf16.mxu0 %v14021_v10 }
0x1203   :  { %9997 = vmatprep.subr.bf16.mxu1 %v14526_v12 }
0x1206   :  { %9999 = vmatpush1.bf16.msra.mxu1 %v14527_v11 }
0x1207   :  { %10001 = vmatprep.subr.bf16.mxu1 %v14528_v61 }
0x120a   :  { %10003 = vmatpush1.bf16.msra.mxu1 %v14529_v47 }
0x120b   :  { %10005 = vmatprep.subr.bf16.mxu1 %v14530_v21 }
0x120e   :  { %10007 = vmatpush1.bf16.msra.mxu1 %v14531_v45 }
0x120f   :  { %10009 = vmatprep.subr.bf16.mxu1 %v14532_v17 }
0x1212   :  { %10011 = vmatpush1.bf16.msra.mxu1 %v14533_v15 }
0x1213   :  { %10013 = vmatprep.subr.bf16.mxu1 %v14534_v22 }
0x1216   :  { %10015 = vmatpush1.bf16.msra.mxu1 %v14535_v26 }
0x1217   :  { %10017 = vmatprep.subr.bf16.mxu1 %v14536_v31 }
0x121a   :  { %10019 = vmatpush1.bf16.msra.mxu1 %v14537_v33 }
0x121b   :  { %10021 = vmatprep.subr.bf16.mxu1 %v14538_v39 }
0x127f   :  { %v8012_v41 = vpop.f32.mrb[36].mxu0 }
0x1280   :  { %v8013_v46 = vpop.f32.mrb[37].mxu0 }
0x1281   :  { %v8014_v0 = vadd.f32 %v8013_v46, %v8012_v41 }
0x1283   :  { %v13318_v1 = vadd.f32 %v10320_v56, %v8014_v0 }
0x12b3   :  { %v5984_v60 = vpop.f32.mrb[38].mxu0 }
0x12b4   :  { %v5986_v42 = vpop.f32.mrb[39].mxu0 }
0x12b5   :  { %6127 = vmatprep.mubr.f32.mxu1 %v5986_v42  ;;  %6269 = vmatprep.mubr.f32.mxu0 %v5986_v42 }
0x12b6   :  { %6128 = vmatmul.mubr.f32.vlgmr.msra.gmra.mrb[50].mxu1 %v5984_v60  ;;  %6270 = vmatmul.mubr.f32.vlgmr.msra.gmra.mrb[42].mxu0 %v5984_v60 }
0x12b7   :  { %10023 = vmatpush1.bf16.msra.mxu1 %v14540_v2  ;;  %10102 = vmatpush1.bf16.msra.mxu0 %v14541_v7  ;;  %v6055_v43 = vpop.f32.mrb[40].mxu0 }
0x12b8   :  { %10025 = vmatprep.subr.bf16.mxu1 %v14542_v53  ;;  %10103 = vmatprep.subr.bf16.mxu0 %v14021_v10  ;;  %v6057_v13 = vpop.f32.mrb[41].mxu0 }
0x12b9   :  { %7626 = vmatprep.mubr.msk.f32.mxu1 %vm1505_vm7, %v6057_v13  ;;  %7627 = vmatprep.mubr.msk.f32.mxu0 %vm1505_vm7, %v6057_v13 }
0x12bb   :  { %10027 = vmatpush1.bf16.msra.mxu1 %v14543_v57  ;;  %10105 = vmatpush1.bf16.msra.mxu0 %v14544_v55  ;;  %v10476_v57 = vld [vmem:[#allocation13] sm:$0x3]  ;;  %v10477_v55 = vld [vmem:[#allocation13 + $0x4] sm:$0x3] }
0x12bc   :  { %10029 = vmatprep.subr.bf16.mxu1 %v14545_v14  ;;  %10106 = vmatprep.subr.bf16.mxu0 %v14021_v10  ;;  %v14573_v14 = vld [vmem:[#allocation312_spill] sm:$0xff] }
0x12bf   :  { %10031 = vmatpush1.bf16.msra.mxu1 %v14546_v16  ;;  %10108 = vmatpush1.bf16.msra.mxu0 %v14547_v20  ;;  %v14574_v16 = vld [vmem:[#allocation327_spill] sm:$0xff]  ;;  %v14575_v20 = vld [vmem:[#allocation313_spill] sm:$0xff] }
0x12c0   :  { %10033 = vmatprep.subr.bf16.mxu1 %v14548_v3  ;;  %10109 = vmatprep.subr.bf16.mxu0 %v14021_v10  ;;  %v14576_v3 = vld [vmem:[#allocation328_spill] sm:$0xff] }
0x12c3   :  { %10035 = vmatpush1.bf16.msra.mxu1 %v14549_v58  ;;  %10111 = vmatpush1.bf16.msra.mxu0 %v14550_v25  ;;  %v14577_v58 = vld [vmem:[#allocation329_spill] sm:$0xff]  ;;  %v14578_v25 = vld [vmem:[#allocation314_spill] sm:$0xff] }
0x12c4   :  { %10037 = vmatprep.subr.bf16.mxu1 %v14551_v36  ;;  %10112 = vmatprep.subr.bf16.mxu0 %v14021_v10  ;;  %v14580_v36 = vld [vmem:[#allocation330_spill] sm:$0xff] }
0x12c7   :  { %10039 = vmatpush1.bf16.msra.mxu1 %v14552_v48  ;;  %10114 = vmatpush1.bf16.msra.mxu0 %v14553_v51  ;;  %v14581_v48 = vld [vmem:[#allocation341_spill] sm:$0xff]  ;;  %v14582_v51 = vld [vmem:[#allocation316_spill] sm:$0xff] }
0x12c8   :  { %10041 = vmatprep.subr.bf16.mxu1 %v14554_v59  ;;  %10115 = vmatprep.subr.bf16.mxu0 %v14021_v10  ;;  %v14583_v59 = vld [vmem:[#allocation317_spill] sm:$0xff] }
0x12cb   :  { %10043 = vmatpush1.bf16.msra.mxu1 %v14555_v63  ;;  %10117 = vmatpush1.bf16.msra.mxu0 %v14556_v8  ;;  %v14584_v63 = vld [vmem:[#allocation343_spill] sm:$0xff]  ;;  %v14585_v8 = vld [vmem:[#allocation345_spill] sm:$0xff] }
0x12cc   :  { %10045 = vmatprep.subr.bf16.mxu1 %v14557_v19  ;;  %10118 = vmatprep.subr.bf16.mxu0 %v14021_v10  ;;  %v14586_v19 = vld [vmem:[#allocation318_spill] sm:$0xff] }
0x12cf   :  { %10047 = vmatpush1.bf16.msra.mxu1 %v14558_v23  ;;  %10120 = vmatpush1.bf16.msra.mxu0 %v14559_v29  ;;  %v14587_v23 = vld [vmem:[#allocation319_spill] sm:$0xff] }
0x12d0   :  { %10049 = vmatprep.subr.bf16.mxu1 %v14560_v34  ;;  %10121 = vmatprep.subr.bf16.mxu0 %v14021_v10  ;;  %v14588_v29 = vld [vmem:[#allocation347_spill] sm:$0xff]  ;;  %v14589_v34 = vld [vmem:[#allocation349_spill] sm:$0xff] }
0x12d3   :  { %10051 = vmatpush1.bf16.msra.mxu1 %v14561_v35  ;;  %10123 = vmatpush1.bf16.msra.mxu0 %v14562_v37  ;;  %v14590_v35 = vld [vmem:[#allocation320_spill] sm:$0xff]  ;;  %v14591_v37 = vld [vmem:[#allocation321_spill] sm:$0xff] }
0x12d4   :  { %10053 = vmatprep.subr.bf16.mxu1 %v14563_v27  ;;  %10124 = vmatprep.subr.bf16.mxu0 %v14021_v10  ;;  %v14592_v27 = vld [vmem:[#allocation351_spill] sm:$0xff] }
0x12d7   :  { %10055 = vmatpush1.bf16.msra.mxu1 %v12108_v32  ;;  %10126 = vmatpush1.bf16.msra.mxu0 %v12110_v18  ;;  %v14571_v32 = vld [vmem:[#allocation310_spill] sm:$0xff]  ;;  %v14572_v18 = vld [vmem:[#allocation311_spill] sm:$0xff] }
0x12d8   :  { %10057 = vmatprep.subr.bf16.mxu1 %v14564_v44  ;;  %10127 = vmatprep.subr.bf16.mxu0 %v14021_v10  ;;  %v14593_v44 = vld [vmem:[#allocation353_spill] sm:$0xff] }
0x12db   :  { %10059 = vmatpush1.bf16.msra.mxu1 %v14565_v50  ;;  %10129 = vmatpush1.bf16.msra.mxu0 %v14566_v40  ;;  %v14594_v50 = vld [vmem:[#allocation322_spill] sm:$0xff]  ;;  %v14595_v40 = vld [vmem:[#allocation323_spill] sm:$0xff] }
0x12dc   :  { %10061 = vmatprep.subr.bf16.mxu1 %v14567_v4  ;;  %10130 = vmatprep.subr.bf16.mxu0 %v14021_v10  ;;  %v14596_v4 = vld [vmem:[#allocation355_spill] sm:$0xff] }
0x12df   :  { %10063 = vmatpush1.bf16.msra.mxu1 %v14568_v24  ;;  %10132 = vmatpush1.bf16.msra.mxu0 %v14569_v5  ;;  %v14597_v24 = vld [vmem:[#allocation357_spill] sm:$0xff]  ;;  %v14598_v5 = vld [vmem:[#allocation324_spill] sm:$0xff] }
0x12e0   :  { %10065 = vmatprep.subr.bf16.mxu1 %v14570_v6  ;;  %10133 = vmatprep.subr.bf16.mxu0 %v14021_v10  ;;  %v14599_v6 = vld [vmem:[#allocation325_spill] sm:$0xff] }
0x12e3   :  { %10067 = vmatpush1.bf16.msra.mxu1 %v14571_v32  ;;  %10135 = vmatpush1.bf16.msra.mxu0 %v14572_v18  ;;  %v14600_v32 = vld [vmem:[#allocation359_spill] sm:$0xff]  ;;  %v14601_v18 = vld [vmem:[#allocation361_spill] sm:$0xff] }
0x12e6   :  { %6199 = vmatmul.mubr.f32.vlgmr.msra.gmra.mrb[50].mxu1 %v6055_v43  ;;  %6340 = vmatmul.mubr.f32.vlgmr.msra.gmra.mrb[30].mxu0 %v6055_v43 }
0x12e7   :  { %6453 = vmatprep.mubr.f32.mxu0 %v13938_v54  ;;  %7023 = vmatprep.mubr.f32.mxu1 %v13938_v54 }
0x1389   :  { %v8047_v38 = vpop.f32.mrb[42].mxu0 }
0x138a   :  { %v8048_v30 = vpop.f32.mrb[43].mxu0 }
0x138b   :  { %v8049_v12 = vadd.f32 %v8048_v30, %v8047_v38  ;;  %v14602_v38 = vld [vmem:[#allocation326_spill] sm:$0xff] }
0x138c   :  { %v14603_v30 = vld [vmem:[#allocation362_spill] sm:$0xff] }
0x138d   :  { %v10322_v11 = vadd.f32 %v13318_v1, %v8049_v12 }
0x13b9   :  { %v6200_v61 = vpop.f32.mrb[50].mxu1  ;;  %v6341_v47 = vpop.f32.mrb[30].mxu0 }
0x13ba   :  { %v10318_v21 = vadd.f32 %v6200_v61, %v12154_v9  ;;  %v10323_v45 = vadd.f32 %v10322_v11, %v6341_v47  ;;  %v6202_v17 = vpop.f32.mrb[51].mxu1  ;;  %v6343_v15 = vpop.f32.mrb[31].mxu0  ;;  %v7391_v9 = vld [vmem:[#allocation16] sm:$0x1] }
0x13bb   :  { %v10319_v22 = vadd.f32 %v6202_v17, %v12159_v49  ;;  %v13377_v1 = vadd.f32 %v7391_v9, %v12908_v28  ;;  %v14609_v9 = vld [vmem:[#allocation336_spill] sm:$0xff] }
0x13bc   :  { %v6350_v26 = vmax.f32 %v10323_v45, 0.0  ;;  %v6348_v31 = vmax.f32 %v10318_v21, 0.0 }
0x13bd   :  { %v6349_v33 = vmax.f32 %v10319_v22, 0.0  ;;  %v7394_v49 = vsel %vm7393_vm11, %v13377_v1, -inf  ;;  %v14604_v22 = vld [vmem:[#allocation331_spill] sm:$0xff] }
0x13be   :  { %v6356_v39 = vrot.slane %v6350_v26, 1  ;;  %v6354_v52 = vrot.slane %v6348_v31, 1 }
0x13bf   :  { %v6355_v41 = vrot.slane %v6349_v33, 1 }
0x13c0   :  { %v6362_v46 = vmax.f32 %v6350_v26, %v6356_v39  ;;  %v6360_v0 = vmax.f32 %v6348_v31, %v6354_v52  ;;  %v14607_v52 = vld [vmem:[#allocation334_spill] sm:$0xff] }
0x13c1   :  { %v6361_v56 = vmax.f32 %v6349_v33, %v6355_v41  ;;  %v14605_v41 = vld [vmem:[#allocation332_spill] sm:$0xff] }
0x13c2   :  { %6370 = vrot.lane.b32.xlu0 %v6362_v46, %s10732_s22 }
0x13c3   :  { %6368 = vrot.lane.b32.xlu1 %v6361_v56, %s10732_s22 }
0x13c7   :  { %6366 = vrot.lane.b32.xlu1 %v6360_v0, %s10732_s22  ;;  %s10678_s22 = scalar_lea.vmem %s7427_s1, 32 }
0x13c8   :  { %p10679_p2 = scmp.ne.s32.totalorder %s7427_s1, %s10678_s22  ;;  %p10684_p4 = scmp.lt.s32.totalorder %s10678_s22, %s10678_s22 }
0x13ca   :  { %p10685_p5 = por %p10684_p4, %p10683_p3 }
0x13cc   :  { %p10686_p6 = pnand %p10685_p5, %p10679_p2 }
0x13e1   :  { %7395 = vmax.xlane.f32.xlu0 %v7394_v49  ;;  %v14611_v49 = vld [vmem:[#allocation338_spill] sm:$0xff] }
0x1434   :  { %v6371_v60 = vpop.permute.xlu0 %6370 }
0x1435   :  { %v6369_v42 = vpop.permute.xlu1 %6368  ;;  %v13391_v13 = vmax.f32 %v6362_v46, %v6371_v60  ;;  %v14606_v46 = vld [vmem:[#allocation333_spill] sm:$0xff] }
0x1436   :  { %v6373_v2 = vsel %vm1505_vm7, %v6369_v42, %v6371_v60  ;;  %v14612_v60 = vld [vmem:[#allocation339_spill] sm:$0xff] }
0x1437   :  { %v13382_v7 = vmax.f32 %v6361_v56, %v6373_v2  ;;  %v10478_v56 = vld [vmem:[#allocation13 + $0x2] sm:$0x3] }
0x1438   :  { %v14614_v2 = vld [vmem:[#allocation342_spill] sm:$0xff] }
0x1439   :  { %7628 = vmatprep.subr.msk.mxu0 %vm3056_vm8, %v13382_v7  ;;  %7640 = vmatprep.subr.msk.mxu1 %vm3056_vm8, %v13382_v7  ;;  %v6367_v43 = vpop.permute.xlu1 %6366 }
0x143a   :  { %v6372_v28 = vsel %vm1505_vm7, %v6367_v43, %v6369_v42  ;;  %v14613_v42 = vld [vmem:[#allocation340_spill] sm:$0xff]  ;;  %v14616_v43 = vld [vmem:[#allocation346_spill] sm:$0xff] }
0x143b   :  { %v13389_v53 = vmax.f32 %v6360_v0, %v6372_v28  ;;  %v14608_v0 = vld [vmem:[#allocation335_spill] sm:$0xff]  ;;  %v14617_v28 = vld [vmem:[#allocation348_spill] sm:$0xff] }
0x143d   :  { %7629 = vmatpush1.msk.msra.mxu0 %vm3056_vm8, %v13389_v53  ;;  %7641 = vmatpush1.msk.msra.mxu1 %vm3056_vm8, %v13389_v53 }
0x143e   :  { %7630 = vmatmul.mubr.msk.f32.vlgmr.msra.gmra.mrb[44].mxu0 %vm3052_vm9, %v10476_v57  ;;  %8382 = vmatprep.subr.mxu0 %v13938_v54 }
0x143f   :  { %8430 = vmatprep.subr.mxu1 %v13938_v54  ;;  %8383 = vmatpush3.msk.msra.mxu0 %vm3056_vm8, %v13391_v13 }
0x1440   :  { %7642 = vmatmul.mubr.msk.f32.vlgmr.msra.gmra.mrb[52].mxu1 %vm3052_vm9, %v10477_v55  ;;  %8384 = vmatprep.mubr.msk.f32.mxu0 %vm10733_vm10, %v13938_v54 }
0x1441   :  { %8431 = vmatpush3.msk.msra.mxu1 %vm3056_vm8, %v13391_v13  ;;  %10137 = vmatprep.subr.bf16.mxu0 %v12194_v62  ;;  %v14579_v62 = vld [vmem:[#allocation315_spill] sm:$0xff] }
0x1442   :  { %8385 = vmatmul.mubr.msk.f32.vlgmr.msra.gmra.mrb[46].mxu0 %vm3052_vm9, %v10476_v57  ;;  %8432 = vmatprep.mubr.msk.f32.mxu1 %vm10733_vm10, %v13938_v54  ;;  %v14620_v57 = vld [vmem:[#allocation354_spill] sm:$0xff] }
0x1443   :  { %10139 = vmatpush3.bf16.msra.mxu0 %v14573_v14  ;;  %10225 = vmatprep.subr.bf16.mxu1 %v14574_v16  ;;  %v14622_v14 = vld [vmem:[#allocation358_spill] sm:$0xff]  ;;  %v14623_v16 = vld [vmem:[#allocation360_spill] sm:$0xff] }
0x1444   :  { %10141 = vmatprep.subr.bf16.mxu0 %v14575_v20  ;;  %8433 = vmatmul.mubr.msk.f32.vlgmr.msra.gmra.mrb[54].mxu1 %vm3052_vm9, %v10477_v55  ;;  %v14621_v55 = vld [vmem:[#allocation356_spill] sm:$0xff] }
0x1445   :  { %10227 = vmatpush3.bf16.msra.mxu1 %v14576_v3 }
0x1446   :  { %10229 = vmatprep.subr.bf16.mxu1 %v14577_v58  ;;  %v14624_v58 = vld [vmem:[#allocation372_spill] sm:$0xff] }
0x1447   :  { %10143 = vmatpush3.bf16.msra.mxu0 %v14578_v25  ;;  %v14625_v25 = vld [vmem:[#allocation374_spill] sm:$0xff] }
0x1448   :  { %10145 = vmatprep.subr.bf16.mxu0 %v14579_v62  ;;  %v14626_v62 = vld [vmem:[#allocation376_spill] sm:$0xff] }
0x1449   :  { %10231 = vmatpush3.bf16.msra.mxu1 %v14580_v36  ;;  %v14627_v36 = vld [vmem:[#allocation378_spill] sm:$0xff] }
0x144a   :  { %10233 = vmatprep.subr.bf16.mxu1 %v14581_v48 }
0x144b   :  { %10147 = vmatpush3.bf16.msra.mxu0 %v14582_v51 }
0x144c   :  { %10149 = vmatprep.subr.bf16.mxu0 %v14583_v59 }
0x144d   :  { %10235 = vmatpush3.bf16.msra.mxu1 %v14584_v63 }
0x144e   :  { %10237 = vmatprep.subr.bf16.mxu1 %v14585_v8 }
0x144f   :  { %10151 = vmatpush3.bf16.msra.mxu0 %v14586_v19 }
0x1450   :  { %10153 = vmatprep.subr.bf16.mxu0 %v14587_v23 }
0x1451   :  { %10239 = vmatpush3.bf16.msra.mxu1 %v14588_v29  ;;  %v14628_v29 = vld [vmem:[#allocation363_spill] sm:$0xff] }
0x1452   :  { %10241 = vmatprep.subr.bf16.mxu1 %v14589_v34 }
0x1453   :  { %10155 = vmatpush3.bf16.msra.mxu0 %v14590_v35 }
0x1454   :  { %10157 = vmatprep.subr.bf16.mxu0 %v14591_v37  ;;  %v14629_v37 = vld [vmem:[#allocation364_spill] sm:$0xff] }
0x1455   :  { %10243 = vmatpush3.bf16.msra.mxu1 %v14592_v27  ;;  %v14630_v27 = vld [vmem:[#allocation365_spill] sm:$0xff] }
0x1456   :  { %10245 = vmatprep.subr.bf16.mxu1 %v14593_v44  ;;  %v14631_v44 = vld [vmem:[#allocation366_spill] sm:$0xff] }
0x1457   :  { %10159 = vmatpush3.bf16.msra.mxu0 %v14594_v50  ;;  %v14632_v50 = vld [vmem:[#allocation367_spill] sm:$0xff] }
0x1458   :  { %10161 = vmatprep.subr.bf16.mxu0 %v14595_v40  ;;  %v14633_v40 = vld [vmem:[#allocation368_spill] sm:$0xff] }
0x1459   :  { %10247 = vmatpush3.bf16.msra.mxu1 %v14596_v4  ;;  %v14634_v4 = vld [vmem:[#allocation369_spill] sm:$0xff] }
0x145a   :  { %10249 = vmatprep.subr.bf16.mxu1 %v14597_v24  ;;  %v14635_v24 = vld [vmem:[#allocation370_spill] sm:$0xff] }
0x145b   :  { %10163 = vmatpush3.bf16.msra.mxu0 %v14598_v5  ;;  %v14636_v5 = vld [vmem:[#allocation371_spill] sm:$0xff] }
0x145c   :  { %10165 = vmatprep.subr.bf16.mxu0 %v14599_v6  ;;  %v14637_v6 = vld [vmem:[#allocation373_spill] sm:$0xff] }
0x145d   :  { %10251 = vmatpush3.bf16.msra.mxu1 %v14600_v32  ;;  %v14638_v32 = vld [vmem:[#allocation375_spill] sm:$0xff] }
0x145e   :  { %10253 = vmatprep.subr.bf16.mxu1 %v14601_v18  ;;  %v14639_v18 = vld [vmem:[#allocation377_spill] sm:$0xff] }
0x145f   :  { %10167 = vmatpush3.bf16.msra.mxu0 %v14602_v38 }
0x1460   :  { %10168 = vmatprep.subr.bf16.mxu0 %v14021_v10 }
0x1461   :  { %10255 = vmatpush3.bf16.msra.mxu1 %v14603_v30 }
0x1462   :  { %10268 = vmatprep.subr.bf16.mxu1 %v14021_v10 }
0x146e   :  { %v7396_v12 = vpop.xlane.xlu0 %7395 }
0x146f   :  { %v7397_v11 = vsub.f32 %v13377_v1, %v7396_v12  ;;  %v14610_v1 = vld [vmem:[#allocation337_spill] sm:$0xff] }
0x1471   :  { %v7398_v61 = vmul.f32 1.442695, %v7397_v11 }
0x1473   :  { %10459 = vpow2.f32 %v7398_v61 }
0x147d   :  { %v10460_v47 = vpop.eup %10459 }
0x147e   :  { %v7400_v21 = vsel %vm7393_vm11, %v10460_v47, 0.0 }
0x147f   :  { %7401 = vadd.xlane.f32.xlu0 %v7400_v21 }
0x150c   :  { %v7402_v45 = vpop.xlane.xlu0 %7401 }
0x150d   :  { %10461 = vrcp.f32 %v7402_v45 }
0x1511   :  { %v6455_v17 = vpop.f32.mrb[44].mxu0 }
0x1512   :  { %v6457_v15 = vpop.f32.mrb[45].mxu0 }
0x1513   :  { %6597 = vmatprep.mubr.f32.mxu0 %v6457_v15  ;;  %v7025_v20 = vpop.f32.mrb[52].mxu1 }
0x1514   :  { %6598 = vmatmul.mubr.f32.vlgmr.msra.gmra.mrb[48].mxu0 %v6455_v17  ;;  %v7027_v3 = vpop.f32.mrb[53].mxu1 }
0x1515   :  { %10170 = vmatpush3.bf16.msra.mxu0 %v14604_v22  ;;  %v6526_v26 = vpop.f32.mrb[46].mxu0  ;;  %8403 = vmatprep.mubr.msk.f32.mxu0 %vm10733_vm10, %v13938_v54 }
0x1516   :  { %10171 = vmatprep.subr.bf16.mxu0 %v14021_v10  ;;  %v8386_v31 = vpop.f32.mrb[47].mxu0  ;;  %7167 = vmatprep.mubr.f32.mxu1 %v7027_v3 }
0x1517   :  { %v10462_v33 = vpop.eup %10461  ;;  %7168 = vmatmul.mubr.f32.vlgmr.msra.gmra.mrb[56].mxu1 %v7025_v20  ;;  %v7096_v48 = vpop.f32.mrb[54].mxu1 }
0x1518   :  { %v7404_v39 = vmul.f32 %v10462_v33, %v10460_v47  ;;  %10270 = vmatpush3.bf16.msra.mxu1 %v14624_v58  ;;  %8470 = vmatprep.mubr.msk.f32.mxu1 %vm10733_vm10, %v13938_v54  ;;  %v8434_v51 = vpop.f32.mrb[55].mxu1  ;;  %v10479_v47 = vld [vmem:[#allocation14] ss:$0 sm:$0xff] }
0x1519   :  { %10173 = vmatpush3.bf16.msra.mxu0 %v14605_v41  ;;  %10271 = vmatprep.subr.bf16.mxu1 %v14021_v10 }
0x151a   :  { %10174 = vmatprep.subr.bf16.mxu0 %v14021_v10  ;;  %7405 = vst.msk [vmem:[#allocation17] sm:$0x1] %vm7393_vm11, %v7404_v39 }
0x151c   :  { %10273 = vmatpush3.bf16.msra.mxu1 %v14625_v25 }
0x151d   :  { %10176 = vmatpush3.bf16.msra.mxu0 %v14606_v46  ;;  %10274 = vmatprep.subr.bf16.mxu1 %v14021_v10  ;;  %v7406_v46 = vld [vmem:[#allocation16] sm:$0x1] }
0x151e   :  { %10177 = vmatprep.subr.bf16.mxu0 %v14021_v10 }
0x1520   :  { %10276 = vmatpush3.bf16.msra.mxu1 %v14626_v62 }
0x1521   :  { %10179 = vmatpush3.bf16.msra.mxu0 %v14607_v52  ;;  %10277 = vmatprep.subr.bf16.mxu1 %v14021_v10 }
0x1522   :  { %7634 = vmatprep.subr.msk.mxu0 %vm3056_vm8, %v13382_v7  ;;  %v14615_v7 = vld [vmem:[#allocation344_spill] sm:$0xff] }
0x1524   :  { %8404 = vmatmul.mubr.msk.f32.vlgmr.msra.gmra.mrb[50].mxu0 %vm1505_vm7, %v6526_v26  ;;  %10279 = vmatpush3.bf16.msra.mxu1 %v14627_v36 }
0x1525   :  { %7635 = vmatpush1.msk.msra.mxu0 %vm3056_vm8, %v13389_v53  ;;  %6738 = vmatprep.mubr.f32.mxu0 %v13938_v54  ;;  %v14618_v53 = vld [vmem:[#allocation350_spill] sm:$0xff] }
0x1526   :  { %8406 = vmatprep.subr.mxu0 %v13938_v54 }
0x1528   :  { %7636 = vmatmul.mubr.msk.f32.vlgmr.msra.gmra.mrb[52].mxu0 %vm3052_vm9, %v10478_v56 }
0x1529   :  { %8407 = vmatpush3.msk.msra.mxu0 %vm3056_vm8, %v13391_v13  ;;  %8408 = vmatprep.mubr.msk.f32.mxu0 %vm10733_vm10, %v13938_v54  ;;  %v14619_v13 = vld [vmem:[#allocation352_spill] sm:$0xff] }
0x152a   :  { %10181 = vmatprep.subr.bf16.mxu0 %v14608_v0 }
0x152c   :  { %8409 = vmatmul.mubr.msk.f32.vlgmr.msra.gmra.mrb[54].mxu0 %vm3052_vm9, %v10478_v56 }
0x152d   :  { %10183 = vmatpush3.bf16.msra.mxu0 %v14609_v9 }
0x152e   :  { %10185 = vmatprep.subr.bf16.mxu0 %v14610_v1 }
0x1531   :  { %10187 = vmatpush3.bf16.msra.mxu0 %v14611_v49 }
0x1532   :  { %10189 = vmatprep.subr.bf16.mxu0 %v14612_v60 }
0x1535   :  { %10191 = vmatpush3.bf16.msra.mxu0 %v14613_v42 }
0x1536   :  { %10193 = vmatprep.subr.bf16.mxu0 %v14614_v2 }
0x1539   :  { %10195 = vmatpush3.bf16.msra.mxu0 %v14615_v7 }
0x153a   :  { %10197 = vmatprep.subr.bf16.mxu0 %v14616_v43 }
0x153d   :  { %10199 = vmatpush3.bf16.msra.mxu0 %v14617_v28 }
0x153e   :  { %10201 = vmatprep.subr.bf16.mxu0 %v14618_v53 }
0x1541   :  { %10203 = vmatpush3.bf16.msra.mxu0 %v14619_v13 }
0x1542   :  { %10205 = vmatprep.subr.bf16.mxu0 %v14620_v57 }
0x1545   :  { %10207 = vmatpush3.bf16.msra.mxu0 %v14621_v55 }
0x1546   :  { %10209 = vmatprep.subr.bf16.mxu0 %v14622_v14 }
0x1549   :  { %10211 = vmatpush3.bf16.msra.mxu0 %v14623_v16 }
0x154a   :  { %10212 = vmatprep.subr.bf16.mxu0 %v14021_v10 }
0x15e7   :  { %v8084_v59 = vpop.f32.mrb[48].mxu0 }
0x15e8   :  { %v8085_v63 = vpop.f32.mrb[49].mxu0 }
0x15e9   :  { %v8086_v8 = vadd.f32 %v8085_v63, %v8084_v59 }
0x15ea   :  { %v8176_v38 = vpop.f32.mrb[56].mxu1 }
0x15eb   :  { %v8177_v30 = vpop.f32.mrb[57].mxu1  ;;  %v10324_v21 = vadd.f32 %v10479_v47, %v8086_v8 }
0x15ec   :  { %v8178_v12 = vadd.f32 %v8177_v30, %v8176_v38 }
0x15fb   :  { %v6740_v19 = vpop.f32.mrb[52].mxu0 }
0x15fc   :  { %v6742_v23 = vpop.f32.mrb[53].mxu0 }
0x15fd   :  { %6882 = vmatprep.mubr.f32.mxu0 %v6742_v23 }
0x15fe   :  { %6883 = vmatmul.mubr.f32.vlgmr.msra.gmra.mrb[56].mxu0 %v6740_v19 }
0x15ff   :  { %10214 = vmatpush3.bf16.msra.mxu0 %v14628_v29  ;;  %v6811_v34 = vpop.f32.mrb[54].mxu0  ;;  %8427 = vmatprep.mubr.msk.f32.mxu0 %vm10733_vm10, %v13938_v54 }
0x1600   :  { %10215 = vmatprep.subr.bf16.mxu0 %v14021_v10  ;;  %v8410_v35 = vpop.f32.mrb[55].mxu0 }
0x1603   :  { %10217 = vmatpush3.bf16.msra.mxu0 %v14629_v37 }
0x1604   :  { %10218 = vmatprep.subr.bf16.mxu0 %v14021_v10 }
0x1607   :  { %10220 = vmatpush3.bf16.msra.mxu0 %v14630_v27 }
0x1608   :  { %10221 = vmatprep.subr.bf16.mxu0 %v14021_v10 }
0x160b   :  { %10223 = vmatpush3.bf16.msra.mxu0 %v14631_v44 }
0x160c   :  { %10256 = vmatprep.subr.bf16.mxu0 %v14021_v10 }
0x160e   :  { %8428 = vmatmul.mubr.msk.f32.vlgmr.msra.gmra.mrb[50].mxu0 %vm1505_vm7, %v6811_v34 }
0x160f   :  { %10258 = vmatpush3.bf16.msra.mxu0 %v14632_v50  ;;  %8451 = vmatprep.mubr.msk.f32.mxu0 %vm10733_vm10, %v13938_v54 }
0x1610   :  { %10259 = vmatprep.subr.bf16.mxu0 %v14021_v10 }
0x1613   :  { %10261 = vmatpush3.bf16.msra.mxu0 %v14633_v40 }
0x1614   :  { %10262 = vmatprep.subr.bf16.mxu0 %v14021_v10 }
0x1617   :  { %10264 = vmatpush3.bf16.msra.mxu0 %v14634_v4 }
0x1618   :  { %10265 = vmatprep.subr.bf16.mxu0 %v14021_v10 }
0x161b   :  { %10267 = vmatpush3.bf16.msra.mxu0 %v14635_v24 }
0x161c   :  { %10280 = vmatprep.subr.bf16.mxu0 %v14021_v10 }
0x161e   :  { %8452 = vmatmul.mubr.msk.f32.vlgmr.msra.gmra.mrb[50].mxu0 %vm1505_vm7, %v7096_v48 }
0x161f   :  { %10282 = vmatpush3.bf16.msra.mxu0 %v14636_v5  ;;  %8489 = vmatprep.mubr.msk.f32.mxu0 %vm10733_vm10, %v13938_v54 }
0x1620   :  { %10283 = vmatprep.subr.bf16.mxu0 %v14021_v10 }
0x1623   :  { %10285 = vmatpush3.bf16.msra.mxu0 %v14637_v6 }
0x1624   :  { %10286 = vmatprep.subr.bf16.mxu0 %v14021_v10 }
0x1627   :  { %10288 = vmatpush3.bf16.msra.mxu0 %v14638_v32 }
0x1628   :  { %10289 = vmatprep.subr.bf16.mxu0 %v14021_v10 }
0x162b   :  { %10291 = vmatpush3.bf16.msra.mxu0 %v14639_v18 }
0x16d1   :  { %v8130_v11 = vpop.f32.mrb[56].mxu0 }
0x16d2   :  { %v8131_v61 = vpop.f32.mrb[57].mxu0 }
0x16d3   :  { %v8132_v54 = vadd.f32 %v8131_v61, %v8130_v11 }
0x16d5   :  { %v10325_v45 = vadd.f32 %v10324_v21, %v8132_v54 }
0x16d7   :  { %v10326_v17 = vadd.f32 %v10325_v45, %v8178_v12 }
0x16f1   :  { %v7239_v15 = vpop.f32.mrb[50].mxu0 }
0x16f2   :  { %v10327_v22 = vadd.f32 %v10326_v17, %v7239_v15  ;;  %v8453_v26 = vpop.f32.mrb[51].mxu0 }
0x16f4   :  { %v7244_v31 = vmax.f32 %v10327_v22, 0.0 }
0x16f6   :  { %v7246_v33 = vrot.slane %v7244_v31, 1  ;;  %8490 = vmatmul.mubr.msk.f32.vlgmr.msra.gmra.mrb[58].mxu0 %vm1505_vm7, %v7244_v31 }
0x16f8   :  { %8471 = vmatmul.mubr.msk.f32.vlgmr.msra.gmra.mrb[58].mxu1 %vm1505_vm7, %v7246_v33 }
0x17c9   :  { %v7387_v10 = vpop.f32.mrb[58].mxu0 }
0x17ca   :  { %v8491_v39 = vpop.f32.mrb[59].mxu0 }
0x17cb   :  { %v7315_v41 = vpop.f32.mrb[58].mxu1 }
0x17cc   :  { %v7388_v52 = vadd.f32 %v7387_v10, %v7315_v41  ;;  %v8472_v56 = vpop.f32.mrb[59].mxu1 }
0x17ce   :  { %v7407_v0 = vadd.f32 %v7406_v46, %v7388_v52 }
0x17d0   :  { %v7408_v9 = vsel %vm7393_vm11, %v7407_v0, -inf }
0x17d1   :  { %7409 = vmax.xlane.f32.xlu1 %v7408_v9 }
0x185e   :  { %v7410_v1 = vpop.xlane.xlu1 %7409 }
0x185f   :  { %v7411_v49 = vsub.f32 %v7407_v0, %v7410_v1 }
0x1861   :  { %v7412_v60 = vmul.f32 1.442695, %v7411_v49 }
0x1863   :  { %10463 = vpow2.f32 %v7412_v60 }
0x186d   :  { %v10464_v42 = vpop.eup %10463 }
0x186e   :  { %v7414_v2 = vsel %vm7393_vm11, %v10464_v42, 0.0 }
0x186f   :  { %7415 = vadd.xlane.f32.xlu0 %v7414_v2 }
0x18fc   :  { %v7416_v7 = vpop.xlane.xlu0 %7415 }
0x18fd   :  { %10465 = vrcp.f32 %v7416_v7 }
0x1907   :  { %v10466_v43 = vpop.eup %10465 }
0x1908   :  { %v7418_v28 = vmul.f32 %v10466_v43, %v10464_v42 }
0x190a   :  { %7419 = vst.msk [vmem:[#allocation17 + $0x1] sm:$0x1] %vm7393_vm11, %v7418_v28 }
0x190b   :  { %10689 = shalt.err (!%p10686_p6)
}
0x190c   :  { %s10690_s27 = scalar_lea.hbm %s13556_s12, 32 }
0x190d   :  { %p10691_p7 = scmp.ne.s32.totalorder %s13556_s12, %s10690_s27  ;;  %p10694_p8 = scmp.lt.u32.totalorder %s10690_s27, %s13556_s12 }
0x190f   :  { %p10696_p9 = pnand %p10694_p8, %p10691_p7 }
0x1911   :  { %10699 = shalt.err (!%p10696_p9)
}
0x1912   :  { %7429 = dma.vmem_to_hbm [thread:$0]  %s7427_s1, 32, %s13556_s12, [#allocation4]  }
0x1913   :  { %10710 = dma.done.wait [#allocation4], 32  }
0x1914   :  { %10711 = vsyncadd [#allocation4], 4294967264 }
0x1915   :  { %7433 = vsyncpa [#allocation3], 1 }
0x1916   :  { %7434 = vsyncpa [#allocation6], 1 }
0x1917   :  { %7435 = vsyncpa [#allocation9], 1 }
0x1918   :  { %7436 = vsyncpa [#allocation12], 1 }
0x1919   :  { %7437 = vsyncpa [#allocation15], 1 }
0x191a   :  { %7438 = vsyncpa [#allocation4], 1 }

</bundles_post_ra>
